<compile_context>
chip_gen: v7x
topology: tpu7x:2x2x1
jax: 0.10.0
libtpu: 0.0.40
codegen_flags: <defaults>
</compile_context>

<pallas_src>
import functools

import jax
import jax.numpy as jnp
from jax.experimental import pallas as pl
from jax.experimental.pallas import tpu as pltpu


def _round_up(v, m):
    return ((v + m - 1) // m) * m


# ----------------------------------------------------------------------------
# Fused Pallas kernel (one batch element per grid step)
# ----------------------------------------------------------------------------
def _fused_coupling_kernel(
    cpad_ref, xpad_ref,
    wc1_ref, bc1_ref, wc2_ref, bc2_ref,
    wh1_ref, bh1_ref, wh2_ref, bh2_ref, wh3_ref, bh3_ref,
    out_ref,
    c1_pad, hin_pad, h1_pad, h2_pad,
    *, half, clamp, neg_slope, cin_pad):
    """Whole AffineCoupling forward (rev=False) for one batch element.

    cpad_ref : (H+2, W+2, CP)  spatially padded conditional input (ch 0 real)
    xpad_ref : (H+2, W+2, C)   spatially padded x (NHWC)
    w*_ref   : (9*CP, Cout)    tap-major conv weights (Cin zero-padded to CP)
    b*_ref   : (1, Cout)       biases
    out_ref  : (H, W, C)       NHWC output: [..., :half]=x2*exp(s)+t, [..., half:]=x1
    *_pad    : (H+2, W+2, CP)  VMEM scratch holding padded intermediates
    """
    Hp, Wp, _ = xpad_ref.shape
    H, W = Hp - 2, Wp - 2
    P = H * W
    CP = cin_pad

    def conv3x3(src_ref, w_ref, b_ref, act):
        # 3x3 / stride-1 / pad-1 conv: 9 shifted (P, CP) x (CP, Cout) matmuls.
        cout = w_ref.shape[-1]
        acc = jnp.zeros((P, cout), jnp.float32)
        k = 0
        for ky in range(3):
            for kx in range(3):
                tap = src_ref[ky:ky + H, kx:kx + W, :].reshape(P, CP)
                acc = acc + jnp.dot(tap, w_ref[k * CP:(k + 1) * CP, :],
                                    preferred_element_type=jnp.float32)
                k += 1
        acc = acc + b_ref[0, :]
        if act:  # fused LeakyReLU
            acc = jnp.where(acc >= 0.0, acc, neg_slope * acc)
        return acc                                            # (P, cout) f32

    def store_padded_interior(dst_ref, val, c0=0):
        c = val.shape[-1]
        dst_ref[1:H + 1, 1:W + 1, c0:c0 + c] = val.reshape(H, W, c)

    # Zero scratch: conv zero-padding border and unused channel lanes.
    c1_pad[...] = jnp.zeros_like(c1_pad)
    hin_pad[...] = jnp.zeros_like(hin_pad)
    h1_pad[...] = jnp.zeros_like(h1_pad)
    h2_pad[...] = jnp.zeros_like(h2_pad)

    # ConditionalBlock C (scale_level == 0): conv -> LeakyReLU(0.2) -> conv
    c1 = conv3x3(cpad_ref, wc1_ref, bc1_ref, act=True)        # (P, feature//2)
    store_padded_interior(c1_pad, c1)
    cc = conv3x3(c1_pad, wc2_ref, bc2_ref, act=False)         # (P, half)

    # DenseBlock H on cat(x1, C(c)): build the padded, concatenated input
    # directly in VMEM (x1 borders are already zero in xpad_ref).
    hin_pad[:, :, :half] = xpad_ref[:, :, :half]
    store_padded_interior(hin_pad, cc, c0=half)

    h1 = conv3x3(hin_pad, wh1_ref, bh1_ref, act=True)         # (P, feature)
    store_padded_interior(h1_pad, h1)
    h2 = conv3x3(h1_pad, wh2_ref, bh2_ref, act=True)          # (P, feature)
    store_padded_interior(h2_pad, h2)
    st = conv3x3(h2_pad, wh3_ref, bh3_ref, act=False)         # (P, 2*half)

    # Coupling: s = clamp*(2*sigmoid(s_raw)-1) == clamp*tanh(0.5*s_raw)
    s_eff = clamp * jnp.tanh(0.5 * st[:, :half])
    t = st[:, half:]
    x1 = xpad_ref[1:H + 1, 1:W + 1, :half].reshape(P, half).astype(jnp.float32)
    x2 = xpad_ref[1:H + 1, 1:W + 1, half:].reshape(P, half).astype(jnp.float32)
    y2 = x2 * jnp.exp(s_eff) + t

    # Output = cat((y2, x1), channel)   (the PyTorch (y1, y2) swap)
    out_ref[:, :, :half] = y2.reshape(H, W, half).astype(out_ref.dtype)
    out_ref[:, :, half:] = x1.reshape(H, W, half).astype(out_ref.dtype)


# ----------------------------------------------------------------------------
# Wrapper
# ----------------------------------------------------------------------------
def _prep_weight(w_hwio, cin_pad):
    """(3,3,Cin,Cout) HWIO -> (9*cin_pad, Cout) tap-major, Cin zero-padded."""
    cin, cout = w_hwio.shape[2], w_hwio.shape[3]
    w = jnp.pad(w_hwio.astype(jnp.float32),
                ((0, 0), (0, 0), (0, cin_pad - cin), (0, 0)))
    return w.reshape(9 * cin_pad, cout)


def affine_coupling_forward(x_nchw, c_nchw, params, channel_num=4, feature=8,
                            clamp=1.0):
    """Forward pass (rev=False) of AffineCoupling with scale_level=0."""
    half = channel_num // 2
    B, C, H, W = x_nchw.shape
    assert C == channel_num
    CP = max(8, _round_up(max(channel_num, feature, feature // 2, 1), 8))
    Hp, Wp = H + 2, W + 2

    # NCHW -> NHWC once; spatial zero-pad once (single cheap passes).
    x = jnp.transpose(x_nchw, (0, 2, 3, 1)).astype(jnp.float32)
    c = jnp.transpose(c_nchw, (0, 2, 3, 1)).astype(jnp.float32)
    xpad = jnp.pad(x, ((0, 0), (1, 1), (1, 1), (0, 0)))
    cpad = jnp.pad(c, ((0, 0), (1, 1), (1, 1), (0, CP - c.shape[-1])))

    def prep_b(b):
        return b.astype(jnp.float32).reshape(1, -1)

    ws = [
        _prep_weight(params["C_w1"], CP), prep_b(params["C_b1"]),
        _prep_weight(params["C_w2"], CP), prep_b(params["C_b2"]),
        _prep_weight(params["H_w1"], CP), prep_b(params["H_b1"]),
        _prep_weight(params["H_w2"], CP), prep_b(params["H_b2"]),
        _prep_weight(params["H_w3"], CP), prep_b(params["H_b3"]),
    ]

    def full2d(shape):
        return pl.BlockSpec(shape, lambda b: (0, 0))

    in_specs = [
        pl.BlockSpec((None, Hp, Wp, CP), lambda b: (b, 0, 0, 0)),           # cpad
        pl.BlockSpec((None, Hp, Wp, channel_num), lambda b: (b, 0, 0, 0)),  # xpad
    ] + [full2d(w.shape) for w in ws]

    kernel = functools.partial(_fused_coupling_kernel, half=half, clamp=clamp,
                               neg_slope=0.2, cin_pad=CP)

    out_nhwc = pl.pallas_call(
        kernel,
        out_shape=jax.ShapeDtypeStruct((B, H, W, channel_num), jnp.float32),
        grid=(B,),
        in_specs=in_specs,
        out_specs=pl.BlockSpec((None, H, W, channel_num),
                               lambda b: (b, 0, 0, 0)),
        scratch_shapes=[
            pltpu.VMEM((Hp, Wp, CP), jnp.float32),   # c1_pad
            pltpu.VMEM((Hp, Wp, CP), jnp.float32),   # hin_pad
            pltpu.VMEM((Hp, Wp, CP), jnp.float32),   # h1_pad
            pltpu.VMEM((Hp, Wp, CP), jnp.float32),   # h2_pad
        ],
        compiler_params=pltpu.CompilerParams(
            dimension_semantics=("parallel",)),      # batch across v7x's 2 TCs
    )(cpad, xpad, *ws)

    return jnp.transpose(out_nhwc, (0, 3, 1, 2))     # back to NCHW


# ----------------------------------------------------------------------------
# Deterministic parameter init (matches nn.Conv2d default init distributions)
# ----------------------------------------------------------------------------
def init_params(key, channel_num=4, feature=8):
    half = channel_num // 2
    feat_c = feature // 2

    def conv_init(k, cin, cout):
        k1, k2 = jax.random.split(k)
        bound = 1.0 / (cin * 9) ** 0.5
        w = jax.random.uniform(k1, (3, 3, cin, cout), jnp.float32, -bound, bound)
        b = jax.random.uniform(k2, (cout,), jnp.float32, -bound, bound)
        return w, b

    ks = jax.random.split(key, 5)
    p = {}
    p["C_w1"], p["C_b1"] = conv_init(ks[0], 1, feat_c)             # Conv 1 -> feature//2
    p["C_w2"], p["C_b2"] = conv_init(ks[1], feat_c, half)          # Conv feature//2 -> cn//2
    p["H_w1"], p["H_b1"] = conv_init(ks[2], channel_num, feature)  # DenseBlock conv1
    p["H_w2"], p["H_b2"] = conv_init(ks[3], feature, feature)      # DenseBlock conv2
    p["H_w3"], p["H_b3"] = conv_init(ks[4], feature, channel_num)  # DenseBlock conv3
    return p


# ----------------------------------------------------------------------------
# Pure-JAX reference (for correctness check)
# ----------------------------------------------------------------------------
def reference_forward(x_nchw, c_nchw, params, channel_num=4, clamp=1.0):
    dn = ("NHWC", "HWIO", "NHWC")

    def conv(z, w, b):
        return jax.lax.conv_general_dilated(z, w, (1, 1), "SAME",
                                            dimension_numbers=dn) + b

    def lrelu(z):
        return jnp.where(z >= 0, z, 0.2 * z)

    half = channel_num // 2
    x = jnp.transpose(x_nchw, (0, 2, 3, 1)).astype(jnp.float32)
    c = jnp.transpose(c_nchw, (0, 2, 3, 1)).astype(jnp.float32)
    x1, x2 = x[..., :half], x[..., half:]
    cc = lrelu(conv(c, params["C_w1"], params["C_b1"]))
    cc = conv(cc, params["C_w2"], params["C_b2"])
    h = jnp.concatenate([x1, cc], axis=-1)
    h = lrelu(conv(h, params["H_w1"], params["H_b1"]))
    h = lrelu(conv(h, params["H_w2"], params["H_b2"]))
    st = conv(h, params["H_w3"], params["H_b3"])
    s, t = st[..., :half], st[..., half:]
    s = clamp * (2.0 * jax.nn.sigmoid(s) - 1.0)
    y2 = x2 * jnp.exp(s) + t
    out = jnp.concatenate([y2, x1], axis=-1)
    return jnp.transpose(out, (0, 3, 1, 2))


# ----------------------------------------------------------------------------
if __name__ == "__main__":
    # TODO(synk): rev=True branch and jacobian() are not implemented (forward
    # rev=False only, per the requested forward-pass semantics).
    channel_num, feature, clamp = 4, 8, 1.0
    B, H, W = 2, 16, 16

    key = jax.random.PRNGKey(0)
    kx, kc, kp = jax.random.split(key, 3)
    x = jax.random.normal(kx, (B, channel_num, H, W), jnp.float32)   # NCHW
    c = jax.random.normal(kc, (B, 1, H, W), jnp.float32)             # NCHW
    params = init_params(kp, channel_num=channel_num, feature=feature)

    out = affine_coupling_forward(x, c, params, channel_num=channel_num,
                                  feature=feature, clamp=clamp)
    out = jax.block_until_ready(out)

    ref = jax.block_until_ready(
        reference_forward(x, c, params, channel_num=channel_num, clamp=clamp))

    assert out.shape == (B, channel_num, H, W), out.shape
    assert jnp.allclose(out, ref, atol=1e-4, rtol=1e-4), \
        float(jnp.max(jnp.abs(out - ref)))

    print("KERNEL_OK")
</pallas_src>

<mosaic_0001>
module attributes {stable_mosaic.version = 11 : i64} {
  func.func @_fused_coupling_kernel(%arg0: i32, %arg1: memref<1x18x18x8xf32, #tpu.memory_space<vmem>>, %arg2: memref<1x18x18x4xf32, #tpu.memory_space<vmem>>, %arg3: memref<72x4xf32, #tpu.memory_space<vmem>>, %arg4: memref<1x4xf32, #tpu.memory_space<vmem>>, %arg5: memref<72x2xf32, #tpu.memory_space<vmem>>, %arg6: memref<1x2xf32, #tpu.memory_space<vmem>>, %arg7: memref<72x8xf32, #tpu.memory_space<vmem>>, %arg8: memref<1x8xf32, #tpu.memory_space<vmem>>, %arg9: memref<72x8xf32, #tpu.memory_space<vmem>>, %arg10: memref<1x8xf32, #tpu.memory_space<vmem>>, %arg11: memref<72x4xf32, #tpu.memory_space<vmem>>, %arg12: memref<1x4xf32, #tpu.memory_space<vmem>>, %arg13: memref<1x16x16x4xf32, #tpu.memory_space<vmem>>, %arg14: memref<18x18x8xf32, #tpu.memory_space<vmem>>, %arg15: memref<18x18x8xf32, #tpu.memory_space<vmem>>, %arg16: memref<18x18x8xf32, #tpu.memory_space<vmem>>, %arg17: memref<18x18x8xf32, #tpu.memory_space<vmem>>) attributes {dimension_semantics = [#tpu.dimension_semantics<parallel>], iteration_bounds = array<i64: 2>, scalar_prefetch = 0 : i64, scratch_operands = 4 : i64, tpu.core_type = #tpu.core_type<tc>, window_params = [{transform_indices = @transform_0, window_bounds = array<i64: 1, 18, 18, 8>}, {transform_indices = @transform_1, window_bounds = array<i64: 1, 18, 18, 4>}, {pipeline_mode = #tpu.pipeline_mode<synchronous>, transform_indices = @transform_2, window_bounds = array<i64: 72, 4>}, {pipeline_mode = #tpu.pipeline_mode<synchronous>, transform_indices = @transform_3, window_bounds = array<i64: 1, 4>}, {pipeline_mode = #tpu.pipeline_mode<synchronous>, transform_indices = @transform_4, window_bounds = array<i64: 72, 2>}, {pipeline_mode = #tpu.pipeline_mode<synchronous>, transform_indices = @transform_5, window_bounds = array<i64: 1, 2>}, {pipeline_mode = #tpu.pipeline_mode<synchronous>, transform_indices = @transform_6, window_bounds = array<i64: 72, 8>}, {pipeline_mode = #tpu.pipeline_mode<synchronous>, transform_indices = @transform_7, window_bounds = array<i64: 1, 8>}, {pipeline_mode = #tpu.pipeline_mode<synchronous>, transform_indices = @transform_8, window_bounds = array<i64: 72, 8>}, {pipeline_mode = #tpu.pipeline_mode<synchronous>, transform_indices = @transform_9, window_bounds = array<i64: 1, 8>}, {pipeline_mode = #tpu.pipeline_mode<synchronous>, transform_indices = @transform_10, window_bounds = array<i64: 72, 4>}, {pipeline_mode = #tpu.pipeline_mode<synchronous>, transform_indices = @transform_11, window_bounds = array<i64: 1, 4>}, {transform_indices = @transform_12, window_bounds = array<i64: 1, 16, 16, 4>}]} {
    %cst = arith.constant 0.000000e+00 : f32
    %0 = vector.broadcast %cst : f32 to vector<18x18x8xf32>
    %c0 = arith.constant 0 : index
    %c0_0 = arith.constant 0 : index
    %c0_1 = arith.constant 0 : index
    %1 = vector.load %arg14[%c0, %c0_0, %c0_1] : memref<18x18x8xf32, #tpu.memory_space<vmem>>, vector<18x18x8xf32>
    tpu.vector_store %arg14[%c0, %c0_0, %c0_1], %0 {strides = array<i32>} : memref<18x18x8xf32, #tpu.memory_space<vmem>>, vector<18x18x8xf32>,
    %cst_2 = arith.constant 0.000000e+00 : f32
    %2 = vector.broadcast %cst_2 : f32 to vector<18x18x8xf32>
    %c0_3 = arith.constant 0 : index
    %c0_4 = arith.constant 0 : index
    %c0_5 = arith.constant 0 : index
    %3 = vector.load %arg15[%c0_3, %c0_4, %c0_5] : memref<18x18x8xf32, #tpu.memory_space<vmem>>, vector<18x18x8xf32>
    tpu.vector_store %arg15[%c0_3, %c0_4, %c0_5], %2 {strides = array<i32>} : memref<18x18x8xf32, #tpu.memory_space<vmem>>, vector<18x18x8xf32>,
    %cst_6 = arith.constant 0.000000e+00 : f32
    %4 = vector.broadcast %cst_6 : f32 to vector<18x18x8xf32>
    %c0_7 = arith.constant 0 : index
    %c0_8 = arith.constant 0 : index
    %c0_9 = arith.constant 0 : index
    %5 = vector.load %arg16[%c0_7, %c0_8, %c0_9] : memref<18x18x8xf32, #tpu.memory_space<vmem>>, vector<18x18x8xf32>
    tpu.vector_store %arg16[%c0_7, %c0_8, %c0_9], %4 {strides = array<i32>} : memref<18x18x8xf32, #tpu.memory_space<vmem>>, vector<18x18x8xf32>,
    %cst_10 = arith.constant 0.000000e+00 : f32
    %6 = vector.broadcast %cst_10 : f32 to vector<18x18x8xf32>
    %c0_11 = arith.constant 0 : index
    %c0_12 = arith.constant 0 : index
    %c0_13 = arith.constant 0 : index
    %7 = vector.load %arg17[%c0_11, %c0_12, %c0_13] : memref<18x18x8xf32, #tpu.memory_space<vmem>>, vector<18x18x8xf32>
    tpu.vector_store %arg17[%c0_11, %c0_12, %c0_13], %6 {strides = array<i32>} : memref<18x18x8xf32, #tpu.memory_space<vmem>>, vector<18x18x8xf32>,
    %cst_14 = arith.constant 0.000000e+00 : f32
    %8 = vector.broadcast %cst_14 : f32 to vector<256x4xf32>
    %c0_15 = arith.constant 0 : index
    %c0_16 = arith.constant 0 : index
    %c0_17 = arith.constant 0 : index
    %c0_18 = arith.constant 0 : index
    %9 = vector.load %arg1[%c0_15, %c0_16, %c0_17, %c0_18] : memref<1x18x18x8xf32, #tpu.memory_space<vmem>>, vector<1x16x16x8xf32>
    %10 = vector.shape_cast %9 : vector<1x16x16x8xf32> to vector<16x16x8xf32>
    %11 = vector.shape_cast %10 : vector<16x16x8xf32> to vector<256x8xf32>
    %c0_19 = arith.constant 0 : index
    %c0_20 = arith.constant 0 : index
    %12 = vector.load %arg3[%c0_19, %c0_20] : memref<72x4xf32, #tpu.memory_space<vmem>>, vector<8x4xf32>
    %cst_21 = arith.constant dense<0.000000e+00> : vector<256x4xf32>
    %13 = tpu.matmul %11, %12, %cst_21 {dimension_numbers = #tpu.dot_dimension_numbers<[1], [0], [0], [1], [0, 0, 1, 1], [], []>} : vector<256x8xf32>, vector<8x4xf32>, vector<256x4xf32> -> vector<256x4xf32>
    %14 = arith.addf %8, %13 : vector<256x4xf32>
    %c0_22 = arith.constant 0 : index
    %c0_23 = arith.constant 0 : index
    %c1 = arith.constant 1 : index
    %c0_24 = arith.constant 0 : index
    %15 = vector.load %arg1[%c0_22, %c0_23, %c1, %c0_24] : memref<1x18x18x8xf32, #tpu.memory_space<vmem>>, vector<1x16x16x8xf32>
    %16 = vector.shape_cast %15 : vector<1x16x16x8xf32> to vector<16x16x8xf32>
    %17 = vector.shape_cast %16 : vector<16x16x8xf32> to vector<256x8xf32>
    %c8 = arith.constant 8 : index
    %c0_25 = arith.constant 0 : index
    %18 = vector.load %arg3[%c8, %c0_25] : memref<72x4xf32, #tpu.memory_space<vmem>>, vector<8x4xf32>
    %cst_26 = arith.constant dense<0.000000e+00> : vector<256x4xf32>
    %19 = tpu.matmul %17, %18, %cst_26 {dimension_numbers = #tpu.dot_dimension_numbers<[1], [0], [0], [1], [0, 0, 1, 1], [], []>} : vector<256x8xf32>, vector<8x4xf32>, vector<256x4xf32> -> vector<256x4xf32>
    %20 = arith.addf %14, %19 : vector<256x4xf32>
    %c0_27 = arith.constant 0 : index
    %c0_28 = arith.constant 0 : index
    %c2 = arith.constant 2 : index
    %c0_29 = arith.constant 0 : index
    %21 = vector.load %arg1[%c0_27, %c0_28, %c2, %c0_29] : memref<1x18x18x8xf32, #tpu.memory_space<vmem>>, vector<1x16x16x8xf32>
    %22 = vector.shape_cast %21 : vector<1x16x16x8xf32> to vector<16x16x8xf32>
    %23 = vector.shape_cast %22 : vector<16x16x8xf32> to vector<256x8xf32>
    %c16 = arith.constant 16 : index
    %c0_30 = arith.constant 0 : index
    %24 = vector.load %arg3[%c16, %c0_30] : memref<72x4xf32, #tpu.memory_space<vmem>>, vector<8x4xf32>
    %cst_31 = arith.constant dense<0.000000e+00> : vector<256x4xf32>
    %25 = tpu.matmul %23, %24, %cst_31 {dimension_numbers = #tpu.dot_dimension_numbers<[1], [0], [0], [1], [0, 0, 1, 1], [], []>} : vector<256x8xf32>, vector<8x4xf32>, vector<256x4xf32> -> vector<256x4xf32>
    %26 = arith.addf %20, %25 : vector<256x4xf32>
    %c0_32 = arith.constant 0 : index
    %c1_33 = arith.constant 1 : index
    %c0_34 = arith.constant 0 : index
    %c0_35 = arith.constant 0 : index
    %27 = vector.load %arg1[%c0_32, %c1_33, %c0_34, %c0_35] : memref<1x18x18x8xf32, #tpu.memory_space<vmem>>, vector<1x16x16x8xf32>
    %28 = vector.shape_cast %27 : vector<1x16x16x8xf32> to vector<16x16x8xf32>
    %29 = vector.shape_cast %28 : vector<16x16x8xf32> to vector<256x8xf32>
    %c24 = arith.constant 24 : index
    %c0_36 = arith.constant 0 : index
    %30 = vector.load %arg3[%c24, %c0_36] : memref<72x4xf32, #tpu.memory_space<vmem>>, vector<8x4xf32>
    %cst_37 = arith.constant dense<0.000000e+00> : vector<256x4xf32>
    %31 = tpu.matmul %29, %30, %cst_37 {dimension_numbers = #tpu.dot_dimension_numbers<[1], [0], [0], [1], [0, 0, 1, 1], [], []>} : vector<256x8xf32>, vector<8x4xf32>, vector<256x4xf32> -> vector<256x4xf32>
    %32 = arith.addf %26, %31 : vector<256x4xf32>
    %c0_38 = arith.constant 0 : index
    %c1_39 = arith.constant 1 : index
    %c1_40 = arith.constant 1 : index
    %c0_41 = arith.constant 0 : index
    %33 = vector.load %arg1[%c0_38, %c1_39, %c1_40, %c0_41] : memref<1x18x18x8xf32, #tpu.memory_space<vmem>>, vector<1x16x16x8xf32>
    %34 = vector.shape_cast %33 : vector<1x16x16x8xf32> to vector<16x16x8xf32>
    %35 = vector.shape_cast %34 : vector<16x16x8xf32> to vector<256x8xf32>
    %c32 = arith.constant 32 : index
    %c0_42 = arith.constant 0 : index
    %36 = vector.load %arg3[%c32, %c0_42] : memref<72x4xf32, #tpu.memory_space<vmem>>, vector<8x4xf32>
    %cst_43 = arith.constant dense<0.000000e+00> : vector<256x4xf32>
    %37 = tpu.matmul %35, %36, %cst_43 {dimension_numbers = #tpu.dot_dimension_numbers<[1], [0], [0], [1], [0, 0, 1, 1], [], []>} : vector<256x8xf32>, vector<8x4xf32>, vector<256x4xf32> -> vector<256x4xf32>
    %38 = arith.addf %32, %37 : vector<256x4xf32>
    %c0_44 = arith.constant 0 : index
    %c1_45 = arith.constant 1 : index
    %c2_46 = arith.constant 2 : index
    %c0_47 = arith.constant 0 : index
    %39 = vector.load %arg1[%c0_44, %c1_45, %c2_46, %c0_47] : memref<1x18x18x8xf32, #tpu.memory_space<vmem>>, vector<1x16x16x8xf32>
    %40 = vector.shape_cast %39 : vector<1x16x16x8xf32> to vector<16x16x8xf32>
    %41 = vector.shape_cast %40 : vector<16x16x8xf32> to vector<256x8xf32>
    %c40 = arith.constant 40 : index
    %c0_48 = arith.constant 0 : index
    %42 = vector.load %arg3[%c40, %c0_48] : memref<72x4xf32, #tpu.memory_space<vmem>>, vector<8x4xf32>
    %cst_49 = arith.constant dense<0.000000e+00> : vector<256x4xf32>
    %43 = tpu.matmul %41, %42, %cst_49 {dimension_numbers = #tpu.dot_dimension_numbers<[1], [0], [0], [1], [0, 0, 1, 1], [], []>} : vector<256x8xf32>, vector<8x4xf32>, vector<256x4xf32> -> vector<256x4xf32>
    %44 = arith.addf %38, %43 : vector<256x4xf32>
    %c0_50 = arith.constant 0 : index
    %c2_51 = arith.constant 2 : index
    %c0_52 = arith.constant 0 : index
    %c0_53 = arith.constant 0 : index
    %45 = vector.load %arg1[%c0_50, %c2_51, %c0_52, %c0_53] : memref<1x18x18x8xf32, #tpu.memory_space<vmem>>, vector<1x16x16x8xf32>
    %46 = vector.shape_cast %45 : vector<1x16x16x8xf32> to vector<16x16x8xf32>
    %47 = vector.shape_cast %46 : vector<16x16x8xf32> to vector<256x8xf32>
    %c48 = arith.constant 48 : index
    %c0_54 = arith.constant 0 : index
    %48 = vector.load %arg3[%c48, %c0_54] : memref<72x4xf32, #tpu.memory_space<vmem>>, vector<8x4xf32>
    %cst_55 = arith.constant dense<0.000000e+00> : vector<256x4xf32>
    %49 = tpu.matmul %47, %48, %cst_55 {dimension_numbers = #tpu.dot_dimension_numbers<[1], [0], [0], [1], [0, 0, 1, 1], [], []>} : vector<256x8xf32>, vector<8x4xf32>, vector<256x4xf32> -> vector<256x4xf32>
    %50 = arith.addf %44, %49 : vector<256x4xf32>
    %c0_56 = arith.constant 0 : index
    %c2_57 = arith.constant 2 : index
    %c1_58 = arith.constant 1 : index
    %c0_59 = arith.constant 0 : index
    %51 = vector.load %arg1[%c0_56, %c2_57, %c1_58, %c0_59] : memref<1x18x18x8xf32, #tpu.memory_space<vmem>>, vector<1x16x16x8xf32>
    %52 = vector.shape_cast %51 : vector<1x16x16x8xf32> to vector<16x16x8xf32>
    %53 = vector.shape_cast %52 : vector<16x16x8xf32> to vector<256x8xf32>
    %c56 = arith.constant 56 : index
    %c0_60 = arith.constant 0 : index
    %54 = vector.load %arg3[%c56, %c0_60] : memref<72x4xf32, #tpu.memory_space<vmem>>, vector<8x4xf32>
    %cst_61 = arith.constant dense<0.000000e+00> : vector<256x4xf32>
    %55 = tpu.matmul %53, %54, %cst_61 {dimension_numbers = #tpu.dot_dimension_numbers<[1], [0], [0], [1], [0, 0, 1, 1], [], []>} : vector<256x8xf32>, vector<8x4xf32>, vector<256x4xf32> -> vector<256x4xf32>
    %56 = arith.addf %50, %55 : vector<256x4xf32>
    %c0_62 = arith.constant 0 : index
    %c2_63 = arith.constant 2 : index
    %c2_64 = arith.constant 2 : index
    %c0_65 = arith.constant 0 : index
    %57 = vector.load %arg1[%c0_62, %c2_63, %c2_64, %c0_65] : memref<1x18x18x8xf32, #tpu.memory_space<vmem>>, vector<1x16x16x8xf32>
    %58 = vector.shape_cast %57 : vector<1x16x16x8xf32> to vector<16x16x8xf32>
    %59 = vector.shape_cast %58 : vector<16x16x8xf32> to vector<256x8xf32>
    %c64 = arith.constant 64 : index
    %c0_66 = arith.constant 0 : index
    %60 = vector.load %arg3[%c64, %c0_66] : memref<72x4xf32, #tpu.memory_space<vmem>>, vector<8x4xf32>
    %cst_67 = arith.constant dense<0.000000e+00> : vector<256x4xf32>
    %61 = tpu.matmul %59, %60, %cst_67 {dimension_numbers = #tpu.dot_dimension_numbers<[1], [0], [0], [1], [0, 0, 1, 1], [], []>} : vector<256x8xf32>, vector<8x4xf32>, vector<256x4xf32> -> vector<256x4xf32>
    %62 = arith.addf %56, %61 : vector<256x4xf32>
    %c0_68 = arith.constant 0 : index
    %c0_69 = arith.constant 0 : index
    %63 = vector.load %arg4[%c0_68, %c0_69] : memref<1x4xf32, #tpu.memory_space<vmem>>, vector<1x4xf32>
    %64 = vector.shape_cast %63 : vector<1x4xf32> to vector<4xf32>
    %65 = vector.shape_cast %64 : vector<4xf32> to vector<1x4xf32>
    %66 = vector.broadcast %65 : vector<1x4xf32> to vector<256x4xf32>
    %67 = arith.addf %62, %66 : vector<256x4xf32>
    %cst_70 = arith.constant 0.000000e+00 : f32
    %68 = vector.broadcast %cst_70 : f32 to vector<256x4xf32>
    %69 = arith.cmpf oge, %67, %68 : vector<256x4xf32>
    %cst_71 = arith.constant 2.000000e-01 : f32
    %70 = vector.broadcast %cst_71 : f32 to vector<256x4xf32>
    %71 = arith.mulf %70, %67 : vector<256x4xf32>
    %72 = arith.select %69, %67, %71 : vector<256x4xi1>, vector<256x4xf32>
    %73 = vector.shape_cast %72 : vector<256x4xf32> to vector<16x16x4xf32>
    %c1_72 = arith.constant 1 : index
    %c1_73 = arith.constant 1 : index
    %c0_74 = arith.constant 0 : index
    %74 = vector.load %arg14[%c1_72, %c1_73, %c0_74] : memref<18x18x8xf32, #tpu.memory_space<vmem>>, vector<16x16x4xf32>
    tpu.vector_store %arg14[%c1_72, %c1_73, %c0_74], %73 {strides = array<i32>} : memref<18x18x8xf32, #tpu.memory_space<vmem>>, vector<16x16x4xf32>,
    %cst_75 = arith.constant 0.000000e+00 : f32
    %75 = vector.broadcast %cst_75 : f32 to vector<256x2xf32>
    %c0_76 = arith.constant 0 : index
    %c0_77 = arith.constant 0 : index
    %c0_78 = arith.constant 0 : index
    %76 = vector.load %arg14[%c0_76, %c0_77, %c0_78] : memref<18x18x8xf32, #tpu.memory_space<vmem>>, vector<16x16x8xf32>
    %77 = vector.shape_cast %76 : vector<16x16x8xf32> to vector<256x8xf32>
    %c0_79 = arith.constant 0 : index
    %c0_80 = arith.constant 0 : index
    %78 = vector.load %arg5[%c0_79, %c0_80] : memref<72x2xf32, #tpu.memory_space<vmem>>, vector<8x2xf32>
    %cst_81 = arith.constant dense<0.000000e+00> : vector<256x2xf32>
    %79 = tpu.matmul %77, %78, %cst_81 {dimension_numbers = #tpu.dot_dimension_numbers<[1], [0], [0], [1], [0, 0, 1, 1], [], []>} : vector<256x8xf32>, vector<8x2xf32>, vector<256x2xf32> -> vector<256x2xf32>
    %80 = arith.addf %75, %79 : vector<256x2xf32>
    %c0_82 = arith.constant 0 : index
    %c1_83 = arith.constant 1 : index
    %c0_84 = arith.constant 0 : index
    %81 = vector.load %arg14[%c0_82, %c1_83, %c0_84] : memref<18x18x8xf32, #tpu.memory_space<vmem>>, vector<16x16x8xf32>
    %82 = vector.shape_cast %81 : vector<16x16x8xf32> to vector<256x8xf32>
    %c8_85 = arith.constant 8 : index
    %c0_86 = arith.constant 0 : index
    %83 = vector.load %arg5[%c8_85, %c0_86] : memref<72x2xf32, #tpu.memory_space<vmem>>, vector<8x2xf32>
    %cst_87 = arith.constant dense<0.000000e+00> : vector<256x2xf32>
    %84 = tpu.matmul %82, %83, %cst_87 {dimension_numbers = #tpu.dot_dimension_numbers<[1], [0], [0], [1], [0, 0, 1, 1], [], []>} : vector<256x8xf32>, vector<8x2xf32>, vector<256x2xf32> -> vector<256x2xf32>
    %85 = arith.addf %80, %84 : vector<256x2xf32>
    %c0_88 = arith.constant 0 : index
    %c2_89 = arith.constant 2 : index
    %c0_90 = arith.constant 0 : index
    %86 = vector.load %arg14[%c0_88, %c2_89, %c0_90] : memref<18x18x8xf32, #tpu.memory_space<vmem>>, vector<16x16x8xf32>
    %87 = vector.shape_cast %86 : vector<16x16x8xf32> to vector<256x8xf32>
    %c16_91 = arith.constant 16 : index
    %c0_92 = arith.constant 0 : index
    %88 = vector.load %arg5[%c16_91, %c0_92] : memref<72x2xf32, #tpu.memory_space<vmem>>, vector<8x2xf32>
    %cst_93 = arith.constant dense<0.000000e+00> : vector<256x2xf32>
    %89 = tpu.matmul %87, %88, %cst_93 {dimension_numbers = #tpu.dot_dimension_numbers<[1], [0], [0], [1], [0, 0, 1, 1], [], []>} : vector<256x8xf32>, vector<8x2xf32>, vector<256x2xf32> -> vector<256x2xf32>
    %90 = arith.addf %85, %89 : vector<256x2xf32>
    %c1_94 = arith.constant 1 : index
    %c0_95 = arith.constant 0 : index
    %c0_96 = arith.constant 0 : index
    %91 = vector.load %arg14[%c1_94, %c0_95, %c0_96] : memref<18x18x8xf32, #tpu.memory_space<vmem>>, vector<16x16x8xf32>
    %92 = vector.shape_cast %91 : vector<16x16x8xf32> to vector<256x8xf32>
    %c24_97 = arith.constant 24 : index
    %c0_98 = arith.constant 0 : index
    %93 = vector.load %arg5[%c24_97, %c0_98] : memref<72x2xf32, #tpu.memory_space<vmem>>, vector<8x2xf32>
    %cst_99 = arith.constant dense<0.000000e+00> : vector<256x2xf32>
    %94 = tpu.matmul %92, %93, %cst_99 {dimension_numbers = #tpu.dot_dimension_numbers<[1], [0], [0], [1], [0, 0, 1, 1], [], []>} : vector<256x8xf32>, vector<8x2xf32>, vector<256x2xf32> -> vector<256x2xf32>
    %95 = arith.addf %90, %94 : vector<256x2xf32>
    %c1_100 = arith.constant 1 : index
    %c1_101 = arith.constant 1 : index
    %c0_102 = arith.constant 0 : index
    %96 = vector.load %arg14[%c1_100, %c1_101, %c0_102] : memref<18x18x8xf32, #tpu.memory_space<vmem>>, vector<16x16x8xf32>
    %97 = vector.shape_cast %96 : vector<16x16x8xf32> to vector<256x8xf32>
    %c32_103 = arith.constant 32 : index
    %c0_104 = arith.constant 0 : index
    %98 = vector.load %arg5[%c32_103, %c0_104] : memref<72x2xf32, #tpu.memory_space<vmem>>, vector<8x2xf32>
    %cst_105 = arith.constant dense<0.000000e+00> : vector<256x2xf32>
    %99 = tpu.matmul %97, %98, %cst_105 {dimension_numbers = #tpu.dot_dimension_numbers<[1], [0], [0], [1], [0, 0, 1, 1], [], []>} : vector<256x8xf32>, vector<8x2xf32>, vector<256x2xf32> -> vector<256x2xf32>
    %100 = arith.addf %95, %99 : vector<256x2xf32>
    %c1_106 = arith.constant 1 : index
    %c2_107 = arith.constant 2 : index
    %c0_108 = arith.constant 0 : index
    %101 = vector.load %arg14[%c1_106, %c2_107, %c0_108] : memref<18x18x8xf32, #tpu.memory_space<vmem>>, vector<16x16x8xf32>
    %102 = vector.shape_cast %101 : vector<16x16x8xf32> to vector<256x8xf32>
    %c40_109 = arith.constant 40 : index
    %c0_110 = arith.constant 0 : index
    %103 = vector.load %arg5[%c40_109, %c0_110] : memref<72x2xf32, #tpu.memory_space<vmem>>, vector<8x2xf32>
    %cst_111 = arith.constant dense<0.000000e+00> : vector<256x2xf32>
    %104 = tpu.matmul %102, %103, %cst_111 {dimension_numbers = #tpu.dot_dimension_numbers<[1], [0], [0], [1], [0, 0, 1, 1], [], []>} : vector<256x8xf32>, vector<8x2xf32>, vector<256x2xf32> -> vector<256x2xf32>
    %105 = arith.addf %100, %104 : vector<256x2xf32>
    %c2_112 = arith.constant 2 : index
    %c0_113 = arith.constant 0 : index
    %c0_114 = arith.constant 0 : index
    %106 = vector.load %arg14[%c2_112, %c0_113, %c0_114] : memref<18x18x8xf32, #tpu.memory_space<vmem>>, vector<16x16x8xf32>
    %107 = vector.shape_cast %106 : vector<16x16x8xf32> to vector<256x8xf32>
    %c48_115 = arith.constant 48 : index
    %c0_116 = arith.constant 0 : index
    %108 = vector.load %arg5[%c48_115, %c0_116] : memref<72x2xf32, #tpu.memory_space<vmem>>, vector<8x2xf32>
    %cst_117 = arith.constant dense<0.000000e+00> : vector<256x2xf32>
    %109 = tpu.matmul %107, %108, %cst_117 {dimension_numbers = #tpu.dot_dimension_numbers<[1], [0], [0], [1], [0, 0, 1, 1], [], []>} : vector<256x8xf32>, vector<8x2xf32>, vector<256x2xf32> -> vector<256x2xf32>
    %110 = arith.addf %105, %109 : vector<256x2xf32>
    %c2_118 = arith.constant 2 : index
    %c1_119 = arith.constant 1 : index
    %c0_120 = arith.constant 0 : index
    %111 = vector.load %arg14[%c2_118, %c1_119, %c0_120] : memref<18x18x8xf32, #tpu.memory_space<vmem>>, vector<16x16x8xf32>
    %112 = vector.shape_cast %111 : vector<16x16x8xf32> to vector<256x8xf32>
    %c56_121 = arith.constant 56 : index
    %c0_122 = arith.constant 0 : index
    %113 = vector.load %arg5[%c56_121, %c0_122] : memref<72x2xf32, #tpu.memory_space<vmem>>, vector<8x2xf32>
    %cst_123 = arith.constant dense<0.000000e+00> : vector<256x2xf32>
    %114 = tpu.matmul %112, %113, %cst_123 {dimension_numbers = #tpu.dot_dimension_numbers<[1], [0], [0], [1], [0, 0, 1, 1], [], []>} : vector<256x8xf32>, vector<8x2xf32>, vector<256x2xf32> -> vector<256x2xf32>
    %115 = arith.addf %110, %114 : vector<256x2xf32>
    %c2_124 = arith.constant 2 : index
    %c2_125 = arith.constant 2 : index
    %c0_126 = arith.constant 0 : index
    %116 = vector.load %arg14[%c2_124, %c2_125, %c0_126] : memref<18x18x8xf32, #tpu.memory_space<vmem>>, vector<16x16x8xf32>
    %117 = vector.shape_cast %116 : vector<16x16x8xf32> to vector<256x8xf32>
    %c64_127 = arith.constant 64 : index
    %c0_128 = arith.constant 0 : index
    %118 = vector.load %arg5[%c64_127, %c0_128] : memref<72x2xf32, #tpu.memory_space<vmem>>, vector<8x2xf32>
    %cst_129 = arith.constant dense<0.000000e+00> : vector<256x2xf32>
    %119 = tpu.matmul %117, %118, %cst_129 {dimension_numbers = #tpu.dot_dimension_numbers<[1], [0], [0], [1], [0, 0, 1, 1], [], []>} : vector<256x8xf32>, vector<8x2xf32>, vector<256x2xf32> -> vector<256x2xf32>
    %120 = arith.addf %115, %119 : vector<256x2xf32>
    %c0_130 = arith.constant 0 : index
    %c0_131 = arith.constant 0 : index
    %121 = vector.load %arg6[%c0_130, %c0_131] : memref<1x2xf32, #tpu.memory_space<vmem>>, vector<1x2xf32>
    %122 = vector.shape_cast %121 : vector<1x2xf32> to vector<2xf32>
    %123 = vector.shape_cast %122 : vector<2xf32> to vector<1x2xf32>
    %124 = vector.broadcast %123 : vector<1x2xf32> to vector<256x2xf32>
    %125 = arith.addf %120, %124 : vector<256x2xf32>
    %c0_132 = arith.constant 0 : index
    %c0_133 = arith.constant 0 : index
    %c0_134 = arith.constant 0 : index
    %c0_135 = arith.constant 0 : index
    %126 = vector.load %arg2[%c0_132, %c0_133, %c0_134, %c0_135] : memref<1x18x18x4xf32, #tpu.memory_space<vmem>>, vector<1x18x18x2xf32>
    %127 = vector.shape_cast %126 : vector<1x18x18x2xf32> to vector<18x18x2xf32>
    %c0_136 = arith.constant 0 : index
    %c0_137 = arith.constant 0 : index
    %c0_138 = arith.constant 0 : index
    %128 = vector.load %arg15[%c0_136, %c0_137, %c0_138] : memref<18x18x8xf32, #tpu.memory_space<vmem>>, vector<18x18x2xf32>
    tpu.vector_store %arg15[%c0_136, %c0_137, %c0_138], %127 {strides = array<i32>} : memref<18x18x8xf32, #tpu.memory_space<vmem>>, vector<18x18x2xf32>,
    %129 = vector.shape_cast %125 : vector<256x2xf32> to vector<16x16x2xf32>
    %c1_139 = arith.constant 1 : index
    %c1_140 = arith.constant 1 : index
    %c2_141 = arith.constant 2 : index
    %130 = vector.load %arg15[%c1_139, %c1_140, %c2_141] : memref<18x18x8xf32, #tpu.memory_space<vmem>>, vector<16x16x2xf32>
    tpu.vector_store %arg15[%c1_139, %c1_140, %c2_141], %129 {strides = array<i32>} : memref<18x18x8xf32, #tpu.memory_space<vmem>>, vector<16x16x2xf32>,
    %cst_142 = arith.constant 0.000000e+00 : f32
    %131 = vector.broadcast %cst_142 : f32 to vector<256x8xf32>
    %c0_143 = arith.constant 0 : index
    %c0_144 = arith.constant 0 : index
    %c0_145 = arith.constant 0 : index
    %132 = vector.load %arg15[%c0_143, %c0_144, %c0_145] : memref<18x18x8xf32, #tpu.memory_space<vmem>>, vector<16x16x8xf32>
    %133 = vector.shape_cast %132 : vector<16x16x8xf32> to vector<256x8xf32>
    %c0_146 = arith.constant 0 : index
    %c0_147 = arith.constant 0 : index
    %134 = vector.load %arg7[%c0_146, %c0_147] : memref<72x8xf32, #tpu.memory_space<vmem>>, vector<8x8xf32>
    %cst_148 = arith.constant dense<0.000000e+00> : vector<256x8xf32>
    %135 = tpu.matmul %133, %134, %cst_148 {dimension_numbers = #tpu.dot_dimension_numbers<[1], [0], [0], [1], [0, 0, 1, 1], [], []>} : vector<256x8xf32>, vector<8x8xf32>, vector<256x8xf32> -> vector<256x8xf32>
    %136 = arith.addf %131, %135 : vector<256x8xf32>
    %c0_149 = arith.constant 0 : index
    %c1_150 = arith.constant 1 : index
    %c0_151 = arith.constant 0 : index
    %137 = vector.load %arg15[%c0_149, %c1_150, %c0_151] : memref<18x18x8xf32, #tpu.memory_space<vmem>>, vector<16x16x8xf32>
    %138 = vector.shape_cast %137 : vector<16x16x8xf32> to vector<256x8xf32>
    %c8_152 = arith.constant 8 : index
    %c0_153 = arith.constant 0 : index
    %139 = vector.load %arg7[%c8_152, %c0_153] : memref<72x8xf32, #tpu.memory_space<vmem>>, vector<8x8xf32>
    %cst_154 = arith.constant dense<0.000000e+00> : vector<256x8xf32>
    %140 = tpu.matmul %138, %139, %cst_154 {dimension_numbers = #tpu.dot_dimension_numbers<[1], [0], [0], [1], [0, 0, 1, 1], [], []>} : vector<256x8xf32>, vector<8x8xf32>, vector<256x8xf32> -> vector<256x8xf32>
    %141 = arith.addf %136, %140 : vector<256x8xf32>
    %c0_155 = arith.constant 0 : index
    %c2_156 = arith.constant 2 : index
    %c0_157 = arith.constant 0 : index
    %142 = vector.load %arg15[%c0_155, %c2_156, %c0_157] : memref<18x18x8xf32, #tpu.memory_space<vmem>>, vector<16x16x8xf32>
    %143 = vector.shape_cast %142 : vector<16x16x8xf32> to vector<256x8xf32>
    %c16_158 = arith.constant 16 : index
    %c0_159 = arith.constant 0 : index
    %144 = vector.load %arg7[%c16_158, %c0_159] : memref<72x8xf32, #tpu.memory_space<vmem>>, vector<8x8xf32>
    %cst_160 = arith.constant dense<0.000000e+00> : vector<256x8xf32>
    %145 = tpu.matmul %143, %144, %cst_160 {dimension_numbers = #tpu.dot_dimension_numbers<[1], [0], [0], [1], [0, 0, 1, 1], [], []>} : vector<256x8xf32>, vector<8x8xf32>, vector<256x8xf32> -> vector<256x8xf32>
    %146 = arith.addf %141, %145 : vector<256x8xf32>
    %c1_161 = arith.constant 1 : index
    %c0_162 = arith.constant 0 : index
    %c0_163 = arith.constant 0 : index
    %147 = vector.load %arg15[%c1_161, %c0_162, %c0_163] : memref<18x18x8xf32, #tpu.memory_space<vmem>>, vector<16x16x8xf32>
    %148 = vector.shape_cast %147 : vector<16x16x8xf32> to vector<256x8xf32>
    %c24_164 = arith.constant 24 : index
    %c0_165 = arith.constant 0 : index
    %149 = vector.load %arg7[%c24_164, %c0_165] : memref<72x8xf32, #tpu.memory_space<vmem>>, vector<8x8xf32>
    %cst_166 = arith.constant dense<0.000000e+00> : vector<256x8xf32>
    %150 = tpu.matmul %148, %149, %cst_166 {dimension_numbers = #tpu.dot_dimension_numbers<[1], [0], [0], [1], [0, 0, 1, 1], [], []>} : vector<256x8xf32>, vector<8x8xf32>, vector<256x8xf32> -> vector<256x8xf32>
    %151 = arith.addf %146, %150 : vector<256x8xf32>
    %c1_167 = arith.constant 1 : index
    %c1_168 = arith.constant 1 : index
    %c0_169 = arith.constant 0 : index
    %152 = vector.load %arg15[%c1_167, %c1_168, %c0_169] : memref<18x18x8xf32, #tpu.memory_space<vmem>>, vector<16x16x8xf32>
    %153 = vector.shape_cast %152 : vector<16x16x8xf32> to vector<256x8xf32>
    %c32_170 = arith.constant 32 : index
    %c0_171 = arith.constant 0 : index
    %154 = vector.load %arg7[%c32_170, %c0_171] : memref<72x8xf32, #tpu.memory_space<vmem>>, vector<8x8xf32>
    %cst_172 = arith.constant dense<0.000000e+00> : vector<256x8xf32>
    %155 = tpu.matmul %153, %154, %cst_172 {dimension_numbers = #tpu.dot_dimension_numbers<[1], [0], [0], [1], [0, 0, 1, 1], [], []>} : vector<256x8xf32>, vector<8x8xf32>, vector<256x8xf32> -> vector<256x8xf32>
    %156 = arith.addf %151, %155 : vector<256x8xf32>
    %c1_173 = arith.constant 1 : index
    %c2_174 = arith.constant 2 : index
    %c0_175 = arith.constant 0 : index
    %157 = vector.load %arg15[%c1_173, %c2_174, %c0_175] : memref<18x18x8xf32, #tpu.memory_space<vmem>>, vector<16x16x8xf32>
    %158 = vector.shape_cast %157 : vector<16x16x8xf32> to vector<256x8xf32>
    %c40_176 = arith.constant 40 : index
    %c0_177 = arith.constant 0 : index
    %159 = vector.load %arg7[%c40_176, %c0_177] : memref<72x8xf32, #tpu.memory_space<vmem>>, vector<8x8xf32>
    %cst_178 = arith.constant dense<0.000000e+00> : vector<256x8xf32>
    %160 = tpu.matmul %158, %159, %cst_178 {dimension_numbers = #tpu.dot_dimension_numbers<[1], [0], [0], [1], [0, 0, 1, 1], [], []>} : vector<256x8xf32>, vector<8x8xf32>, vector<256x8xf32> -> vector<256x8xf32>
    %161 = arith.addf %156, %160 : vector<256x8xf32>
    %c2_179 = arith.constant 2 : index
    %c0_180 = arith.constant 0 : index
    %c0_181 = arith.constant 0 : index
    %162 = vector.load %arg15[%c2_179, %c0_180, %c0_181] : memref<18x18x8xf32, #tpu.memory_space<vmem>>, vector<16x16x8xf32>
    %163 = vector.shape_cast %162 : vector<16x16x8xf32> to vector<256x8xf32>
    %c48_182 = arith.constant 48 : index
    %c0_183 = arith.constant 0 : index
    %164 = vector.load %arg7[%c48_182, %c0_183] : memref<72x8xf32, #tpu.memory_space<vmem>>, vector<8x8xf32>
    %cst_184 = arith.constant dense<0.000000e+00> : vector<256x8xf32>
    %165 = tpu.matmul %163, %164, %cst_184 {dimension_numbers = #tpu.dot_dimension_numbers<[1], [0], [0], [1], [0, 0, 1, 1], [], []>} : vector<256x8xf32>, vector<8x8xf32>, vector<256x8xf32> -> vector<256x8xf32>
    %166 = arith.addf %161, %165 : vector<256x8xf32>
    %c2_185 = arith.constant 2 : index
    %c1_186 = arith.constant 1 : index
    %c0_187 = arith.constant 0 : index
    %167 = vector.load %arg15[%c2_185, %c1_186, %c0_187] : memref<18x18x8xf32, #tpu.memory_space<vmem>>, vector<16x16x8xf32>
    %168 = vector.shape_cast %167 : vector<16x16x8xf32> to vector<256x8xf32>
    %c56_188 = arith.constant 56 : index
    %c0_189 = arith.constant 0 : index
    %169 = vector.load %arg7[%c56_188, %c0_189] : memref<72x8xf32, #tpu.memory_space<vmem>>, vector<8x8xf32>
    %cst_190 = arith.constant dense<0.000000e+00> : vector<256x8xf32>
    %170 = tpu.matmul %168, %169, %cst_190 {dimension_numbers = #tpu.dot_dimension_numbers<[1], [0], [0], [1], [0, 0, 1, 1], [], []>} : vector<256x8xf32>, vector<8x8xf32>, vector<256x8xf32> -> vector<256x8xf32>
    %171 = arith.addf %166, %170 : vector<256x8xf32>
    %c2_191 = arith.constant 2 : index
    %c2_192 = arith.constant 2 : index
    %c0_193 = arith.constant 0 : index
    %172 = vector.load %arg15[%c2_191, %c2_192, %c0_193] : memref<18x18x8xf32, #tpu.memory_space<vmem>>, vector<16x16x8xf32>
    %173 = vector.shape_cast %172 : vector<16x16x8xf32> to vector<256x8xf32>
    %c64_194 = arith.constant 64 : index
    %c0_195 = arith.constant 0 : index
    %174 = vector.load %arg7[%c64_194, %c0_195] : memref<72x8xf32, #tpu.memory_space<vmem>>, vector<8x8xf32>
    %cst_196 = arith.constant dense<0.000000e+00> : vector<256x8xf32>
    %175 = tpu.matmul %173, %174, %cst_196 {dimension_numbers = #tpu.dot_dimension_numbers<[1], [0], [0], [1], [0, 0, 1, 1], [], []>} : vector<256x8xf32>, vector<8x8xf32>, vector<256x8xf32> -> vector<256x8xf32>
    %176 = arith.addf %171, %175 : vector<256x8xf32>
    %c0_197 = arith.constant 0 : index
    %c0_198 = arith.constant 0 : index
    %177 = vector.load %arg8[%c0_197, %c0_198] : memref<1x8xf32, #tpu.memory_space<vmem>>, vector<1x8xf32>
    %178 = vector.shape_cast %177 : vector<1x8xf32> to vector<8xf32>
    %179 = vector.shape_cast %178 : vector<8xf32> to vector<1x8xf32>
    %180 = vector.broadcast %179 : vector<1x8xf32> to vector<256x8xf32>
    %181 = arith.addf %176, %180 : vector<256x8xf32>
    %cst_199 = arith.constant 0.000000e+00 : f32
    %182 = vector.broadcast %cst_199 : f32 to vector<256x8xf32>
    %183 = arith.cmpf oge, %181, %182 : vector<256x8xf32>
    %cst_200 = arith.constant 2.000000e-01 : f32
    %184 = vector.broadcast %cst_200 : f32 to vector<256x8xf32>
    %185 = arith.mulf %184, %181 : vector<256x8xf32>
    %186 = arith.select %183, %181, %185 : vector<256x8xi1>, vector<256x8xf32>
    %187 = vector.shape_cast %186 : vector<256x8xf32> to vector<16x16x8xf32>
    %c1_201 = arith.constant 1 : index
    %c1_202 = arith.constant 1 : index
    %c0_203 = arith.constant 0 : index
    %188 = vector.load %arg16[%c1_201, %c1_202, %c0_203] : memref<18x18x8xf32, #tpu.memory_space<vmem>>, vector<16x16x8xf32>
    tpu.vector_store %arg16[%c1_201, %c1_202, %c0_203], %187 {strides = array<i32>} : memref<18x18x8xf32, #tpu.memory_space<vmem>>, vector<16x16x8xf32>,
    %cst_204 = arith.constant 0.000000e+00 : f32
    %189 = vector.broadcast %cst_204 : f32 to vector<256x8xf32>
    %c0_205 = arith.constant 0 : index
    %c0_206 = arith.constant 0 : index
    %c0_207 = arith.constant 0 : index
    %190 = vector.load %arg16[%c0_205, %c0_206, %c0_207] : memref<18x18x8xf32, #tpu.memory_space<vmem>>, vector<16x16x8xf32>
    %191 = vector.shape_cast %190 : vector<16x16x8xf32> to vector<256x8xf32>
    %c0_208 = arith.constant 0 : index
    %c0_209 = arith.constant 0 : index
    %192 = vector.load %arg9[%c0_208, %c0_209] : memref<72x8xf32, #tpu.memory_space<vmem>>, vector<8x8xf32>
    %cst_210 = arith.constant dense<0.000000e+00> : vector<256x8xf32>
    %193 = tpu.matmul %191, %192, %cst_210 {dimension_numbers = #tpu.dot_dimension_numbers<[1], [0], [0], [1], [0, 0, 1, 1], [], []>} : vector<256x8xf32>, vector<8x8xf32>, vector<256x8xf32> -> vector<256x8xf32>
    %194 = arith.addf %189, %193 : vector<256x8xf32>
    %c0_211 = arith.constant 0 : index
    %c1_212 = arith.constant 1 : index
    %c0_213 = arith.constant 0 : index
    %195 = vector.load %arg16[%c0_211, %c1_212, %c0_213] : memref<18x18x8xf32, #tpu.memory_space<vmem>>, vector<16x16x8xf32>
    %196 = vector.shape_cast %195 : vector<16x16x8xf32> to vector<256x8xf32>
    %c8_214 = arith.constant 8 : index
    %c0_215 = arith.constant 0 : index
    %197 = vector.load %arg9[%c8_214, %c0_215] : memref<72x8xf32, #tpu.memory_space<vmem>>, vector<8x8xf32>
    %cst_216 = arith.constant dense<0.000000e+00> : vector<256x8xf32>
    %198 = tpu.matmul %196, %197, %cst_216 {dimension_numbers = #tpu.dot_dimension_numbers<[1], [0], [0], [1], [0, 0, 1, 1], [], []>} : vector<256x8xf32>, vector<8x8xf32>, vector<256x8xf32> -> vector<256x8xf32>
    %199 = arith.addf %194, %198 : vector<256x8xf32>
    %c0_217 = arith.constant 0 : index
    %c2_218 = arith.constant 2 : index
    %c0_219 = arith.constant 0 : index
    %200 = vector.load %arg16[%c0_217, %c2_218, %c0_219] : memref<18x18x8xf32, #tpu.memory_space<vmem>>, vector<16x16x8xf32>
    %201 = vector.shape_cast %200 : vector<16x16x8xf32> to vector<256x8xf32>
    %c16_220 = arith.constant 16 : index
    %c0_221 = arith.constant 0 : index
    %202 = vector.load %arg9[%c16_220, %c0_221] : memref<72x8xf32, #tpu.memory_space<vmem>>, vector<8x8xf32>
    %cst_222 = arith.constant dense<0.000000e+00> : vector<256x8xf32>
    %203 = tpu.matmul %201, %202, %cst_222 {dimension_numbers = #tpu.dot_dimension_numbers<[1], [0], [0], [1], [0, 0, 1, 1], [], []>} : vector<256x8xf32>, vector<8x8xf32>, vector<256x8xf32> -> vector<256x8xf32>
    %204 = arith.addf %199, %203 : vector<256x8xf32>
    %c1_223 = arith.constant 1 : index
    %c0_224 = arith.constant 0 : index
    %c0_225 = arith.constant 0 : index
    %205 = vector.load %arg16[%c1_223, %c0_224, %c0_225] : memref<18x18x8xf32, #tpu.memory_space<vmem>>, vector<16x16x8xf32>
    %206 = vector.shape_cast %205 : vector<16x16x8xf32> to vector<256x8xf32>
    %c24_226 = arith.constant 24 : index
    %c0_227 = arith.constant 0 : index
    %207 = vector.load %arg9[%c24_226, %c0_227] : memref<72x8xf32, #tpu.memory_space<vmem>>, vector<8x8xf32>
    %cst_228 = arith.constant dense<0.000000e+00> : vector<256x8xf32>
    %208 = tpu.matmul %206, %207, %cst_228 {dimension_numbers = #tpu.dot_dimension_numbers<[1], [0], [0], [1], [0, 0, 1, 1], [], []>} : vector<256x8xf32>, vector<8x8xf32>, vector<256x8xf32> -> vector<256x8xf32>
    %209 = arith.addf %204, %208 : vector<256x8xf32>
    %c1_229 = arith.constant 1 : index
    %c1_230 = arith.constant 1 : index
    %c0_231 = arith.constant 0 : index
    %210 = vector.load %arg16[%c1_229, %c1_230, %c0_231] : memref<18x18x8xf32, #tpu.memory_space<vmem>>, vector<16x16x8xf32>
    %211 = vector.shape_cast %210 : vector<16x16x8xf32> to vector<256x8xf32>
    %c32_232 = arith.constant 32 : index
    %c0_233 = arith.constant 0 : index
    %212 = vector.load %arg9[%c32_232, %c0_233] : memref<72x8xf32, #tpu.memory_space<vmem>>, vector<8x8xf32>
    %cst_234 = arith.constant dense<0.000000e+00> : vector<256x8xf32>
    %213 = tpu.matmul %211, %212, %cst_234 {dimension_numbers = #tpu.dot_dimension_numbers<[1], [0], [0], [1], [0, 0, 1, 1], [], []>} : vector<256x8xf32>, vector<8x8xf32>, vector<256x8xf32> -> vector<256x8xf32>
    %214 = arith.addf %209, %213 : vector<256x8xf32>
    %c1_235 = arith.constant 1 : index
    %c2_236 = arith.constant 2 : index
    %c0_237 = arith.constant 0 : index
    %215 = vector.load %arg16[%c1_235, %c2_236, %c0_237] : memref<18x18x8xf32, #tpu.memory_space<vmem>>, vector<16x16x8xf32>
    %216 = vector.shape_cast %215 : vector<16x16x8xf32> to vector<256x8xf32>
    %c40_238 = arith.constant 40 : index
    %c0_239 = arith.constant 0 : index
    %217 = vector.load %arg9[%c40_238, %c0_239] : memref<72x8xf32, #tpu.memory_space<vmem>>, vector<8x8xf32>
    %cst_240 = arith.constant dense<0.000000e+00> : vector<256x8xf32>
    %218 = tpu.matmul %216, %217, %cst_240 {dimension_numbers = #tpu.dot_dimension_numbers<[1], [0], [0], [1], [0, 0, 1, 1], [], []>} : vector<256x8xf32>, vector<8x8xf32>, vector<256x8xf32> -> vector<256x8xf32>
    %219 = arith.addf %214, %218 : vector<256x8xf32>
    %c2_241 = arith.constant 2 : index
    %c0_242 = arith.constant 0 : index
    %c0_243 = arith.constant 0 : index
    %220 = vector.load %arg16[%c2_241, %c0_242, %c0_243] : memref<18x18x8xf32, #tpu.memory_space<vmem>>, vector<16x16x8xf32>
    %221 = vector.shape_cast %220 : vector<16x16x8xf32> to vector<256x8xf32>
    %c48_244 = arith.constant 48 : index
    %c0_245 = arith.constant 0 : index
    %222 = vector.load %arg9[%c48_244, %c0_245] : memref<72x8xf32, #tpu.memory_space<vmem>>, vector<8x8xf32>
    %cst_246 = arith.constant dense<0.000000e+00> : vector<256x8xf32>
    %223 = tpu.matmul %221, %222, %cst_246 {dimension_numbers = #tpu.dot_dimension_numbers<[1], [0], [0], [1], [0, 0, 1, 1], [], []>} : vector<256x8xf32>, vector<8x8xf32>, vector<256x8xf32> -> vector<256x8xf32>
    %224 = arith.addf %219, %223 : vector<256x8xf32>
    %c2_247 = arith.constant 2 : index
    %c1_248 = arith.constant 1 : index
    %c0_249 = arith.constant 0 : index
    %225 = vector.load %arg16[%c2_247, %c1_248, %c0_249] : memref<18x18x8xf32, #tpu.memory_space<vmem>>, vector<16x16x8xf32>
    %226 = vector.shape_cast %225 : vector<16x16x8xf32> to vector<256x8xf32>
    %c56_250 = arith.constant 56 : index
    %c0_251 = arith.constant 0 : index
    %227 = vector.load %arg9[%c56_250, %c0_251] : memref<72x8xf32, #tpu.memory_space<vmem>>, vector<8x8xf32>
    %cst_252 = arith.constant dense<0.000000e+00> : vector<256x8xf32>
    %228 = tpu.matmul %226, %227, %cst_252 {dimension_numbers = #tpu.dot_dimension_numbers<[1], [0], [0], [1], [0, 0, 1, 1], [], []>} : vector<256x8xf32>, vector<8x8xf32>, vector<256x8xf32> -> vector<256x8xf32>
    %229 = arith.addf %224, %228 : vector<256x8xf32>
    %c2_253 = arith.constant 2 : index
    %c2_254 = arith.constant 2 : index
    %c0_255 = arith.constant 0 : index
    %230 = vector.load %arg16[%c2_253, %c2_254, %c0_255] : memref<18x18x8xf32, #tpu.memory_space<vmem>>, vector<16x16x8xf32>
    %231 = vector.shape_cast %230 : vector<16x16x8xf32> to vector<256x8xf32>
    %c64_256 = arith.constant 64 : index
    %c0_257 = arith.constant 0 : index
    %232 = vector.load %arg9[%c64_256, %c0_257] : memref<72x8xf32, #tpu.memory_space<vmem>>, vector<8x8xf32>
    %cst_258 = arith.constant dense<0.000000e+00> : vector<256x8xf32>
    %233 = tpu.matmul %231, %232, %cst_258 {dimension_numbers = #tpu.dot_dimension_numbers<[1], [0], [0], [1], [0, 0, 1, 1], [], []>} : vector<256x8xf32>, vector<8x8xf32>, vector<256x8xf32> -> vector<256x8xf32>
    %234 = arith.addf %229, %233 : vector<256x8xf32>
    %c0_259 = arith.constant 0 : index
    %c0_260 = arith.constant 0 : index
    %235 = vector.load %arg10[%c0_259, %c0_260] : memref<1x8xf32, #tpu.memory_space<vmem>>, vector<1x8xf32>
    %236 = vector.shape_cast %235 : vector<1x8xf32> to vector<8xf32>
    %237 = vector.shape_cast %236 : vector<8xf32> to vector<1x8xf32>
    %238 = vector.broadcast %237 : vector<1x8xf32> to vector<256x8xf32>
    %239 = arith.addf %234, %238 : vector<256x8xf32>
    %cst_261 = arith.constant 0.000000e+00 : f32
    %240 = vector.broadcast %cst_261 : f32 to vector<256x8xf32>
    %241 = arith.cmpf oge, %239, %240 : vector<256x8xf32>
    %cst_262 = arith.constant 2.000000e-01 : f32
    %242 = vector.broadcast %cst_262 : f32 to vector<256x8xf32>
    %243 = arith.mulf %242, %239 : vector<256x8xf32>
    %244 = arith.select %241, %239, %243 : vector<256x8xi1>, vector<256x8xf32>
    %245 = vector.shape_cast %244 : vector<256x8xf32> to vector<16x16x8xf32>
    %c1_263 = arith.constant 1 : index
    %c1_264 = arith.constant 1 : index
    %c0_265 = arith.constant 0 : index
    %246 = vector.load %arg17[%c1_263, %c1_264, %c0_265] : memref<18x18x8xf32, #tpu.memory_space<vmem>>, vector<16x16x8xf32>
    tpu.vector_store %arg17[%c1_263, %c1_264, %c0_265], %245 {strides = array<i32>} : memref<18x18x8xf32, #tpu.memory_space<vmem>>, vector<16x16x8xf32>,
    %cst_266 = arith.constant 0.000000e+00 : f32
    %247 = vector.broadcast %cst_266 : f32 to vector<256x4xf32>
    %c0_267 = arith.constant 0 : index
    %c0_268 = arith.constant 0 : index
    %c0_269 = arith.constant 0 : index
    %248 = vector.load %arg17[%c0_267, %c0_268, %c0_269] : memref<18x18x8xf32, #tpu.memory_space<vmem>>, vector<16x16x8xf32>
    %249 = vector.shape_cast %248 : vector<16x16x8xf32> to vector<256x8xf32>
    %c0_270 = arith.constant 0 : index
    %c0_271 = arith.constant 0 : index
    %250 = vector.load %arg11[%c0_270, %c0_271] : memref<72x4xf32, #tpu.memory_space<vmem>>, vector<8x4xf32>
    %cst_272 = arith.constant dense<0.000000e+00> : vector<256x4xf32>
    %251 = tpu.matmul %249, %250, %cst_272 {dimension_numbers = #tpu.dot_dimension_numbers<[1], [0], [0], [1], [0, 0, 1, 1], [], []>} : vector<256x8xf32>, vector<8x4xf32>, vector<256x4xf32> -> vector<256x4xf32>
    %252 = arith.addf %247, %251 : vector<256x4xf32>
    %c0_273 = arith.constant 0 : index
    %c1_274 = arith.constant 1 : index
    %c0_275 = arith.constant 0 : index
    %253 = vector.load %arg17[%c0_273, %c1_274, %c0_275] : memref<18x18x8xf32, #tpu.memory_space<vmem>>, vector<16x16x8xf32>
    %254 = vector.shape_cast %253 : vector<16x16x8xf32> to vector<256x8xf32>
    %c8_276 = arith.constant 8 : index
    %c0_277 = arith.constant 0 : index
    %255 = vector.load %arg11[%c8_276, %c0_277] : memref<72x4xf32, #tpu.memory_space<vmem>>, vector<8x4xf32>
    %cst_278 = arith.constant dense<0.000000e+00> : vector<256x4xf32>
    %256 = tpu.matmul %254, %255, %cst_278 {dimension_numbers = #tpu.dot_dimension_numbers<[1], [0], [0], [1], [0, 0, 1, 1], [], []>} : vector<256x8xf32>, vector<8x4xf32>, vector<256x4xf32> -> vector<256x4xf32>
    %257 = arith.addf %252, %256 : vector<256x4xf32>
    %c0_279 = arith.constant 0 : index
    %c2_280 = arith.constant 2 : index
    %c0_281 = arith.constant 0 : index
    %258 = vector.load %arg17[%c0_279, %c2_280, %c0_281] : memref<18x18x8xf32, #tpu.memory_space<vmem>>, vector<16x16x8xf32>
    %259 = vector.shape_cast %258 : vector<16x16x8xf32> to vector<256x8xf32>
    %c16_282 = arith.constant 16 : index
    %c0_283 = arith.constant 0 : index
    %260 = vector.load %arg11[%c16_282, %c0_283] : memref<72x4xf32, #tpu.memory_space<vmem>>, vector<8x4xf32>
    %cst_284 = arith.constant dense<0.000000e+00> : vector<256x4xf32>
    %261 = tpu.matmul %259, %260, %cst_284 {dimension_numbers = #tpu.dot_dimension_numbers<[1], [0], [0], [1], [0, 0, 1, 1], [], []>} : vector<256x8xf32>, vector<8x4xf32>, vector<256x4xf32> -> vector<256x4xf32>
    %262 = arith.addf %257, %261 : vector<256x4xf32>
    %c1_285 = arith.constant 1 : index
    %c0_286 = arith.constant 0 : index
    %c0_287 = arith.constant 0 : index
    %263 = vector.load %arg17[%c1_285, %c0_286, %c0_287] : memref<18x18x8xf32, #tpu.memory_space<vmem>>, vector<16x16x8xf32>
    %264 = vector.shape_cast %263 : vector<16x16x8xf32> to vector<256x8xf32>
    %c24_288 = arith.constant 24 : index
    %c0_289 = arith.constant 0 : index
    %265 = vector.load %arg11[%c24_288, %c0_289] : memref<72x4xf32, #tpu.memory_space<vmem>>, vector<8x4xf32>
    %cst_290 = arith.constant dense<0.000000e+00> : vector<256x4xf32>
    %266 = tpu.matmul %264, %265, %cst_290 {dimension_numbers = #tpu.dot_dimension_numbers<[1], [0], [0], [1], [0, 0, 1, 1], [], []>} : vector<256x8xf32>, vector<8x4xf32>, vector<256x4xf32> -> vector<256x4xf32>
    %267 = arith.addf %262, %266 : vector<256x4xf32>
    %c1_291 = arith.constant 1 : index
    %c1_292 = arith.constant 1 : index
    %c0_293 = arith.constant 0 : index
    %268 = vector.load %arg17[%c1_291, %c1_292, %c0_293] : memref<18x18x8xf32, #tpu.memory_space<vmem>>, vector<16x16x8xf32>
    %269 = vector.shape_cast %268 : vector<16x16x8xf32> to vector<256x8xf32>
    %c32_294 = arith.constant 32 : index
    %c0_295 = arith.constant 0 : index
    %270 = vector.load %arg11[%c32_294, %c0_295] : memref<72x4xf32, #tpu.memory_space<vmem>>, vector<8x4xf32>
    %cst_296 = arith.constant dense<0.000000e+00> : vector<256x4xf32>
    %271 = tpu.matmul %269, %270, %cst_296 {dimension_numbers = #tpu.dot_dimension_numbers<[1], [0], [0], [1], [0, 0, 1, 1], [], []>} : vector<256x8xf32>, vector<8x4xf32>, vector<256x4xf32> -> vector<256x4xf32>
    %272 = arith.addf %267, %271 : vector<256x4xf32>
    %c1_297 = arith.constant 1 : index
    %c2_298 = arith.constant 2 : index
    %c0_299 = arith.constant 0 : index
    %273 = vector.load %arg17[%c1_297, %c2_298, %c0_299] : memref<18x18x8xf32, #tpu.memory_space<vmem>>, vector<16x16x8xf32>
    %274 = vector.shape_cast %273 : vector<16x16x8xf32> to vector<256x8xf32>
    %c40_300 = arith.constant 40 : index
    %c0_301 = arith.constant 0 : index
    %275 = vector.load %arg11[%c40_300, %c0_301] : memref<72x4xf32, #tpu.memory_space<vmem>>, vector<8x4xf32>
    %cst_302 = arith.constant dense<0.000000e+00> : vector<256x4xf32>
    %276 = tpu.matmul %274, %275, %cst_302 {dimension_numbers = #tpu.dot_dimension_numbers<[1], [0], [0], [1], [0, 0, 1, 1], [], []>} : vector<256x8xf32>, vector<8x4xf32>, vector<256x4xf32> -> vector<256x4xf32>
    %277 = arith.addf %272, %276 : vector<256x4xf32>
    %c2_303 = arith.constant 2 : index
    %c0_304 = arith.constant 0 : index
    %c0_305 = arith.constant 0 : index
    %278 = vector.load %arg17[%c2_303, %c0_304, %c0_305] : memref<18x18x8xf32, #tpu.memory_space<vmem>>, vector<16x16x8xf32>
    %279 = vector.shape_cast %278 : vector<16x16x8xf32> to vector<256x8xf32>
    %c48_306 = arith.constant 48 : index
    %c0_307 = arith.constant 0 : index
    %280 = vector.load %arg11[%c48_306, %c0_307] : memref<72x4xf32, #tpu.memory_space<vmem>>, vector<8x4xf32>
    %cst_308 = arith.constant dense<0.000000e+00> : vector<256x4xf32>
    %281 = tpu.matmul %279, %280, %cst_308 {dimension_numbers = #tpu.dot_dimension_numbers<[1], [0], [0], [1], [0, 0, 1, 1], [], []>} : vector<256x8xf32>, vector<8x4xf32>, vector<256x4xf32> -> vector<256x4xf32>
    %282 = arith.addf %277, %281 : vector<256x4xf32>
    %c2_309 = arith.constant 2 : index
    %c1_310 = arith.constant 1 : index
    %c0_311 = arith.constant 0 : index
    %283 = vector.load %arg17[%c2_309, %c1_310, %c0_311] : memref<18x18x8xf32, #tpu.memory_space<vmem>>, vector<16x16x8xf32>
    %284 = vector.shape_cast %283 : vector<16x16x8xf32> to vector<256x8xf32>
    %c56_312 = arith.constant 56 : index
    %c0_313 = arith.constant 0 : index
    %285 = vector.load %arg11[%c56_312, %c0_313] : memref<72x4xf32, #tpu.memory_space<vmem>>, vector<8x4xf32>
    %cst_314 = arith.constant dense<0.000000e+00> : vector<256x4xf32>
    %286 = tpu.matmul %284, %285, %cst_314 {dimension_numbers = #tpu.dot_dimension_numbers<[1], [0], [0], [1], [0, 0, 1, 1], [], []>} : vector<256x8xf32>, vector<8x4xf32>, vector<256x4xf32> -> vector<256x4xf32>
    %287 = arith.addf %282, %286 : vector<256x4xf32>
    %c2_315 = arith.constant 2 : index
    %c2_316 = arith.constant 2 : index
    %c0_317 = arith.constant 0 : index
    %288 = vector.load %arg17[%c2_315, %c2_316, %c0_317] : memref<18x18x8xf32, #tpu.memory_space<vmem>>, vector<16x16x8xf32>
    %289 = vector.shape_cast %288 : vector<16x16x8xf32> to vector<256x8xf32>
    %c64_318 = arith.constant 64 : index
    %c0_319 = arith.constant 0 : index
    %290 = vector.load %arg11[%c64_318, %c0_319] : memref<72x4xf32, #tpu.memory_space<vmem>>, vector<8x4xf32>
    %cst_320 = arith.constant dense<0.000000e+00> : vector<256x4xf32>
    %291 = tpu.matmul %289, %290, %cst_320 {dimension_numbers = #tpu.dot_dimension_numbers<[1], [0], [0], [1], [0, 0, 1, 1], [], []>} : vector<256x8xf32>, vector<8x4xf32>, vector<256x4xf32> -> vector<256x4xf32>
    %292 = arith.addf %287, %291 : vector<256x4xf32>
    %c0_321 = arith.constant 0 : index
    %c0_322 = arith.constant 0 : index
    %293 = vector.load %arg12[%c0_321, %c0_322] : memref<1x4xf32, #tpu.memory_space<vmem>>, vector<1x4xf32>
    %294 = vector.shape_cast %293 : vector<1x4xf32> to vector<4xf32>
    %295 = vector.shape_cast %294 : vector<4xf32> to vector<1x4xf32>
    %296 = vector.broadcast %295 : vector<1x4xf32> to vector<256x4xf32>
    %297 = arith.addf %292, %296 : vector<256x4xf32>
    %298 = vector.extract_strided_slice %297 {offsets = [0, 0], sizes = [256, 2], strides = [1, 1]} : vector<256x4xf32> to vector<256x2xf32>
    %cst_323 = arith.constant 5.000000e-01 : f32
    %299 = vector.broadcast %cst_323 : f32 to vector<256x2xf32>
    %300 = arith.mulf %299, %298 : vector<256x2xf32>
    %301 = math.tanh %300 : vector<256x2xf32>
    %cst_324 = arith.constant 1.000000e+00 : f32
    %302 = vector.broadcast %cst_324 : f32 to vector<256x2xf32>
    %303 = arith.mulf %302, %301 : vector<256x2xf32>
    %304 = vector.extract_strided_slice %297 {offsets = [0, 2], sizes = [256, 2], strides = [1, 1]} : vector<256x4xf32> to vector<256x2xf32>
    %c0_325 = arith.constant 0 : index
    %c1_326 = arith.constant 1 : index
    %c1_327 = arith.constant 1 : index
    %c0_328 = arith.constant 0 : index
    %305 = vector.load %arg2[%c0_325, %c1_326, %c1_327, %c0_328] : memref<1x18x18x4xf32, #tpu.memory_space<vmem>>, vector<1x16x16x2xf32>
    %306 = vector.shape_cast %305 : vector<1x16x16x2xf32> to vector<16x16x2xf32>
    %307 = vector.shape_cast %306 : vector<16x16x2xf32> to vector<256x2xf32>
    %c0_329 = arith.constant 0 : index
    %c1_330 = arith.constant 1 : index
    %c1_331 = arith.constant 1 : index
    %c2_332 = arith.constant 2 : index
    %308 = vector.load %arg2[%c0_329, %c1_330, %c1_331, %c2_332] : memref<1x18x18x4xf32, #tpu.memory_space<vmem>>, vector<1x16x16x2xf32>
    %309 = vector.shape_cast %308 : vector<1x16x16x2xf32> to vector<16x16x2xf32>
    %310 = vector.shape_cast %309 : vector<16x16x2xf32> to vector<256x2xf32>
    %311 = math.exp %303 : vector<256x2xf32>
    %312 = arith.mulf %310, %311 : vector<256x2xf32>
    %313 = arith.addf %312, %304 : vector<256x2xf32>
    %314 = vector.shape_cast %313 : vector<256x2xf32> to vector<16x16x2xf32>
    %c0_333 = arith.constant 0 : index
    %c0_334 = arith.constant 0 : index
    %c0_335 = arith.constant 0 : index
    %c0_336 = arith.constant 0 : index
    %315 = vector.load %arg13[%c0_333, %c0_334, %c0_335, %c0_336] : memref<1x16x16x4xf32, #tpu.memory_space<vmem>>, vector<1x16x16x2xf32>
    %316 = vector.shape_cast %315 : vector<1x16x16x2xf32> to vector<16x16x2xf32>
    %317 = vector.shape_cast %314 : vector<16x16x2xf32> to vector<1x16x16x2xf32>
    tpu.vector_store %arg13[%c0_333, %c0_334, %c0_335, %c0_336], %317 {strides = array<i32>} : memref<1x16x16x4xf32, #tpu.memory_space<vmem>>, vector<1x16x16x2xf32>,
    %318 = vector.shape_cast %307 : vector<256x2xf32> to vector<16x16x2xf32>
    %c0_337 = arith.constant 0 : index
    %c0_338 = arith.constant 0 : index
    %c0_339 = arith.constant 0 : index
    %c2_340 = arith.constant 2 : index
    %319 = vector.load %arg13[%c0_337, %c0_338, %c0_339, %c2_340] : memref<1x16x16x4xf32, #tpu.memory_space<vmem>>, vector<1x16x16x2xf32>
    %320 = vector.shape_cast %319 : vector<1x16x16x2xf32> to vector<16x16x2xf32>
    %321 = vector.shape_cast %318 : vector<16x16x2xf32> to vector<1x16x16x2xf32>
    tpu.vector_store %arg13[%c0_337, %c0_338, %c0_339, %c2_340], %321 {strides = array<i32>} : memref<1x16x16x4xf32, #tpu.memory_space<vmem>>, vector<1x16x16x2xf32>,
    return
  }
  func.func @transform_0(%arg0: i32) -> (i32, i32, i32, i32) {
    %c0_i32 = arith.constant 0 : i32
    %c0_i32_0 = arith.constant 0 : i32
    %c0_i32_1 = arith.constant 0 : i32
    %c0_i32_2 = arith.constant 0 : i32
    return %arg0, %c0_i32, %c0_i32_0, %c0_i32_1 : i32, i32, i32, i32
  }
  func.func @transform_1(%arg0: i32) -> (i32, i32, i32, i32) {
    %c0_i32 = arith.constant 0 : i32
    %c0_i32_0 = arith.constant 0 : i32
    %c0_i32_1 = arith.constant 0 : i32
    %c0_i32_2 = arith.constant 0 : i32
    return %arg0, %c0_i32, %c0_i32_0, %c0_i32_1 : i32, i32, i32, i32
  }
  func.func @transform_2(%arg0: i32) -> (i32, i32) {
    %c0_i32 = arith.constant 0 : i32
    %c0_i32_0 = arith.constant 0 : i32
    %c0_i32_1 = arith.constant 0 : i32
    return %c0_i32, %c0_i32_0 : i32, i32
  }
  func.func @transform_3(%arg0: i32) -> (i32, i32) {
    %c0_i32 = arith.constant 0 : i32
    %c0_i32_0 = arith.constant 0 : i32
    %c0_i32_1 = arith.constant 0 : i32
    return %c0_i32, %c0_i32_0 : i32, i32
  }
  func.func @transform_4(%arg0: i32) -> (i32, i32) {
    %c0_i32 = arith.constant 0 : i32
    %c0_i32_0 = arith.constant 0 : i32
    %c0_i32_1 = arith.constant 0 : i32
    return %c0_i32, %c0_i32_0 : i32, i32
  }
  func.func @transform_5(%arg0: i32) -> (i32, i32) {
    %c0_i32 = arith.constant 0 : i32
    %c0_i32_0 = arith.constant 0 : i32
    %c0_i32_1 = arith.constant 0 : i32
    return %c0_i32, %c0_i32_0 : i32, i32
  }
  func.func @transform_6(%arg0: i32) -> (i32, i32) {
    %c0_i32 = arith.constant 0 : i32
    %c0_i32_0 = arith.constant 0 : i32
    %c0_i32_1 = arith.constant 0 : i32
    return %c0_i32, %c0_i32_0 : i32, i32
  }
  func.func @transform_7(%arg0: i32) -> (i32, i32) {
    %c0_i32 = arith.constant 0 : i32
    %c0_i32_0 = arith.constant 0 : i32
    %c0_i32_1 = arith.constant 0 : i32
    return %c0_i32, %c0_i32_0 : i32, i32
  }
  func.func @transform_8(%arg0: i32) -> (i32, i32) {
    %c0_i32 = arith.constant 0 : i32
    %c0_i32_0 = arith.constant 0 : i32
    %c0_i32_1 = arith.constant 0 : i32
    return %c0_i32, %c0_i32_0 : i32, i32
  }
  func.func @transform_9(%arg0: i32) -> (i32, i32) {
    %c0_i32 = arith.constant 0 : i32
    %c0_i32_0 = arith.constant 0 : i32
    %c0_i32_1 = arith.constant 0 : i32
    return %c0_i32, %c0_i32_0 : i32, i32
  }
  func.func @transform_10(%arg0: i32) -> (i32, i32) {
    %c0_i32 = arith.constant 0 : i32
    %c0_i32_0 = arith.constant 0 : i32
    %c0_i32_1 = arith.constant 0 : i32
    return %c0_i32, %c0_i32_0 : i32, i32
  }
  func.func @transform_11(%arg0: i32) -> (i32, i32) {
    %c0_i32 = arith.constant 0 : i32
    %c0_i32_0 = arith.constant 0 : i32
    %c0_i32_1 = arith.constant 0 : i32
    return %c0_i32, %c0_i32_0 : i32, i32
  }
  func.func @transform_12(%arg0: i32) -> (i32, i32, i32, i32) {
    %c0_i32 = arith.constant 0 : i32
    %c0_i32_0 = arith.constant 0 : i32
    %c0_i32_1 = arith.constant 0 : i32
    %c0_i32_2 = arith.constant 0 : i32
    return %arg0, %c0_i32, %c0_i32_0, %c0_i32_1 : i32, i32, i32, i32
  }
}

</mosaic_0001>

<bundles_post_ra>
// kernel: tpu_custom_call.1
= control target key start
LH: loop header
LB: loop body
LE: loop exit
PB: predicated region body
PF: predicated region fallthrough
CT: control target
= control target key end

     0   :  { %s26217_s21 = smov 0   ;;  %s31779_s0 = inlined_call_operand.vmem [shape: f32[2,18,18,8], index: 0, kind: input, shape index: {}]   ;;  %s31780_s1 = inlined_call_operand.vmem [shape: f32[2,18,18,4], index: 1, kind: input, shape index: {}]   ;;  %s31781_s2 = inlined_call_operand.vmem [shape: f32[72,4], index: 2, kind: input, shape index: {}]   ;;  %s31782_s3 = inlined_call_operand.vmem [shape: f32[1,4], index: 3, kind: input, shape index: {}]   ;;  %s31783_s4 = inlined_call_operand.vmem [shape: f32[72,2], index: 4, kind: input, shape index: {}]   ;;  %s31784_s5 = inlined_call_operand.vmem [shape: f32[1,2], index: 5, kind: input, shape index: {}]   ;;  %s31785_s6 = inlined_call_operand.vmem [shape: f32[72,8], index: 6, kind: input, shape index: {}]   ;;  %s31786_s7 = inlined_call_operand.vmem [shape: f32[1,8], index: 7, kind: input, shape index: {}]   ;;  %s31787_s8 = inlined_call_operand.vmem [shape: f32[72,8], index: 8, kind: input, shape index: {}]   ;;  %s31788_s9 = inlined_call_operand.vmem [shape: f32[1,8], index: 9, kind: input, shape index: {}]   ;;  %s31789_s10 = inlined_call_operand.vmem [shape: f32[72,4], index: 10, kind: input, shape index: {}]   ;;  %s31790_s11 = inlined_call_operand.vmem [shape: f32[1,4], index: 11, kind: input, shape index: {}]   ;;  %s31791_s12 = inlined_call_operand.vmem [shape: f32[2,16,16,4], index: 12, kind: output, shape index: {}]  }
   0x1 LB: > { %s19303_s22 = sadd.s32 4294967295, %s26147_s21   ;;  %p19307_p0 = scmp.ge.s32.totalorder %s26147_s21, 1  ;;  %s26147_s21 = sphi %s26217_s21, %s22_s21  }
   0x2   : > { %p372_p1 = scmp.lt.s32.totalorder %s26147_s21, 3 }
   0x4   : > { %p373_p2 = pnand %p19307_p0, %p372_p1 }
   0x6   : > { %376 = sbr.rel (%p373_p2) target bundleno = 3845 (0xf05), region = 68 }
   0xd   : > { %v717_v0 = vld [vmem:[%s31781_s2 + $0x8] sm:$0xff]  ;;  %v26231_v1 = vld [vmem:[%s31781_s2 + $0x20] sm:$0xff]  ;;  %p419_p3 = scmp.lt.s32.totalorder %s19303_s22, 1  ;;  %vm434_vm0 = vcmask 64512   ;;  %v2938_v9 = vld [vmem:[%s31781_s2 + $0x30] sm:$0xff]  ;;  %vm437_vm1 = vcmask 58368  }
   0xe   : > { %v684_v2 = vld [vmem:[%s31781_s2] sm:$0xff]  ;;  %22469 = vmatprep.subr.mxu1 %v717_v0  ;;  %22669 = vmatprep.subr.mxu0 %v26231_v1  ;;  %v2551_v3 = vld [vmem:[%s31781_s2 + $0x28] sm:$0xff]  ;;  %v26268_v10 = vld [vmem:[%s31781_s2 + $0x10] sm:$0xff]  ;;  %vm4200_vm3 = vcmask 31744   ;;  %s26150_s27 = smov 2   ;;  %s26151_s28 = smov 126  }
   0xf   : > { %22470 = vmatpush3.msra.mxu1 %v717_v0  ;;  %22670 = vmatpush3.msra.mxu0 %v26231_v1  ;;  %s32493_s22 = smov (!%p419_p3, %s19303_s22), 1  ;;  %v26383_v28 = vld [vmem:[%s31781_s2 + $0x38] sm:$0xff] }
  0x10   : > { %22519 = vmatprep.subr.mxu1 %v684_v2  ;;  %22719 = vmatprep.subr.mxu0 %v2551_v3  ;;  %s26001_s13 = smul.u32 432, %s32493_s22  ;;  %v26544_v61 = vld [vmem:[%s31781_s2 + $0x18] sm:$0xff] }
  0x12   : > { %s26249_s16 = scalar_lea.vmem %s31779_s0, %s26001_s13  ;;  %s28451_s23 = scalar_lea.vmem %s31780_s1, %s26001_s13 }
  0x13   : > { %v685_v4 = vld [vmem:[%s26249_s16 + $0x1] sm:$0xff]  ;;  %v19472_v5 = vld [vmem:[%s26249_s16 + $0x19] sm:$0xff]  ;;  %v686_v6 = vld [vmem:[%s26249_s16 + $0x9] sm:$0xff] }
  0x14   : > { %22471 = vmatprep.mubr.msk.f32.mxu1 %vm434_vm0, %v685_v4  ;;  %22671 = vmatprep.mubr.msk.f32.mxu0 %vm434_vm0, %v19472_v5  ;;  %v19473_v7 = vld [vmem:[%s26249_s16 + $0x21] sm:$0xff]  ;;  %v26258_v8 = vld [vmem:[%s26249_s16 + $0x31] sm:$0xff]  ;;  %v26271_v11 = vld [vmem:[%s26249_s16 + $0x39] sm:$0xff] }
  0x15   : > { %22472 = vmatmul.mubr.msk.f32.vlgmr.msra.gmra.mrb[0].mxu1 %vm434_vm0, %v686_v6  ;;  %22672 = vmatmul.mubr.msk.f32.vlgmr.msra.gmra.mrb[0].mxu0 %vm434_vm0, %v19473_v7  ;;  %v26277_v12 = vld [vmem:[%s26249_s16 + $0x49] sm:$0xff]  ;;  %v26288_v13 = vld [vmem:[%s26249_s16 + $0x51] sm:$0xff]  ;;  %v26291_v14 = vld [vmem:[%s26249_s16 + $0x61] sm:$0xff] }
  0x16   : > { %22520 = vmatpush3.msra.mxu1 %v684_v2  ;;  %22720 = vmatpush3.msra.mxu0 %v2551_v3  ;;  %v26302_v15 = vld [vmem:[%s26249_s16 + $0x69] sm:$0xff]  ;;  %v26305_v16 = vld [vmem:[%s26249_s16 + $0x79] sm:$0xff]  ;;  %v26316_v17 = vld [vmem:[%s26249_s16 + $0x81] sm:$0xff] }
  0x17   : > { %22474 = vmatprep.mubr.msk.f32.mxu1 %vm434_vm0, %v19472_v5  ;;  %22674 = vmatprep.mubr.msk.f32.mxu0 %vm434_vm0, %v26258_v8  ;;  %v26319_v18 = vld [vmem:[%s26249_s16 + $0x91] sm:$0xff]  ;;  %v26330_v19 = vld [vmem:[%s26249_s16 + $0x99] sm:$0xff]  ;;  %v26333_v20 = vld [vmem:[%s26249_s16 + $0xa9] sm:$0xff] }
  0x18   : > { %22769 = vmatprep.subr.mxu0 %v2938_v9  ;;  %22569 = vmatprep.subr.mxu1 %v26268_v10  ;;  %v26344_v21 = vld [vmem:[%s26249_s16 + $0xb1] sm:$0xff]  ;;  %v26347_v22 = vld [vmem:[%s26249_s16 + $0xc1] sm:$0xff]  ;;  %v26358_v23 = vld [vmem:[%s26249_s16 + $0xc9] sm:$0xff] }
  0x19   : > { %22475 = vmatmul.mubr.msk.f32.gmra.mrb[2].mxu1 %vm434_vm0, %v19473_v7  ;;  %22675 = vmatmul.mubr.msk.f32.gmra.mrb[2].mxu0 %vm434_vm0, %v26271_v11  ;;  %v26361_v24 = vld [vmem:[%s26249_s16 + $0x1a] sm:$0xff]  ;;  %v26372_v25 = vld [vmem:[%s26249_s16 + $0x22] sm:$0xff]  ;;  %v26378_v27 = vld [vmem:[%s26249_s16 + $0x32] sm:$0xff] }
  0x1a   : > { %22477 = vmatprep.mubr.msk.f32.mxu1 %vm434_vm0, %v26258_v8  ;;  %22677 = vmatprep.mubr.msk.f32.mxu0 %vm434_vm0, %v26277_v12  ;;  %v26375_v26 = vld [vmem:[%s26249_s16 + $0xd9] sm:$0xff]  ;;  %v26392_v29 = vld [vmem:[%s26249_s16 + $0xe1] sm:$0xff]  ;;  %v26400_v31 = vld [vmem:[%s26249_s16 + $0xf1] sm:$0xff] }
  0x1b   : > { %32069 = vst [vmem:[#allocation6_spill] sm:$0xff] %v26392_v29  ;;  %v26395_v30 = vld [vmem:[%s26249_s16 + $0x3a] sm:$0xff]  ;;  %32070 = vst [vmem:[#allocation7_spill] sm:$0xff] %v26400_v31  ;;  %v26403_v32 = vld [vmem:[%s26249_s16 + $0x4a] sm:$0xff] }
  0x1c   : > { %v26415_v33 = vld [vmem:[%s26249_s16 + $0xf9] sm:$0xff]  ;;  %v26421_v35 = vld [vmem:[%s26249_s16 + $0x109] sm:$0xff]  ;;  %v26435_v37 = vld [vmem:[%s26249_s16 + $0x111] sm:$0xff] }
  0x1d   : > { %22478 = vmatmul.mubr.msk.f32.gmra.mrb[4].mxu1 %vm434_vm0, %v26271_v11  ;;  %22678 = vmatmul.mubr.msk.f32.gmra.mrb[4].mxu0 %vm434_vm0, %v26288_v13  ;;  %32071 = vst [vmem:[#allocation8_spill] sm:$0xff] %v26415_v33  ;;  %v26418_v34 = vld [vmem:[%s26249_s16 + $0x52] sm:$0xff]  ;;  %32072 = vst [vmem:[#allocation9_spill] sm:$0xff] %v26421_v35  ;;  %v26424_v36 = vld [vmem:[%s26249_s16 + $0x62] sm:$0xff] }
  0x1e   : > { %22480 = vmatprep.mubr.msk.f32.mxu1 %vm434_vm0, %v26277_v12  ;;  %22680 = vmatprep.mubr.msk.f32.mxu0 %vm434_vm0, %v26291_v14  ;;  %32073 = vst [vmem:[#allocation10_spill] sm:$0xff] %v26435_v37  ;;  %v26438_v38 = vld [vmem:[%s26249_s16 + $0x6a] sm:$0xff]  ;;  %v26441_v39 = vld [vmem:[%s26249_s16 + $0x121] sm:$0xff]  ;;  %v26461_v43 = vld [vmem:[%s26249_s16 + $0x139] sm:$0xff] }
  0x1f   : > { %32074 = vst [vmem:[#allocation11_spill] sm:$0xff] %v26441_v39  ;;  %v26444_v40 = vld [vmem:[%s26249_s16 + $0x7a] sm:$0xff]  ;;  %v26455_v41 = vld [vmem:[%s26249_s16 + $0x129] sm:$0xff]  ;;  %32076 = vst [vmem:[#allocation13_spill] sm:$0xff] %v26461_v43 }
  0x20   : > { %32075 = vst [vmem:[#allocation12_spill] sm:$0xff] %v26455_v41  ;;  %v26458_v42 = vld [vmem:[%s26249_s16 + $0x82] sm:$0xff]  ;;  %v26464_v44 = vld [vmem:[%s26249_s16 + $0x92] sm:$0xff]  ;;  %v26478_v46 = vld [vmem:[%s26249_s16 + $0x9a] sm:$0xff] }
  0x21   : > { %22481 = vmatmul.mubr.msk.f32.gmra.mrb[6].mxu1 %vm434_vm0, %v26288_v13  ;;  %22681 = vmatmul.mubr.msk.f32.gmra.mrb[6].mxu0 %vm434_vm0, %v26302_v15  ;;  %v26475_v45 = vld [vmem:[%s26249_s16 + $0x141] sm:$0xff]  ;;  %v26481_v47 = vld [vmem:[%s26249_s16 + $0x151] sm:$0xff]  ;;  %v26495_v49 = vld [vmem:[%s26249_s16 + $0x159] sm:$0xff] }
  0x22   : > { %22483 = vmatprep.mubr.msk.f32.mxu1 %vm434_vm0, %v26291_v14  ;;  %22683 = vmatprep.mubr.msk.f32.mxu0 %vm434_vm0, %v26305_v16  ;;  %32077 = vst [vmem:[#allocation14_spill] sm:$0xff] %v26475_v45  ;;  %32078 = vst [vmem:[#allocation15_spill] sm:$0xff] %v26481_v47  ;;  %v26484_v48 = vld [vmem:[%s26249_s16 + $0xaa] sm:$0xff]  ;;  %v26498_v50 = vld [vmem:[%s26249_s16 + $0xb2] sm:$0xff] }
  0x23   : > { %32079 = vst [vmem:[#allocation16_spill] sm:$0xff] %v26495_v49  ;;  %v26501_v51 = vld [vmem:[%s26249_s16 + $0x169] sm:$0xff]  ;;  %v26515_v53 = vld [vmem:[%s26249_s16 + $0x171] sm:$0xff]  ;;  %v652_v55 = vld [vmem:[%s26249_s16] sm:$0xff] }
  0x24   : > { %32080 = vst [vmem:[#allocation17_spill] sm:$0xff] %v26501_v51  ;;  %v26504_v52 = vld [vmem:[%s26249_s16 + $0xc2] sm:$0xff]  ;;  %32081 = vst [vmem:[#allocation18_spill] sm:$0xff] %v26515_v53  ;;  %v26518_v54 = vld [vmem:[%s26249_s16 + $0xca] sm:$0xff] }
  0x25   : > { %22484 = vmatmul.mubr.msk.f32.gmra.mrb[8].mxu1 %vm434_vm0, %v26302_v15  ;;  %22684 = vmatmul.mubr.msk.f32.gmra.mrb[8].mxu0 %vm434_vm0, %v26316_v17  ;;  %v26522_v56 = vld [vmem:[%s26249_s16 + $0xda] sm:$0xff]  ;;  %v653_v57 = vld [vmem:[%s26249_s16 + $0x8] sm:$0xff]  ;;  %v26539_v60 = vld [vmem:[%s26249_s16 + $0xf2] sm:$0xff] }
  0x26   : > { %22486 = vmatprep.mubr.msk.f32.mxu1 %vm434_vm0, %v26305_v16  ;;  %22686 = vmatprep.mubr.msk.f32.mxu0 %vm434_vm0, %v26319_v18  ;;  %v26533_v58 = vld [vmem:[%s26249_s16 + $0xe2] sm:$0xff]  ;;  %v26536_v59 = vld [vmem:[%s26249_s16 + $0x18] sm:$0xff]  ;;  %v26561_v0 = vld [vmem:[%s26249_s16 + $0x30] sm:$0xff] }
  0x27   : > { %32082 = vst [vmem:[#allocation19_spill] sm:$0xff] %v26536_v59  ;;  %v26553_v62 = vld [vmem:[%s26249_s16 + $0x20] sm:$0xff]  ;;  %32084 = vst [vmem:[#allocation21_spill] sm:$0xff] %v26561_v0  ;;  %v26564_v2 = vld [vmem:[%s26249_s16 + $0x10a] sm:$0xff] }
  0x28   : > { %32083 = vst [vmem:[#allocation20_spill] sm:$0xff] %v26553_v62  ;;  %v26556_v63 = vld [vmem:[%s26249_s16 + $0xfa] sm:$0xff]  ;;  %v26579_v4 = vld [vmem:[%s26249_s16 + $0x112] sm:$0xff]  ;;  %v26582_v5 = vld [vmem:[%s26249_s16 + $0x48] sm:$0xff] }
  0x29   : > { %22487 = vmatmul.mubr.msk.f32.gmra.mrb[10].mxu1 %vm434_vm0, %v26316_v17  ;;  %22687 = vmatmul.mubr.msk.f32.gmra.mrb[10].mxu0 %vm434_vm0, %v26330_v19  ;;  %v26576_v3 = vld [vmem:[%s26249_s16 + $0x38] sm:$0xff]  ;;  %32086 = vst [vmem:[#allocation23_spill] sm:$0xff] %v26582_v5  ;;  %v26585_v6 = vld [vmem:[%s26249_s16 + $0x122] sm:$0xff]  ;;  %v26596_v7 = vld [vmem:[%s26249_s16 + $0x50] sm:$0xff] }
  0x2a   : > { %22489 = vmatprep.mubr.msk.f32.mxu1 %vm434_vm0, %v26319_v18  ;;  %22689 = vmatprep.mubr.msk.f32.mxu0 %vm434_vm0, %v26333_v20  ;;  %32085 = vst [vmem:[#allocation22_spill] sm:$0xff] %v26576_v3  ;;  %32087 = vst [vmem:[#allocation24_spill] sm:$0xff] %v26596_v7 }
  0x2d   : > { %22490 = vmatmul.mubr.msk.f32.gmra.mrb[12].mxu1 %vm434_vm0, %v26330_v19  ;;  %22690 = vmatmul.mubr.msk.f32.gmra.mrb[12].mxu0 %vm434_vm0, %v26344_v21 }
  0x2e   : > { %22492 = vmatprep.mubr.msk.f32.mxu1 %vm434_vm0, %v26333_v20  ;;  %22692 = vmatprep.mubr.msk.f32.mxu0 %vm434_vm0, %v26347_v22 }
  0x31   : > { %22493 = vmatmul.mubr.msk.f32.gmra.mrb[14].mxu1 %vm434_vm0, %v26344_v21  ;;  %22693 = vmatmul.mubr.msk.f32.gmra.mrb[14].mxu0 %vm434_vm0, %v26358_v23 }
  0x32   : > { %22495 = vmatprep.mubr.msk.f32.mxu1 %vm434_vm0, %v26347_v22  ;;  %22721 = vmatprep.mubr.msk.f32.mxu0 %vm434_vm0, %v26361_v24 }
  0x35   : > { %22496 = vmatmul.mubr.msk.f32.gmra.mrb[16].mxu1 %vm434_vm0, %v26358_v23  ;;  %22722 = vmatmul.mubr.msk.f32.vlgmr.msra.gmra.mrb[0].mxu0 %vm434_vm0, %v26372_v25 }
  0x36   : > { %22770 = vmatpush3.msra.mxu0 %v2938_v9  ;;  %22498 = vmatprep.mubr.msk.f32.mxu1 %vm434_vm0, %v26375_v26  ;;  %v26599_v9 = vld [vmem:[%s26249_s16 + $0x12a] sm:$0xff] }
  0x37   : > { %22724 = vmatprep.mubr.msk.f32.mxu0 %vm434_vm0, %v26378_v27  ;;  %22819 = vmatprep.subr.mxu0 %v26383_v28 }
  0x39   : > { %22499 = vmatmul.mubr.msk.f32.gmra.mrb[18].mxu1 %vm434_vm0, %v26392_v29  ;;  %22725 = vmatmul.mubr.msk.f32.gmra.mrb[2].mxu0 %vm434_vm0, %v26395_v30  ;;  %v26696_v29 = vld [vmem:[%s26249_s16 + $0xd8] sm:$0xff] }
  0x3a   : > { %22501 = vmatprep.mubr.msk.f32.mxu1 %vm434_vm0, %v26400_v31  ;;  %22727 = vmatprep.mubr.msk.f32.mxu0 %vm434_vm0, %v26403_v32  ;;  %v26679_v31 = vld [vmem:[%s26249_s16 + $0x18a] sm:$0xff] }
  0x3b   : > { %32098 = vst [vmem:[#allocation35_spill] sm:$0xff] %v26679_v31 }
  0x3d   : > { %22502 = vmatmul.mubr.msk.f32.gmra.mrb[20].mxu1 %vm434_vm0, %v26415_v33  ;;  %22728 = vmatmul.mubr.msk.f32.gmra.mrb[4].mxu0 %vm434_vm0, %v26418_v34  ;;  %v26665_v33 = vld [vmem:[%s26249_s16 + $0x182] sm:$0xff] }
  0x3e   : > { %22504 = vmatprep.mubr.msk.f32.mxu1 %vm434_vm0, %v26421_v35  ;;  %22730 = vmatprep.mubr.msk.f32.mxu0 %vm434_vm0, %v26424_v36  ;;  %v26662_v35 = vld [vmem:[%s26249_s16 + $0xa8] sm:$0xff]  ;;  %32096 = vst [vmem:[#allocation33_spill] sm:$0xff] %v26665_v33 }
  0x3f   : > { %32095 = vst [vmem:[#allocation32_spill] sm:$0xff] %v26662_v35 }
  0x41   : > { %22505 = vmatmul.mubr.msk.f32.gmra.mrb[22].mxu1 %vm434_vm0, %v26435_v37  ;;  %22731 = vmatmul.mubr.msk.f32.gmra.mrb[6].mxu0 %vm434_vm0, %v26438_v38  ;;  %v26659_v37 = vld [vmem:[%s26249_s16 + $0x172] sm:$0xff] }
  0x42   : > { %22507 = vmatprep.mubr.msk.f32.mxu1 %vm434_vm0, %v26441_v39  ;;  %22733 = vmatprep.mubr.msk.f32.mxu0 %vm434_vm0, %v26444_v40  ;;  %v26656_v39 = vld [vmem:[%s26249_s16 + $0x98] sm:$0xff]  ;;  %32094 = vst [vmem:[#allocation31_spill] sm:$0xff] %v26659_v37 }
  0x43   : > { %32093 = vst [vmem:[#allocation30_spill] sm:$0xff] %v26656_v39 }
  0x45   : > { %22508 = vmatmul.mubr.msk.f32.gmra.mrb[24].mxu1 %vm434_vm0, %v26455_v41  ;;  %22734 = vmatmul.mubr.msk.f32.gmra.mrb[8].mxu0 %vm434_vm0, %v26458_v42  ;;  %v26645_v41 = vld [vmem:[%s26249_s16 + $0x16a] sm:$0xff] }
  0x46   : > { %22510 = vmatprep.mubr.msk.f32.mxu1 %vm434_vm0, %v26461_v43  ;;  %22736 = vmatprep.mubr.msk.f32.mxu0 %vm434_vm0, %v26464_v44  ;;  %v26642_v43 = vld [vmem:[%s26249_s16 + $0x90] sm:$0xff] }
  0x47   : > { %32092 = vst [vmem:[#allocation29_spill] sm:$0xff] %v26642_v43 }
  0x49   : > { %22511 = vmatmul.mubr.msk.f32.gmra.mrb[26].mxu1 %vm434_vm0, %v26475_v45  ;;  %22737 = vmatmul.mubr.msk.f32.gmra.mrb[10].mxu0 %vm434_vm0, %v26478_v46  ;;  %v26639_v45 = vld [vmem:[%s26249_s16 + $0x15a] sm:$0xff] }
  0x4a   : > { %22513 = vmatprep.mubr.msk.f32.mxu1 %vm434_vm0, %v26481_v47  ;;  %22739 = vmatprep.mubr.msk.f32.mxu0 %vm434_vm0, %v26484_v48  ;;  %v26636_v47 = vld [vmem:[%s26249_s16 + $0x80] sm:$0xff] }
  0x4b   : > { %32091 = vst [vmem:[#allocation28_spill] sm:$0xff] %v26636_v47 }
  0x4d   : > { %22514 = vmatmul.mubr.msk.f32.gmra.mrb[28].mxu1 %vm434_vm0, %v26495_v49  ;;  %22740 = vmatmul.mubr.msk.f32.gmra.mrb[12].mxu0 %vm434_vm0, %v26498_v50  ;;  %v26625_v49 = vld [vmem:[%s26249_s16 + $0x152] sm:$0xff] }
  0x4e   : > { %22516 = vmatprep.mubr.msk.f32.mxu1 %vm434_vm0, %v26501_v51  ;;  %22742 = vmatprep.mubr.msk.f32.mxu0 %vm434_vm0, %v26504_v52  ;;  %v26622_v51 = vld [vmem:[%s26249_s16 + $0x78] sm:$0xff] }
  0x4f   : > { %32090 = vst [vmem:[#allocation27_spill] sm:$0xff] %v26622_v51 }
  0x51   : > { %22517 = vmatmul.mubr.msk.f32.gmra.mrb[30].mxu1 %vm434_vm0, %v26515_v53  ;;  %22743 = vmatmul.mubr.msk.f32.gmra.mrb[14].mxu0 %vm434_vm0, %v26518_v54  ;;  %v26619_v53 = vld [vmem:[%s26249_s16 + $0x142] sm:$0xff] }
  0x52   : > { %22521 = vmatprep.mubr.msk.f32.mxu1 %vm434_vm0, %v652_v55  ;;  %22745 = vmatprep.mubr.msk.f32.mxu0 %vm434_vm0, %v26522_v56  ;;  %v26605_v55 = vld [vmem:[%s26249_s16 + $0x13a] sm:$0xff] }
  0x55   : > { %22522 = vmatmul.mubr.msk.f32.vlgmr.msra.gmra.mrb[0].mxu1 %vm434_vm0, %v653_v57  ;;  %22746 = vmatmul.mubr.msk.f32.gmra.mrb[16].mxu0 %vm434_vm0, %v26533_v58  ;;  %v26616_v57 = vld [vmem:[%s26249_s16 + $0x68] sm:$0xff] }
  0x56   : > { %22570 = vmatpush3.msra.mxu1 %v26268_v10  ;;  %22524 = vmatprep.mubr.msk.f32.mxu1 %vm434_vm0, %v26536_v59  ;;  %v26602_v10 = vld [vmem:[%s26249_s16 + $0x60] sm:$0xff]  ;;  %32089 = vst [vmem:[#allocation26_spill] sm:$0xff] %v26616_v57 }
  0x57   : > { %22748 = vmatprep.mubr.msk.f32.mxu0 %vm434_vm0, %v26539_v60  ;;  %22619 = vmatprep.subr.mxu1 %v26544_v61  ;;  %32088 = vst [vmem:[#allocation25_spill] sm:$0xff] %v26602_v10  ;;  %v26682_v59 = vld [vmem:[%s26249_s16 + $0xc0] sm:$0xff] }
  0x59   : > { %22525 = vmatmul.mubr.msk.f32.gmra.mrb[2].mxu1 %vm434_vm0, %v26553_v62  ;;  %22749 = vmatmul.mubr.msk.f32.gmra.mrb[18].mxu0 %vm434_vm0, %v26556_v63  ;;  %v26676_v62 = vld [vmem:[%s26249_s16 + $0xb0] sm:$0xff] }
  0x5a   : > { %22527 = vmatprep.mubr.msk.f32.mxu1 %vm434_vm0, %v26561_v0  ;;  %22751 = vmatprep.mubr.msk.f32.mxu0 %vm434_vm0, %v26564_v2  ;;  %32097 = vst [vmem:[#allocation34_spill] sm:$0xff] %v26676_v62 }
  0x5d   : > { %22528 = vmatmul.mubr.msk.f32.gmra.mrb[4].mxu1 %vm434_vm0, %v26576_v3  ;;  %22752 = vmatmul.mubr.msk.f32.gmra.mrb[20].mxu0 %vm434_vm0, %v26579_v4 }
  0x5e   : > { %22530 = vmatprep.mubr.msk.f32.mxu1 %vm434_vm0, %v26582_v5  ;;  %22754 = vmatprep.mubr.msk.f32.mxu0 %vm434_vm0, %v26585_v6 }
  0x61   : > { %22531 = vmatmul.mubr.msk.f32.gmra.mrb[6].mxu1 %vm434_vm0, %v26596_v7  ;;  %22755 = vmatmul.mubr.msk.f32.gmra.mrb[22].mxu0 %vm434_vm0, %v26599_v9 }
  0x62   : > { %22533 = vmatprep.mubr.msk.f32.mxu1 %vm434_vm0, %v26602_v10  ;;  %22757 = vmatprep.mubr.msk.f32.mxu0 %vm434_vm0, %v26605_v55 }
  0x65   : > { %22534 = vmatmul.mubr.msk.f32.gmra.mrb[8].mxu1 %vm434_vm0, %v26616_v57  ;;  %22758 = vmatmul.mubr.msk.f32.gmra.mrb[24].mxu0 %vm434_vm0, %v26619_v53 }
  0x66   : > { %22536 = vmatprep.mubr.msk.f32.mxu1 %vm434_vm0, %v26622_v51  ;;  %22760 = vmatprep.mubr.msk.f32.mxu0 %vm434_vm0, %v26625_v49 }
  0x69   : > { %22537 = vmatmul.mubr.msk.f32.gmra.mrb[10].mxu1 %vm434_vm0, %v26636_v47  ;;  %22761 = vmatmul.mubr.msk.f32.gmra.mrb[26].mxu0 %vm434_vm0, %v26639_v45 }
  0x6a   : > { %22539 = vmatprep.mubr.msk.f32.mxu1 %vm434_vm0, %v26642_v43  ;;  %22763 = vmatprep.mubr.msk.f32.mxu0 %vm434_vm0, %v26645_v41 }
  0x6d   : > { %22540 = vmatmul.mubr.msk.f32.gmra.mrb[12].mxu1 %vm434_vm0, %v26656_v39  ;;  %22764 = vmatmul.mubr.msk.f32.gmra.mrb[28].mxu0 %vm434_vm0, %v26659_v37  ;;  %v26701_v37 = vld [vmem:[%s31781_s2 + $0x40] sm:$0xff] }
  0x6e   : > { %22542 = vmatprep.mubr.msk.f32.mxu1 %vm434_vm0, %v26662_v35  ;;  %22766 = vmatprep.mubr.msk.f32.mxu0 %vm434_vm0, %v26665_v33  ;;  %v26693_v33 = vld [vmem:[%s26249_s16 + $0xc8] sm:$0xff] }
  0x6f   : > { %32099 = vst [vmem:[#allocation36_spill] sm:$0xff] %v26693_v33 }
  0x71   : > { %22543 = vmatmul.mubr.msk.f32.gmra.mrb[14].mxu1 %vm434_vm0, %v26676_v62  ;;  %22767 = vmatmul.mubr.msk.f32.gmra.mrb[30].mxu0 %vm434_vm0, %v26679_v31  ;;  %v26711_v31 = vld [vmem:[%s26249_s16 + $0xe0] sm:$0xff] }
  0x72   : > { %22545 = vmatprep.mubr.msk.f32.mxu1 %vm434_vm0, %v26682_v59  ;;  %22771 = vmatprep.mubr.msk.f32.mxu0 %vm434_vm0, %v26561_v0  ;;  %v26716_v0 = vld [vmem:[%s26249_s16 + $0xf0] sm:$0xff] }
  0x75   : > { %22546 = vmatmul.mubr.msk.f32.gmra.mrb[16].mxu1 %vm434_vm0, %v26693_v33  ;;  %22772 = vmatmul.mubr.msk.f32.vlgmr.msra.gmra.mrb[0].mxu0 %vm434_vm0, %v26576_v3  ;;  %v1360_v3 = vld [vmem:[%s26249_s16 + $0x2] sm:$0xff] }
  0x76   : > { %22820 = vmatpush3.msra.mxu0 %v26383_v28  ;;  %22548 = vmatprep.mubr.msk.f32.mxu1 %vm434_vm0, %v26696_v29  ;;  %v26728_v28 = vld [vmem:[%s26249_s16 + $0xf8] sm:$0xff] }
  0x77   : > { %22774 = vmatprep.mubr.msk.f32.mxu0 %vm434_vm0, %v26582_v5  ;;  %22869 = vmatprep.subr.mxu0 %v26701_v37  ;;  %v26731_v5 = vld [vmem:[%s26249_s16 + $0x108] sm:$0xff] }
  0x79   : > { %22549 = vmatmul.mubr.msk.f32.gmra.mrb[18].mxu1 %vm434_vm0, %v26711_v31  ;;  %22775 = vmatmul.mubr.msk.f32.gmra.mrb[2].mxu0 %vm434_vm0, %v26596_v7  ;;  %v26742_v7 = vld [vmem:[%s26249_s16 + $0x110] sm:$0xff] }
  0x7a   : > { %22551 = vmatprep.mubr.msk.f32.mxu1 %vm434_vm0, %v26716_v0  ;;  %22777 = vmatprep.mubr.msk.f32.mxu0 %vm434_vm0, %v26602_v10  ;;  %v26745_v10 = vld [vmem:[%s26249_s16 + $0x120] sm:$0xff] }
  0x7d   : > { %22552 = vmatmul.mubr.msk.f32.gmra.mrb[20].mxu1 %vm434_vm0, %v26728_v28  ;;  %22778 = vmatmul.mubr.msk.f32.gmra.mrb[4].mxu0 %vm434_vm0, %v26616_v57  ;;  %v26756_v57 = vld [vmem:[%s26249_s16 + $0x128] sm:$0xff] }
  0x7e   : > { %22554 = vmatprep.mubr.msk.f32.mxu1 %vm434_vm0, %v26731_v5  ;;  %22780 = vmatprep.mubr.msk.f32.mxu0 %vm434_vm0, %v26622_v51  ;;  %v26759_v51 = vld [vmem:[%s26249_s16 + $0x138] sm:$0xff] }
  0x81   : > { %22555 = vmatmul.mubr.msk.f32.gmra.mrb[22].mxu1 %vm434_vm0, %v26742_v7  ;;  %22781 = vmatmul.mubr.msk.f32.gmra.mrb[6].mxu0 %vm434_vm0, %v26636_v47  ;;  %v26770_v47 = vld [vmem:[%s26249_s16 + $0x140] sm:$0xff] }
  0x82   : > { %22557 = vmatprep.mubr.msk.f32.mxu1 %vm434_vm0, %v26745_v10  ;;  %22783 = vmatprep.mubr.msk.f32.mxu0 %vm434_vm0, %v26642_v43  ;;  %v26773_v43 = vld [vmem:[%s26249_s16 + $0x150] sm:$0xff] }
  0x85   : > { %22558 = vmatmul.mubr.msk.f32.gmra.mrb[24].mxu1 %vm434_vm0, %v26756_v57  ;;  %22784 = vmatmul.mubr.msk.f32.gmra.mrb[8].mxu0 %vm434_vm0, %v26656_v39  ;;  %v26784_v39 = vld [vmem:[%s26249_s16 + $0x158] sm:$0xff] }
  0x86   : > { %22560 = vmatprep.mubr.msk.f32.mxu1 %vm434_vm0, %v26759_v51  ;;  %22786 = vmatprep.mubr.msk.f32.mxu0 %vm434_vm0, %v26662_v35  ;;  %v26787_v35 = vld [vmem:[%s26249_s16 + $0x168] sm:$0xff] }
  0x89   : > { %22561 = vmatmul.mubr.msk.f32.gmra.mrb[26].mxu1 %vm434_vm0, %v26770_v47  ;;  %22787 = vmatmul.mubr.msk.f32.gmra.mrb[10].mxu0 %vm434_vm0, %v26676_v62  ;;  %v26798_v62 = vld [vmem:[%s26249_s16 + $0x170] sm:$0xff] }
  0x8a   : > { %22563 = vmatprep.mubr.msk.f32.mxu1 %vm434_vm0, %v26773_v43  ;;  %22789 = vmatprep.mubr.msk.f32.mxu0 %vm434_vm0, %v26682_v59 }
  0x8d   : > { %22564 = vmatmul.mubr.msk.f32.gmra.mrb[28].mxu1 %vm434_vm0, %v26784_v39  ;;  %22790 = vmatmul.mubr.msk.f32.gmra.mrb[12].mxu0 %vm434_vm0, %v26693_v33  ;;  %v1361_v33 = vld [vmem:[%s26249_s16 + $0xa] sm:$0xff] }
  0x8e   : > { %22566 = vmatprep.mubr.msk.f32.mxu1 %vm434_vm0, %v26787_v35  ;;  %22792 = vmatprep.mubr.msk.f32.mxu0 %vm434_vm0, %v26696_v29 }
  0x91   : > { %22567 = vmatmul.mubr.msk.f32.gmra.mrb[30].mxu1 %vm434_vm0, %v26798_v62  ;;  %22793 = vmatmul.mubr.msk.f32.gmra.mrb[14].mxu0 %vm434_vm0, %v26711_v31 }
  0x92   : > { %22571 = vmatprep.mubr.msk.f32.mxu1 %vm434_vm0, %v1360_v3  ;;  %22795 = vmatprep.mubr.msk.f32.mxu0 %vm434_vm0, %v26716_v0  ;;  %v32116_v3 = vld [vmem:[#allocation26_spill] sm:$0xff] }
  0x95   : > { %22572 = vmatmul.mubr.msk.f32.vlgmr.msra.gmra.mrb[0].mxu1 %vm434_vm0, %v1361_v33  ;;  %22796 = vmatmul.mubr.msk.f32.gmra.mrb[16].mxu0 %vm434_vm0, %v26728_v28  ;;  %v19630_v33 = vld [vmem:[%s26249_s16 + $0x198] sm:$0xff] }
  0x96   : > { %22620 = vmatpush3.msra.mxu1 %v26544_v61  ;;  %22574 = vmatprep.mubr.msk.f32.mxu1 %vm434_vm0, %v26361_v24  ;;  %v26851_v24 = vld [vmem:[%s26249_s16 + $0x180] sm:$0xff] }
  0x97   : > { %22798 = vmatprep.mubr.msk.f32.mxu0 %vm434_vm0, %v26731_v5  ;;  %24719 = vmatprep.subr.mxu1 %v26231_v1  ;;  %v19631_v61 = vld [vmem:[%s26249_s16 + $0x1a0] sm:$0xff] }
  0x99   : > { %22575 = vmatmul.mubr.msk.f32.gmra.mrb[2].mxu1 %vm434_vm0, %v26372_v25  ;;  %22799 = vmatmul.mubr.msk.f32.gmra.mrb[18].mxu0 %vm434_vm0, %v26742_v7  ;;  %v26862_v25 = vld [vmem:[%s26249_s16 + $0x188] sm:$0xff] }
  0x9a   : > { %22577 = vmatprep.mubr.msk.f32.mxu1 %vm434_vm0, %v26378_v27  ;;  %22801 = vmatprep.mubr.msk.f32.mxu0 %vm434_vm0, %v26745_v10 }
  0x9d   : > { %22578 = vmatmul.mubr.msk.f32.gmra.mrb[4].mxu1 %vm434_vm0, %v26395_v30  ;;  %22802 = vmatmul.mubr.msk.f32.gmra.mrb[20].mxu0 %vm434_vm0, %v26756_v57 }
  0x9e   : > { %22580 = vmatprep.mubr.msk.f32.mxu1 %vm434_vm0, %v26403_v32  ;;  %22804 = vmatprep.mubr.msk.f32.mxu0 %vm434_vm0, %v26759_v51 }
  0xa1   : > { %22581 = vmatmul.mubr.msk.f32.gmra.mrb[6].mxu1 %vm434_vm0, %v26418_v34  ;;  %22805 = vmatmul.mubr.msk.f32.gmra.mrb[22].mxu0 %vm434_vm0, %v26770_v47 }
  0xa2   : > { %22583 = vmatprep.mubr.msk.f32.mxu1 %vm434_vm0, %v26424_v36  ;;  %22807 = vmatprep.mubr.msk.f32.mxu0 %vm434_vm0, %v26773_v43 }
  0xa5   : > { %22584 = vmatmul.mubr.msk.f32.gmra.mrb[8].mxu1 %vm434_vm0, %v26438_v38  ;;  %22808 = vmatmul.mubr.msk.f32.gmra.mrb[24].mxu0 %vm434_vm0, %v26784_v39 }
  0xa6   : > { %22586 = vmatprep.mubr.msk.f32.mxu1 %vm434_vm0, %v26444_v40  ;;  %22810 = vmatprep.mubr.msk.f32.mxu0 %vm434_vm0, %v26787_v35 }
  0xa9   : > { %22587 = vmatmul.mubr.msk.f32.gmra.mrb[10].mxu1 %vm434_vm0, %v26458_v42  ;;  %22811 = vmatmul.mubr.msk.f32.gmra.mrb[26].mxu0 %vm434_vm0, %v26798_v62 }
  0xaa   : > { %22589 = vmatprep.mubr.msk.f32.mxu1 %vm434_vm0, %v26464_v44  ;;  %22813 = vmatprep.mubr.msk.f32.mxu0 %vm434_vm0, %v26851_v24 }
  0xad   : > { %22590 = vmatmul.mubr.msk.f32.gmra.mrb[12].mxu1 %vm434_vm0, %v26478_v46  ;;  %22814 = vmatmul.mubr.msk.f32.gmra.mrb[28].mxu0 %vm434_vm0, %v26862_v25 }
  0xae   : > { %22592 = vmatprep.mubr.msk.f32.mxu1 %vm434_vm0, %v26484_v48  ;;  %22816 = vmatprep.mubr.msk.f32.mxu0 %vm434_vm0, %v19630_v33  ;;  %v32117_v33 = vld [vmem:[#allocation14_spill] sm:$0xff] }
  0xb1   : > { %22593 = vmatmul.mubr.msk.f32.gmra.mrb[14].mxu1 %vm434_vm0, %v26498_v50  ;;  %22817 = vmatmul.mubr.msk.f32.gmra.mrb[30].mxu0 %vm434_vm0, %v19631_v61  ;;  %v32118_v61 = vld [vmem:[#allocation27_spill] sm:$0xff] }
  0xb2   : > { %22595 = vmatprep.mubr.msk.f32.mxu1 %vm434_vm0, %v26504_v52  ;;  %22821 = vmatprep.mubr.msk.f32.mxu0 %vm434_vm0, %v26258_v8  ;;  %v32100_v8 = vld [vmem:[#allocation31_spill] sm:$0xff] }
  0xb5   : > { %22596 = vmatmul.mubr.msk.f32.gmra.mrb[16].mxu1 %vm434_vm0, %v26518_v54  ;;  %22822 = vmatmul.mubr.msk.f32.vlgmr.msra.gmra.mrb[0].mxu0 %vm434_vm0, %v26271_v11  ;;  %v32101_v11 = vld [vmem:[#allocation6_spill] sm:$0xff] }
  0xb6   : > { %22870 = vmatpush3.msra.mxu0 %v26701_v37  ;;  %22598 = vmatprep.mubr.msk.f32.mxu1 %vm434_vm0, %v26522_v56  ;;  %v32115_v37 = vld [vmem:[#allocation13_spill] sm:$0xff] }
  0xb7   : > { %22824 = vmatprep.mubr.msk.f32.mxu0 %vm434_vm0, %v26277_v12  ;;  %v32102_v12 = vld [vmem:[#allocation19_spill] sm:$0xff] }
  0xb9   : > { %22599 = vmatmul.mubr.msk.f32.gmra.mrb[18].mxu1 %vm434_vm0, %v26533_v58  ;;  %22825 = vmatmul.mubr.msk.f32.gmra.mrb[2].mxu0 %vm434_vm0, %v26288_v13  ;;  %v32103_v13 = vld [vmem:[#allocation7_spill] sm:$0xff] }
  0xba   : > { %22601 = vmatprep.mubr.msk.f32.mxu1 %vm434_vm0, %v26539_v60  ;;  %22827 = vmatprep.mubr.msk.f32.mxu0 %vm434_vm0, %v26291_v14  ;;  %v32104_v14 = vld [vmem:[#allocation20_spill] sm:$0xff] }
  0xbd   : > { %22602 = vmatmul.mubr.msk.f32.gmra.mrb[20].mxu1 %vm434_vm0, %v26556_v63  ;;  %22828 = vmatmul.mubr.msk.f32.gmra.mrb[4].mxu0 %vm434_vm0, %v26302_v15  ;;  %v32105_v15 = vld [vmem:[#allocation8_spill] sm:$0xff] }
  0xbe   : > { %22604 = vmatprep.mubr.msk.f32.mxu1 %vm434_vm0, %v26564_v2  ;;  %22830 = vmatprep.mubr.msk.f32.mxu0 %vm434_vm0, %v26305_v16  ;;  %v32106_v16 = vld [vmem:[#allocation21_spill] sm:$0xff] }
  0xc1   : > { %22605 = vmatmul.mubr.msk.f32.gmra.mrb[22].mxu1 %vm434_vm0, %v26579_v4  ;;  %22831 = vmatmul.mubr.msk.f32.gmra.mrb[6].mxu0 %vm434_vm0, %v26316_v17  ;;  %v32107_v17 = vld [vmem:[#allocation9_spill] sm:$0xff] }
  0xc2   : > { %22607 = vmatprep.mubr.msk.f32.mxu1 %vm434_vm0, %v26585_v6  ;;  %22833 = vmatprep.mubr.msk.f32.mxu0 %vm434_vm0, %v26319_v18  ;;  %v32108_v18 = vld [vmem:[#allocation22_spill] sm:$0xff] }
  0xc5   : > { %22608 = vmatmul.mubr.msk.f32.gmra.mrb[24].mxu1 %vm434_vm0, %v26599_v9  ;;  %22834 = vmatmul.mubr.msk.f32.gmra.mrb[8].mxu0 %vm434_vm0, %v26330_v19  ;;  %v32109_v19 = vld [vmem:[#allocation10_spill] sm:$0xff] }
  0xc6   : > { %22610 = vmatprep.mubr.msk.f32.mxu1 %vm434_vm0, %v26605_v55  ;;  %22836 = vmatprep.mubr.msk.f32.mxu0 %vm434_vm0, %v26333_v20  ;;  %v32110_v20 = vld [vmem:[#allocation23_spill] sm:$0xff] }
  0xc9   : > { %22611 = vmatmul.mubr.msk.f32.gmra.mrb[26].mxu1 %vm434_vm0, %v26619_v53  ;;  %22837 = vmatmul.mubr.msk.f32.gmra.mrb[10].mxu0 %vm434_vm0, %v26344_v21  ;;  %v32111_v21 = vld [vmem:[#allocation11_spill] sm:$0xff] }
  0xca   : > { %22613 = vmatprep.mubr.msk.f32.mxu1 %vm434_vm0, %v26625_v49  ;;  %22839 = vmatprep.mubr.msk.f32.mxu0 %vm434_vm0, %v26347_v22  ;;  %v32113_v22 = vld [vmem:[#allocation12_spill] sm:$0xff] }
  0xcd   : > { %22614 = vmatmul.mubr.msk.f32.gmra.mrb[28].mxu1 %vm434_vm0, %v26639_v45  ;;  %22840 = vmatmul.mubr.msk.f32.gmra.mrb[12].mxu0 %vm434_vm0, %v26358_v23  ;;  %v32114_v23 = vld [vmem:[#allocation25_spill] sm:$0xff] }
  0xce   : > { %22616 = vmatprep.mubr.msk.f32.mxu1 %vm434_vm0, %v26645_v41  ;;  %22842 = vmatprep.mubr.msk.f32.mxu0 %vm434_vm0, %v26375_v26 }
  0xd1   : > { %22617 = vmatmul.mubr.msk.f32.gmra.mrb[30].mxu1 %vm434_vm0, %v32100_v8  ;;  %22843 = vmatmul.mubr.msk.f32.gmra.mrb[14].mxu0 %vm434_vm0, %v32101_v11  ;;  %v32127_v8 = vld [vmem:[#allocation34_spill] sm:$0xff] }
  0xd2   : > { %22621 = vmatprep.mubr.msk.f32.mxu1 %vm434_vm0, %v32102_v12  ;;  %22845 = vmatprep.mubr.msk.f32.mxu0 %vm434_vm0, %v32103_v13  ;;  %v32119_v12 = vld [vmem:[#allocation15_spill] sm:$0xff] }
  0xd5   : > { %22622 = vmatmul.mubr.msk.f32.vlgmr.msra.gmra.mrb[0].mxu1 %vm434_vm0, %v32104_v14  ;;  %22846 = vmatmul.mubr.msk.f32.gmra.mrb[16].mxu0 %vm434_vm0, %v32105_v15  ;;  %v32120_v14 = vld [vmem:[#allocation28_spill] sm:$0xff] }
  0xd6   : > { %24720 = vmatpush3.msra.mxu1 %v26231_v1  ;;  %22624 = vmatprep.mubr.msk.f32.mxu1 %vm434_vm0, %v32106_v16  ;;  %v32112_v1 = vld [vmem:[#allocation24_spill] sm:$0xff] }
  0xd7   : > { %22848 = vmatprep.mubr.msk.f32.mxu0 %vm434_vm0, %v32107_v17  ;;  %v32121_v16 = vld [vmem:[#allocation16_spill] sm:$0xff] }
  0xd9   : > { %22625 = vmatmul.mubr.msk.f32.gmra.mrb[2].mxu1 %vm434_vm0, %v32108_v18  ;;  %22849 = vmatmul.mubr.msk.f32.gmra.mrb[18].mxu0 %vm434_vm0, %v32109_v19  ;;  %v32122_v18 = vld [vmem:[#allocation29_spill] sm:$0xff] }
  0xda   : > { %22627 = vmatprep.mubr.msk.f32.mxu1 %vm434_vm0, %v32110_v20  ;;  %22851 = vmatprep.mubr.msk.f32.mxu0 %vm434_vm0, %v32111_v21  ;;  %v32123_v20 = vld [vmem:[#allocation17_spill] sm:$0xff] }
  0xdd   : > { %22628 = vmatmul.mubr.msk.f32.gmra.mrb[4].mxu1 %vm434_vm0, %v32112_v1  ;;  %22852 = vmatmul.mubr.msk.f32.gmra.mrb[20].mxu0 %vm434_vm0, %v32113_v22  ;;  %v26987_v1 = vld [vmem:[%s26249_s16 + $0x181] sm:$0xff] }
  0xde   : > { %22630 = vmatprep.mubr.msk.f32.mxu1 %vm434_vm0, %v32114_v23  ;;  %22854 = vmatprep.mubr.msk.f32.mxu0 %vm434_vm0, %v32115_v37  ;;  %v32124_v23 = vld [vmem:[#allocation30_spill] sm:$0xff] }
  0xe1   : > { %22631 = vmatmul.mubr.msk.f32.gmra.mrb[6].mxu1 %vm434_vm0, %v32116_v3  ;;  %22855 = vmatmul.mubr.msk.f32.gmra.mrb[22].mxu0 %vm434_vm0, %v32117_v33  ;;  %v32125_v3 = vld [vmem:[#allocation18_spill] sm:$0xff] }
  0xe2   : > { %22633 = vmatprep.mubr.msk.f32.mxu1 %vm434_vm0, %v32118_v61  ;;  %22857 = vmatprep.mubr.msk.f32.mxu0 %vm434_vm0, %v32119_v12  ;;  %v32126_v61 = vld [vmem:[#allocation32_spill] sm:$0xff] }
  0xe5   : > { %22634 = vmatmul.mubr.msk.f32.gmra.mrb[8].mxu1 %vm434_vm0, %v32120_v14  ;;  %22858 = vmatmul.mubr.msk.f32.gmra.mrb[24].mxu0 %vm434_vm0, %v32121_v16  ;;  %v26998_v14 = vld [vmem:[%s26249_s16 + $0x189] sm:$0xff] }
  0xe6   : > { %22636 = vmatprep.mubr.msk.f32.mxu1 %vm434_vm0, %v32122_v18  ;;  %22860 = vmatprep.mubr.msk.f32.mxu0 %vm434_vm0, %v32123_v20  ;;  %v19694_v18 = vld [vmem:[%s26249_s16 + $0x199] sm:$0xff] }
  0xe9   : > { %22637 = vmatmul.mubr.msk.f32.gmra.mrb[10].mxu1 %vm434_vm0, %v32124_v23  ;;  %22861 = vmatmul.mubr.msk.f32.gmra.mrb[26].mxu0 %vm434_vm0, %v32125_v3  ;;  %v19695_v23 = vld [vmem:[%s26249_s16 + $0x1a1] sm:$0xff]  ;;  %v32128_v3 = vld [vmem:[#allocation36_spill] sm:$0xff] }
  0xea   : > { %22639 = vmatprep.mubr.msk.f32.mxu1 %vm434_vm0, %v32126_v61  ;;  %22863 = vmatprep.mubr.msk.f32.mxu0 %vm434_vm0, %v26987_v1 }
  0xed   : > { %22640 = vmatmul.mubr.msk.f32.gmra.mrb[12].mxu1 %vm434_vm0, %v32127_v8  ;;  %22864 = vmatmul.mubr.msk.f32.gmra.mrb[28].mxu0 %vm434_vm0, %v26998_v14 }
  0xee   : > { %22642 = vmatprep.mubr.msk.f32.mxu1 %vm434_vm0, %v26682_v59  ;;  %22866 = vmatprep.mubr.msk.f32.mxu0 %vm434_vm0, %v19694_v18 }
  0xf1   : > { %22643 = vmatmul.mubr.msk.f32.gmra.mrb[14].mxu1 %vm434_vm0, %v32128_v3  ;;  %22867 = vmatmul.mubr.msk.f32.gmra.mrb[30].mxu0 %vm434_vm0, %v19695_v23 }
  0xf2   : > { %22645 = vmatprep.mubr.msk.f32.mxu1 %vm434_vm0, %v26696_v29  ;;  %22871 = vmatprep.mubr.msk.f32.mxu0 %vm434_vm0, %v26378_v27  ;;  %v32130_v27 = vld [vmem:[#allocation33_spill] sm:$0xff] }
  0xf3   : > { %v19758_v29 = vld [vmem:[%s26249_s16 + $0x19a] sm:$0xff] }
  0xf5   : > { %22646 = vmatmul.mubr.msk.f32.gmra.mrb[16].mxu1 %vm434_vm0, %v26711_v31  ;;  %22872 = vmatmul.mubr.msk.f32.vlgmr.msra.gmra.mrb[0].mxu0 %vm434_vm0, %v26395_v30  ;;  %v32131_v30 = vld [vmem:[#allocation18_spill] sm:$0xff]  ;;  %v32132_v31 = vld [vmem:[#allocation35_spill] sm:$0xff] }
  0xf6   : > { %22648 = vmatprep.mubr.msk.f32.mxu1 %vm434_vm0, %v26716_v0  ;;  %22874 = vmatprep.mubr.msk.f32.mxu0 %vm434_vm0, %v26403_v32  ;;  %v19759_v32 = vld [vmem:[%s26249_s16 + $0x1a2] sm:$0xff] }
  0xf9   : > { %22649 = vmatmul.mubr.msk.f32.gmra.mrb[18].mxu1 %vm434_vm0, %v26728_v28  ;;  %22875 = vmatmul.mubr.msk.f32.gmra.mrb[2].mxu0 %vm434_vm0, %v26418_v34  ;;  %v4298_v34 = vld [vmem:[%s31783_s4 + $0x8] sm:$0xff] }
  0xfa   : > { %22651 = vmatprep.mubr.msk.f32.mxu1 %vm434_vm0, %v26731_v5  ;;  %22877 = vmatprep.mubr.msk.f32.mxu0 %vm434_vm0, %v26424_v36 }
  0xfb   : > { %22919 = vmatprep.subr.mxu1 %v4298_v34 }
  0xfd   : > { %22652 = vmatmul.mubr.msk.f32.gmra.mrb[20].mxu1 %vm434_vm0, %v26742_v7  ;;  %22878 = vmatmul.mubr.msk.f32.gmra.mrb[4].mxu0 %vm434_vm0, %v26438_v38 }
  0xfe   : > { %22654 = vmatprep.mubr.msk.f32.mxu1 %vm434_vm0, %v26745_v10  ;;  %22880 = vmatprep.mubr.msk.f32.mxu0 %vm434_vm0, %v26444_v40  ;;  %v27583_v40 = vld [vmem:[%s31783_s4 + $0x10] sm:$0xff] }
 0x101   : > { %22655 = vmatmul.mubr.msk.f32.gmra.mrb[22].mxu1 %vm434_vm0, %v26756_v57  ;;  %22881 = vmatmul.mubr.msk.f32.gmra.mrb[6].mxu0 %vm434_vm0, %v26458_v42 }
 0x102   : > { %22657 = vmatprep.mubr.msk.f32.mxu1 %vm434_vm0, %v26759_v51  ;;  %22883 = vmatprep.mubr.msk.f32.mxu0 %vm434_vm0, %v26464_v44 }
 0x105   : > { %22658 = vmatmul.mubr.msk.f32.gmra.mrb[24].mxu1 %vm434_vm0, %v26770_v47  ;;  %22884 = vmatmul.mubr.msk.f32.gmra.mrb[8].mxu0 %vm434_vm0, %v26478_v46 }
 0x106   : > { %22660 = vmatprep.mubr.msk.f32.mxu1 %vm434_vm0, %v26773_v43  ;;  %22886 = vmatprep.mubr.msk.f32.mxu0 %vm434_vm0, %v26484_v48 }
 0x109   : > { %22661 = vmatmul.mubr.msk.f32.gmra.mrb[26].mxu1 %vm434_vm0, %v26784_v39  ;;  %22887 = vmatmul.mubr.msk.f32.gmra.mrb[10].mxu0 %vm434_vm0, %v26498_v50  ;;  %v4265_v39 = vld [vmem:[%s31783_s4] sm:$0xff] }
 0x10a   : > { %22663 = vmatprep.mubr.msk.f32.mxu1 %vm434_vm0, %v26787_v35  ;;  %22889 = vmatprep.mubr.msk.f32.mxu0 %vm434_vm0, %v26504_v52  ;;  %v26149_v35 = vmov 0.0  }
 0x10b   : > { %440 = vst.msk [vmem:[#allocation2 + $0x20] sm:$0xff] %vm434_vm0, %v26149_v35  ;;  %435 = vst.msk [vmem:[#allocation2] sm:$0xff] %vm434_vm0, %v26149_v35 }
 0x10c   : > { %441 = vst.msk [vmem:[#allocation2 + $0x28] sm:$0x3] %vm437_vm1, %v26149_v35  ;;  %438 = vst.msk [vmem:[#allocation2 + $0x10] sm:$0x3] %vm437_vm1, %v26149_v35 }
 0x10d   : > { %22664 = vmatmul.mubr.msk.f32.gmra.mrb[28].mxu1 %vm434_vm0, %v26798_v62  ;;  %22890 = vmatmul.mubr.msk.f32.gmra.mrb[12].mxu0 %vm434_vm0, %v26518_v54  ;;  %436 = vst.msk [vmem:[#allocation2 + $0x8] sm:$0xff] %vm434_vm0, %v26149_v35  ;;  %439 = vst.msk [vmem:[#allocation2 + $0x18] sm:$0xff] %vm434_vm0, %v26149_v35 }
 0x10e   : > { %22666 = vmatprep.mubr.msk.f32.mxu1 %vm434_vm0, %v26851_v24  ;;  %22892 = vmatprep.mubr.msk.f32.mxu0 %vm434_vm0, %v26522_v56  ;;  %442 = vst.msk [vmem:[#allocation2 + $0x30] sm:$0xff] %vm434_vm0, %v26149_v35  ;;  %443 = vst.msk [vmem:[#allocation2 + $0x38] sm:$0xff] %vm434_vm0, %v26149_v35 }
 0x10f   : > { %444 = vst.msk [vmem:[#allocation2 + $0x40] sm:$0x3] %vm437_vm1, %v26149_v35  ;;  %447 = vst.msk [vmem:[#allocation2 + $0x58] sm:$0x3] %vm437_vm1, %v26149_v35 }
 0x110   : > { %445 = vst.msk [vmem:[#allocation2 + $0x48] sm:$0xff] %vm434_vm0, %v26149_v35  ;;  %446 = vst.msk [vmem:[#allocation2 + $0x50] sm:$0xff] %vm434_vm0, %v26149_v35 }
 0x111   : > { %22667 = vmatmul.mubr.msk.f32.gmra.mrb[30].mxu1 %vm434_vm0, %v26862_v25  ;;  %22893 = vmatmul.mubr.msk.f32.gmra.mrb[14].mxu0 %vm434_vm0, %v26533_v58  ;;  %448 = vst.msk [vmem:[#allocation2 + $0x60] sm:$0xff] %vm434_vm0, %v26149_v35  ;;  %449 = vst.msk [vmem:[#allocation2 + $0x68] sm:$0xff] %vm434_vm0, %v26149_v35 }
 0x112   : > { %22695 = vmatprep.mubr.msk.f32.mxu1 %vm434_vm0, %v26375_v26  ;;  %22895 = vmatprep.mubr.msk.f32.mxu0 %vm434_vm0, %v26539_v60  ;;  %v32129_v26 = vld [vmem:[#allocation31_spill] sm:$0xff]  ;;  %450 = vst.msk [vmem:[#allocation2 + $0x70] sm:$0x3] %vm437_vm1, %v26149_v35  ;;  %453 = vst.msk [vmem:[#allocation2 + $0x88] sm:$0x3] %vm437_vm1, %v26149_v35 }
 0x113   : > { %451 = vst.msk [vmem:[#allocation2 + $0x78] sm:$0xff] %vm434_vm0, %v26149_v35  ;;  %452 = vst.msk [vmem:[#allocation2 + $0x80] sm:$0xff] %vm434_vm0, %v26149_v35  ;;  %v27603_v60 = vld [vmem:[%s31782_s3] ss:$0 sm:$0xff] }
 0x114   : > { %454 = vst.msk [vmem:[#allocation2 + $0x90] sm:$0xff] %vm434_vm0, %v26149_v35  ;;  %455 = vst.msk [vmem:[#allocation2 + $0x98] sm:$0xff] %vm434_vm0, %v26149_v35  ;;  %v4266_v36 = vld [vmem:[#allocation2 + $0x1] sm:$0xff]  ;;  %v4267_v38 = vld [vmem:[#allocation2 + $0x9] sm:$0xff] }
 0x115   : > { %22696 = vmatmul.mubr.msk.f32.vlgmr.msra.gmra.mrb[16].mxu1 %vm434_vm0, %v32101_v11  ;;  %22896 = vmatmul.mubr.msk.f32.gmra.mrb[16].mxu0 %vm434_vm0, %v26556_v63  ;;  %456 = vst.msk [vmem:[#allocation2 + $0xa0] sm:$0x3] %vm437_vm1, %v26149_v35  ;;  %459 = vst.msk [vmem:[#allocation2 + $0xb8] sm:$0x3] %vm437_vm1, %v26149_v35 }
 0x116   : > { %22698 = vmatprep.mubr.msk.f32.mxu1 %vm434_vm0, %v32103_v13  ;;  %22898 = vmatprep.mubr.msk.f32.mxu0 %vm434_vm0, %v26564_v2  ;;  %457 = vst.msk [vmem:[#allocation2 + $0xa8] sm:$0xff] %vm434_vm0, %v26149_v35  ;;  %458 = vst.msk [vmem:[#allocation2 + $0xb0] sm:$0xff] %vm434_vm0, %v26149_v35 }
 0x117   : > { %22920 = vmatpush3.msra.mxu1 %v4298_v34  ;;  %460 = vst.msk [vmem:[#allocation2 + $0xc0] sm:$0xff] %vm434_vm0, %v26149_v35  ;;  %461 = vst.msk [vmem:[#allocation2 + $0xc8] sm:$0xff] %vm434_vm0, %v26149_v35 }
 0x118   : > { %462 = vst.msk [vmem:[#allocation2 + $0xd0] sm:$0x3] %vm437_vm1, %v26149_v35  ;;  %465 = vst.msk [vmem:[#allocation2 + $0xe8] sm:$0x3] %vm437_vm1, %v26149_v35  ;;  %22969 = vmatprep.subr.mxu1 %v4265_v39 }
 0x119   : > { %22699 = vmatmul.mubr.msk.f32.gmra.mrb[18].mxu1 %vm434_vm0, %v32105_v15  ;;  %22899 = vmatmul.mubr.msk.f32.gmra.mrb[18].mxu0 %vm434_vm0, %v26579_v4  ;;  %463 = vst.msk [vmem:[#allocation2 + $0xd8] sm:$0xff] %vm434_vm0, %v26149_v35  ;;  %464 = vst.msk [vmem:[#allocation2 + $0xe0] sm:$0xff] %vm434_vm0, %v26149_v35 }
 0x11a   : > { %22701 = vmatprep.mubr.msk.f32.mxu1 %vm434_vm0, %v32107_v17  ;;  %22901 = vmatprep.mubr.msk.f32.mxu0 %vm434_vm0, %v26585_v6  ;;  %466 = vst.msk [vmem:[#allocation2 + $0xf0] sm:$0xff] %vm434_vm0, %v26149_v35  ;;  %467 = vst.msk [vmem:[#allocation2 + $0xf8] sm:$0xff] %vm434_vm0, %v26149_v35 }
 0x11b   : > { %468 = vst.msk [vmem:[#allocation2 + $0x100] sm:$0x3] %vm437_vm1, %v26149_v35  ;;  %471 = vst.msk [vmem:[#allocation2 + $0x118] sm:$0x3] %vm437_vm1, %v26149_v35 }
 0x11c   : > { %469 = vst.msk [vmem:[#allocation2 + $0x108] sm:$0xff] %vm434_vm0, %v26149_v35  ;;  %470 = vst.msk [vmem:[#allocation2 + $0x110] sm:$0xff] %vm434_vm0, %v26149_v35 }
 0x11d   : > { %22702 = vmatmul.mubr.msk.f32.gmra.mrb[20].mxu1 %vm434_vm0, %v32109_v19  ;;  %22902 = vmatmul.mubr.msk.f32.gmra.mrb[20].mxu0 %vm434_vm0, %v26599_v9  ;;  %472 = vst.msk [vmem:[#allocation2 + $0x120] sm:$0xff] %vm434_vm0, %v26149_v35  ;;  %473 = vst.msk [vmem:[#allocation2 + $0x128] sm:$0xff] %vm434_vm0, %v26149_v35 }
 0x11e   : > { %22704 = vmatprep.mubr.msk.f32.mxu1 %vm434_vm0, %v32111_v21  ;;  %22904 = vmatprep.mubr.msk.f32.mxu0 %vm434_vm0, %v26605_v55  ;;  %474 = vst.msk [vmem:[#allocation2 + $0x130] sm:$0x3] %vm437_vm1, %v26149_v35  ;;  %477 = vst.msk [vmem:[#allocation2 + $0x148] sm:$0x3] %vm437_vm1, %v26149_v35 }
 0x11f   : > { %475 = vst.msk [vmem:[#allocation2 + $0x138] sm:$0xff] %vm434_vm0, %v26149_v35  ;;  %476 = vst.msk [vmem:[#allocation2 + $0x140] sm:$0xff] %vm434_vm0, %v26149_v35 }
 0x120   : > { %478 = vst.msk [vmem:[#allocation2 + $0x150] sm:$0xff] %vm434_vm0, %v26149_v35  ;;  %479 = vst.msk [vmem:[#allocation2 + $0x158] sm:$0xff] %vm434_vm0, %v26149_v35 }
 0x121   : > { %22705 = vmatmul.mubr.msk.f32.gmra.mrb[22].mxu1 %vm434_vm0, %v32113_v22  ;;  %22905 = vmatmul.mubr.msk.f32.gmra.mrb[22].mxu0 %vm434_vm0, %v26619_v53  ;;  %480 = vst.msk [vmem:[#allocation2 + $0x160] sm:$0x3] %vm437_vm1, %v26149_v35  ;;  %483 = vst.msk [vmem:[#allocation2 + $0x178] sm:$0x3] %vm437_vm1, %v26149_v35 }
 0x122   : > { %22707 = vmatprep.mubr.msk.f32.mxu1 %vm434_vm0, %v32115_v37  ;;  %22907 = vmatprep.mubr.msk.f32.mxu0 %vm434_vm0, %v26625_v49  ;;  %481 = vst.msk [vmem:[#allocation2 + $0x168] sm:$0xff] %vm434_vm0, %v26149_v35  ;;  %482 = vst.msk [vmem:[#allocation2 + $0x170] sm:$0xff] %vm434_vm0, %v26149_v35 }
 0x123   : > { %484 = vst.msk [vmem:[#allocation2 + $0x180] sm:$0xff] %vm434_vm0, %v26149_v35  ;;  %485 = vst.msk [vmem:[#allocation2 + $0x188] sm:$0xff] %vm434_vm0, %v26149_v35 }
 0x124   : > { %486 = vst.msk [vmem:[#allocation2 + $0x190] sm:$0x3] %vm437_vm1, %v26149_v35  ;;  %489 = vst.msk [vmem:[#allocation2 + $0x1a8] sm:$0x3] %vm437_vm1, %v26149_v35 }
 0x125   : > { %22708 = vmatmul.mubr.msk.f32.gmra.mrb[24].mxu1 %vm434_vm0, %v32117_v33  ;;  %22908 = vmatmul.mubr.msk.f32.gmra.mrb[24].mxu0 %vm434_vm0, %v26639_v45  ;;  %487 = vst.msk [vmem:[#allocation2 + $0x198] sm:$0xff] %vm434_vm0, %v26149_v35  ;;  %488 = vst.msk [vmem:[#allocation2 + $0x1a0] sm:$0xff] %vm434_vm0, %v26149_v35 }
 0x126   : > { %22710 = vmatprep.mubr.msk.f32.mxu1 %vm434_vm0, %v32119_v12  ;;  %22910 = vmatprep.mubr.msk.f32.mxu0 %vm434_vm0, %v26645_v41  ;;  %490 = vst.msk [vmem:[#allocation3] sm:$0xff] %vm434_vm0, %v26149_v35  ;;  %491 = vst.msk [vmem:[#allocation3 + $0x8] sm:$0xff] %vm434_vm0, %v26149_v35 }
 0x127   : > { %492 = vst.msk [vmem:[#allocation3 + $0x10] sm:$0x3] %vm437_vm1, %v26149_v35  ;;  %495 = vst.msk [vmem:[#allocation3 + $0x28] sm:$0x3] %vm437_vm1, %v26149_v35 }
 0x128   : > { %493 = vst.msk [vmem:[#allocation3 + $0x18] sm:$0xff] %vm434_vm0, %v26149_v35  ;;  %494 = vst.msk [vmem:[#allocation3 + $0x20] sm:$0xff] %vm434_vm0, %v26149_v35 }
 0x129   : > { %22711 = vmatmul.mubr.msk.f32.gmra.mrb[26].mxu1 %vm434_vm0, %v32121_v16  ;;  %22911 = vmatmul.mubr.msk.f32.gmra.mrb[26].mxu0 %vm434_vm0, %v32129_v26  ;;  %496 = vst.msk [vmem:[#allocation3 + $0x30] sm:$0xff] %vm434_vm0, %v26149_v35  ;;  %497 = vst.msk [vmem:[#allocation3 + $0x38] sm:$0xff] %vm434_vm0, %v26149_v35 }
 0x12a   : > { %22713 = vmatprep.mubr.msk.f32.mxu1 %vm434_vm0, %v32123_v20  ;;  %22913 = vmatprep.mubr.msk.f32.mxu0 %vm434_vm0, %v32130_v27  ;;  %498 = vst.msk [vmem:[#allocation3 + $0x40] sm:$0x3] %vm437_vm1, %v26149_v35  ;;  %501 = vst.msk [vmem:[#allocation3 + $0x58] sm:$0x3] %vm437_vm1, %v26149_v35 }
 0x12b   : > { %499 = vst.msk [vmem:[#allocation3 + $0x48] sm:$0xff] %vm434_vm0, %v26149_v35  ;;  %500 = vst.msk [vmem:[#allocation3 + $0x50] sm:$0xff] %vm434_vm0, %v26149_v35 }
 0x12c   : > { %502 = vst.msk [vmem:[#allocation3 + $0x60] sm:$0xff] %vm434_vm0, %v26149_v35  ;;  %503 = vst.msk [vmem:[#allocation3 + $0x68] sm:$0xff] %vm434_vm0, %v26149_v35 }
 0x12d   : > { %22714 = vmatmul.mubr.msk.f32.gmra.mrb[28].mxu1 %vm434_vm0, %v32131_v30  ;;  %22914 = vmatmul.mubr.msk.f32.gmra.mrb[28].mxu0 %vm434_vm0, %v32132_v31  ;;  %504 = vst.msk [vmem:[#allocation3 + $0x70] sm:$0x3] %vm437_vm1, %v26149_v35  ;;  %507 = vst.msk [vmem:[#allocation3 + $0x88] sm:$0x3] %vm437_vm1, %v26149_v35 }
 0x12e   : > { %22716 = vmatprep.mubr.msk.f32.mxu1 %vm434_vm0, %v26987_v1  ;;  %22916 = vmatprep.mubr.msk.f32.mxu0 %vm434_vm0, %v19758_v29  ;;  %505 = vst.msk [vmem:[#allocation3 + $0x78] sm:$0xff] %vm434_vm0, %v26149_v35  ;;  %506 = vst.msk [vmem:[#allocation3 + $0x80] sm:$0xff] %vm434_vm0, %v26149_v35 }
 0x12f   : > { %508 = vst.msk [vmem:[#allocation3 + $0x90] sm:$0xff] %vm434_vm0, %v26149_v35  ;;  %509 = vst.msk [vmem:[#allocation3 + $0x98] sm:$0xff] %vm434_vm0, %v26149_v35 }
 0x130   : > { %510 = vst.msk [vmem:[#allocation3 + $0xa0] sm:$0x3] %vm437_vm1, %v26149_v35  ;;  %513 = vst.msk [vmem:[#allocation3 + $0xb8] sm:$0x3] %vm437_vm1, %v26149_v35 }
 0x131   : > { %22717 = vmatmul.mubr.msk.f32.gmra.mrb[30].mxu1 %vm434_vm0, %v26998_v14  ;;  %22917 = vmatmul.mubr.msk.f32.gmra.mrb[30].mxu0 %vm434_vm0, %v19759_v32  ;;  %511 = vst.msk [vmem:[#allocation3 + $0xa8] sm:$0xff] %vm434_vm0, %v26149_v35  ;;  %512 = vst.msk [vmem:[#allocation3 + $0xb0] sm:$0xff] %vm434_vm0, %v26149_v35 }
 0x132   : > { %514 = vst.msk [vmem:[#allocation3 + $0xc0] sm:$0xff] %vm434_vm0, %v26149_v35  ;;  %515 = vst.msk [vmem:[#allocation3 + $0xc8] sm:$0xff] %vm434_vm0, %v26149_v35  ;;  %22921 = vmatprep.mubr.msk.f32.mxu1 %vm434_vm0, %v4266_v36 }
 0x133   : > { %516 = vst.msk [vmem:[#allocation3 + $0xd0] sm:$0x3] %vm437_vm1, %v26149_v35  ;;  %519 = vst.msk [vmem:[#allocation3 + $0xe8] sm:$0x3] %vm437_vm1, %v26149_v35 }
 0x134   : > { %517 = vst.msk [vmem:[#allocation3 + $0xd8] sm:$0xff] %vm434_vm0, %v26149_v35  ;;  %518 = vst.msk [vmem:[#allocation3 + $0xe0] sm:$0xff] %vm434_vm0, %v26149_v35 }
 0x135   : > { %520 = vst.msk [vmem:[#allocation3 + $0xf0] sm:$0xff] %vm434_vm0, %v26149_v35  ;;  %521 = vst.msk [vmem:[#allocation3 + $0xf8] sm:$0xff] %vm434_vm0, %v26149_v35  ;;  %22922 = vmatmul.mubr.msk.f32.vlgmr.msra.gmra.mrb[32].mxu1 %vm434_vm0, %v4267_v38 }
 0x136   : > { %522 = vst.msk [vmem:[#allocation3 + $0x100] sm:$0x3] %vm437_vm1, %v26149_v35  ;;  %525 = vst.msk [vmem:[#allocation3 + $0x118] sm:$0x3] %vm437_vm1, %v26149_v35  ;;  %22970 = vmatpush3.msra.mxu1 %v4265_v39 }
 0x137   : > { %523 = vst.msk [vmem:[#allocation3 + $0x108] sm:$0xff] %vm434_vm0, %v26149_v35  ;;  %524 = vst.msk [vmem:[#allocation3 + $0x110] sm:$0xff] %vm434_vm0, %v26149_v35  ;;  %23019 = vmatprep.subr.mxu1 %v27583_v40 }
 0x138   : > { %526 = vst.msk [vmem:[#allocation3 + $0x120] sm:$0xff] %vm434_vm0, %v26149_v35  ;;  %527 = vst.msk [vmem:[#allocation3 + $0x128] sm:$0xff] %vm434_vm0, %v26149_v35 }
 0x139   : > { %528 = vst.msk [vmem:[#allocation3 + $0x130] sm:$0x3] %vm437_vm1, %v26149_v35  ;;  %531 = vst.msk [vmem:[#allocation3 + $0x148] sm:$0x3] %vm437_vm1, %v26149_v35 }
 0x13a   : > { %529 = vst.msk [vmem:[#allocation3 + $0x138] sm:$0xff] %vm434_vm0, %v26149_v35  ;;  %530 = vst.msk [vmem:[#allocation3 + $0x140] sm:$0xff] %vm434_vm0, %v26149_v35 }
 0x13b   : > { %532 = vst.msk [vmem:[#allocation3 + $0x150] sm:$0xff] %vm434_vm0, %v26149_v35  ;;  %533 = vst.msk [vmem:[#allocation3 + $0x158] sm:$0xff] %vm434_vm0, %v26149_v35 }
 0x13c   : > { %534 = vst.msk [vmem:[#allocation3 + $0x160] sm:$0x3] %vm437_vm1, %v26149_v35  ;;  %537 = vst.msk [vmem:[#allocation3 + $0x178] sm:$0x3] %vm437_vm1, %v26149_v35 }
 0x13d   : > { %535 = vst.msk [vmem:[#allocation3 + $0x168] sm:$0xff] %vm434_vm0, %v26149_v35  ;;  %536 = vst.msk [vmem:[#allocation3 + $0x170] sm:$0xff] %vm434_vm0, %v26149_v35 }
 0x13e   : > { %538 = vst.msk [vmem:[#allocation3 + $0x180] sm:$0xff] %vm434_vm0, %v26149_v35  ;;  %539 = vst.msk [vmem:[#allocation3 + $0x188] sm:$0xff] %vm434_vm0, %v26149_v35 }
 0x13f   : > { %540 = vst.msk [vmem:[#allocation3 + $0x190] sm:$0x3] %vm437_vm1, %v26149_v35  ;;  %543 = vst.msk [vmem:[#allocation3 + $0x1a8] sm:$0x3] %vm437_vm1, %v26149_v35 }
 0x140   : > { %541 = vst.msk [vmem:[#allocation3 + $0x198] sm:$0xff] %vm434_vm0, %v26149_v35  ;;  %542 = vst.msk [vmem:[#allocation3 + $0x1a0] sm:$0xff] %vm434_vm0, %v26149_v35 }
 0x141   : > { %544 = vst.msk [vmem:[#allocation4] sm:$0xff] %vm434_vm0, %v26149_v35  ;;  %545 = vst.msk [vmem:[#allocation4 + $0x8] sm:$0xff] %vm434_vm0, %v26149_v35 }
 0x142   : > { %546 = vst.msk [vmem:[#allocation4 + $0x10] sm:$0x3] %vm437_vm1, %v26149_v35  ;;  %549 = vst.msk [vmem:[#allocation4 + $0x28] sm:$0x3] %vm437_vm1, %v26149_v35 }
 0x143   : > { %547 = vst.msk [vmem:[#allocation4 + $0x18] sm:$0xff] %vm434_vm0, %v26149_v35  ;;  %548 = vst.msk [vmem:[#allocation4 + $0x20] sm:$0xff] %vm434_vm0, %v26149_v35 }
 0x144   : > { %550 = vst.msk [vmem:[#allocation4 + $0x30] sm:$0xff] %vm434_vm0, %v26149_v35  ;;  %551 = vst.msk [vmem:[#allocation4 + $0x38] sm:$0xff] %vm434_vm0, %v26149_v35 }
 0x145   : > { %552 = vst.msk [vmem:[#allocation4 + $0x40] sm:$0x3] %vm437_vm1, %v26149_v35  ;;  %555 = vst.msk [vmem:[#allocation4 + $0x58] sm:$0x3] %vm437_vm1, %v26149_v35 }
 0x146   : > { %553 = vst.msk [vmem:[#allocation4 + $0x48] sm:$0xff] %vm434_vm0, %v26149_v35  ;;  %554 = vst.msk [vmem:[#allocation4 + $0x50] sm:$0xff] %vm434_vm0, %v26149_v35 }
 0x147   : > { %556 = vst.msk [vmem:[#allocation4 + $0x60] sm:$0xff] %vm434_vm0, %v26149_v35  ;;  %557 = vst.msk [vmem:[#allocation4 + $0x68] sm:$0xff] %vm434_vm0, %v26149_v35 }
 0x148   : > { %558 = vst.msk [vmem:[#allocation4 + $0x70] sm:$0x3] %vm437_vm1, %v26149_v35  ;;  %561 = vst.msk [vmem:[#allocation4 + $0x88] sm:$0x3] %vm437_vm1, %v26149_v35 }
 0x149   : > { %559 = vst.msk [vmem:[#allocation4 + $0x78] sm:$0xff] %vm434_vm0, %v26149_v35  ;;  %560 = vst.msk [vmem:[#allocation4 + $0x80] sm:$0xff] %vm434_vm0, %v26149_v35 }
 0x14a   : > { %562 = vst.msk [vmem:[#allocation4 + $0x90] sm:$0xff] %vm434_vm0, %v26149_v35  ;;  %563 = vst.msk [vmem:[#allocation4 + $0x98] sm:$0xff] %vm434_vm0, %v26149_v35 }
 0x14b   : > { %564 = vst.msk [vmem:[#allocation4 + $0xa0] sm:$0x3] %vm437_vm1, %v26149_v35  ;;  %567 = vst.msk [vmem:[#allocation4 + $0xb8] sm:$0x3] %vm437_vm1, %v26149_v35 }
 0x14c   : > { %565 = vst.msk [vmem:[#allocation4 + $0xa8] sm:$0xff] %vm434_vm0, %v26149_v35  ;;  %566 = vst.msk [vmem:[#allocation4 + $0xb0] sm:$0xff] %vm434_vm0, %v26149_v35 }
 0x14d   : > { %568 = vst.msk [vmem:[#allocation4 + $0xc0] sm:$0xff] %vm434_vm0, %v26149_v35  ;;  %569 = vst.msk [vmem:[#allocation4 + $0xc8] sm:$0xff] %vm434_vm0, %v26149_v35 }
 0x14e   : > { %570 = vst.msk [vmem:[#allocation4 + $0xd0] sm:$0x3] %vm437_vm1, %v26149_v35  ;;  %573 = vst.msk [vmem:[#allocation4 + $0xe8] sm:$0x3] %vm437_vm1, %v26149_v35 }
 0x14f   : > { %571 = vst.msk [vmem:[#allocation4 + $0xd8] sm:$0xff] %vm434_vm0, %v26149_v35  ;;  %572 = vst.msk [vmem:[#allocation4 + $0xe0] sm:$0xff] %vm434_vm0, %v26149_v35 }
 0x150   : > { %574 = vst.msk [vmem:[#allocation4 + $0xf0] sm:$0xff] %vm434_vm0, %v26149_v35  ;;  %575 = vst.msk [vmem:[#allocation4 + $0xf8] sm:$0xff] %vm434_vm0, %v26149_v35 }
 0x151   : > { %576 = vst.msk [vmem:[#allocation4 + $0x100] sm:$0x3] %vm437_vm1, %v26149_v35  ;;  %579 = vst.msk [vmem:[#allocation4 + $0x118] sm:$0x3] %vm437_vm1, %v26149_v35 }
 0x152   : > { %577 = vst.msk [vmem:[#allocation4 + $0x108] sm:$0xff] %vm434_vm0, %v26149_v35  ;;  %578 = vst.msk [vmem:[#allocation4 + $0x110] sm:$0xff] %vm434_vm0, %v26149_v35 }
 0x153   : > { %580 = vst.msk [vmem:[#allocation4 + $0x120] sm:$0xff] %vm434_vm0, %v26149_v35  ;;  %581 = vst.msk [vmem:[#allocation4 + $0x128] sm:$0xff] %vm434_vm0, %v26149_v35 }
 0x154   : > { %582 = vst.msk [vmem:[#allocation4 + $0x130] sm:$0x3] %vm437_vm1, %v26149_v35  ;;  %585 = vst.msk [vmem:[#allocation4 + $0x148] sm:$0x3] %vm437_vm1, %v26149_v35 }
 0x155   : > { %583 = vst.msk [vmem:[#allocation4 + $0x138] sm:$0xff] %vm434_vm0, %v26149_v35  ;;  %584 = vst.msk [vmem:[#allocation4 + $0x140] sm:$0xff] %vm434_vm0, %v26149_v35 }
 0x156   : > { %586 = vst.msk [vmem:[#allocation4 + $0x150] sm:$0xff] %vm434_vm0, %v26149_v35  ;;  %587 = vst.msk [vmem:[#allocation4 + $0x158] sm:$0xff] %vm434_vm0, %v26149_v35 }
 0x157   : > { %588 = vst.msk [vmem:[#allocation4 + $0x160] sm:$0x3] %vm437_vm1, %v26149_v35  ;;  %591 = vst.msk [vmem:[#allocation4 + $0x178] sm:$0x3] %vm437_vm1, %v26149_v35 }
 0x158   : > { %589 = vst.msk [vmem:[#allocation4 + $0x168] sm:$0xff] %vm434_vm0, %v26149_v35  ;;  %590 = vst.msk [vmem:[#allocation4 + $0x170] sm:$0xff] %vm434_vm0, %v26149_v35 }
 0x159   : > { %592 = vst.msk [vmem:[#allocation4 + $0x180] sm:$0xff] %vm434_vm0, %v26149_v35  ;;  %593 = vst.msk [vmem:[#allocation4 + $0x188] sm:$0xff] %vm434_vm0, %v26149_v35 }
 0x15a   : > { %594 = vst.msk [vmem:[#allocation4 + $0x190] sm:$0x3] %vm437_vm1, %v26149_v35  ;;  %597 = vst.msk [vmem:[#allocation4 + $0x1a8] sm:$0x3] %vm437_vm1, %v26149_v35 }
 0x15b   : > { %595 = vst.msk [vmem:[#allocation4 + $0x198] sm:$0xff] %vm434_vm0, %v26149_v35  ;;  %596 = vst.msk [vmem:[#allocation4 + $0x1a0] sm:$0xff] %vm434_vm0, %v26149_v35 }
 0x15c   : > { %598 = vst.msk [vmem:[#allocation5] sm:$0xff] %vm434_vm0, %v26149_v35  ;;  %599 = vst.msk [vmem:[#allocation5 + $0x8] sm:$0xff] %vm434_vm0, %v26149_v35 }
 0x15d   : > { %600 = vst.msk [vmem:[#allocation5 + $0x10] sm:$0x3] %vm437_vm1, %v26149_v35  ;;  %603 = vst.msk [vmem:[#allocation5 + $0x28] sm:$0x3] %vm437_vm1, %v26149_v35 }
 0x15e   : > { %601 = vst.msk [vmem:[#allocation5 + $0x18] sm:$0xff] %vm434_vm0, %v26149_v35  ;;  %602 = vst.msk [vmem:[#allocation5 + $0x20] sm:$0xff] %vm434_vm0, %v26149_v35 }
 0x15f   : > { %604 = vst.msk [vmem:[#allocation5 + $0x30] sm:$0xff] %vm434_vm0, %v26149_v35  ;;  %605 = vst.msk [vmem:[#allocation5 + $0x38] sm:$0xff] %vm434_vm0, %v26149_v35 }
 0x160   : > { %606 = vst.msk [vmem:[#allocation5 + $0x40] sm:$0x3] %vm437_vm1, %v26149_v35  ;;  %609 = vst.msk [vmem:[#allocation5 + $0x58] sm:$0x3] %vm437_vm1, %v26149_v35 }
 0x161   : > { %607 = vst.msk [vmem:[#allocation5 + $0x48] sm:$0xff] %vm434_vm0, %v26149_v35  ;;  %608 = vst.msk [vmem:[#allocation5 + $0x50] sm:$0xff] %vm434_vm0, %v26149_v35 }
 0x162   : > { %610 = vst.msk [vmem:[#allocation5 + $0x60] sm:$0xff] %vm434_vm0, %v26149_v35  ;;  %611 = vst.msk [vmem:[#allocation5 + $0x68] sm:$0xff] %vm434_vm0, %v26149_v35 }
 0x163   : > { %612 = vst.msk [vmem:[#allocation5 + $0x70] sm:$0x3] %vm437_vm1, %v26149_v35  ;;  %615 = vst.msk [vmem:[#allocation5 + $0x88] sm:$0x3] %vm437_vm1, %v26149_v35 }
 0x164   : > { %613 = vst.msk [vmem:[#allocation5 + $0x78] sm:$0xff] %vm434_vm0, %v26149_v35  ;;  %614 = vst.msk [vmem:[#allocation5 + $0x80] sm:$0xff] %vm434_vm0, %v26149_v35 }
 0x165   : > { %616 = vst.msk [vmem:[#allocation5 + $0x90] sm:$0xff] %vm434_vm0, %v26149_v35  ;;  %617 = vst.msk [vmem:[#allocation5 + $0x98] sm:$0xff] %vm434_vm0, %v26149_v35 }
 0x166   : > { %618 = vst.msk [vmem:[#allocation5 + $0xa0] sm:$0x3] %vm437_vm1, %v26149_v35  ;;  %621 = vst.msk [vmem:[#allocation5 + $0xb8] sm:$0x3] %vm437_vm1, %v26149_v35 }
 0x167   : > { %619 = vst.msk [vmem:[#allocation5 + $0xa8] sm:$0xff] %vm434_vm0, %v26149_v35  ;;  %620 = vst.msk [vmem:[#allocation5 + $0xb0] sm:$0xff] %vm434_vm0, %v26149_v35 }
 0x168   : > { %622 = vst.msk [vmem:[#allocation5 + $0xc0] sm:$0xff] %vm434_vm0, %v26149_v35  ;;  %623 = vst.msk [vmem:[#allocation5 + $0xc8] sm:$0xff] %vm434_vm0, %v26149_v35 }
 0x169   : > { %624 = vst.msk [vmem:[#allocation5 + $0xd0] sm:$0x3] %vm437_vm1, %v26149_v35  ;;  %627 = vst.msk [vmem:[#allocation5 + $0xe8] sm:$0x3] %vm437_vm1, %v26149_v35 }
 0x16a   : > { %625 = vst.msk [vmem:[#allocation5 + $0xd8] sm:$0xff] %vm434_vm0, %v26149_v35  ;;  %626 = vst.msk [vmem:[#allocation5 + $0xe0] sm:$0xff] %vm434_vm0, %v26149_v35 }
 0x16b   : > { %628 = vst.msk [vmem:[#allocation5 + $0xf0] sm:$0xff] %vm434_vm0, %v26149_v35  ;;  %629 = vst.msk [vmem:[#allocation5 + $0xf8] sm:$0xff] %vm434_vm0, %v26149_v35 }
 0x16c   : > { %630 = vst.msk [vmem:[#allocation5 + $0x100] sm:$0x3] %vm437_vm1, %v26149_v35  ;;  %633 = vst.msk [vmem:[#allocation5 + $0x118] sm:$0x3] %vm437_vm1, %v26149_v35 }
 0x16d   : > { %631 = vst.msk [vmem:[#allocation5 + $0x108] sm:$0xff] %vm434_vm0, %v26149_v35  ;;  %632 = vst.msk [vmem:[#allocation5 + $0x110] sm:$0xff] %vm434_vm0, %v26149_v35 }
 0x16e   : > { %634 = vst.msk [vmem:[#allocation5 + $0x120] sm:$0xff] %vm434_vm0, %v26149_v35  ;;  %635 = vst.msk [vmem:[#allocation5 + $0x128] sm:$0xff] %vm434_vm0, %v26149_v35 }
 0x16f   : > { %636 = vst.msk [vmem:[#allocation5 + $0x130] sm:$0x3] %vm437_vm1, %v26149_v35  ;;  %639 = vst.msk [vmem:[#allocation5 + $0x148] sm:$0x3] %vm437_vm1, %v26149_v35 }
 0x170   : > { %637 = vst.msk [vmem:[#allocation5 + $0x138] sm:$0xff] %vm434_vm0, %v26149_v35  ;;  %638 = vst.msk [vmem:[#allocation5 + $0x140] sm:$0xff] %vm434_vm0, %v26149_v35 }
 0x171   : > { %640 = vst.msk [vmem:[#allocation5 + $0x150] sm:$0xff] %vm434_vm0, %v26149_v35  ;;  %641 = vst.msk [vmem:[#allocation5 + $0x158] sm:$0xff] %vm434_vm0, %v26149_v35 }
 0x172   : > { %642 = vst.msk [vmem:[#allocation5 + $0x160] sm:$0x3] %vm437_vm1, %v26149_v35  ;;  %645 = vst.msk [vmem:[#allocation5 + $0x178] sm:$0x3] %vm437_vm1, %v26149_v35 }
 0x173   : > { %643 = vst.msk [vmem:[#allocation5 + $0x168] sm:$0xff] %vm434_vm0, %v26149_v35  ;;  %644 = vst.msk [vmem:[#allocation5 + $0x170] sm:$0xff] %vm434_vm0, %v26149_v35 }
 0x174   : > { %646 = vst.msk [vmem:[#allocation5 + $0x180] sm:$0xff] %vm434_vm0, %v26149_v35  ;;  %647 = vst.msk [vmem:[#allocation5 + $0x188] sm:$0xff] %vm434_vm0, %v26149_v35 }
 0x175   : > { %648 = vst.msk [vmem:[#allocation5 + $0x190] sm:$0x3] %vm437_vm1, %v26149_v35  ;;  %651 = vst.msk [vmem:[#allocation5 + $0x1a8] sm:$0x3] %vm437_vm1, %v26149_v35 }
 0x176   : > { %649 = vst.msk [vmem:[#allocation5 + $0x198] sm:$0xff] %vm434_vm0, %v26149_v35  ;;  %650 = vst.msk [vmem:[#allocation5 + $0x1a0] sm:$0xff] %vm434_vm0, %v26149_v35 }
 0x1a8   : > { %v22623_v41 = vpop.f32.mrb[0].mxu1 }
 0x1a9   : > { %v1942_v42 = vpop.f32.mrb[1].mxu1 }
 0x1ac   : > { %v22626_v43 = vpop.f32.mrb[2].mxu1 }
 0x1ad   : > { %v1952_v44 = vpop.f32.mrb[3].mxu1 }
 0x1b0   : > { %v22629_v45 = vpop.f32.mrb[4].mxu1 }
 0x1b1   : > { %v1962_v46 = vpop.f32.mrb[5].mxu1 }
 0x1b4   : > { %v22632_v47 = vpop.f32.mrb[6].mxu1 }
 0x1b5   : > { %v1972_v48 = vpop.f32.mrb[7].mxu1 }
 0x1b8   : > { %v22635_v49 = vpop.f32.mrb[8].mxu1 }
 0x1b9   : > { %v27586_v50 = vpop.f32.mrb[9].mxu1 }
 0x1bc   : > { %v27588_v51 = vpop.f32.mrb[10].mxu1 }
 0x1bd   : > { %v27590_v52 = vpop.f32.mrb[11].mxu1 }
 0x1c0   : > { %v27592_v53 = vpop.f32.mrb[12].mxu1 }
 0x1c1   : > { %v27594_v54 = vpop.f32.mrb[13].mxu1 }
 0x1c4   : > { %v27596_v56 = vpop.f32.mrb[14].mxu1 }
 0x1c5   : > { %v27598_v58 = vpop.f32.mrb[15].mxu1 }
 0x1c8   : > { %v22873_v59 = vpop.f32.mrb[0].mxu0 }
 0x1c9   : > { %v24721_v62 = vadd.f32 %v22873_v59, %v22623_v41  ;;  %v3873_v63 = vpop.f32.mrb[1].mxu0 }
 0x1ca   : > { %v24722_v0 = vadd.f32 %v3873_v63, %v1942_v42 }
 0x1cb   : > { %v4072_v2 = vadd.f32 %v24721_v62, %v27603_v60 }
 0x1cc   : > { %v4071_v4 = vadd.f32 %v24722_v0, %v27603_v60  ;;  %v22876_v5 = vpop.f32.mrb[2].mxu0 }
 0x1cd   : > { %vm4104_vm2 = vcmp.ge.f32.partialorder %v4072_v2, 0.0  ;;  %v4136_v6 = vmul.f32 0.2, %v4072_v2  ;;  %v24723_v7 = vadd.f32 %v22876_v5, %v22626_v43  ;;  %v3883_v9 = vpop.f32.mrb[3].mxu0 }
 0x1ce   : > { %vm4103_vm4 = vcmp.ge.f32.partialorder %v4071_v4, 0.0  ;;  %v4135_v10 = vmul.f32 0.2, %v4071_v4  ;;  %v24724_v55 = vadd.f32 %v3883_v9, %v1952_v44 }
 0x1cf   : > { %v4168_v57 = vsel %vm4104_vm2, %v4072_v2, %v4136_v6  ;;  %v4074_v28 = vadd.f32 %v24723_v7, %v27603_v60 }
 0x1d0   : > { %4202 = vst.msk [vmem:[#allocation2 + $0x21] sm:$0xff] %vm4200_vm3, %v4168_v57  ;;  %v4167_v24 = vsel %vm4103_vm4, %v4071_v4, %v4135_v10  ;;  %v4073_v25 = vadd.f32 %v24724_v55, %v27603_v60  ;;  %v22879_v8 = vpop.f32.mrb[4].mxu0 }
 0x1d1   : > { %4201 = vst.msk [vmem:[#allocation2 + $0x19] sm:$0xff] %vm4200_vm3, %v4167_v24  ;;  %vm4106_vm5 = vcmp.ge.f32.partialorder %v4074_v28, 0.0  ;;  %v4138_v11 = vmul.f32 0.2, %v4074_v28  ;;  %v24725_v13 = vadd.f32 %v22879_v8, %v22629_v45  ;;  %v3893_v15 = vpop.f32.mrb[5].mxu0 }
 0x1d2   : > { %vm4105_vm6 = vcmp.ge.f32.partialorder %v4073_v25, 0.0  ;;  %v4137_v17 = vmul.f32 0.2, %v4073_v25  ;;  %v24726_v19 = vadd.f32 %v3893_v15, %v1962_v46 }
 0x1d3   : > { %v4170_v21 = vsel %vm4106_vm5, %v4074_v28, %v4138_v11  ;;  %v4076_v22 = vadd.f32 %v24725_v13, %v27603_v60 }
 0x1d4   : > { %4204 = vst.msk [vmem:[#allocation2 + $0x39] sm:$0xff] %vm4200_vm3, %v4170_v21  ;;  %v4169_v37 = vsel %vm4105_vm6, %v4073_v25, %v4137_v17  ;;  %v4075_v33 = vadd.f32 %v24726_v19, %v27603_v60  ;;  %v22882_v12 = vpop.f32.mrb[6].mxu0 }
 0x1d5   : > { %4203 = vst.msk [vmem:[#allocation2 + $0x31] sm:$0xff] %vm4200_vm3, %v4169_v37  ;;  %vm4108_vm7 = vcmp.ge.f32.partialorder %v4076_v22, 0.0  ;;  %v4140_v16 = vmul.f32 0.2, %v4076_v22  ;;  %v24727_v20 = vadd.f32 %v22882_v12, %v22632_v47  ;;  %v3903_v1 = vpop.f32.mrb[7].mxu0 }
 0x1d6   : > { %vm4107_vm8 = vcmp.ge.f32.partialorder %v4075_v33, 0.0  ;;  %v4139_v3 = vmul.f32 0.2, %v4075_v33  ;;  %v24728_v61 = vadd.f32 %v3903_v1, %v1972_v48 }
 0x1d7   : > { %v4172_v14 = vsel %vm4108_vm7, %v4076_v22, %v4140_v16  ;;  %v4078_v18 = vadd.f32 %v24727_v20, %v27603_v60  ;;  %v27623_v34 = vld [vmem:[#allocation2 + $0x21] sm:$0xff] }
 0x1d8   : > { %4206 = vst.msk [vmem:[#allocation2 + $0x51] sm:$0xff] %vm4200_vm3, %v4172_v14  ;;  %v4171_v23 = vsel %vm4107_vm8, %v4075_v33, %v4139_v3  ;;  %v4077_v26 = vadd.f32 %v24728_v61, %v27603_v60  ;;  %v22885_v27 = vpop.f32.mrb[8].mxu0  ;;  %v27618_v29 = vld [vmem:[#allocation2 + $0x19] sm:$0xff] }
 0x1d9   : > { %4205 = vst.msk [vmem:[#allocation2 + $0x49] sm:$0xff] %vm4200_vm3, %v4171_v23  ;;  %vm4110_vm9 = vcmp.ge.f32.partialorder %v4078_v18, 0.0  ;;  %v4142_v30 = vmul.f32 0.2, %v4078_v18  ;;  %v24729_v31 = vadd.f32 %v22885_v27, %v22635_v49  ;;  %v3913_v32 = vpop.f32.mrb[9].mxu0  ;;  %22924 = vmatprep.mubr.msk.f32.mxu1 %vm434_vm0, %v27618_v29 }
 0x1da   : > { %vm4109_vm10 = vcmp.ge.f32.partialorder %v4077_v26, 0.0  ;;  %v4141_v35 = vmul.f32 0.2, %v4077_v26  ;;  %v24730_v36 = vadd.f32 %v3913_v32, %v27586_v50  ;;  %22925 = vmatmul.mubr.msk.f32.gmra.mrb[34].mxu1 %vm434_vm0, %v27623_v34 }
 0x1db   : > { %v4174_v38 = vsel %vm4110_vm9, %v4078_v18, %v4142_v30  ;;  %v4080_v39 = vadd.f32 %v24729_v31, %v27603_v60  ;;  %v27637_v48 = vld [vmem:[#allocation2 + $0x39] sm:$0xff] }
 0x1dc   : > { %4208 = vst.msk [vmem:[#allocation2 + $0x69] sm:$0xff] %vm4200_vm3, %v4174_v38  ;;  %v4173_v41 = vsel %vm4109_vm10, %v4077_v26, %v4141_v35  ;;  %v4079_v42 = vadd.f32 %v24730_v36, %v27603_v60  ;;  %v22888_v43 = vpop.f32.mrb[10].mxu0  ;;  %v27631_v44 = vld [vmem:[#allocation2 + $0x31] sm:$0xff] }
 0x1dd   : > { %4207 = vst.msk [vmem:[#allocation2 + $0x61] sm:$0xff] %vm4200_vm3, %v4173_v41  ;;  %vm4112_vm11 = vcmp.ge.f32.partialorder %v4080_v39, 0.0  ;;  %v4144_v45 = vmul.f32 0.2, %v4080_v39  ;;  %v24731_v46 = vadd.f32 %v22888_v43, %v27588_v51  ;;  %v3923_v47 = vpop.f32.mrb[11].mxu0  ;;  %22927 = vmatprep.mubr.msk.f32.mxu1 %vm434_vm0, %v27631_v44 }
 0x1de   : > { %vm4111_vm12 = vcmp.ge.f32.partialorder %v4079_v42, 0.0  ;;  %v4143_v49 = vmul.f32 0.2, %v4079_v42  ;;  %v24732_v50 = vadd.f32 %v3923_v47, %v27590_v52  ;;  %22928 = vmatmul.mubr.msk.f32.gmra.mrb[36].mxu1 %vm434_vm0, %v27637_v48 }
 0x1df   : > { %v4176_v59 = vsel %vm4112_vm11, %v4080_v39, %v4144_v45  ;;  %v4082_v62 = vadd.f32 %v24731_v46, %v27603_v60  ;;  %v27651_v6 = vld [vmem:[#allocation2 + $0x51] sm:$0xff] }
 0x1e0   : > { %4210 = vst.msk [vmem:[#allocation2 + $0x81] sm:$0xff] %vm4200_vm3, %v4176_v59  ;;  %v4175_v63 = vsel %vm4111_vm12, %v4079_v42, %v4143_v49  ;;  %v4081_v51 = vadd.f32 %v24732_v50, %v27603_v60  ;;  %v22891_v0 = vpop.f32.mrb[12].mxu0  ;;  %v27645_v2 = vld [vmem:[#allocation2 + $0x49] sm:$0xff] }
 0x1e1   : > { %4209 = vst.msk [vmem:[#allocation2 + $0x79] sm:$0xff] %vm4200_vm3, %v4175_v63  ;;  %vm4114_vm13 = vcmp.ge.f32.partialorder %v4082_v62, 0.0  ;;  %v4146_v4 = vmul.f32 0.2, %v4082_v62  ;;  %v24733_v52 = vadd.f32 %v22891_v0, %v27592_v53  ;;  %v3933_v5 = vpop.f32.mrb[13].mxu0  ;;  %22930 = vmatprep.mubr.msk.f32.mxu1 %vm434_vm0, %v27645_v2 }
 0x1e2   : > { %vm4113_vm14 = vcmp.ge.f32.partialorder %v4081_v51, 0.0  ;;  %v4145_v7 = vmul.f32 0.2, %v4081_v51  ;;  %v24734_v9 = vadd.f32 %v3933_v5, %v27594_v54  ;;  %22931 = vmatmul.mubr.msk.f32.gmra.mrb[38].mxu1 %vm434_vm0, %v27651_v6 }
 0x1e3   : > { %v4178_v10 = vsel %vm4114_vm13, %v4082_v62, %v4146_v4  ;;  %v4084_v55 = vadd.f32 %v24733_v52, %v27603_v60  ;;  %v27665_v11 = vld [vmem:[#allocation2 + $0x69] sm:$0xff] }
 0x1e4   : > { %4212 = vst.msk [vmem:[#allocation2 + $0x99] sm:$0xff] %vm4200_vm3, %v4178_v10  ;;  %v4177_v57 = vsel %vm4113_vm14, %v4081_v51, %v4145_v7  ;;  %v4083_v53 = vadd.f32 %v24734_v9, %v27603_v60  ;;  %v22894_v28 = vpop.f32.mrb[14].mxu0  ;;  %v27659_v24 = vld [vmem:[#allocation2 + $0x61] sm:$0xff] }
 0x1e5   : > { %4211 = vst.msk [vmem:[#allocation2 + $0x91] sm:$0xff] %vm4200_vm3, %v4177_v57  ;;  %vm4116_vm15 = vcmp.ge.f32.partialorder %v4084_v55, 0.0  ;;  %v4148_v25 = vmul.f32 0.2, %v4084_v55  ;;  %v24735_v54 = vadd.f32 %v22894_v28, %v27596_v56  ;;  %v3943_v8 = vpop.f32.mrb[15].mxu0  ;;  %22933 = vmatprep.mubr.msk.f32.mxu1 %vm434_vm0, %v27659_v24 }
 0x1e6   : > { %vm4115_vm1 = vcmp.ge.f32.partialorder %v4083_v53, 0.0  ;;  %v4147_v13 = vmul.f32 0.2, %v4083_v53  ;;  %v24736_v15 = vadd.f32 %v3943_v8, %v27598_v58  ;;  %22934 = vmatmul.mubr.msk.f32.gmra.mrb[40].mxu1 %vm434_vm0, %v27665_v11 }
 0x1e7   : > { %v4180_v17 = vsel %vm4116_vm15, %v4084_v55, %v4148_v25  ;;  %v4086_v19 = vadd.f32 %v24735_v54, %v27603_v60  ;;  %v27678_v1 = vld [vmem:[#allocation2 + $0x81] sm:$0xff] }
 0x1e8   : > { %4214 = vst.msk [vmem:[#allocation2 + $0xb1] sm:$0xff] %vm4200_vm3, %v4180_v17  ;;  %v4179_v21 = vsel %vm4115_vm1, %v4083_v53, %v4147_v13  ;;  %v4085_v56 = vadd.f32 %v24736_v15, %v27603_v60  ;;  %v22697_v22 = vpop.f32.mrb[16].mxu1  ;;  %v22897_v37 = vpop.f32.mrb[16].mxu0  ;;  %v27673_v33 = vld [vmem:[#allocation2 + $0x79] sm:$0xff] }
 0x1e9   : > { %4213 = vst.msk [vmem:[#allocation2 + $0xa9] sm:$0xff] %vm4200_vm3, %v4179_v21  ;;  %vm4118_vm2 = vcmp.ge.f32.partialorder %v4086_v19, 0.0  ;;  %v4150_v12 = vmul.f32 0.2, %v4086_v19  ;;  %v24737_v58 = vadd.f32 %v22897_v37, %v22697_v22  ;;  %v2408_v16 = vpop.f32.mrb[17].mxu1  ;;  %v3953_v20 = vpop.f32.mrb[17].mxu0  ;;  %22936 = vmatprep.mubr.msk.f32.mxu1 %vm434_vm0, %v27673_v33 }
 0x1ea   : > { %vm4117_vm4 = vcmp.ge.f32.partialorder %v4085_v56, 0.0  ;;  %v4149_v3 = vmul.f32 0.2, %v4085_v56  ;;  %v24738_v61 = vadd.f32 %v3953_v20, %v2408_v16  ;;  %22937 = vmatmul.mubr.msk.f32.gmra.mrb[42].mxu1 %vm434_vm0, %v27678_v1 }
 0x1eb   : > { %v4182_v14 = vsel %vm4118_vm2, %v4086_v19, %v4150_v12  ;;  %v4088_v18 = vadd.f32 %v24737_v58, %v27603_v60  ;;  %v27690_v39 = vld [vmem:[#allocation2 + $0x99] sm:$0xff] }
 0x1ec   : > { %4216 = vst.msk [vmem:[#allocation2 + $0xc9] sm:$0xff] %vm4200_vm3, %v4182_v14  ;;  %v4181_v23 = vsel %vm4117_vm4, %v4085_v56, %v4149_v3  ;;  %v4087_v26 = vadd.f32 %v24738_v61, %v27603_v60  ;;  %v22700_v27 = vpop.f32.mrb[18].mxu1  ;;  %v22900_v30 = vpop.f32.mrb[18].mxu0  ;;  %v27685_v31 = vld [vmem:[#allocation2 + $0x91] sm:$0xff] }
 0x1ed   : > { %4215 = vst.msk [vmem:[#allocation2 + $0xc1] sm:$0xff] %vm4200_vm3, %v4181_v23  ;;  %vm4120_vm5 = vcmp.ge.f32.partialorder %v4088_v18, 0.0  ;;  %v4152_v32 = vmul.f32 0.2, %v4088_v18  ;;  %v24739_v35 = vadd.f32 %v22900_v30, %v22700_v27  ;;  %v2418_v36 = vpop.f32.mrb[19].mxu1  ;;  %v3963_v38 = vpop.f32.mrb[19].mxu0  ;;  %22939 = vmatprep.mubr.msk.f32.mxu1 %vm434_vm0, %v27685_v31 }
 0x1ee   : > { %vm4119_vm6 = vcmp.ge.f32.partialorder %v4087_v26, 0.0  ;;  %v4151_v41 = vmul.f32 0.2, %v4087_v26  ;;  %v24740_v42 = vadd.f32 %v3963_v38, %v2418_v36  ;;  %22940 = vmatmul.mubr.msk.f32.gmra.mrb[44].mxu1 %vm434_vm0, %v27690_v39 }
 0x1ef   : > { %v4184_v43 = vsel %vm4120_vm5, %v4088_v18, %v4152_v32  ;;  %v4090_v45 = vadd.f32 %v24739_v35, %v27603_v60  ;;  %v27702_v4 = vld [vmem:[#allocation2 + $0xb1] sm:$0xff] }
 0x1f0   : > { %4218 = vst.msk [vmem:[#allocation2 + $0xe1] sm:$0xff] %vm4200_vm3, %v4184_v43  ;;  %v4183_v46 = vsel %vm4119_vm6, %v4087_v26, %v4151_v41  ;;  %v4089_v47 = vadd.f32 %v24740_v42, %v27603_v60  ;;  %v22703_v49 = vpop.f32.mrb[20].mxu1  ;;  %v22903_v50 = vpop.f32.mrb[20].mxu0  ;;  %v27697_v59 = vld [vmem:[#allocation2 + $0xa9] sm:$0xff] }
 0x1f1   : > { %4217 = vst.msk [vmem:[#allocation2 + $0xd9] sm:$0xff] %vm4200_vm3, %v4183_v46  ;;  %vm4122_vm7 = vcmp.ge.f32.partialorder %v4090_v45, 0.0  ;;  %v4154_v62 = vmul.f32 0.2, %v4090_v45  ;;  %v24741_v63 = vadd.f32 %v22903_v50, %v22703_v49  ;;  %v2428_v51 = vpop.f32.mrb[21].mxu1  ;;  %v3973_v0 = vpop.f32.mrb[21].mxu0  ;;  %22942 = vmatprep.mubr.msk.f32.mxu1 %vm434_vm0, %v27697_v59 }
 0x1f2   : > { %vm4121_vm8 = vcmp.ge.f32.partialorder %v4089_v47, 0.0  ;;  %v4153_v52 = vmul.f32 0.2, %v4089_v47  ;;  %v24742_v5 = vadd.f32 %v3973_v0, %v2428_v51  ;;  %22943 = vmatmul.mubr.msk.f32.gmra.mrb[46].mxu1 %vm434_vm0, %v27702_v4 }
 0x1f3   : > { %v4186_v7 = vsel %vm4122_vm7, %v4090_v45, %v4154_v62  ;;  %v4092_v9 = vadd.f32 %v24741_v63, %v27603_v60  ;;  %v27714_v15 = vld [vmem:[#allocation2 + $0xc9] sm:$0xff]  ;;  %vm7740_vm7 = vcmask 9216  }
 0x1f4   : > { %4220 = vst.msk [vmem:[#allocation2 + $0xf9] sm:$0xff] %vm4200_vm3, %v4186_v7  ;;  %v4185_v10 = vsel %vm4121_vm8, %v4089_v47, %v4153_v52  ;;  %v4091_v55 = vadd.f32 %v24742_v5, %v27603_v60  ;;  %v22706_v57 = vpop.f32.mrb[22].mxu1  ;;  %v22906_v53 = vpop.f32.mrb[22].mxu0  ;;  %v27709_v28 = vld [vmem:[#allocation2 + $0xc1] sm:$0xff]  ;;  %vm7922_vm8 = vcmask 31760  }
 0x1f5   : > { %4219 = vst.msk [vmem:[#allocation2 + $0xf1] sm:$0xff] %vm4200_vm3, %v4185_v10  ;;  %vm4124_vm9 = vcmp.ge.f32.partialorder %v4092_v9, 0.0  ;;  %v4156_v25 = vmul.f32 0.2, %v4092_v9  ;;  %v24743_v54 = vadd.f32 %v22906_v53, %v22706_v57  ;;  %v2438_v8 = vpop.f32.mrb[23].mxu1  ;;  %v3983_v13 = vpop.f32.mrb[23].mxu0  ;;  %22945 = vmatprep.mubr.msk.f32.mxu1 %vm434_vm0, %v27709_v28 }
 0x1f6   : > { %vm4123_vm10 = vcmp.ge.f32.partialorder %v4091_v55, 0.0  ;;  %v4155_v17 = vmul.f32 0.2, %v4091_v55  ;;  %v24744_v19 = vadd.f32 %v3983_v13, %v2438_v8  ;;  %22946 = vmatmul.mubr.msk.f32.gmra.mrb[48].mxu1 %vm434_vm0, %v27714_v15 }
 0x1f7   : > { %v4188_v21 = vsel %vm4124_vm9, %v4092_v9, %v4156_v25  ;;  %v4094_v56 = vadd.f32 %v24743_v54, %v27603_v60  ;;  %v27726_v18 = vld [vmem:[#allocation2 + $0xe1] sm:$0xff] }
 0x1f8   : > { %4222 = vst.msk [vmem:[#allocation2 + $0x111] sm:$0xff] %vm4200_vm3, %v4188_v21  ;;  %v4187_v22 = vsel %vm4123_vm10, %v4091_v55, %v4155_v17  ;;  %v4093_v37 = vadd.f32 %v24744_v19, %v27603_v60  ;;  %v22709_v12 = vpop.f32.mrb[24].mxu1  ;;  %v22909_v58 = vpop.f32.mrb[24].mxu0  ;;  %v27721_v16 = vld [vmem:[#allocation2 + $0xd9] sm:$0xff] }
 0x1f9   : > { %4221 = vst.msk [vmem:[#allocation2 + $0x109] sm:$0xff] %vm4200_vm3, %v4187_v22  ;;  %vm4126_vm11 = vcmp.ge.f32.partialorder %v4094_v56, 0.0  ;;  %v4158_v20 = vmul.f32 0.2, %v4094_v56  ;;  %v24745_v3 = vadd.f32 %v22909_v58, %v22709_v12  ;;  %v2448_v61 = vpop.f32.mrb[25].mxu1  ;;  %v3993_v14 = vpop.f32.mrb[25].mxu0  ;;  %22948 = vmatprep.mubr.msk.f32.mxu1 %vm434_vm0, %v27721_v16 }
 0x1fa   : > { %vm4125_vm12 = vcmp.ge.f32.partialorder %v4093_v37, 0.0  ;;  %v4157_v23 = vmul.f32 0.2, %v4093_v37  ;;  %v24746_v26 = vadd.f32 %v3993_v14, %v2448_v61  ;;  %22949 = vmatmul.mubr.msk.f32.gmra.mrb[50].mxu1 %vm434_vm0, %v27726_v18 }
 0x1fb   : > { %v4190_v27 = vsel %vm4126_vm11, %v4094_v56, %v4158_v20  ;;  %v4096_v30 = vadd.f32 %v24745_v3, %v27603_v60  ;;  %v27738_v47 = vld [vmem:[#allocation2 + $0xf9] sm:$0xff] }
 0x1fc   : > { %4224 = vst.msk [vmem:[#allocation2 + $0x129] sm:$0xff] %vm4200_vm3, %v4190_v27  ;;  %v4189_v32 = vsel %vm4125_vm12, %v4093_v37, %v4157_v23  ;;  %v4095_v35 = vadd.f32 %v24746_v26, %v27603_v60  ;;  %v22712_v36 = vpop.f32.mrb[26].mxu1  ;;  %v22912_v38 = vpop.f32.mrb[26].mxu0  ;;  %v27733_v41 = vld [vmem:[#allocation2 + $0xf1] sm:$0xff] }
 0x1fd   : > { %4223 = vst.msk [vmem:[#allocation2 + $0x121] sm:$0xff] %vm4200_vm3, %v4189_v32  ;;  %vm4128_vm13 = vcmp.ge.f32.partialorder %v4096_v30, 0.0  ;;  %v4160_v42 = vmul.f32 0.2, %v4096_v30  ;;  %v24747_v43 = vadd.f32 %v22912_v38, %v22712_v36  ;;  %v2458_v45 = vpop.f32.mrb[27].mxu1  ;;  %v4003_v46 = vpop.f32.mrb[27].mxu0  ;;  %22951 = vmatprep.mubr.msk.f32.mxu1 %vm434_vm0, %v27733_v41 }
 0x1fe   : > { %vm4127_vm14 = vcmp.ge.f32.partialorder %v4095_v35, 0.0  ;;  %v4159_v49 = vmul.f32 0.2, %v4095_v35  ;;  %v24748_v50 = vadd.f32 %v4003_v46, %v2458_v45  ;;  %22952 = vmatmul.mubr.msk.f32.gmra.mrb[52].mxu1 %vm434_vm0, %v27738_v47 }
 0x1ff   : > { %v4192_v62 = vsel %vm4128_vm13, %v4096_v30, %v4160_v42  ;;  %v4098_v63 = vadd.f32 %v24747_v43, %v27603_v60  ;;  %v27750_v53 = vld [vmem:[#allocation2 + $0x111] sm:$0xff] }
 0x200   : > { %4226 = vst.msk [vmem:[#allocation2 + $0x141] sm:$0xff] %vm4200_vm3, %v4192_v62  ;;  %v4191_v51 = vsel %vm4127_vm14, %v4095_v35, %v4159_v49  ;;  %v4097_v0 = vadd.f32 %v24748_v50, %v27603_v60  ;;  %v22715_v52 = vpop.f32.mrb[28].mxu1  ;;  %v22915_v5 = vpop.f32.mrb[28].mxu0  ;;  %v27745_v7 = vld [vmem:[#allocation2 + $0x109] sm:$0xff]  ;;  %v4233_v49 = vld [vmem:[#allocation2] sm:$0xff] }
 0x201   : > { %4225 = vst.msk [vmem:[#allocation2 + $0x139] sm:$0xff] %vm4200_vm3, %v4191_v51  ;;  %vm4130_vm15 = vcmp.ge.f32.partialorder %v4098_v63, 0.0  ;;  %v4162_v9 = vmul.f32 0.2, %v4098_v63  ;;  %v24749_v10 = vadd.f32 %v22915_v5, %v22715_v52  ;;  %v2468_v55 = vpop.f32.mrb[29].mxu1  ;;  %v4013_v57 = vpop.f32.mrb[29].mxu0  ;;  %22954 = vmatprep.mubr.msk.f32.mxu1 %vm434_vm0, %v27745_v7 }
 0x202   : > { %vm4129_vm1 = vcmp.ge.f32.partialorder %v4097_v0, 0.0  ;;  %v4161_v25 = vmul.f32 0.2, %v4097_v0  ;;  %v24750_v54 = vadd.f32 %v4013_v57, %v2468_v55  ;;  %22955 = vmatmul.mubr.msk.f32.gmra.mrb[54].mxu1 %vm434_vm0, %v27750_v53  ;;  %v4234_v62 = vld [vmem:[#allocation2 + $0x8] sm:$0xff]  ;;  %v27803_v51 = vld [vmem:[#allocation2 + $0x18] sm:$0xff]  ;;  %v27813_v52 = vld [vmem:[#allocation2 + $0x30] sm:$0xff] }
 0x203   : > { %v4194_v8 = vsel %vm4130_vm15, %v4098_v63, %v4162_v9  ;;  %v4100_v13 = vadd.f32 %v24749_v10, %v27603_v60  ;;  %v27762_v3 = vld [vmem:[#allocation2 + $0x129] sm:$0xff]  ;;  %v27800_v63 = vld [vmem:[%s31783_s4 + $0x18] sm:$0xff]  ;;  %v27829_v10 = vld [vmem:[#allocation2 + $0x60] sm:$0xff] }
 0x204   : > { %4228 = vst.msk [vmem:[#allocation2 + $0x159] sm:$0xff] %vm4200_vm3, %v4194_v8  ;;  %v4193_v17 = vsel %vm4129_vm1, %v4097_v0, %v4161_v25  ;;  %v4099_v19 = vadd.f32 %v24750_v54, %v27603_v60  ;;  %v22718_v21 = vpop.f32.mrb[30].mxu1  ;;  %v22918_v56 = vpop.f32.mrb[30].mxu0  ;;  %v27757_v22 = vld [vmem:[#allocation2 + $0x121] sm:$0xff]  ;;  %v27817_v5 = vld [vmem:[#allocation2 + $0x38] sm:$0xff]  ;;  %v27825_v9 = vld [vmem:[#allocation2 + $0x50] sm:$0xff] }
 0x205   : > { %4227 = vst.msk [vmem:[#allocation2 + $0x151] sm:$0xff] %vm4200_vm3, %v4193_v17  ;;  %vm4132_vm2 = vcmp.ge.f32.partialorder %v4100_v13, 0.0  ;;  %v4164_v37 = vmul.f32 0.2, %v4100_v13  ;;  %v24751_v12 = vadd.f32 %v22918_v56, %v22718_v21  ;;  %v2478_v58 = vpop.f32.mrb[31].mxu1  ;;  %v4023_v20 = vpop.f32.mrb[31].mxu0  ;;  %22957 = vmatprep.mubr.msk.f32.mxu1 %vm434_vm0, %v27757_v22 }
 0x206   : > { %vm4131_vm4 = vcmp.ge.f32.partialorder %v4099_v19, 0.0  ;;  %v4163_v61 = vmul.f32 0.2, %v4099_v19  ;;  %v24752_v14 = vadd.f32 %v4023_v20, %v2478_v58  ;;  %22958 = vmatmul.mubr.msk.f32.gmra.mrb[56].mxu1 %vm434_vm0, %v27762_v3  ;;  %v27809_v0 = vld [vmem:[#allocation2 + $0x20] sm:$0xff]  ;;  %v27833_v55 = vld [vmem:[#allocation2 + $0x68] sm:$0xff]  ;;  %v27837_v57 = vld [vmem:[#allocation2 + $0x78] sm:$0xff] }
 0x207   : > { %v4196_v23 = vsel %vm4132_vm2, %v4100_v13, %v4164_v37  ;;  %v4102_v26 = vadd.f32 %v24751_v12, %v27603_v60  ;;  %v27774_v36 = vld [vmem:[#allocation2 + $0x141] sm:$0xff]  ;;  %v27845_v54 = vld [vmem:[#allocation2 + $0x90] sm:$0xff]  ;;  %v27849_v8 = vld [vmem:[#allocation2 + $0x98] sm:$0xff] }
 0x208   : > { %4230 = vst.msk [vmem:[#allocation2 + $0x171] sm:$0xff] %vm4200_vm3, %v4196_v23  ;;  %v4195_v27 = vsel %vm4131_vm4, %v4099_v19, %v4163_v61  ;;  %v4101_v30 = vadd.f32 %v24752_v14, %v27603_v60  ;;  %v27769_v32 = vld [vmem:[#allocation2 + $0x139] sm:$0xff]  ;;  %v27853_v13 = vld [vmem:[#allocation2 + $0xa8] sm:$0xff]  ;;  %v27857_v17 = vld [vmem:[#allocation2 + $0xb0] sm:$0xff] }
 0x209   : > { %4229 = vst.msk [vmem:[#allocation2 + $0x169] sm:$0xff] %vm4200_vm3, %v4195_v27  ;;  %vm4134_vm5 = vcmp.ge.f32.partialorder %v4102_v26, 0.0  ;;  %v4166_v35 = vmul.f32 0.2, %v4102_v26  ;;  %22960 = vmatprep.mubr.msk.f32.mxu1 %vm434_vm0, %v27769_v32  ;;  %v27841_v25 = vld [vmem:[#allocation2 + $0x80] sm:$0xff]  ;;  %v27865_v21 = vld [vmem:[#allocation2 + $0xc8] sm:$0xff] }
 0x20a   : > { %vm4133_vm6 = vcmp.ge.f32.partialorder %v4101_v30, 0.0  ;;  %v4165_v38 = vmul.f32 0.2, %v4101_v30  ;;  %22961 = vmatmul.mubr.msk.f32.gmra.mrb[58].mxu1 %vm434_vm0, %v27774_v36  ;;  %v27861_v19 = vld [vmem:[#allocation2 + $0xc0] sm:$0xff]  ;;  %v27869_v56 = vld [vmem:[#allocation2 + $0xd8] sm:$0xff]  ;;  %v27877_v12 = vld [vmem:[#allocation2 + $0xf0] sm:$0xff] }
 0x20b   : > { %v4198_v42 = vsel %vm4134_vm5, %v4102_v26, %v4166_v35  ;;  %v27784_v45 = vld [vmem:[#allocation2 + $0x159] sm:$0xff]  ;;  %v27885_v20 = vld [vmem:[#allocation2 + $0x108] sm:$0xff]  ;;  %v27889_v61 = vld [vmem:[#allocation2 + $0x110] sm:$0xff] }
 0x20c   : > { %4232 = vst.msk [vmem:[#allocation2 + $0x189] sm:$0xff] %vm4200_vm3, %v4198_v42  ;;  %v4197_v60 = vsel %vm4133_vm6, %v4101_v30, %v4165_v38  ;;  %v27779_v43 = vld [vmem:[#allocation2 + $0x151] sm:$0xff]  ;;  %v27873_v37 = vld [vmem:[#allocation2 + $0xe0] sm:$0xff]  ;;  %v27897_v23 = vld [vmem:[#allocation2 + $0x128] sm:$0xff] }
 0x20d   : > { %4231 = vst.msk [vmem:[#allocation2 + $0x181] sm:$0xff] %vm4200_vm3, %v4197_v60  ;;  %22963 = vmatprep.mubr.msk.f32.mxu1 %vm434_vm0, %v27779_v43  ;;  %v27881_v58 = vld [vmem:[#allocation2 + $0xf8] sm:$0xff]  ;;  %v27893_v14 = vld [vmem:[#allocation2 + $0x120] sm:$0xff]  ;;  %v27909_v30 = vld [vmem:[#allocation2 + $0x150] sm:$0xff]  ;;  %vm7737_vm3 = vcmask 15360  }
 0x20e   : > { %22964 = vmatmul.mubr.msk.f32.gmra.mrb[60].mxu1 %vm434_vm0, %v27784_v45  ;;  %v27901_v26 = vld [vmem:[#allocation2 + $0x138] sm:$0xff]  ;;  %v27905_v27 = vld [vmem:[#allocation2 + $0x140] sm:$0xff] }
 0x20f   : > { %v27792_v50 = vld [vmem:[#allocation2 + $0x171] sm:$0xff]  ;;  %v4941_v42 = vld [vmem:[#allocation2 + $0x2] sm:$0xff] }
 0x210   : > { %v27788_v46 = vld [vmem:[#allocation2 + $0x169] sm:$0xff]  ;;  %32134 = vst [vmem:[#allocation19_spill] sm:$0xff] %v27792_v50  ;;  %v27913_v35 = vld [vmem:[#allocation2 + $0x158] sm:$0xff] }
 0x211   : > { %32133 = vst [vmem:[#allocation6_spill] sm:$0xff] %v27788_v46  ;;  %22966 = vmatprep.mubr.msk.f32.mxu1 %vm434_vm0, %v27788_v46  ;;  %v27917_v38 = vld [vmem:[#allocation2 + $0x168] sm:$0xff]  ;;  %v27921_v60 = vld [vmem:[#allocation2 + $0x170] sm:$0xff] }
 0x212   : > { %22967 = vmatmul.mubr.msk.f32.gmra.mrb[62].mxu1 %vm434_vm0, %v27792_v50  ;;  %v27932_v50 = vld [vmem:[#allocation2 + $0x1a] sm:$0xff]  ;;  %v27938_v46 = vld [vmem:[#allocation2 + $0x22] sm:$0xff] }
 0x213   : > { %22971 = vmatprep.mubr.msk.f32.mxu1 %vm434_vm0, %v4233_v49  ;;  %v4942_v49 = vld [vmem:[#allocation2 + $0xa] sm:$0xff]  ;;  %32135 = vst [vmem:[#allocation7_spill] sm:$0xff] %v27932_v50  ;;  %32136 = vst [vmem:[#allocation20_spill] sm:$0xff] %v27938_v46 }
 0x216   : > { %22972 = vmatmul.mubr.msk.f32.vlgmr.msra.gmra.mrb[32].mxu1 %vm434_vm0, %v4234_v62  ;;  %v27929_v62 = vld [vmem:[%s31783_s4 + $0x20] sm:$0xff] }
 0x217   : > { %23020 = vmatpush3.msra.mxu1 %v27583_v40  ;;  %22974 = vmatprep.mubr.msk.f32.mxu1 %vm434_vm0, %v27803_v51  ;;  %v27821_v40 = vld [vmem:[#allocation2 + $0x48] sm:$0xff] }
 0x218   : > { %23069 = vmatprep.subr.mxu1 %v27800_v63 }
 0x21a   : > { %22975 = vmatmul.mubr.msk.f32.gmra.mrb[34].mxu1 %vm434_vm0, %v27809_v0 }
 0x21b   : > { %22977 = vmatprep.mubr.msk.f32.mxu1 %vm434_vm0, %v27813_v52 }
 0x21e   : > { %22978 = vmatmul.mubr.msk.f32.gmra.mrb[36].mxu1 %vm434_vm0, %v27817_v5 }
 0x21f   : > { %22980 = vmatprep.mubr.msk.f32.mxu1 %vm434_vm0, %v27821_v40 }
 0x222   : > { %22981 = vmatmul.mubr.msk.f32.gmra.mrb[38].mxu1 %vm434_vm0, %v27825_v9 }
 0x223   : > { %22983 = vmatprep.mubr.msk.f32.mxu1 %vm434_vm0, %v27829_v10 }
 0x226   : > { %22984 = vmatmul.mubr.msk.f32.gmra.mrb[40].mxu1 %vm434_vm0, %v27833_v55 }
 0x227   : > { %22986 = vmatprep.mubr.msk.f32.mxu1 %vm434_vm0, %v27837_v57 }
 0x22a   : > { %22987 = vmatmul.mubr.msk.f32.gmra.mrb[42].mxu1 %vm434_vm0, %v27841_v25 }
 0x22b   : > { %22989 = vmatprep.mubr.msk.f32.mxu1 %vm434_vm0, %v27845_v54 }
 0x22e   : > { %22990 = vmatmul.mubr.msk.f32.gmra.mrb[44].mxu1 %vm434_vm0, %v27849_v8 }
 0x22f   : > { %22992 = vmatprep.mubr.msk.f32.mxu1 %vm434_vm0, %v27853_v13 }
 0x232   : > { %22993 = vmatmul.mubr.msk.f32.gmra.mrb[46].mxu1 %vm434_vm0, %v27857_v17 }
 0x233   : > { %22995 = vmatprep.mubr.msk.f32.mxu1 %vm434_vm0, %v27861_v19 }
 0x236   : > { %22996 = vmatmul.mubr.msk.f32.gmra.mrb[48].mxu1 %vm434_vm0, %v27865_v21 }
 0x237   : > { %22998 = vmatprep.mubr.msk.f32.mxu1 %vm434_vm0, %v27869_v56 }
 0x23a   : > { %22999 = vmatmul.mubr.msk.f32.gmra.mrb[50].mxu1 %vm434_vm0, %v27873_v37 }
 0x23b   : > { %23001 = vmatprep.mubr.msk.f32.mxu1 %vm434_vm0, %v27877_v12 }
 0x23e   : > { %23002 = vmatmul.mubr.msk.f32.gmra.mrb[52].mxu1 %vm434_vm0, %v27881_v58 }
 0x23f   : > { %23004 = vmatprep.mubr.msk.f32.mxu1 %vm434_vm0, %v27885_v20 }
 0x242   : > { %23005 = vmatmul.mubr.msk.f32.gmra.mrb[54].mxu1 %vm434_vm0, %v27889_v61 }
 0x243   : > { %23007 = vmatprep.mubr.msk.f32.mxu1 %vm434_vm0, %v27893_v14 }
 0x246   : > { %23008 = vmatmul.mubr.msk.f32.gmra.mrb[56].mxu1 %vm434_vm0, %v27897_v23 }
 0x247   : > { %23010 = vmatprep.mubr.msk.f32.mxu1 %vm434_vm0, %v27901_v26 }
 0x24a   : > { %23011 = vmatmul.mubr.msk.f32.gmra.mrb[58].mxu1 %vm434_vm0, %v27905_v27 }
 0x24b   : > { %23013 = vmatprep.mubr.msk.f32.mxu1 %vm434_vm0, %v27909_v30 }
 0x24e   : > { %23014 = vmatmul.mubr.msk.f32.gmra.mrb[60].mxu1 %vm434_vm0, %v27913_v35 }
 0x24f   : > { %23016 = vmatprep.mubr.msk.f32.mxu1 %vm434_vm0, %v27917_v38 }
 0x252   : > { %23017 = vmatmul.mubr.msk.f32.gmra.mrb[62].mxu1 %vm434_vm0, %v27921_v60 }
 0x253   : > { %23021 = vmatprep.mubr.msk.f32.mxu1 %vm434_vm0, %v4941_v42  ;;  %v27942_v42 = vld [vmem:[#allocation2 + $0x32] sm:$0xff] }
 0x254   : > { %32137 = vst [vmem:[#allocation8_spill] sm:$0xff] %v27942_v42 }
 0x256   : > { %23022 = vmatmul.mubr.msk.f32.vlgmr.msra.gmra.mrb[32].mxu1 %vm434_vm0, %v4942_v49  ;;  %v27946_v49 = vld [vmem:[#allocation2 + $0x3a] sm:$0xff] }
 0x257   : > { %23070 = vmatpush3.msra.mxu1 %v27800_v63  ;;  %23024 = vmatprep.mubr.msk.f32.mxu1 %vm434_vm0, %v27932_v50  ;;  %32138 = vst [vmem:[#allocation21_spill] sm:$0xff] %v27946_v49  ;;  %v27950_v63 = vld [vmem:[#allocation2 + $0x4a] sm:$0xff]  ;;  %v27954_v50 = vld [vmem:[#allocation2 + $0x52] sm:$0xff] }
 0x258   : > { %23119 = vmatprep.subr.mxu1 %v27929_v62  ;;  %32139 = vst [vmem:[#allocation9_spill] sm:$0xff] %v27950_v63  ;;  %32140 = vst [vmem:[#allocation22_spill] sm:$0xff] %v27954_v50 }
 0x25a   : > { %23025 = vmatmul.mubr.msk.f32.gmra.mrb[34].mxu1 %vm434_vm0, %v27938_v46  ;;  %v27958_v46 = vld [vmem:[#allocation2 + $0x62] sm:$0xff] }
 0x25b   : > { %23027 = vmatprep.mubr.msk.f32.mxu1 %vm434_vm0, %v27942_v42  ;;  %32141 = vst [vmem:[#allocation10_spill] sm:$0xff] %v27958_v46  ;;  %v27962_v42 = vld [vmem:[#allocation2 + $0x6a] sm:$0xff] }
 0x25c   : > { %32142 = vst [vmem:[#allocation23_spill] sm:$0xff] %v27962_v42 }
 0x25e   : > { %23028 = vmatmul.mubr.msk.f32.gmra.mrb[36].mxu1 %vm434_vm0, %v27946_v49  ;;  %v27966_v49 = vld [vmem:[#allocation2 + $0x7a] sm:$0xff] }
 0x25f   : > { %23030 = vmatprep.mubr.msk.f32.mxu1 %vm434_vm0, %v27950_v63  ;;  %32143 = vst [vmem:[#allocation11_spill] sm:$0xff] %v27966_v49  ;;  %v27970_v63 = vld [vmem:[#allocation2 + $0x82] sm:$0xff] }
 0x260   : > { %32144 = vst [vmem:[#allocation24_spill] sm:$0xff] %v27970_v63 }
 0x262   : > { %23031 = vmatmul.mubr.msk.f32.gmra.mrb[38].mxu1 %vm434_vm0, %v27954_v50  ;;  %v27974_v50 = vld [vmem:[#allocation2 + $0x92] sm:$0xff] }
 0x263   : > { %23033 = vmatprep.mubr.msk.f32.mxu1 %vm434_vm0, %v27958_v46  ;;  %32145 = vst [vmem:[#allocation12_spill] sm:$0xff] %v27974_v50  ;;  %v27978_v46 = vld [vmem:[#allocation2 + $0x9a] sm:$0xff] }
 0x264   : > { %32146 = vst [vmem:[#allocation25_spill] sm:$0xff] %v27978_v46 }
 0x266   : > { %23034 = vmatmul.mubr.msk.f32.gmra.mrb[40].mxu1 %vm434_vm0, %v27962_v42  ;;  %v27982_v42 = vld [vmem:[#allocation2 + $0xaa] sm:$0xff] }
 0x267   : > { %23036 = vmatprep.mubr.msk.f32.mxu1 %vm434_vm0, %v27966_v49  ;;  %32147 = vst [vmem:[#allocation13_spill] sm:$0xff] %v27982_v42  ;;  %v27986_v49 = vld [vmem:[#allocation2 + $0xb2] sm:$0xff] }
 0x268   : > { %32148 = vst [vmem:[#allocation26_spill] sm:$0xff] %v27986_v49 }
 0x26a   : > { %23037 = vmatmul.mubr.msk.f32.gmra.mrb[42].mxu1 %vm434_vm0, %v27970_v63  ;;  %v27990_v63 = vld [vmem:[#allocation2 + $0xc2] sm:$0xff] }
 0x26b   : > { %23039 = vmatprep.mubr.msk.f32.mxu1 %vm434_vm0, %v27974_v50  ;;  %32149 = vst [vmem:[#allocation14_spill] sm:$0xff] %v27990_v63  ;;  %v27994_v50 = vld [vmem:[#allocation2 + $0xca] sm:$0xff] }
 0x26c   : > { %32150 = vst [vmem:[#allocation27_spill] sm:$0xff] %v27994_v50 }
 0x26e   : > { %23040 = vmatmul.mubr.msk.f32.gmra.mrb[44].mxu1 %vm434_vm0, %v27978_v46  ;;  %v27998_v46 = vld [vmem:[#allocation2 + $0xda] sm:$0xff] }
 0x26f   : > { %23042 = vmatprep.mubr.msk.f32.mxu1 %vm434_vm0, %v27982_v42  ;;  %32151 = vst [vmem:[#allocation15_spill] sm:$0xff] %v27998_v46  ;;  %v28002_v42 = vld [vmem:[#allocation2 + $0xe2] sm:$0xff] }
 0x270   : > { %32152 = vst [vmem:[#allocation28_spill] sm:$0xff] %v28002_v42 }
 0x272   : > { %23043 = vmatmul.mubr.msk.f32.gmra.mrb[46].mxu1 %vm434_vm0, %v27986_v49  ;;  %v28006_v49 = vld [vmem:[#allocation2 + $0xf2] sm:$0xff] }
 0x273   : > { %23045 = vmatprep.mubr.msk.f32.mxu1 %vm434_vm0, %v27990_v63  ;;  %32153 = vst [vmem:[#allocation16_spill] sm:$0xff] %v28006_v49  ;;  %v28010_v63 = vld [vmem:[#allocation2 + $0xfa] sm:$0xff] }
 0x274   : > { %32154 = vst [vmem:[#allocation29_spill] sm:$0xff] %v28010_v63 }
 0x276   : > { %23046 = vmatmul.mubr.msk.f32.gmra.mrb[48].mxu1 %vm434_vm0, %v27994_v50  ;;  %v28014_v50 = vld [vmem:[#allocation2 + $0x10a] sm:$0xff] }
 0x277   : > { %23048 = vmatprep.mubr.msk.f32.mxu1 %vm434_vm0, %v27998_v46  ;;  %32155 = vst [vmem:[#allocation17_spill] sm:$0xff] %v28014_v50  ;;  %v28018_v46 = vld [vmem:[#allocation2 + $0x112] sm:$0xff] }
 0x278   : > { %32156 = vst [vmem:[#allocation30_spill] sm:$0xff] %v28018_v46 }
 0x27a   : > { %23049 = vmatmul.mubr.msk.f32.gmra.mrb[50].mxu1 %vm434_vm0, %v28002_v42  ;;  %v28022_v42 = vld [vmem:[#allocation2 + $0x122] sm:$0xff] }
 0x27b   : > { %23051 = vmatprep.mubr.msk.f32.mxu1 %vm434_vm0, %v28006_v49  ;;  %32157 = vst [vmem:[#allocation32_spill] sm:$0xff] %v28022_v42  ;;  %v28026_v49 = vld [vmem:[#allocation2 + $0x12a] sm:$0xff] }
 0x27c   : > { %32158 = vst [vmem:[#allocation34_spill] sm:$0xff] %v28026_v49 }
 0x27e   : > { %23052 = vmatmul.mubr.msk.f32.gmra.mrb[52].mxu1 %vm434_vm0, %v28010_v63  ;;  %v28030_v63 = vld [vmem:[#allocation2 + $0x13a] sm:$0xff] }
 0x27f   : > { %23054 = vmatprep.mubr.msk.f32.mxu1 %vm434_vm0, %v28014_v50  ;;  %32159 = vst [vmem:[#allocation36_spill] sm:$0xff] %v28030_v63  ;;  %v28034_v50 = vld [vmem:[#allocation2 + $0x142] sm:$0xff] }
 0x282   : > { %23055 = vmatmul.mubr.msk.f32.gmra.mrb[54].mxu1 %vm434_vm0, %v28018_v46  ;;  %v28038_v46 = vld [vmem:[#allocation2 + $0x152] sm:$0xff] }
 0x283   : > { %23057 = vmatprep.mubr.msk.f32.mxu1 %vm434_vm0, %v28022_v42  ;;  %32160 = vst [vmem:[#allocation31_spill] sm:$0xff] %v28038_v46  ;;  %v28042_v42 = vld [vmem:[#allocation2 + $0x15a] sm:$0xff] }
 0x286   : > { %23058 = vmatmul.mubr.msk.f32.gmra.mrb[56].mxu1 %vm434_vm0, %v28026_v49  ;;  %v28046_v49 = vld [vmem:[#allocation2 + $0x16a] sm:$0xff] }
 0x287   : > { %23060 = vmatprep.mubr.msk.f32.mxu1 %vm434_vm0, %v28030_v63  ;;  %32161 = vst [vmem:[#allocation33_spill] sm:$0xff] %v28046_v49  ;;  %v28050_v63 = vld [vmem:[#allocation2 + $0x172] sm:$0xff] }
 0x28a   : > { %23061 = vmatmul.mubr.msk.f32.gmra.mrb[58].mxu1 %vm434_vm0, %v28034_v50 }
 0x28b   : > { %23063 = vmatprep.mubr.msk.f32.mxu1 %vm434_vm0, %v28038_v46  ;;  %v6131_v46 = vld [vmem:[%s31783_s4 + $0x28] sm:$0xff] }
 0x28e   : > { %23064 = vmatmul.mubr.msk.f32.gmra.mrb[60].mxu1 %vm434_vm0, %v28042_v42 }
 0x28f   : > { %23066 = vmatprep.mubr.msk.f32.mxu1 %vm434_vm0, %v28046_v49 }
 0x292   : > { %23067 = vmatmul.mubr.msk.f32.gmra.mrb[62].mxu1 %vm434_vm0, %v28050_v63 }
 0x293   : > { %23071 = vmatprep.mubr.msk.f32.mxu1 %vm434_vm0, %v27803_v51  ;;  %v28118_v51 = vld [vmem:[#allocation2 + $0x180] sm:$0xff] }
 0x296   : > { %23072 = vmatmul.mubr.msk.f32.vlgmr.msra.gmra.mrb[32].mxu1 %vm434_vm0, %v27809_v0  ;;  %v28122_v0 = vld [vmem:[#allocation2 + $0x188] sm:$0xff] }
 0x297   : > { %23120 = vmatpush3.msra.mxu1 %v27929_v62  ;;  %23074 = vmatprep.mubr.msk.f32.mxu1 %vm434_vm0, %v27813_v52  ;;  %v6518_v62 = vld [vmem:[%s31783_s4 + $0x30] sm:$0xff] }
 0x298   : > { %23169 = vmatprep.subr.mxu1 %v6131_v46 }
 0x29a   : > { %23075 = vmatmul.mubr.msk.f32.gmra.mrb[34].mxu1 %vm434_vm0, %v27817_v5 }
 0x29b   : > { %23077 = vmatprep.mubr.msk.f32.mxu1 %vm434_vm0, %v27821_v40 }
 0x29e   : > { %23078 = vmatmul.mubr.msk.f32.gmra.mrb[36].mxu1 %vm434_vm0, %v27825_v9 }
 0x29f   : > { %23080 = vmatprep.mubr.msk.f32.mxu1 %vm434_vm0, %v27829_v10 }
 0x2a2   : > { %23081 = vmatmul.mubr.msk.f32.gmra.mrb[38].mxu1 %vm434_vm0, %v27833_v55 }
 0x2a3   : > { %23083 = vmatprep.mubr.msk.f32.mxu1 %vm434_vm0, %v27837_v57 }
 0x2a6   : > { %23084 = vmatmul.mubr.msk.f32.gmra.mrb[40].mxu1 %vm434_vm0, %v27841_v25 }
 0x2a7   : > { %23086 = vmatprep.mubr.msk.f32.mxu1 %vm434_vm0, %v27845_v54 }
 0x2aa   : > { %23087 = vmatmul.mubr.msk.f32.gmra.mrb[42].mxu1 %vm434_vm0, %v27849_v8 }
 0x2ab   : > { %23089 = vmatprep.mubr.msk.f32.mxu1 %vm434_vm0, %v27853_v13 }
 0x2ae   : > { %23090 = vmatmul.mubr.msk.f32.gmra.mrb[44].mxu1 %vm434_vm0, %v27857_v17 }
 0x2af   : > { %23092 = vmatprep.mubr.msk.f32.mxu1 %vm434_vm0, %v27861_v19 }
 0x2b2   : > { %23093 = vmatmul.mubr.msk.f32.gmra.mrb[46].mxu1 %vm434_vm0, %v27865_v21 }
 0x2b3   : > { %23095 = vmatprep.mubr.msk.f32.mxu1 %vm434_vm0, %v27869_v56 }
 0x2b6   : > { %23096 = vmatmul.mubr.msk.f32.gmra.mrb[48].mxu1 %vm434_vm0, %v27873_v37 }
 0x2b7   : > { %23098 = vmatprep.mubr.msk.f32.mxu1 %vm434_vm0, %v27877_v12 }
 0x2ba   : > { %23099 = vmatmul.mubr.msk.f32.gmra.mrb[50].mxu1 %vm434_vm0, %v27881_v58 }
 0x2bb   : > { %23101 = vmatprep.mubr.msk.f32.mxu1 %vm434_vm0, %v27885_v20 }
 0x2be   : > { %23102 = vmatmul.mubr.msk.f32.gmra.mrb[52].mxu1 %vm434_vm0, %v27889_v61 }
 0x2bf   : > { %23104 = vmatprep.mubr.msk.f32.mxu1 %vm434_vm0, %v27893_v14 }
 0x2c2   : > { %23105 = vmatmul.mubr.msk.f32.gmra.mrb[54].mxu1 %vm434_vm0, %v27897_v23 }
 0x2c3   : > { %23107 = vmatprep.mubr.msk.f32.mxu1 %vm434_vm0, %v27901_v26 }
 0x2c6   : > { %23108 = vmatmul.mubr.msk.f32.gmra.mrb[56].mxu1 %vm434_vm0, %v27905_v27 }
 0x2c7   : > { %23110 = vmatprep.mubr.msk.f32.mxu1 %vm434_vm0, %v27909_v30 }
 0x2ca   : > { %23111 = vmatmul.mubr.msk.f32.gmra.mrb[58].mxu1 %vm434_vm0, %v27913_v35 }
 0x2cb   : > { %23113 = vmatprep.mubr.msk.f32.mxu1 %vm434_vm0, %v27917_v38 }
 0x2ce   : > { %23114 = vmatmul.mubr.msk.f32.gmra.mrb[60].mxu1 %vm434_vm0, %v27921_v60 }
 0x2cf   : > { %23116 = vmatprep.mubr.msk.f32.mxu1 %vm434_vm0, %v28118_v51 }
 0x2d2   : > { %23117 = vmatmul.mubr.msk.f32.gmra.mrb[62].mxu1 %vm434_vm0, %v28122_v0 }
 0x2d3   : > { %23121 = vmatprep.mubr.msk.f32.mxu1 %vm434_vm0, %v27618_v29  ;;  %v32162_v29 = vld [vmem:[#allocation6_spill] sm:$0xff] }
 0x2d6   : > { %23122 = vmatmul.mubr.msk.f32.vlgmr.msra.gmra.mrb[32].mxu1 %vm434_vm0, %v27623_v34  ;;  %v32163_v34 = vld [vmem:[#allocation19_spill] sm:$0xff] }
 0x2d7   : > { %23170 = vmatpush3.msra.mxu1 %v6131_v46  ;;  %23124 = vmatprep.mubr.msk.f32.mxu1 %vm434_vm0, %v27631_v44  ;;  %v28189_v44 = vld [vmem:[#allocation2 + $0x181] sm:$0xff]  ;;  %v32175_v46 = vld [vmem:[#allocation25_spill] sm:$0xff] }
 0x2d8   : > { %23219 = vmatprep.subr.mxu1 %v6518_v62 }
 0x2da   : > { %23125 = vmatmul.mubr.msk.f32.gmra.mrb[34].mxu1 %vm434_vm0, %v27637_v48  ;;  %v28193_v48 = vld [vmem:[#allocation2 + $0x189] sm:$0xff] }
 0x2db   : > { %23127 = vmatprep.mubr.msk.f32.mxu1 %vm434_vm0, %v27645_v2  ;;  %v32164_v2 = vld [vmem:[#allocation7_spill] sm:$0xff] }
 0x2de   : > { %23128 = vmatmul.mubr.msk.f32.gmra.mrb[36].mxu1 %vm434_vm0, %v27651_v6  ;;  %v6904_v6 = vld [vmem:[%s31783_s4 + $0x38] sm:$0xff] }
 0x2df   : > { %23130 = vmatprep.mubr.msk.f32.mxu1 %vm434_vm0, %v27659_v24  ;;  %v32165_v24 = vld [vmem:[#allocation20_spill] sm:$0xff] }
 0x2e2   : > { %23131 = vmatmul.mubr.msk.f32.gmra.mrb[38].mxu1 %vm434_vm0, %v27665_v11  ;;  %v32166_v11 = vld [vmem:[#allocation8_spill] sm:$0xff] }
 0x2e3   : > { %23133 = vmatprep.mubr.msk.f32.mxu1 %vm434_vm0, %v27673_v33  ;;  %v32167_v33 = vld [vmem:[#allocation21_spill] sm:$0xff] }
 0x2e6   : > { %23134 = vmatmul.mubr.msk.f32.gmra.mrb[40].mxu1 %vm434_vm0, %v27678_v1  ;;  %v32168_v1 = vld [vmem:[#allocation9_spill] sm:$0xff] }
 0x2e7   : > { %23136 = vmatprep.mubr.msk.f32.mxu1 %vm434_vm0, %v27685_v31  ;;  %v32169_v31 = vld [vmem:[#allocation22_spill] sm:$0xff] }
 0x2ea   : > { %23137 = vmatmul.mubr.msk.f32.gmra.mrb[42].mxu1 %vm434_vm0, %v27690_v39  ;;  %v32170_v39 = vld [vmem:[#allocation10_spill] sm:$0xff] }
 0x2eb   : > { %23139 = vmatprep.mubr.msk.f32.mxu1 %vm434_vm0, %v27697_v59  ;;  %v32171_v59 = vld [vmem:[#allocation23_spill] sm:$0xff] }
 0x2ee   : > { %23140 = vmatmul.mubr.msk.f32.gmra.mrb[44].mxu1 %vm434_vm0, %v27702_v4  ;;  %v32172_v4 = vld [vmem:[#allocation11_spill] sm:$0xff] }
 0x2ef   : > { %23142 = vmatprep.mubr.msk.f32.mxu1 %vm434_vm0, %v27709_v28  ;;  %v32173_v28 = vld [vmem:[#allocation24_spill] sm:$0xff] }
 0x2f2   : > { %23143 = vmatmul.mubr.msk.f32.gmra.mrb[46].mxu1 %vm434_vm0, %v27714_v15  ;;  %v32174_v15 = vld [vmem:[#allocation12_spill] sm:$0xff] }
 0x2f3   : > { %23145 = vmatprep.mubr.msk.f32.mxu1 %vm434_vm0, %v27721_v16 }
 0x2f6   : > { %23146 = vmatmul.mubr.msk.f32.gmra.mrb[48].mxu1 %vm434_vm0, %v27726_v18 }
 0x2f7   : > { %23148 = vmatprep.mubr.msk.f32.mxu1 %vm434_vm0, %v27733_v41 }
 0x2fa   : > { %23149 = vmatmul.mubr.msk.f32.gmra.mrb[50].mxu1 %vm434_vm0, %v27738_v47 }
 0x2fb   : > { %23151 = vmatprep.mubr.msk.f32.mxu1 %vm434_vm0, %v27745_v7 }
 0x2fe   : > { %23152 = vmatmul.mubr.msk.f32.gmra.mrb[52].mxu1 %vm434_vm0, %v27750_v53 }
 0x2ff   : > { %23154 = vmatprep.mubr.msk.f32.mxu1 %vm434_vm0, %v27757_v22 }
 0x302   : > { %23155 = vmatmul.mubr.msk.f32.gmra.mrb[54].mxu1 %vm434_vm0, %v27762_v3 }
 0x303   : > { %23157 = vmatprep.mubr.msk.f32.mxu1 %vm434_vm0, %v27769_v32 }
 0x306   : > { %23158 = vmatmul.mubr.msk.f32.gmra.mrb[56].mxu1 %vm434_vm0, %v27774_v36 }
 0x307   : > { %23160 = vmatprep.mubr.msk.f32.mxu1 %vm434_vm0, %v27779_v43 }
 0x30a   : > { %23161 = vmatmul.mubr.msk.f32.gmra.mrb[58].mxu1 %vm434_vm0, %v27784_v45 }
 0x30b   : > { %23163 = vmatprep.mubr.msk.f32.mxu1 %vm434_vm0, %v32162_v29 }
 0x30e   : > { %23164 = vmatmul.mubr.msk.f32.gmra.mrb[60].mxu1 %vm434_vm0, %v32163_v34 }
 0x30f   : > { %23166 = vmatprep.mubr.msk.f32.mxu1 %vm434_vm0, %v28189_v44 }
 0x312   : > { %23167 = vmatmul.mubr.msk.f32.gmra.mrb[62].mxu1 %vm434_vm0, %v28193_v48 }
 0x313   : > { %23171 = vmatprep.mubr.msk.f32.mxu1 %vm434_vm0, %v32164_v2  ;;  %v32177_v2 = vld [vmem:[#allocation26_spill] sm:$0xff] }
 0x316   : > { %23172 = vmatmul.mubr.msk.f32.vlgmr.msra.gmra.mrb[32].mxu1 %vm434_vm0, %v32165_v24  ;;  %v32178_v24 = vld [vmem:[#allocation14_spill] sm:$0xff] }
 0x317   : > { %23220 = vmatpush3.msra.mxu1 %v6518_v62  ;;  %23174 = vmatprep.mubr.msk.f32.mxu1 %vm434_vm0, %v32166_v11  ;;  %v32176_v62 = vld [vmem:[#allocation13_spill] sm:$0xff] }
 0x318   : > { %23269 = vmatprep.subr.mxu1 %v6904_v6 }
 0x31a   : > { %23175 = vmatmul.mubr.msk.f32.gmra.mrb[34].mxu1 %vm434_vm0, %v32167_v33 }
 0x31b   : > { %23177 = vmatprep.mubr.msk.f32.mxu1 %vm434_vm0, %v32168_v1 }
 0x31e   : > { %23178 = vmatmul.mubr.msk.f32.gmra.mrb[36].mxu1 %vm434_vm0, %v32169_v31 }
 0x31f   : > { %23180 = vmatprep.mubr.msk.f32.mxu1 %vm434_vm0, %v32170_v39 }
 0x322   : > { %23181 = vmatmul.mubr.msk.f32.gmra.mrb[38].mxu1 %vm434_vm0, %v32171_v59  ;;  %v32179_v59 = vld [vmem:[#allocation27_spill] sm:$0xff] }
 0x323   : > { %23183 = vmatprep.mubr.msk.f32.mxu1 %vm434_vm0, %v32172_v4  ;;  %v32180_v4 = vld [vmem:[#allocation15_spill] sm:$0xff] }
 0x326   : > { %23184 = vmatmul.mubr.msk.f32.gmra.mrb[40].mxu1 %vm434_vm0, %v32173_v28  ;;  %v32181_v28 = vld [vmem:[#allocation28_spill] sm:$0xff] }
 0x327   : > { %23186 = vmatprep.mubr.msk.f32.mxu1 %vm434_vm0, %v32174_v15  ;;  %v32182_v15 = vld [vmem:[#allocation16_spill] sm:$0xff] }
 0x32a   : > { %23187 = vmatmul.mubr.msk.f32.gmra.mrb[42].mxu1 %vm434_vm0, %v32175_v46  ;;  %v32183_v46 = vld [vmem:[#allocation29_spill] sm:$0xff] }
 0x32b   : > { %23189 = vmatprep.mubr.msk.f32.mxu1 %vm434_vm0, %v32176_v62  ;;  %v32184_v62 = vld [vmem:[#allocation17_spill] sm:$0xff] }
 0x32e   : > { %23190 = vmatmul.mubr.msk.f32.gmra.mrb[44].mxu1 %vm434_vm0, %v32177_v2  ;;  %v32185_v2 = vld [vmem:[#allocation30_spill] sm:$0xff] }
 0x32f   : > { %23192 = vmatprep.mubr.msk.f32.mxu1 %vm434_vm0, %v32178_v24  ;;  %v32186_v24 = vld [vmem:[#allocation32_spill] sm:$0xff] }
 0x332   : > { %23193 = vmatmul.mubr.msk.f32.gmra.mrb[46].mxu1 %vm434_vm0, %v32179_v59  ;;  %v32187_v59 = vld [vmem:[#allocation34_spill] sm:$0xff] }
 0x333   : > { %23195 = vmatprep.mubr.msk.f32.mxu1 %vm434_vm0, %v32180_v4  ;;  %v32188_v4 = vld [vmem:[#allocation36_spill] sm:$0xff] }
 0x336   : > { %23196 = vmatmul.mubr.msk.f32.gmra.mrb[48].mxu1 %vm434_vm0, %v32181_v28 }
 0x337   : > { %23198 = vmatprep.mubr.msk.f32.mxu1 %vm434_vm0, %v32182_v15  ;;  %v32189_v15 = vld [vmem:[#allocation31_spill] sm:$0xff] }
 0x33a   : > { %23199 = vmatmul.mubr.msk.f32.gmra.mrb[50].mxu1 %vm434_vm0, %v32183_v46 }
 0x33b   : > { %23201 = vmatprep.mubr.msk.f32.mxu1 %vm434_vm0, %v32184_v62 }
 0x33e   : > { %23202 = vmatmul.mubr.msk.f32.gmra.mrb[52].mxu1 %vm434_vm0, %v32185_v2 }
 0x33f   : > { %23204 = vmatprep.mubr.msk.f32.mxu1 %vm434_vm0, %v32186_v24  ;;  %v28260_v24 = vld [vmem:[#allocation2 + $0x182] sm:$0xff] }
 0x342   : > { %23205 = vmatmul.mubr.msk.f32.gmra.mrb[54].mxu1 %vm434_vm0, %v32187_v59 }
 0x343   : > { %23207 = vmatprep.mubr.msk.f32.mxu1 %vm434_vm0, %v32188_v4  ;;  %v28264_v4 = vld [vmem:[#allocation2 + $0x18a] sm:$0xff] }
 0x346   : > { %23208 = vmatmul.mubr.msk.f32.gmra.mrb[56].mxu1 %vm434_vm0, %v28034_v50 }
 0x347   : > { %23210 = vmatprep.mubr.msk.f32.mxu1 %vm434_vm0, %v32189_v15 }
 0x34a   : > { %23211 = vmatmul.mubr.msk.f32.gmra.mrb[58].mxu1 %vm434_vm0, %v28042_v42 }
 0x34b   : > { %23213 = vmatprep.mubr.msk.f32.mxu1 %vm434_vm0, %v28046_v49  ;;  %v7290_v49 = vld [vmem:[%s31783_s4 + $0x40] sm:$0xff] }
 0x34e   : > { %23214 = vmatmul.mubr.msk.f32.gmra.mrb[60].mxu1 %vm434_vm0, %v28050_v63 }
 0x34f   : > { %23216 = vmatprep.mubr.msk.f32.mxu1 %vm434_vm0, %v28260_v24 }
 0x352   : > { %23217 = vmatmul.mubr.msk.f32.gmra.mrb[62].mxu1 %vm434_vm0, %v28264_v4 }
 0x353   : > { %23221 = vmatprep.mubr.msk.f32.mxu1 %vm434_vm0, %v27813_v52  ;;  %v6516_v52 = vld [vmem:[#allocation2 + $0x198] sm:$0xff] }
 0x356   : > { %23222 = vmatmul.mubr.msk.f32.vlgmr.msra.gmra.mrb[32].mxu1 %vm434_vm0, %v27817_v5  ;;  %v6517_v5 = vld [vmem:[#allocation2 + $0x1a0] sm:$0xff] }
 0x357   : > { %23270 = vmatpush3.msra.mxu1 %v6904_v6  ;;  %23224 = vmatprep.mubr.msk.f32.mxu1 %vm434_vm0, %v27821_v40  ;;  %v6872_v40 = vld [vmem:[#allocation2 + $0x31] sm:$0xff] }
 0x358   : > { %23319 = vmatprep.subr.mxu1 %v7290_v49 }
 0x35a   : > { %23225 = vmatmul.mubr.msk.f32.gmra.mrb[34].mxu1 %vm434_vm0, %v27825_v9  ;;  %v6873_v9 = vld [vmem:[#allocation2 + $0x39] sm:$0xff] }
 0x35b   : > { %23227 = vmatprep.mubr.msk.f32.mxu1 %vm434_vm0, %v27829_v10  ;;  %v6874_v10 = vld [vmem:[#allocation2 + $0x49] sm:$0xff] }
 0x35e   : > { %23228 = vmatmul.mubr.msk.f32.gmra.mrb[36].mxu1 %vm434_vm0, %v27833_v55  ;;  %v6875_v55 = vld [vmem:[#allocation2 + $0x51] sm:$0xff] }
 0x35f   : > { %23230 = vmatprep.mubr.msk.f32.mxu1 %vm434_vm0, %v27837_v57  ;;  %v6876_v57 = vld [vmem:[#allocation2 + $0x61] sm:$0xff] }
 0x362   : > { %23231 = vmatmul.mubr.msk.f32.gmra.mrb[38].mxu1 %vm434_vm0, %v27841_v25  ;;  %v6877_v25 = vld [vmem:[#allocation2 + $0x69] sm:$0xff] }
 0x363   : > { %23233 = vmatprep.mubr.msk.f32.mxu1 %vm434_vm0, %v27845_v54  ;;  %v6878_v54 = vld [vmem:[#allocation2 + $0x79] sm:$0xff] }
 0x366   : > { %23234 = vmatmul.mubr.msk.f32.gmra.mrb[40].mxu1 %vm434_vm0, %v27849_v8  ;;  %v6879_v8 = vld [vmem:[#allocation2 + $0x81] sm:$0xff] }
 0x367   : > { %23236 = vmatprep.mubr.msk.f32.mxu1 %vm434_vm0, %v27853_v13  ;;  %v6880_v13 = vld [vmem:[#allocation2 + $0x91] sm:$0xff] }
 0x36a   : > { %23237 = vmatmul.mubr.msk.f32.gmra.mrb[42].mxu1 %vm434_vm0, %v27857_v17  ;;  %v6881_v17 = vld [vmem:[#allocation2 + $0x99] sm:$0xff] }
 0x36b   : > { %23239 = vmatprep.mubr.msk.f32.mxu1 %vm434_vm0, %v27861_v19  ;;  %v6882_v19 = vld [vmem:[#allocation2 + $0xa9] sm:$0xff] }
 0x36e   : > { %23240 = vmatmul.mubr.msk.f32.gmra.mrb[44].mxu1 %vm434_vm0, %v27865_v21  ;;  %v6883_v21 = vld [vmem:[#allocation2 + $0xb1] sm:$0xff] }
 0x36f   : > { %23242 = vmatprep.mubr.msk.f32.mxu1 %vm434_vm0, %v27869_v56  ;;  %v6884_v56 = vld [vmem:[#allocation2 + $0xc1] sm:$0xff] }
 0x372   : > { %23243 = vmatmul.mubr.msk.f32.gmra.mrb[46].mxu1 %vm434_vm0, %v27873_v37  ;;  %v6885_v37 = vld [vmem:[#allocation2 + $0xc9] sm:$0xff] }
 0x373   : > { %23245 = vmatprep.mubr.msk.f32.mxu1 %vm434_vm0, %v27877_v12  ;;  %v32200_v12 = vld [vmem:[#allocation16_spill] sm:$0xff] }
 0x376   : > { %23246 = vmatmul.mubr.msk.f32.gmra.mrb[48].mxu1 %vm434_vm0, %v27881_v58  ;;  %v32201_v58 = vld [vmem:[#allocation32_spill] sm:$0xff] }
 0x377   : > { %23248 = vmatprep.mubr.msk.f32.mxu1 %vm434_vm0, %v27885_v20  ;;  %v32202_v20 = vld [vmem:[#allocation36_spill] sm:$0xff] }
 0x37a   : > { %23249 = vmatmul.mubr.msk.f32.gmra.mrb[50].mxu1 %vm434_vm0, %v27889_v61  ;;  %v32203_v61 = vld [vmem:[#allocation33_spill] sm:$0xff] }
 0x37b   : > { %23251 = vmatprep.mubr.msk.f32.mxu1 %vm434_vm0, %v27893_v14  ;;  %v7288_v14 = vld [vmem:[#allocation2 + $0x19a] sm:$0xff] }
 0x37e   : > { %23252 = vmatmul.mubr.msk.f32.gmra.mrb[52].mxu1 %vm434_vm0, %v27897_v23  ;;  %v8020_v23 = vld [vmem:[%s31785_s6 + $0x8] sm:$0xff] }
 0x37f   : > { %23254 = vmatprep.mubr.msk.f32.mxu1 %vm434_vm0, %v27901_v26  ;;  %23369 = vmatprep.subr.mxu0 %v8020_v23  ;;  %v7686_v26 = vld [vmem:[%s28451_s23 + $0x18] sm:$0xff] }
 0x380   : > { %23370 = vmatpush3.msra.mxu0 %v8020_v23  ;;  %7742 = vst.msk [vmem:[#allocation3 + $0x18] sm:$0xff] %vm7737_vm3, %v7686_v26  ;;  %v7715_v26 = vld [vmem:[%s28451_s23 + $0x100] sm:$0x3] }
 0x381   : > { %7771 = vst.msk [vmem:[#allocation3 + $0x100] sm:$0x3] %vm7740_vm7, %v7715_v26 }
 0x382   : > { %23255 = vmatmul.mubr.msk.f32.gmra.mrb[54].mxu1 %vm434_vm0, %v27905_v27  ;;  %v7687_v27 = vld [vmem:[%s28451_s23 + $0x20] sm:$0xff] }
 0x383   : > { %23257 = vmatprep.mubr.msk.f32.mxu1 %vm434_vm0, %v27909_v30  ;;  %7743 = vst.msk [vmem:[#allocation3 + $0x20] sm:$0xff] %vm7737_vm3, %v7687_v27  ;;  %v7683_v30 = vld [vmem:[%s28451_s23] sm:$0xff] }
 0x384   : > { %7738 = vst.msk [vmem:[#allocation3] sm:$0xff] %vm7737_vm3, %v7683_v30 }
 0x386   : > { %23258 = vmatmul.mubr.msk.f32.gmra.mrb[56].mxu1 %vm434_vm0, %v27913_v35  ;;  %v7684_v35 = vld [vmem:[%s28451_s23 + $0x8] sm:$0xff] }
 0x387   : > { %23260 = vmatprep.mubr.msk.f32.mxu1 %vm434_vm0, %v27917_v38  ;;  %v7688_v38 = vld [vmem:[%s28451_s23 + $0x28] sm:$0x3]  ;;  %7739 = vst.msk [vmem:[#allocation3 + $0x8] sm:$0xff] %vm7737_vm3, %v7684_v35 }
 0x388   : > { %7744 = vst.msk [vmem:[#allocation3 + $0x28] sm:$0x3] %vm7740_vm7, %v7688_v38  ;;  %v7716_v38 = vld [vmem:[%s28451_s23 + $0x108] sm:$0xff] }
 0x389   : > { %7772 = vst.msk [vmem:[#allocation3 + $0x108] sm:$0xff] %vm7737_vm3, %v7716_v38 }
 0x38a   : > { %23261 = vmatmul.mubr.msk.f32.gmra.mrb[58].mxu1 %vm434_vm0, %v27921_v60  ;;  %v7685_v60 = vld [vmem:[%s28451_s23 + $0x10] sm:$0x3] }
 0x38b   : > { %23263 = vmatprep.mubr.msk.f32.mxu1 %vm434_vm0, %v28118_v51  ;;  %7741 = vst.msk [vmem:[#allocation3 + $0x10] sm:$0x3] %vm7740_vm7, %v7685_v60  ;;  %v7691_v51 = vld [vmem:[%s28451_s23 + $0x40] sm:$0x3]  ;;  %v7717_v60 = vld [vmem:[%s28451_s23 + $0x110] sm:$0xff] }
 0x38c   : > { %7747 = vst.msk [vmem:[#allocation3 + $0x40] sm:$0x3] %vm7740_vm7, %v7691_v51 }
 0x38d   : > { %7773 = vst.msk [vmem:[#allocation3 + $0x110] sm:$0xff] %vm7737_vm3, %v7717_v60 }
 0x38e   : > { %23264 = vmatmul.mubr.msk.f32.gmra.mrb[60].mxu1 %vm434_vm0, %v28122_v0  ;;  %v28477_v0 = vld [vmem:[%s31784_s5] ss:$0 sm:$0xff] }
 0x38f   : > { %23266 = vmatprep.mubr.msk.f32.mxu1 %vm434_vm0, %v6516_v52  ;;  %v7700_v52 = vld [vmem:[%s28451_s23 + $0x88] sm:$0x3] }
 0x390   : > { %7756 = vst.msk [vmem:[#allocation3 + $0x88] sm:$0x3] %vm7740_vm7, %v7700_v52  ;;  %v7727_v52 = vld [vmem:[%s28451_s23 + $0x160] sm:$0x3] }
 0x391   : > { %7783 = vst.msk [vmem:[#allocation3 + $0x160] sm:$0x3] %vm7740_vm7, %v7727_v52 }
 0x392   : > { %23267 = vmatmul.mubr.msk.f32.gmra.mrb[62].mxu1 %vm434_vm0, %v6517_v5 }
 0x393   : > { %23271 = vmatprep.mubr.msk.f32.mxu1 %vm434_vm0, %v6872_v40 }
 0x396   : > { %23272 = vmatmul.mubr.msk.f32.vlgmr.msra.gmra.mrb[32].mxu1 %vm434_vm0, %v6873_v9 }
 0x397   : > { %23320 = vmatpush3.msra.mxu1 %v7290_v49  ;;  %23274 = vmatprep.mubr.msk.f32.mxu1 %vm434_vm0, %v6874_v10  ;;  %v7690_v49 = vld [vmem:[%s28451_s23 + $0x38] sm:$0xff]  ;;  %v7701_v10 = vld [vmem:[%s28451_s23 + $0x90] sm:$0xff] }
 0x398   : > { %7746 = vst.msk [vmem:[#allocation3 + $0x38] sm:$0xff] %vm7737_vm3, %v7690_v49  ;;  %7757 = vst.msk [vmem:[#allocation3 + $0x90] sm:$0xff] %vm7737_vm3, %v7701_v10  ;;  %v7718_v49 = vld [vmem:[%s28451_s23 + $0x118] sm:$0x3]  ;;  %v7728_v10 = vld [vmem:[%s28451_s23 + $0x168] sm:$0xff] }
 0x399   : > { %7774 = vst.msk [vmem:[#allocation3 + $0x118] sm:$0x3] %vm7740_vm7, %v7718_v49 }
 0x39a   : > { %23275 = vmatmul.mubr.msk.f32.gmra.mrb[34].mxu1 %vm434_vm0, %v6875_v55  ;;  %v7702_v55 = vld [vmem:[%s28451_s23 + $0x98] sm:$0xff]  ;;  %7784 = vst.msk [vmem:[#allocation3 + $0x168] sm:$0xff] %vm7737_vm3, %v7728_v10 }
 0x39b   : > { %23277 = vmatprep.mubr.msk.f32.mxu1 %vm434_vm0, %v6876_v57  ;;  %7758 = vst.msk [vmem:[#allocation3 + $0x98] sm:$0xff] %vm7737_vm3, %v7702_v55  ;;  %v7729_v55 = vld [vmem:[%s28451_s23 + $0x170] sm:$0xff] }
 0x39c   : > { %7785 = vst.msk [vmem:[#allocation3 + $0x170] sm:$0xff] %vm7737_vm3, %v7729_v55 }
 0x39e   : > { %23278 = vmatmul.mubr.msk.f32.gmra.mrb[36].mxu1 %vm434_vm0, %v6877_v25  ;;  %v7703_v25 = vld [vmem:[%s28451_s23 + $0xa0] sm:$0x3] }
 0x39f   : > { %23280 = vmatprep.mubr.msk.f32.mxu1 %vm434_vm0, %v6878_v54  ;;  %7759 = vst.msk [vmem:[#allocation3 + $0xa0] sm:$0x3] %vm7740_vm7, %v7703_v25  ;;  %v7730_v25 = vld [vmem:[%s28451_s23 + $0x178] sm:$0x3] }
 0x3a0   : > { %7786 = vst.msk [vmem:[#allocation3 + $0x178] sm:$0x3] %vm7740_vm7, %v7730_v25 }
 0x3a2   : > { %23281 = vmatmul.mubr.msk.f32.gmra.mrb[38].mxu1 %vm434_vm0, %v6879_v8 }
 0x3a3   : > { %23283 = vmatprep.mubr.msk.f32.mxu1 %vm434_vm0, %v6880_v13 }
 0x3a6   : > { %23284 = vmatmul.mubr.msk.f32.gmra.mrb[40].mxu1 %vm434_vm0, %v6881_v17  ;;  %v7704_v17 = vld [vmem:[%s28451_s23 + $0xa8] sm:$0xff] }
 0x3a7   : > { %23286 = vmatprep.mubr.msk.f32.mxu1 %vm434_vm0, %v6882_v19  ;;  %v7705_v19 = vld [vmem:[%s28451_s23 + $0xb0] sm:$0xff]  ;;  %7760 = vst.msk [vmem:[#allocation3 + $0xa8] sm:$0xff] %vm7737_vm3, %v7704_v17  ;;  %v7731_v17 = vld [vmem:[%s28451_s23 + $0x180] sm:$0xff] }
 0x3a8   : > { %7761 = vst.msk [vmem:[#allocation3 + $0xb0] sm:$0xff] %vm7737_vm3, %v7705_v19  ;;  %v7732_v19 = vld [vmem:[%s28451_s23 + $0x188] sm:$0xff]  ;;  %7787 = vst.msk [vmem:[#allocation3 + $0x180] sm:$0xff] %vm7737_vm3, %v7731_v17 }
 0x3a9   : > { %7788 = vst.msk [vmem:[#allocation3 + $0x188] sm:$0xff] %vm7737_vm3, %v7732_v19 }
 0x3aa   : > { %23287 = vmatmul.mubr.msk.f32.gmra.mrb[42].mxu1 %vm434_vm0, %v6883_v21 }
 0x3ab   : > { %23289 = vmatprep.mubr.msk.f32.mxu1 %vm434_vm0, %v6884_v56  ;;  %v7706_v56 = vld [vmem:[%s28451_s23 + $0xb8] sm:$0x3] }
 0x3ac   : > { %7762 = vst.msk [vmem:[#allocation3 + $0xb8] sm:$0x3] %vm7740_vm7, %v7706_v56  ;;  %v7733_v56 = vld [vmem:[%s28451_s23 + $0x190] sm:$0x3] }
 0x3ad   : > { %7789 = vst.msk [vmem:[#allocation3 + $0x190] sm:$0x3] %vm7740_vm7, %v7733_v56 }
 0x3ae   : > { %23290 = vmatmul.mubr.msk.f32.gmra.mrb[44].mxu1 %vm434_vm0, %v6885_v37 }
 0x3af   : > { %23292 = vmatprep.mubr.msk.f32.mxu1 %vm434_vm0, %v27721_v16  ;;  %v6902_v16 = vld [vmem:[#allocation2 + $0x199] sm:$0xff] }
 0x3b2   : > { %23293 = vmatmul.mubr.msk.f32.gmra.mrb[46].mxu1 %vm434_vm0, %v27726_v18  ;;  %v6903_v18 = vld [vmem:[#allocation2 + $0x1a1] sm:$0xff] }
 0x3b3   : > { %23295 = vmatprep.mubr.msk.f32.mxu1 %vm434_vm0, %v27733_v41  ;;  %v32190_v41 = vld [vmem:[#allocation23_spill] sm:$0xff] }
 0x3b6   : > { %23296 = vmatmul.mubr.msk.f32.gmra.mrb[48].mxu1 %vm434_vm0, %v27738_v47  ;;  %v32191_v47 = vld [vmem:[#allocation11_spill] sm:$0xff] }
 0x3b7   : > { %23298 = vmatprep.mubr.msk.f32.mxu1 %vm434_vm0, %v27745_v7  ;;  %v32192_v7 = vld [vmem:[#allocation24_spill] sm:$0xff] }
 0x3ba   : > { %23299 = vmatmul.mubr.msk.f32.gmra.mrb[50].mxu1 %vm434_vm0, %v27750_v53  ;;  %v32193_v53 = vld [vmem:[#allocation12_spill] sm:$0xff] }
 0x3bb   : > { %23301 = vmatprep.mubr.msk.f32.mxu1 %vm434_vm0, %v27757_v22  ;;  %v32194_v22 = vld [vmem:[#allocation25_spill] sm:$0xff] }
 0x3be   : > { %23302 = vmatmul.mubr.msk.f32.gmra.mrb[52].mxu1 %vm434_vm0, %v27762_v3  ;;  %v32195_v3 = vld [vmem:[#allocation13_spill] sm:$0xff] }
 0x3bf   : > { %23304 = vmatprep.mubr.msk.f32.mxu1 %vm434_vm0, %v27769_v32  ;;  %v32196_v32 = vld [vmem:[#allocation26_spill] sm:$0xff] }
 0x3c2   : > { %23305 = vmatmul.mubr.msk.f32.gmra.mrb[54].mxu1 %vm434_vm0, %v27774_v36  ;;  %v32197_v36 = vld [vmem:[#allocation14_spill] sm:$0xff] }
 0x3c3   : > { %23307 = vmatprep.mubr.msk.f32.mxu1 %vm434_vm0, %v27779_v43  ;;  %v32198_v43 = vld [vmem:[#allocation27_spill] sm:$0xff] }
 0x3c6   : > { %23308 = vmatmul.mubr.msk.f32.gmra.mrb[56].mxu1 %vm434_vm0, %v27784_v45  ;;  %v32199_v45 = vld [vmem:[#allocation15_spill] sm:$0xff] }
 0x3c7   : > { %23310 = vmatprep.mubr.msk.f32.mxu1 %vm434_vm0, %v32162_v29  ;;  %v7988_v29 = vld [vmem:[#allocation3 + $0x1] sm:$0xff] }
 0x3c8   : > { %23371 = vmatprep.mubr.msk.f32.mxu0 %vm434_vm0, %v7988_v29 }
 0x3ca   : > { %23311 = vmatmul.mubr.msk.f32.gmra.mrb[58].mxu1 %vm434_vm0, %v32163_v34  ;;  %v7989_v34 = vld [vmem:[#allocation3 + $0x9] sm:$0xff] }
 0x3cb   : > { %23313 = vmatprep.mubr.msk.f32.mxu1 %vm434_vm0, %v28189_v44  ;;  %v7692_v44 = vld [vmem:[%s28451_s23 + $0x48] sm:$0xff]  ;;  %23372 = vmatmul.mubr.msk.f32.vlgmr.msra.gmra.mrb[32].mxu0 %vm434_vm0, %v7989_v34  ;;  %v7719_v34 = vld [vmem:[%s28451_s23 + $0x120] sm:$0xff] }
 0x3cc   : > { %7748 = vst.msk [vmem:[#allocation3 + $0x48] sm:$0xff] %vm7737_vm3, %v7692_v44  ;;  %v7720_v44 = vld [vmem:[%s28451_s23 + $0x128] sm:$0xff]  ;;  %7775 = vst.msk [vmem:[#allocation3 + $0x120] sm:$0xff] %vm7737_vm3, %v7719_v34 }
 0x3cd   : > { %7776 = vst.msk [vmem:[#allocation3 + $0x128] sm:$0xff] %vm7737_vm3, %v7720_v44 }
 0x3ce   : > { %23314 = vmatmul.mubr.msk.f32.gmra.mrb[60].mxu1 %vm434_vm0, %v28193_v48  ;;  %v7693_v48 = vld [vmem:[%s28451_s23 + $0x50] sm:$0xff] }
 0x3cf   : > { %23316 = vmatprep.mubr.msk.f32.mxu1 %vm434_vm0, %v6902_v16  ;;  %7749 = vst.msk [vmem:[#allocation3 + $0x50] sm:$0xff] %vm7737_vm3, %v7693_v48 }
 0x3d2   : > { %23317 = vmatmul.mubr.msk.f32.gmra.mrb[62].mxu1 %vm434_vm0, %v6903_v18 }
 0x3d3   : > { %23321 = vmatprep.mubr.msk.f32.mxu1 %vm434_vm0, %v32166_v11  ;;  %v7694_v11 = vld [vmem:[%s28451_s23 + $0x58] sm:$0x3] }
 0x3d4   : > { %7750 = vst.msk [vmem:[#allocation3 + $0x58] sm:$0x3] %vm7740_vm7, %v7694_v11 }
 0x3d6   : > { %23322 = vmatmul.mubr.msk.f32.vlgmr.msra.gmra.mrb[32].mxu1 %vm434_vm0, %v32167_v33 }
 0x3d7   : > { %23324 = vmatprep.mubr.msk.f32.mxu1 %vm434_vm0, %v32168_v1 }
 0x3da   : > { %23325 = vmatmul.mubr.msk.f32.gmra.mrb[34].mxu1 %vm434_vm0, %v32169_v31  ;;  %v7695_v31 = vld [vmem:[%s28451_s23 + $0x60] sm:$0xff] }
 0x3db   : > { %23327 = vmatprep.mubr.msk.f32.mxu1 %vm434_vm0, %v32170_v39  ;;  %v7696_v39 = vld [vmem:[%s28451_s23 + $0x68] sm:$0xff]  ;;  %7751 = vst.msk [vmem:[#allocation3 + $0x60] sm:$0xff] %vm7737_vm3, %v7695_v31  ;;  %v7722_v31 = vld [vmem:[%s28451_s23 + $0x138] sm:$0xff] }
 0x3dc   : > { %7752 = vst.msk [vmem:[#allocation3 + $0x68] sm:$0xff] %vm7737_vm3, %v7696_v39  ;;  %v7723_v39 = vld [vmem:[%s28451_s23 + $0x140] sm:$0xff]  ;;  %7778 = vst.msk [vmem:[#allocation3 + $0x138] sm:$0xff] %vm7737_vm3, %v7722_v31 }
 0x3dd   : > { %7779 = vst.msk [vmem:[#allocation3 + $0x140] sm:$0xff] %vm7737_vm3, %v7723_v39 }
 0x3de   : > { %23328 = vmatmul.mubr.msk.f32.gmra.mrb[36].mxu1 %vm434_vm0, %v32190_v41  ;;  %v7707_v41 = vld [vmem:[%s28451_s23 + $0xc0] sm:$0xff] }
 0x3df   : > { %23330 = vmatprep.mubr.msk.f32.mxu1 %vm434_vm0, %v32191_v47  ;;  %v7708_v47 = vld [vmem:[%s28451_s23 + $0xc8] sm:$0xff]  ;;  %7763 = vst.msk [vmem:[#allocation3 + $0xc0] sm:$0xff] %vm7737_vm3, %v7707_v41 }
 0x3e0   : > { %7764 = vst.msk [vmem:[#allocation3 + $0xc8] sm:$0xff] %vm7737_vm3, %v7708_v47 }
 0x3e2   : > { %23331 = vmatmul.mubr.msk.f32.gmra.mrb[38].mxu1 %vm434_vm0, %v32192_v7 }
 0x3e3   : > { %23333 = vmatprep.mubr.msk.f32.mxu1 %vm434_vm0, %v32193_v53  ;;  %v7709_v53 = vld [vmem:[%s28451_s23 + $0xd0] sm:$0x3] }
 0x3e4   : > { %7765 = vst.msk [vmem:[#allocation3 + $0xd0] sm:$0x3] %vm7740_vm7, %v7709_v53 }
 0x3e6   : > { %23334 = vmatmul.mubr.msk.f32.gmra.mrb[40].mxu1 %vm434_vm0, %v32194_v22 }
 0x3e7   : > { %23336 = vmatprep.mubr.msk.f32.mxu1 %vm434_vm0, %v32195_v3 }
 0x3ea   : > { %23337 = vmatmul.mubr.msk.f32.gmra.mrb[42].mxu1 %vm434_vm0, %v32196_v32 }
 0x3eb   : > { %23339 = vmatprep.mubr.msk.f32.mxu1 %vm434_vm0, %v32197_v36  ;;  %v7710_v36 = vld [vmem:[%s28451_s23 + $0xd8] sm:$0xff] }
 0x3ec   : > { %7766 = vst.msk [vmem:[#allocation3 + $0xd8] sm:$0xff] %vm7737_vm3, %v7710_v36 }
 0x3ee   : > { %23340 = vmatmul.mubr.msk.f32.gmra.mrb[44].mxu1 %vm434_vm0, %v32198_v43  ;;  %v7711_v43 = vld [vmem:[%s28451_s23 + $0xe0] sm:$0xff] }
 0x3ef   : > { %23342 = vmatprep.mubr.msk.f32.mxu1 %vm434_vm0, %v32199_v45  ;;  %7767 = vst.msk [vmem:[#allocation3 + $0xe0] sm:$0xff] %vm7737_vm3, %v7711_v43 }
 0x3f2   : > { %23343 = vmatmul.mubr.msk.f32.gmra.mrb[46].mxu1 %vm434_vm0, %v32181_v28 }
 0x3f3   : > { %23345 = vmatprep.mubr.msk.f32.mxu1 %vm434_vm0, %v32200_v12  ;;  %v7712_v12 = vld [vmem:[%s28451_s23 + $0xe8] sm:$0x3] }
 0x3f4   : > { %7768 = vst.msk [vmem:[#allocation3 + $0xe8] sm:$0x3] %vm7740_vm7, %v7712_v12 }
 0x3f6   : > { %23346 = vmatmul.mubr.msk.f32.gmra.mrb[48].mxu1 %vm434_vm0, %v32183_v46 }
 0x3f7   : > { %23348 = vmatprep.mubr.msk.f32.mxu1 %vm434_vm0, %v32184_v62  ;;  %v7698_v62 = vld [vmem:[%s28451_s23 + $0x78] sm:$0xff] }
 0x3f8   : > { %7754 = vst.msk [vmem:[#allocation3 + $0x78] sm:$0xff] %vm7737_vm3, %v7698_v62  ;;  %v7725_v62 = vld [vmem:[%s28451_s23 + $0x150] sm:$0xff] }
 0x3f9   : > { %7781 = vst.msk [vmem:[#allocation3 + $0x150] sm:$0xff] %vm7737_vm3, %v7725_v62 }
 0x3fa   : > { %23349 = vmatmul.mubr.msk.f32.gmra.mrb[50].mxu1 %vm434_vm0, %v32185_v2  ;;  %v7699_v2 = vld [vmem:[%s28451_s23 + $0x80] sm:$0xff] }
 0x3fb   : > { %23351 = vmatprep.mubr.msk.f32.mxu1 %vm434_vm0, %v32201_v58  ;;  %7755 = vst.msk [vmem:[#allocation3 + $0x80] sm:$0xff] %vm7737_vm3, %v7699_v2  ;;  %v7726_v2 = vld [vmem:[%s28451_s23 + $0x158] sm:$0xff] }
 0x3fc   : > { %7782 = vst.msk [vmem:[#allocation3 + $0x158] sm:$0xff] %vm7737_vm3, %v7726_v2 }
 0x3fe   : > { %23352 = vmatmul.mubr.msk.f32.gmra.mrb[52].mxu1 %vm434_vm0, %v32187_v59 }
 0x3ff   : > { %23354 = vmatprep.mubr.msk.f32.mxu1 %vm434_vm0, %v32202_v20 }
 0x402   : > { %23355 = vmatmul.mubr.msk.f32.gmra.mrb[54].mxu1 %vm434_vm0, %v28034_v50  ;;  %v7289_v50 = vld [vmem:[#allocation2 + $0x1a2] sm:$0xff] }
 0x403   : > { %23357 = vmatprep.mubr.msk.f32.mxu1 %vm434_vm0, %v32189_v15 }
 0x406   : > { %23358 = vmatmul.mubr.msk.f32.gmra.mrb[56].mxu1 %vm434_vm0, %v28042_v42  ;;  %v7689_v42 = vld [vmem:[%s28451_s23 + $0x30] sm:$0xff] }
 0x407   : > { %23360 = vmatprep.mubr.msk.f32.mxu1 %vm434_vm0, %v32203_v61  ;;  %7745 = vst.msk [vmem:[#allocation3 + $0x30] sm:$0xff] %vm7737_vm3, %v7689_v42 }
 0x40a   : > { %23361 = vmatmul.mubr.msk.f32.gmra.mrb[58].mxu1 %vm434_vm0, %v28050_v63  ;;  %v7987_v63 = vld [vmem:[%s31785_s6] sm:$0xff] }
 0x40b   : > { %23363 = vmatprep.mubr.msk.f32.mxu1 %vm434_vm0, %v28260_v24  ;;  %23419 = vmatprep.subr.mxu0 %v7987_v63 }
 0x40c   : > { %23420 = vmatpush3.msra.mxu0 %v7987_v63 }
 0x40e   : > { %23364 = vmatmul.mubr.msk.f32.gmra.mrb[60].mxu1 %vm434_vm0, %v28264_v4  ;;  %v7697_v4 = vld [vmem:[%s28451_s23 + $0x70] sm:$0x3] }
 0x40f   : > { %23366 = vmatprep.mubr.msk.f32.mxu1 %vm434_vm0, %v7288_v14  ;;  %7753 = vst.msk [vmem:[#allocation3 + $0x70] sm:$0x3] %vm7740_vm7, %v7697_v4  ;;  %v7713_v14 = vld [vmem:[%s28451_s23 + $0xf0] sm:$0xff]  ;;  %v7724_v4 = vld [vmem:[%s28451_s23 + $0x148] sm:$0x3] }
 0x410   : > { %7769 = vst.msk [vmem:[#allocation3 + $0xf0] sm:$0xff] %vm7737_vm3, %v7713_v14 }
 0x411   : > { %7780 = vst.msk [vmem:[#allocation3 + $0x148] sm:$0x3] %vm7740_vm7, %v7724_v4 }
 0x412   : > { %23367 = vmatmul.mubr.msk.f32.gmra.mrb[62].mxu1 %vm434_vm0, %v7289_v50  ;;  %v7714_v50 = vld [vmem:[%s28451_s23 + $0xf8] sm:$0xff] }
 0x413   : > { %7770 = vst.msk [vmem:[#allocation3 + $0xf8] sm:$0xff] %vm7737_vm3, %v7714_v50 }
 0x4a9   : > { %v23323_v6 = vpop.f32.mrb[32].mxu1 }
 0x4aa   : > { %v7453_v33 = vpop.f32.mrb[33].mxu1  ;;  %v7652_v15 = vadd.f32 %v23323_v6, %v28477_v0  ;;  %v7721_v6 = vld [vmem:[%s28451_s23 + $0x130] sm:$0x3] }
 0x4ab   : > { %v7651_v1 = vadd.f32 %v28477_v0, %v7453_v33  ;;  %7777 = vst.msk [vmem:[#allocation3 + $0x130] sm:$0x3] %vm7740_vm7, %v7721_v6 }
 0x4ad   : > { %7825 = vrot.lane.b32.xlu0 %v7651_v1, %s26150_s27  ;;  %v23326_v59 = vpop.f32.mrb[34].mxu1 }
 0x4ae   : > { %v7463_v28 = vpop.f32.mrb[35].mxu1  ;;  %v7654_v40 = vadd.f32 %v23326_v59, %v28477_v0 }
 0x4af   : > { %v7653_v46 = vadd.f32 %v28477_v0, %v7463_v28 }
 0x4b1   : > { %7827 = vrot.lane.b32.xlu0 %v7652_v15, %s26150_s27  ;;  %7829 = vrot.lane.b32.xlu1 %v7653_v46, %s26150_s27  ;;  %v23329_v24 = vpop.f32.mrb[36].mxu1 }
 0x4b2   : > { %v7473_v5 = vpop.f32.mrb[37].mxu1  ;;  %v7656_v8 = vadd.f32 %v23329_v24, %v28477_v0 }
 0x4b3   : > { %v7655_v9 = vadd.f32 %v28477_v0, %v7473_v5 }
 0x4b5   : > { %7831 = vrot.lane.b32.xlu1 %v7654_v40, %s26150_s27  ;;  %7833 = vrot.lane.b32.xlu0 %v7655_v9, %s26150_s27  ;;  %v23332_v57 = vpop.f32.mrb[38].mxu1 }
 0x4b6   : > { %v7483_v54 = vpop.f32.mrb[39].mxu1  ;;  %v7658_v16 = vadd.f32 %v23332_v57, %v28477_v0 }
 0x4b7   : > { %v7657_v13 = vadd.f32 %v28477_v0, %v7483_v54 }
 0x4b9   : > { %7835 = vrot.lane.b32.xlu1 %v7656_v8, %s26150_s27  ;;  %7837 = vrot.lane.b32.xlu0 %v7657_v13, %s26150_s27  ;;  %v23335_v21 = vpop.f32.mrb[40].mxu1 }
 0x4ba   : > { %v7493_v37 = vpop.f32.mrb[41].mxu1  ;;  %v7660_v3 = vadd.f32 %v23335_v21, %v28477_v0 }
 0x4bb   : > { %v7659_v18 = vadd.f32 %v28477_v0, %v7493_v37 }
 0x4bd   : > { %7839 = vrot.lane.b32.xlu1 %v7658_v16, %s26150_s27  ;;  %7841 = vrot.lane.b32.xlu0 %v7659_v18, %s26150_s27  ;;  %v23338_v7 = vpop.f32.mrb[42].mxu1 }
 0x4be   : > { %v7503_v22 = vpop.f32.mrb[43].mxu1  ;;  %v7662_v20 = vadd.f32 %v23338_v7, %v28477_v0 }
 0x4bf   : > { %v7661_v32 = vadd.f32 %v28477_v0, %v7503_v22 }
 0x4c1   : > { %7843 = vrot.lane.b32.xlu1 %v7660_v3, %s26150_s27  ;;  %7845 = vrot.lane.b32.xlu0 %v7661_v32, %s26150_s27  ;;  %v23341_v45 = vpop.f32.mrb[44].mxu1  ;;  %v28626_v3 = vld [vmem:[%s31785_s6 + $0x10] sm:$0xff] }
 0x4c2   : > { %v7513_v58 = vpop.f32.mrb[45].mxu1  ;;  %v7664_v30 = vadd.f32 %v23341_v45, %v28477_v0  ;;  %23469 = vmatprep.subr.mxu0 %v28626_v3 }
 0x4c3   : > { %v7663_v61 = vadd.f32 %v28477_v0, %v7513_v58 }
 0x4c5   : > { %7847 = vrot.lane.b32.xlu1 %v7662_v20, %s26150_s27  ;;  %7849 = vrot.lane.b32.xlu0 %v7663_v61, %s26150_s27  ;;  %v23344_v23 = vpop.f32.mrb[46].mxu1 }
 0x4c6   : > { %v7523_v27 = vpop.f32.mrb[47].mxu1  ;;  %v7666_v51 = vadd.f32 %v23344_v23, %v28477_v0 }
 0x4c7   : > { %v7665_v35 = vadd.f32 %v28477_v0, %v7523_v27 }
 0x4c9   : > { %7851 = vrot.lane.b32.xlu1 %v7664_v30, %s26150_s27  ;;  %7853 = vrot.lane.b32.xlu0 %v7665_v35, %s26150_s27  ;;  %v23347_v42 = vpop.f32.mrb[48].mxu1 }
 0x4ca   : > { %v7533_v63 = vpop.f32.mrb[49].mxu1  ;;  %v7668_v33 = vadd.f32 %v23347_v42, %v28477_v0 }
 0x4cb   : > { %v7667_v29 = vadd.f32 %v28477_v0, %v7533_v63 }
 0x4cd   : > { %7855 = vrot.lane.b32.xlu1 %v7666_v51, %s26150_s27  ;;  %7857 = vrot.lane.b32.xlu0 %v7667_v29, %s26150_s27  ;;  %v23350_v48 = vpop.f32.mrb[50].mxu1 }
 0x4ce   : > { %v7543_v11 = vpop.f32.mrb[51].mxu1  ;;  %v7670_v15 = vadd.f32 %v23350_v48, %v28477_v0 }
 0x4cf   : > { %v7669_v1 = vadd.f32 %v28477_v0, %v7543_v11 }
 0x4d1   : > { %7859 = vrot.lane.b32.xlu1 %v7668_v33, %s26150_s27  ;;  %7861 = vrot.lane.b32.xlu0 %v7669_v1, %s26150_s27  ;;  %v23353_v59 = vpop.f32.mrb[52].mxu1 }
 0x4d2   : > { %v7553_v28 = vpop.f32.mrb[53].mxu1  ;;  %v7672_v40 = vadd.f32 %v23353_v59, %v28477_v0 }
 0x4d3   : > { %v7671_v46 = vadd.f32 %v28477_v0, %v7553_v28 }
 0x4d5   : > { %7863 = vrot.lane.b32.xlu1 %v7670_v15, %s26150_s27  ;;  %7865 = vrot.lane.b32.xlu0 %v7671_v46, %s26150_s27  ;;  %v23356_v24 = vpop.f32.mrb[54].mxu1 }
 0x4d6   : > { %v7563_v5 = vpop.f32.mrb[55].mxu1  ;;  %v7674_v8 = vadd.f32 %v23356_v24, %v28477_v0 }
 0x4d7   : > { %v7673_v9 = vadd.f32 %v28477_v0, %v7563_v5 }
 0x4d9   : > { %7867 = vrot.lane.b32.xlu1 %v7672_v40, %s26150_s27  ;;  %7869 = vrot.lane.b32.xlu0 %v7673_v9, %s26150_s27  ;;  %v23359_v57 = vpop.f32.mrb[56].mxu1 }
 0x4da   : > { %v7573_v54 = vpop.f32.mrb[57].mxu1  ;;  %v7676_v16 = vadd.f32 %v23359_v57, %v28477_v0 }
 0x4db   : > { %v7675_v13 = vadd.f32 %v28477_v0, %v7573_v54 }
 0x4dd   : > { %7871 = vrot.lane.b32.xlu1 %v7674_v8, %s26150_s27  ;;  %7873 = vrot.lane.b32.xlu0 %v7675_v13, %s26150_s27  ;;  %v23362_v21 = vpop.f32.mrb[58].mxu1 }
 0x4de   : > { %v7583_v37 = vpop.f32.mrb[59].mxu1  ;;  %v7678_v7 = vadd.f32 %v23362_v21, %v28477_v0 }
 0x4df   : > { %v7677_v18 = vadd.f32 %v28477_v0, %v7583_v37 }
 0x4e1   : > { %7875 = vrot.lane.b32.xlu1 %v7676_v16, %s26150_s27  ;;  %7877 = vrot.lane.b32.xlu0 %v7677_v18, %s26150_s27  ;;  %v23365_v41 = vpop.f32.mrb[60].mxu1 }
 0x4e2   : > { %v7593_v47 = vpop.f32.mrb[61].mxu1  ;;  %v7680_v43 = vadd.f32 %v23365_v41, %v28477_v0 }
 0x4e3   : > { %v7679_v53 = vadd.f32 %v28477_v0, %v7593_v47 }
 0x4e5   : > { %7879 = vrot.lane.b32.xlu1 %v7678_v7, %s26150_s27  ;;  %7881 = vrot.lane.b32.xlu0 %v7679_v53, %s26150_s27  ;;  %v23368_v22 = vpop.f32.mrb[62].mxu1 }
 0x4e6   : > { %v7682_v32 = vadd.f32 %v23368_v22, %v28477_v0  ;;  %v7603_v36 = vpop.f32.mrb[63].mxu1 }
 0x4e7   : > { %v7681_v45 = vadd.f32 %v28477_v0, %v7603_v36 }
 0x4e9   : > { %7883 = vrot.lane.b32.xlu1 %v7680_v43, %s26150_s27  ;;  %7885 = vrot.lane.b32.xlu0 %v7681_v45, %s26150_s27  ;;  %v7955_v43 = vld [vmem:[#allocation3] sm:$0xff] }
 0x4ed   : > { %7887 = vrot.lane.b32.xlu1 %v7682_v32, %s26150_s27 }
 0x51f   : > { %v7826_v12 = vpop.permute.xlu0 %7825 }
 0x520   : > { %7923 = vst.msk [vmem:[#allocation3 + $0x19] sm:$0xff] %vm7922_vm8, %v7826_v12  ;;  %v7956_v12 = vld [vmem:[#allocation3 + $0x8] sm:$0xff] }
 0x523   : > { %v7828_v58 = vpop.permute.xlu0 %7827  ;;  %v7830_v20 = vpop.permute.xlu1 %7829 }
 0x524   : > { %7924 = vst.msk [vmem:[#allocation3 + $0x21] sm:$0xff] %vm7922_vm8, %v7828_v58  ;;  %7925 = vst.msk [vmem:[#allocation3 + $0x31] sm:$0xff] %vm7922_vm8, %v7830_v20  ;;  %v28791_v58 = vld [vmem:[%s31785_s6 + $0x18] sm:$0xff] }
 0x527   : > { %v7832_v61 = vpop.permute.xlu1 %7831  ;;  %v7834_v14 = vpop.permute.xlu0 %7833  ;;  %v28638_v50 = vld [vmem:[#allocation3 + $0x19] sm:$0xff] }
 0x528   : > { %7926 = vst.msk [vmem:[#allocation3 + $0x39] sm:$0xff] %vm7922_vm8, %v7832_v61  ;;  %7927 = vst.msk [vmem:[#allocation3 + $0x49] sm:$0xff] %vm7922_vm8, %v7834_v14  ;;  %23374 = vmatprep.mubr.msk.f32.mxu0 %vm434_vm0, %v28638_v50  ;;  %v28794_v20 = vld [vmem:[#allocation3 + $0x18] sm:$0xff] }
 0x52b   : > { %v7836_v0 = vpop.permute.xlu1 %7835  ;;  %v7838_v23 = vpop.permute.xlu0 %7837  ;;  %v28644_v26 = vld [vmem:[#allocation3 + $0x21] sm:$0xff]  ;;  %v28646_v27 = vld [vmem:[#allocation3 + $0x31] sm:$0xff] }
 0x52c   : > { %7928 = vst.msk [vmem:[#allocation3 + $0x51] sm:$0xff] %vm7922_vm8, %v7836_v0  ;;  %7929 = vst.msk [vmem:[#allocation3 + $0x61] sm:$0xff] %vm7922_vm8, %v7838_v23  ;;  %23375 = vmatmul.mubr.msk.f32.gmra.mrb[34].mxu0 %vm434_vm0, %v28644_v26  ;;  %v28800_v61 = vld [vmem:[#allocation3 + $0x20] sm:$0xff]  ;;  %v28804_v14 = vld [vmem:[#allocation3 + $0x30] sm:$0xff] }
 0x52d   : > { %23377 = vmatprep.mubr.msk.f32.mxu0 %vm434_vm0, %v28646_v27 }
 0x52f   : > { %v7840_v30 = vpop.permute.xlu1 %7839  ;;  %v7842_v35 = vpop.permute.xlu0 %7841  ;;  %v28654_v38 = vld [vmem:[#allocation3 + $0x39] sm:$0xff]  ;;  %v28656_v60 = vld [vmem:[#allocation3 + $0x49] sm:$0xff] }
 0x530   : > { %7930 = vst.msk [vmem:[#allocation3 + $0x69] sm:$0xff] %vm7922_vm8, %v7840_v30  ;;  %7931 = vst.msk [vmem:[#allocation3 + $0x79] sm:$0xff] %vm7922_vm8, %v7842_v35  ;;  %23378 = vmatmul.mubr.msk.f32.gmra.mrb[36].mxu0 %vm434_vm0, %v28654_v38  ;;  %v28808_v0 = vld [vmem:[#allocation3 + $0x38] sm:$0xff] }
 0x531   : > { %23380 = vmatprep.mubr.msk.f32.mxu0 %vm434_vm0, %v28656_v60 }
 0x533   : > { %v7844_v42 = vpop.permute.xlu1 %7843  ;;  %v7846_v49 = vpop.permute.xlu0 %7845  ;;  %v28664_v63 = vld [vmem:[#allocation3 + $0x51] sm:$0xff]  ;;  %v28666_v51 = vld [vmem:[#allocation3 + $0x61] sm:$0xff] }
 0x534   : > { %7932 = vst.msk [vmem:[#allocation3 + $0x81] sm:$0xff] %vm7922_vm8, %v7844_v42  ;;  %7933 = vst.msk [vmem:[#allocation3 + $0x91] sm:$0xff] %vm7922_vm8, %v7846_v49  ;;  %23381 = vmatmul.mubr.msk.f32.gmra.mrb[38].mxu0 %vm434_vm0, %v28664_v63  ;;  %v28816_v23 = vld [vmem:[#allocation3 + $0x50] sm:$0xff]  ;;  %v28820_v30 = vld [vmem:[#allocation3 + $0x60] sm:$0xff] }
 0x535   : > { %23383 = vmatprep.mubr.msk.f32.mxu0 %vm434_vm0, %v28666_v51 }
 0x537   : > { %v7848_v29 = vpop.permute.xlu1 %7847  ;;  %v7850_v34 = vpop.permute.xlu0 %7849  ;;  %v28674_v44 = vld [vmem:[#allocation3 + $0x69] sm:$0xff]  ;;  %v28676_v48 = vld [vmem:[#allocation3 + $0x79] sm:$0xff] }
 0x538   : > { %7934 = vst.msk [vmem:[#allocation3 + $0x99] sm:$0xff] %vm7922_vm8, %v7848_v29  ;;  %7935 = vst.msk [vmem:[#allocation3 + $0xa9] sm:$0xff] %vm7922_vm8, %v7850_v34  ;;  %23384 = vmatmul.mubr.msk.f32.gmra.mrb[40].mxu0 %vm434_vm0, %v28674_v44  ;;  %v28824_v35 = vld [vmem:[#allocation3 + $0x68] sm:$0xff]  ;;  %v28828_v42 = vld [vmem:[#allocation3 + $0x78] sm:$0xff] }
 0x539   : > { %23386 = vmatprep.mubr.msk.f32.mxu0 %vm434_vm0, %v28676_v48 }
 0x53b   : > { %v7852_v6 = vpop.permute.xlu1 %7851  ;;  %v7854_v11 = vpop.permute.xlu0 %7853  ;;  %v28684_v33 = vld [vmem:[#allocation3 + $0x81] sm:$0xff]  ;;  %v28686_v1 = vld [vmem:[#allocation3 + $0x91] sm:$0xff] }
 0x53c   : > { %7936 = vst.msk [vmem:[#allocation3 + $0xb1] sm:$0xff] %vm7922_vm8, %v7852_v6  ;;  %7937 = vst.msk [vmem:[#allocation3 + $0xc1] sm:$0xff] %vm7922_vm8, %v7854_v11  ;;  %23387 = vmatmul.mubr.msk.f32.gmra.mrb[42].mxu0 %vm434_vm0, %v28684_v33  ;;  %v28832_v49 = vld [vmem:[#allocation3 + $0x80] sm:$0xff]  ;;  %v28836_v29 = vld [vmem:[#allocation3 + $0x90] sm:$0xff] }
 0x53d   : > { %23389 = vmatprep.mubr.msk.f32.mxu0 %vm434_vm0, %v28686_v1 }
 0x53f   : > { %v7856_v31 = vpop.permute.xlu1 %7855  ;;  %v7858_v39 = vpop.permute.xlu0 %7857  ;;  %v28694_v59 = vld [vmem:[#allocation3 + $0x99] sm:$0xff]  ;;  %v28696_v4 = vld [vmem:[#allocation3 + $0xa9] sm:$0xff] }
 0x540   : > { %7938 = vst.msk [vmem:[#allocation3 + $0xc9] sm:$0xff] %vm7922_vm8, %v7856_v31  ;;  %7939 = vst.msk [vmem:[#allocation3 + $0xd9] sm:$0xff] %vm7922_vm8, %v7858_v39  ;;  %23390 = vmatmul.mubr.msk.f32.gmra.mrb[44].mxu0 %vm434_vm0, %v28694_v59  ;;  %v28840_v34 = vld [vmem:[#allocation3 + $0x98] sm:$0xff]  ;;  %v28844_v6 = vld [vmem:[#allocation3 + $0xa8] sm:$0xff] }
 0x541   : > { %23392 = vmatprep.mubr.msk.f32.mxu0 %vm434_vm0, %v28696_v4 }
 0x543   : > { %v7860_v28 = vpop.permute.xlu1 %7859  ;;  %v7862_v15 = vpop.permute.xlu0 %7861  ;;  %v28704_v46 = vld [vmem:[#allocation3 + $0xb1] sm:$0xff]  ;;  %v28706_v62 = vld [vmem:[#allocation3 + $0xc1] sm:$0xff] }
 0x544   : > { %7940 = vst.msk [vmem:[#allocation3 + $0xe1] sm:$0xff] %vm7922_vm8, %v7860_v28  ;;  %7941 = vst.msk [vmem:[#allocation3 + $0xf1] sm:$0xff] %vm7922_vm8, %v7862_v15  ;;  %23393 = vmatmul.mubr.msk.f32.gmra.mrb[46].mxu0 %vm434_vm0, %v28704_v46  ;;  %v28848_v11 = vld [vmem:[#allocation3 + $0xb0] sm:$0xff]  ;;  %v28852_v31 = vld [vmem:[#allocation3 + $0xc0] sm:$0xff] }
 0x545   : > { %23395 = vmatprep.mubr.msk.f32.mxu0 %vm434_vm0, %v28706_v62 }
 0x547   : > { %v7864_v2 = vpop.permute.xlu1 %7863  ;;  %v7866_v24 = vpop.permute.xlu0 %7865  ;;  %v28714_v52 = vld [vmem:[#allocation3 + $0xc9] sm:$0xff]  ;;  %v28716_v5 = vld [vmem:[#allocation3 + $0xd9] sm:$0xff] }
 0x548   : > { %7942 = vst.msk [vmem:[#allocation3 + $0xf9] sm:$0xff] %vm7922_vm8, %v7864_v2  ;;  %7943 = vst.msk [vmem:[#allocation3 + $0x109] sm:$0xff] %vm7922_vm8, %v7866_v24  ;;  %23396 = vmatmul.mubr.msk.f32.gmra.mrb[48].mxu0 %vm434_vm0, %v28714_v52  ;;  %v28856_v39 = vld [vmem:[#allocation3 + $0xc8] sm:$0xff]  ;;  %v28860_v28 = vld [vmem:[#allocation3 + $0xd8] sm:$0xff] }
 0x549   : > { %23398 = vmatprep.mubr.msk.f32.mxu0 %vm434_vm0, %v28716_v5 }
 0x54b   : > { %v7868_v40 = vpop.permute.xlu1 %7867  ;;  %v7870_v9 = vpop.permute.xlu0 %7869  ;;  %v28724_v10 = vld [vmem:[#allocation3 + $0xe1] sm:$0xff]  ;;  %v28726_v55 = vld [vmem:[#allocation3 + $0xf1] sm:$0xff] }
 0x54c   : > { %7944 = vst.msk [vmem:[#allocation3 + $0x111] sm:$0xff] %vm7922_vm8, %v7868_v40  ;;  %7945 = vst.msk [vmem:[#allocation3 + $0x121] sm:$0xff] %vm7922_vm8, %v7870_v9  ;;  %23399 = vmatmul.mubr.msk.f32.gmra.mrb[50].mxu0 %vm434_vm0, %v28724_v10  ;;  %v28864_v15 = vld [vmem:[#allocation3 + $0xe0] sm:$0xff]  ;;  %v28868_v2 = vld [vmem:[#allocation3 + $0xf0] sm:$0xff] }
 0x54d   : > { %23401 = vmatprep.mubr.msk.f32.mxu0 %vm434_vm0, %v28726_v55 }
 0x54f   : > { %v7872_v57 = vpop.permute.xlu1 %7871  ;;  %v7874_v25 = vpop.permute.xlu0 %7873  ;;  %v28734_v54 = vld [vmem:[#allocation3 + $0xf9] sm:$0xff]  ;;  %v28736_v8 = vld [vmem:[#allocation3 + $0x109] sm:$0xff] }
 0x550   : > { %7946 = vst.msk [vmem:[#allocation3 + $0x129] sm:$0xff] %vm7922_vm8, %v7872_v57  ;;  %7947 = vst.msk [vmem:[#allocation3 + $0x139] sm:$0xff] %vm7922_vm8, %v7874_v25  ;;  %23402 = vmatmul.mubr.msk.f32.gmra.mrb[52].mxu0 %vm434_vm0, %v28734_v54  ;;  %v28872_v24 = vld [vmem:[#allocation3 + $0xf8] sm:$0xff]  ;;  %v28876_v40 = vld [vmem:[#allocation3 + $0x108] sm:$0xff] }
 0x551   : > { %23404 = vmatprep.mubr.msk.f32.mxu0 %vm434_vm0, %v28736_v8 }
 0x553   : > { %v7876_v13 = vpop.permute.xlu1 %7875  ;;  %v7878_v17 = vpop.permute.xlu0 %7877  ;;  %v28744_v19 = vld [vmem:[#allocation3 + $0x111] sm:$0xff]  ;;  %v28746_v21 = vld [vmem:[#allocation3 + $0x121] sm:$0xff] }
 0x554   : > { %7948 = vst.msk [vmem:[#allocation3 + $0x141] sm:$0xff] %vm7922_vm8, %v7876_v13  ;;  %7949 = vst.msk [vmem:[#allocation3 + $0x151] sm:$0xff] %vm7922_vm8, %v7878_v17  ;;  %23405 = vmatmul.mubr.msk.f32.gmra.mrb[54].mxu0 %vm434_vm0, %v28744_v19  ;;  %v28880_v9 = vld [vmem:[#allocation3 + $0x110] sm:$0xff]  ;;  %v28884_v57 = vld [vmem:[#allocation3 + $0x120] sm:$0xff] }
 0x555   : > { %23407 = vmatprep.mubr.msk.f32.mxu0 %vm434_vm0, %v28746_v21 }
 0x557   : > { %v7880_v56 = vpop.permute.xlu1 %7879  ;;  %v7882_v37 = vpop.permute.xlu0 %7881  ;;  %v28754_v16 = vld [vmem:[#allocation3 + $0x129] sm:$0xff]  ;;  %v28756_v18 = vld [vmem:[#allocation3 + $0x139] sm:$0xff] }
 0x558   : > { %7950 = vst.msk [vmem:[#allocation3 + $0x159] sm:$0xff] %vm7922_vm8, %v7880_v56  ;;  %7951 = vst.msk [vmem:[#allocation3 + $0x169] sm:$0xff] %vm7922_vm8, %v7882_v37  ;;  %23408 = vmatmul.mubr.msk.f32.gmra.mrb[56].mxu0 %vm434_vm0, %v28754_v16  ;;  %v28888_v25 = vld [vmem:[#allocation3 + $0x128] sm:$0xff]  ;;  %v28892_v13 = vld [vmem:[#allocation3 + $0x138] sm:$0xff] }
 0x559   : > { %23410 = vmatprep.mubr.msk.f32.mxu0 %vm434_vm0, %v28756_v18 }
 0x55b   : > { %v7884_v41 = vpop.permute.xlu1 %7883  ;;  %v7886_v47 = vpop.permute.xlu0 %7885  ;;  %v28764_v7 = vld [vmem:[#allocation3 + $0x141] sm:$0xff]  ;;  %v28766_v53 = vld [vmem:[#allocation3 + $0x151] sm:$0xff] }
 0x55c   : > { %7952 = vst.msk [vmem:[#allocation3 + $0x171] sm:$0xff] %vm7922_vm8, %v7884_v41  ;;  %7953 = vst.msk [vmem:[#allocation3 + $0x181] sm:$0xff] %vm7922_vm8, %v7886_v47  ;;  %23411 = vmatmul.mubr.msk.f32.gmra.mrb[58].mxu0 %vm434_vm0, %v28764_v7  ;;  %v28896_v17 = vld [vmem:[#allocation3 + $0x140] sm:$0xff]  ;;  %v28900_v56 = vld [vmem:[#allocation3 + $0x150] sm:$0xff] }
 0x55d   : > { %23413 = vmatprep.mubr.msk.f32.mxu0 %vm434_vm0, %v28766_v53  ;;  %v8663_v47 = vld [vmem:[#allocation3 + $0x2] sm:$0xff] }
 0x55f   : > { %v7888_v22 = vpop.permute.xlu1 %7887  ;;  %v28774_v32 = vld [vmem:[#allocation3 + $0x159] sm:$0xff]  ;;  %v28776_v36 = vld [vmem:[#allocation3 + $0x169] sm:$0xff] }
 0x560   : > { %32204 = vst [vmem:[#allocation18_spill] sm:$0xff] %v28776_v36  ;;  %7954 = vst.msk [vmem:[#allocation3 + $0x189] sm:$0xff] %vm7922_vm8, %v7888_v22  ;;  %23414 = vmatmul.mubr.msk.f32.gmra.mrb[60].mxu0 %vm434_vm0, %v28774_v32  ;;  %v28904_v37 = vld [vmem:[#allocation3 + $0x158] sm:$0xff]  ;;  %v28908_v41 = vld [vmem:[#allocation3 + $0x168] sm:$0xff] }
 0x561   : > { %23416 = vmatprep.mubr.msk.f32.mxu0 %vm434_vm0, %v28776_v36  ;;  %v28929_v36 = vld [vmem:[#allocation3 + $0x22] sm:$0xff] }
 0x562   : > { %32207 = vst [vmem:[#allocation19_spill] sm:$0xff] %v28929_v36 }
 0x563   : > { %v28783_v45 = vld [vmem:[#allocation3 + $0x171] sm:$0xff] }
 0x564   : > { %32205 = vst [vmem:[#allocation35_spill] sm:$0xff] %v28783_v45  ;;  %23417 = vmatmul.mubr.msk.f32.gmra.mrb[62].mxu0 %vm434_vm0, %v28783_v45  ;;  %v28912_v22 = vld [vmem:[#allocation3 + $0x170] sm:$0xff]  ;;  %v28923_v45 = vld [vmem:[#allocation3 + $0x1a] sm:$0xff] }
 0x565   : > { %23421 = vmatprep.mubr.msk.f32.mxu0 %vm434_vm0, %v7955_v43  ;;  %v8664_v43 = vld [vmem:[#allocation3 + $0xa] sm:$0xff]  ;;  %32206 = vst [vmem:[#allocation6_spill] sm:$0xff] %v28923_v45 }
 0x568   : > { %23422 = vmatmul.mubr.msk.f32.vlgmr.msra.gmra.mrb[32].mxu0 %vm434_vm0, %v7956_v12  ;;  %v28920_v12 = vld [vmem:[%s31785_s6 + $0x20] sm:$0xff] }
 0x569   : > { %23470 = vmatpush3.msra.mxu0 %v28626_v3  ;;  %23424 = vmatprep.mubr.msk.f32.mxu0 %vm434_vm0, %v28794_v20  ;;  %v28812_v3 = vld [vmem:[#allocation3 + $0x48] sm:$0xff] }
 0x56a   : > { %23519 = vmatprep.subr.mxu0 %v28791_v58 }
 0x56c   : > { %23425 = vmatmul.mubr.msk.f32.gmra.mrb[34].mxu0 %vm434_vm0, %v28800_v61 }
 0x56d   : > { %23427 = vmatprep.mubr.msk.f32.mxu0 %vm434_vm0, %v28804_v14 }
 0x570   : > { %23428 = vmatmul.mubr.msk.f32.gmra.mrb[36].mxu0 %vm434_vm0, %v28808_v0 }
 0x571   : > { %23430 = vmatprep.mubr.msk.f32.mxu0 %vm434_vm0, %v28812_v3 }
 0x574   : > { %23431 = vmatmul.mubr.msk.f32.gmra.mrb[38].mxu0 %vm434_vm0, %v28816_v23 }
 0x575   : > { %23433 = vmatprep.mubr.msk.f32.mxu0 %vm434_vm0, %v28820_v30 }
 0x578   : > { %23434 = vmatmul.mubr.msk.f32.gmra.mrb[40].mxu0 %vm434_vm0, %v28824_v35 }
 0x579   : > { %23436 = vmatprep.mubr.msk.f32.mxu0 %vm434_vm0, %v28828_v42 }
 0x57c   : > { %23437 = vmatmul.mubr.msk.f32.gmra.mrb[42].mxu0 %vm434_vm0, %v28832_v49 }
 0x57d   : > { %23439 = vmatprep.mubr.msk.f32.mxu0 %vm434_vm0, %v28836_v29 }
 0x580   : > { %23440 = vmatmul.mubr.msk.f32.gmra.mrb[44].mxu0 %vm434_vm0, %v28840_v34 }
 0x581   : > { %23442 = vmatprep.mubr.msk.f32.mxu0 %vm434_vm0, %v28844_v6 }
 0x584   : > { %23443 = vmatmul.mubr.msk.f32.gmra.mrb[46].mxu0 %vm434_vm0, %v28848_v11 }
 0x585   : > { %23445 = vmatprep.mubr.msk.f32.mxu0 %vm434_vm0, %v28852_v31 }
 0x588   : > { %23446 = vmatmul.mubr.msk.f32.gmra.mrb[48].mxu0 %vm434_vm0, %v28856_v39 }
 0x589   : > { %23448 = vmatprep.mubr.msk.f32.mxu0 %vm434_vm0, %v28860_v28 }
 0x58c   : > { %23449 = vmatmul.mubr.msk.f32.gmra.mrb[50].mxu0 %vm434_vm0, %v28864_v15 }
 0x58d   : > { %23451 = vmatprep.mubr.msk.f32.mxu0 %vm434_vm0, %v28868_v2 }
 0x590   : > { %23452 = vmatmul.mubr.msk.f32.gmra.mrb[52].mxu0 %vm434_vm0, %v28872_v24 }
 0x591   : > { %23454 = vmatprep.mubr.msk.f32.mxu0 %vm434_vm0, %v28876_v40 }
 0x594   : > { %23455 = vmatmul.mubr.msk.f32.gmra.mrb[54].mxu0 %vm434_vm0, %v28880_v9 }
 0x595   : > { %23457 = vmatprep.mubr.msk.f32.mxu0 %vm434_vm0, %v28884_v57 }
 0x598   : > { %23458 = vmatmul.mubr.msk.f32.gmra.mrb[56].mxu0 %vm434_vm0, %v28888_v25 }
 0x599   : > { %23460 = vmatprep.mubr.msk.f32.mxu0 %vm434_vm0, %v28892_v13 }
 0x59c   : > { %23461 = vmatmul.mubr.msk.f32.gmra.mrb[58].mxu0 %vm434_vm0, %v28896_v17 }
 0x59d   : > { %23463 = vmatprep.mubr.msk.f32.mxu0 %vm434_vm0, %v28900_v56 }
 0x5a0   : > { %23464 = vmatmul.mubr.msk.f32.gmra.mrb[60].mxu0 %vm434_vm0, %v28904_v37 }
 0x5a1   : > { %23466 = vmatprep.mubr.msk.f32.mxu0 %vm434_vm0, %v28908_v41 }
 0x5a4   : > { %23467 = vmatmul.mubr.msk.f32.gmra.mrb[62].mxu0 %vm434_vm0, %v28912_v22 }
 0x5a5   : > { %23471 = vmatprep.mubr.msk.f32.mxu0 %vm434_vm0, %v8663_v47  ;;  %v28933_v47 = vld [vmem:[#allocation3 + $0x32] sm:$0xff] }
 0x5a6   : > { %32208 = vst [vmem:[#allocation7_spill] sm:$0xff] %v28933_v47 }
 0x5a8   : > { %23472 = vmatmul.mubr.msk.f32.vlgmr.msra.gmra.mrb[32].mxu0 %vm434_vm0, %v8664_v43  ;;  %v28937_v43 = vld [vmem:[#allocation3 + $0x3a] sm:$0xff] }
 0x5a9   : > { %23520 = vmatpush3.msra.mxu0 %v28791_v58  ;;  %23474 = vmatprep.mubr.msk.f32.mxu0 %vm434_vm0, %v28923_v45  ;;  %32209 = vst [vmem:[#allocation20_spill] sm:$0xff] %v28937_v43  ;;  %v28941_v58 = vld [vmem:[#allocation3 + $0x4a] sm:$0xff]  ;;  %v28945_v45 = vld [vmem:[#allocation3 + $0x52] sm:$0xff] }
 0x5aa   : > { %23569 = vmatprep.subr.mxu0 %v28920_v12  ;;  %32210 = vst [vmem:[#allocation8_spill] sm:$0xff] %v28941_v58  ;;  %32211 = vst [vmem:[#allocation21_spill] sm:$0xff] %v28945_v45 }
 0x5ac   : > { %23475 = vmatmul.mubr.msk.f32.gmra.mrb[34].mxu0 %vm434_vm0, %v28929_v36  ;;  %v28949_v36 = vld [vmem:[#allocation3 + $0x62] sm:$0xff] }
 0x5ad   : > { %23477 = vmatprep.mubr.msk.f32.mxu0 %vm434_vm0, %v28933_v47  ;;  %32212 = vst [vmem:[#allocation9_spill] sm:$0xff] %v28949_v36  ;;  %v28953_v47 = vld [vmem:[#allocation3 + $0x6a] sm:$0xff] }
 0x5ae   : > { %32213 = vst [vmem:[#allocation22_spill] sm:$0xff] %v28953_v47 }
 0x5b0   : > { %23478 = vmatmul.mubr.msk.f32.gmra.mrb[36].mxu0 %vm434_vm0, %v28937_v43  ;;  %v28957_v43 = vld [vmem:[#allocation3 + $0x7a] sm:$0xff] }
 0x5b1   : > { %23480 = vmatprep.mubr.msk.f32.mxu0 %vm434_vm0, %v28941_v58  ;;  %32214 = vst [vmem:[#allocation10_spill] sm:$0xff] %v28957_v43  ;;  %v28961_v58 = vld [vmem:[#allocation3 + $0x82] sm:$0xff] }
 0x5b2   : > { %32215 = vst [vmem:[#allocation28_spill] sm:$0xff] %v28961_v58 }
 0x5b4   : > { %23481 = vmatmul.mubr.msk.f32.gmra.mrb[38].mxu0 %vm434_vm0, %v28945_v45  ;;  %v28965_v45 = vld [vmem:[#allocation3 + $0x92] sm:$0xff] }
 0x5b5   : > { %23483 = vmatprep.mubr.msk.f32.mxu0 %vm434_vm0, %v28949_v36  ;;  %32216 = vst [vmem:[#allocation29_spill] sm:$0xff] %v28965_v45  ;;  %v28969_v36 = vld [vmem:[#allocation3 + $0x9a] sm:$0xff] }
 0x5b6   : > { %32217 = vst [vmem:[#allocation17_spill] sm:$0xff] %v28969_v36 }
 0x5b8   : > { %23484 = vmatmul.mubr.msk.f32.gmra.mrb[40].mxu0 %vm434_vm0, %v28953_v47  ;;  %v28973_v47 = vld [vmem:[#allocation3 + $0xaa] sm:$0xff] }
 0x5b9   : > { %23486 = vmatprep.mubr.msk.f32.mxu0 %vm434_vm0, %v28957_v43  ;;  %32218 = vst [vmem:[#allocation30_spill] sm:$0xff] %v28973_v47  ;;  %v28977_v43 = vld [vmem:[#allocation3 + $0xb2] sm:$0xff] }
 0x5ba   : > { %32219 = vst [vmem:[#allocation34_spill] sm:$0xff] %v28977_v43 }
 0x5bc   : > { %23487 = vmatmul.mubr.msk.f32.gmra.mrb[42].mxu0 %vm434_vm0, %v28961_v58  ;;  %v28981_v58 = vld [vmem:[#allocation3 + $0xc2] sm:$0xff] }
 0x5bd   : > { %23489 = vmatprep.mubr.msk.f32.mxu0 %vm434_vm0, %v28965_v45  ;;  %32220 = vst [vmem:[#allocation31_spill] sm:$0xff] %v28981_v58  ;;  %v28985_v45 = vld [vmem:[#allocation3 + $0xca] sm:$0xff] }
 0x5be   : > { %32221 = vst [vmem:[#allocation23_spill] sm:$0xff] %v28985_v45 }
 0x5c0   : > { %23490 = vmatmul.mubr.msk.f32.gmra.mrb[44].mxu0 %vm434_vm0, %v28969_v36  ;;  %v28989_v36 = vld [vmem:[#allocation3 + $0xda] sm:$0xff] }
 0x5c1   : > { %23492 = vmatprep.mubr.msk.f32.mxu0 %vm434_vm0, %v28973_v47  ;;  %32222 = vst [vmem:[#allocation11_spill] sm:$0xff] %v28989_v36  ;;  %v28993_v47 = vld [vmem:[#allocation3 + $0xe2] sm:$0xff] }
 0x5c2   : > { %32223 = vst [vmem:[#allocation24_spill] sm:$0xff] %v28993_v47 }
 0x5c4   : > { %23493 = vmatmul.mubr.msk.f32.gmra.mrb[46].mxu0 %vm434_vm0, %v28977_v43  ;;  %v28997_v43 = vld [vmem:[#allocation3 + $0xf2] sm:$0xff] }
 0x5c5   : > { %23495 = vmatprep.mubr.msk.f32.mxu0 %vm434_vm0, %v28981_v58  ;;  %32224 = vst [vmem:[#allocation12_spill] sm:$0xff] %v28997_v43  ;;  %v29001_v58 = vld [vmem:[#allocation3 + $0xfa] sm:$0xff] }
 0x5c6   : > { %32225 = vst [vmem:[#allocation25_spill] sm:$0xff] %v29001_v58 }
 0x5c8   : > { %23496 = vmatmul.mubr.msk.f32.gmra.mrb[48].mxu0 %vm434_vm0, %v28985_v45  ;;  %v29005_v45 = vld [vmem:[#allocation3 + $0x10a] sm:$0xff] }
 0x5c9   : > { %23498 = vmatprep.mubr.msk.f32.mxu0 %vm434_vm0, %v28989_v36  ;;  %32226 = vst [vmem:[#allocation13_spill] sm:$0xff] %v29005_v45  ;;  %v29009_v36 = vld [vmem:[#allocation3 + $0x112] sm:$0xff] }
 0x5ca   : > { %32227 = vst [vmem:[#allocation26_spill] sm:$0xff] %v29009_v36 }
 0x5cc   : > { %23499 = vmatmul.mubr.msk.f32.gmra.mrb[50].mxu0 %vm434_vm0, %v28993_v47  ;;  %v29013_v47 = vld [vmem:[#allocation3 + $0x122] sm:$0xff] }
 0x5cd   : > { %23501 = vmatprep.mubr.msk.f32.mxu0 %vm434_vm0, %v28997_v43  ;;  %32228 = vst [vmem:[#allocation14_spill] sm:$0xff] %v29013_v47  ;;  %v29017_v43 = vld [vmem:[#allocation3 + $0x12a] sm:$0xff] }
 0x5ce   : > { %32229 = vst [vmem:[#allocation27_spill] sm:$0xff] %v29017_v43 }
 0x5d0   : > { %23502 = vmatmul.mubr.msk.f32.gmra.mrb[52].mxu0 %vm434_vm0, %v29001_v58  ;;  %v29021_v58 = vld [vmem:[#allocation3 + $0x13a] sm:$0xff] }
 0x5d1   : > { %23504 = vmatprep.mubr.msk.f32.mxu0 %vm434_vm0, %v29005_v45  ;;  %32230 = vst [vmem:[#allocation15_spill] sm:$0xff] %v29021_v58  ;;  %v29025_v45 = vld [vmem:[#allocation3 + $0x142] sm:$0xff] }
 0x5d2   : > { %32231 = vst [vmem:[#allocation16_spill] sm:$0xff] %v29025_v45 }
 0x5d4   : > { %23505 = vmatmul.mubr.msk.f32.gmra.mrb[54].mxu0 %vm434_vm0, %v29009_v36  ;;  %v29029_v36 = vld [vmem:[#allocation3 + $0x152] sm:$0xff] }
 0x5d5   : > { %23507 = vmatprep.mubr.msk.f32.mxu0 %vm434_vm0, %v29013_v47  ;;  %32232 = vst [vmem:[#allocation32_spill] sm:$0xff] %v29029_v36  ;;  %v29033_v47 = vld [vmem:[#allocation3 + $0x15a] sm:$0xff] }
 0x5d8   : > { %23508 = vmatmul.mubr.msk.f32.gmra.mrb[56].mxu0 %vm434_vm0, %v29017_v43  ;;  %v29037_v43 = vld [vmem:[#allocation3 + $0x16a] sm:$0xff] }
 0x5d9   : > { %23510 = vmatprep.mubr.msk.f32.mxu0 %vm434_vm0, %v29021_v58  ;;  %v29041_v58 = vld [vmem:[#allocation3 + $0x172] sm:$0xff] }
 0x5dc   : > { %23511 = vmatmul.mubr.msk.f32.gmra.mrb[58].mxu0 %vm434_vm0, %v29025_v45 }
 0x5dd   : > { %23513 = vmatprep.mubr.msk.f32.mxu0 %vm434_vm0, %v29029_v36  ;;  %v9853_v36 = vld [vmem:[%s31785_s6 + $0x28] sm:$0xff] }
 0x5e0   : > { %23514 = vmatmul.mubr.msk.f32.gmra.mrb[60].mxu0 %vm434_vm0, %v29033_v47 }
 0x5e1   : > { %23516 = vmatprep.mubr.msk.f32.mxu0 %vm434_vm0, %v29037_v43 }
 0x5e4   : > { %23517 = vmatmul.mubr.msk.f32.gmra.mrb[62].mxu0 %vm434_vm0, %v29041_v58 }
 0x5e5   : > { %23521 = vmatprep.mubr.msk.f32.mxu0 %vm434_vm0, %v28794_v20  ;;  %v29109_v20 = vld [vmem:[#allocation3 + $0x180] sm:$0xff] }
 0x5e8   : > { %23522 = vmatmul.mubr.msk.f32.vlgmr.msra.gmra.mrb[32].mxu0 %vm434_vm0, %v28800_v61  ;;  %v29113_v61 = vld [vmem:[#allocation3 + $0x188] sm:$0xff] }
 0x5e9   : > { %23570 = vmatpush3.msra.mxu0 %v28920_v12  ;;  %23524 = vmatprep.mubr.msk.f32.mxu0 %vm434_vm0, %v28804_v14  ;;  %v10240_v12 = vld [vmem:[%s31785_s6 + $0x30] sm:$0xff] }
 0x5ea   : > { %23619 = vmatprep.subr.mxu0 %v9853_v36 }
 0x5ec   : > { %23525 = vmatmul.mubr.msk.f32.gmra.mrb[34].mxu0 %vm434_vm0, %v28808_v0 }
 0x5ed   : > { %23527 = vmatprep.mubr.msk.f32.mxu0 %vm434_vm0, %v28812_v3 }
 0x5f0   : > { %23528 = vmatmul.mubr.msk.f32.gmra.mrb[36].mxu0 %vm434_vm0, %v28816_v23 }
 0x5f1   : > { %23530 = vmatprep.mubr.msk.f32.mxu0 %vm434_vm0, %v28820_v30 }
 0x5f4   : > { %23531 = vmatmul.mubr.msk.f32.gmra.mrb[38].mxu0 %vm434_vm0, %v28824_v35 }
 0x5f5   : > { %23533 = vmatprep.mubr.msk.f32.mxu0 %vm434_vm0, %v28828_v42 }
 0x5f8   : > { %23534 = vmatmul.mubr.msk.f32.gmra.mrb[40].mxu0 %vm434_vm0, %v28832_v49 }
 0x5f9   : > { %23536 = vmatprep.mubr.msk.f32.mxu0 %vm434_vm0, %v28836_v29 }
 0x5fc   : > { %23537 = vmatmul.mubr.msk.f32.gmra.mrb[42].mxu0 %vm434_vm0, %v28840_v34 }
 0x5fd   : > { %23539 = vmatprep.mubr.msk.f32.mxu0 %vm434_vm0, %v28844_v6 }
 0x600   : > { %23540 = vmatmul.mubr.msk.f32.gmra.mrb[44].mxu0 %vm434_vm0, %v28848_v11 }
 0x601   : > { %23542 = vmatprep.mubr.msk.f32.mxu0 %vm434_vm0, %v28852_v31 }
 0x604   : > { %23543 = vmatmul.mubr.msk.f32.gmra.mrb[46].mxu0 %vm434_vm0, %v28856_v39 }
 0x605   : > { %23545 = vmatprep.mubr.msk.f32.mxu0 %vm434_vm0, %v28860_v28 }
 0x608   : > { %23546 = vmatmul.mubr.msk.f32.gmra.mrb[48].mxu0 %vm434_vm0, %v28864_v15 }
 0x609   : > { %23548 = vmatprep.mubr.msk.f32.mxu0 %vm434_vm0, %v28868_v2 }
 0x60c   : > { %23549 = vmatmul.mubr.msk.f32.gmra.mrb[50].mxu0 %vm434_vm0, %v28872_v24 }
 0x60d   : > { %23551 = vmatprep.mubr.msk.f32.mxu0 %vm434_vm0, %v28876_v40 }
 0x610   : > { %23552 = vmatmul.mubr.msk.f32.gmra.mrb[52].mxu0 %vm434_vm0, %v28880_v9 }
 0x611   : > { %23554 = vmatprep.mubr.msk.f32.mxu0 %vm434_vm0, %v28884_v57 }
 0x614   : > { %23555 = vmatmul.mubr.msk.f32.gmra.mrb[54].mxu0 %vm434_vm0, %v28888_v25 }
 0x615   : > { %23557 = vmatprep.mubr.msk.f32.mxu0 %vm434_vm0, %v28892_v13 }
 0x618   : > { %23558 = vmatmul.mubr.msk.f32.gmra.mrb[56].mxu0 %vm434_vm0, %v28896_v17 }
 0x619   : > { %23560 = vmatprep.mubr.msk.f32.mxu0 %vm434_vm0, %v28900_v56 }
 0x61c   : > { %23561 = vmatmul.mubr.msk.f32.gmra.mrb[58].mxu0 %vm434_vm0, %v28904_v37 }
 0x61d   : > { %23563 = vmatprep.mubr.msk.f32.mxu0 %vm434_vm0, %v28908_v41 }
 0x620   : > { %23564 = vmatmul.mubr.msk.f32.gmra.mrb[60].mxu0 %vm434_vm0, %v28912_v22 }
 0x621   : > { %23566 = vmatprep.mubr.msk.f32.mxu0 %vm434_vm0, %v29109_v20 }
 0x624   : > { %23567 = vmatmul.mubr.msk.f32.gmra.mrb[62].mxu0 %vm434_vm0, %v29113_v61 }
 0x625   : > { %23571 = vmatprep.mubr.msk.f32.mxu0 %vm434_vm0, %v28638_v50  ;;  %v7734_v50 = vld [vmem:[%s28451_s23 + $0x198] sm:$0xff] }
 0x626   : > { %7790 = vst.msk [vmem:[#allocation3 + $0x198] sm:$0xff] %vm7737_vm3, %v7734_v50  ;;  %v32247_v50 = vld [vmem:[#allocation30_spill] sm:$0xff] }
 0x628   : > { %23572 = vmatmul.mubr.msk.f32.vlgmr.msra.gmra.mrb[32].mxu0 %vm434_vm0, %v28644_v26  ;;  %v32233_v26 = vld [vmem:[#allocation18_spill] sm:$0xff] }
 0x629   : > { %23620 = vmatpush3.msra.mxu0 %v9853_v36  ;;  %23574 = vmatprep.mubr.msk.f32.mxu0 %vm434_vm0, %v28646_v27  ;;  %v7735_v27 = vld [vmem:[%s28451_s23 + $0x1a0] sm:$0xff]  ;;  %v32245_v36 = vld [vmem:[#allocation29_spill] sm:$0xff] }
 0x62a   : > { %23669 = vmatprep.subr.mxu0 %v10240_v12  ;;  %7791 = vst.msk [vmem:[#allocation3 + $0x1a0] sm:$0xff] %vm7737_vm3, %v7735_v27  ;;  %v32248_v27 = vld [vmem:[#allocation34_spill] sm:$0xff] }
 0x62c   : > { %23575 = vmatmul.mubr.msk.f32.gmra.mrb[34].mxu0 %vm434_vm0, %v28654_v38  ;;  %v32234_v38 = vld [vmem:[#allocation35_spill] sm:$0xff] }
 0x62d   : > { %23577 = vmatprep.mubr.msk.f32.mxu0 %vm434_vm0, %v28656_v60  ;;  %v29184_v60 = vld [vmem:[#allocation3 + $0x181] sm:$0xff] }
 0x630   : > { %23578 = vmatmul.mubr.msk.f32.gmra.mrb[36].mxu0 %vm434_vm0, %v28664_v63  ;;  %v29188_v63 = vld [vmem:[#allocation3 + $0x189] sm:$0xff] }
 0x631   : > { %23580 = vmatprep.mubr.msk.f32.mxu0 %vm434_vm0, %v28666_v51  ;;  %v32235_v51 = vld [vmem:[#allocation6_spill] sm:$0xff] }
 0x634   : > { %23581 = vmatmul.mubr.msk.f32.gmra.mrb[38].mxu0 %vm434_vm0, %v28674_v44  ;;  %v10626_v44 = vld [vmem:[%s31785_s6 + $0x38] sm:$0xff] }
 0x635   : > { %23583 = vmatprep.mubr.msk.f32.mxu0 %vm434_vm0, %v28676_v48  ;;  %v32236_v48 = vld [vmem:[#allocation19_spill] sm:$0xff] }
 0x638   : > { %23584 = vmatmul.mubr.msk.f32.gmra.mrb[40].mxu0 %vm434_vm0, %v28684_v33  ;;  %v32237_v33 = vld [vmem:[#allocation7_spill] sm:$0xff] }
 0x639   : > { %23586 = vmatprep.mubr.msk.f32.mxu0 %vm434_vm0, %v28686_v1  ;;  %v32238_v1 = vld [vmem:[#allocation20_spill] sm:$0xff] }
 0x63c   : > { %23587 = vmatmul.mubr.msk.f32.gmra.mrb[42].mxu0 %vm434_vm0, %v28694_v59  ;;  %v32239_v59 = vld [vmem:[#allocation8_spill] sm:$0xff] }
 0x63d   : > { %23589 = vmatprep.mubr.msk.f32.mxu0 %vm434_vm0, %v28696_v4  ;;  %v32240_v4 = vld [vmem:[#allocation21_spill] sm:$0xff] }
 0x640   : > { %23590 = vmatmul.mubr.msk.f32.gmra.mrb[44].mxu0 %vm434_vm0, %v28704_v46  ;;  %v32241_v46 = vld [vmem:[#allocation9_spill] sm:$0xff] }
 0x641   : > { %23592 = vmatprep.mubr.msk.f32.mxu0 %vm434_vm0, %v28706_v62  ;;  %v32242_v62 = vld [vmem:[#allocation22_spill] sm:$0xff] }
 0x644   : > { %23593 = vmatmul.mubr.msk.f32.gmra.mrb[46].mxu0 %vm434_vm0, %v28714_v52  ;;  %v32243_v52 = vld [vmem:[#allocation10_spill] sm:$0xff] }
 0x645   : > { %23595 = vmatprep.mubr.msk.f32.mxu0 %vm434_vm0, %v28716_v5  ;;  %v32244_v5 = vld [vmem:[#allocation28_spill] sm:$0xff] }
 0x648   : > { %23596 = vmatmul.mubr.msk.f32.gmra.mrb[48].mxu0 %vm434_vm0, %v28724_v10 }
 0x649   : > { %23598 = vmatprep.mubr.msk.f32.mxu0 %vm434_vm0, %v28726_v55 }
 0x64c   : > { %23599 = vmatmul.mubr.msk.f32.gmra.mrb[50].mxu0 %vm434_vm0, %v28734_v54 }
 0x64d   : > { %23601 = vmatprep.mubr.msk.f32.mxu0 %vm434_vm0, %v28736_v8 }
 0x650   : > { %23602 = vmatmul.mubr.msk.f32.gmra.mrb[52].mxu0 %vm434_vm0, %v28744_v19 }
 0x651   : > { %23604 = vmatprep.mubr.msk.f32.mxu0 %vm434_vm0, %v28746_v21 }
 0x654   : > { %23605 = vmatmul.mubr.msk.f32.gmra.mrb[54].mxu0 %vm434_vm0, %v28754_v16 }
 0x655   : > { %23607 = vmatprep.mubr.msk.f32.mxu0 %vm434_vm0, %v28756_v18 }
 0x658   : > { %23608 = vmatmul.mubr.msk.f32.gmra.mrb[56].mxu0 %vm434_vm0, %v28764_v7 }
 0x659   : > { %23610 = vmatprep.mubr.msk.f32.mxu0 %vm434_vm0, %v28766_v53 }
 0x65c   : > { %23611 = vmatmul.mubr.msk.f32.gmra.mrb[58].mxu0 %vm434_vm0, %v28774_v32 }
 0x65d   : > { %23613 = vmatprep.mubr.msk.f32.mxu0 %vm434_vm0, %v32233_v26 }
 0x660   : > { %23614 = vmatmul.mubr.msk.f32.gmra.mrb[60].mxu0 %vm434_vm0, %v32234_v38 }
 0x661   : > { %23616 = vmatprep.mubr.msk.f32.mxu0 %vm434_vm0, %v29184_v60 }
 0x664   : > { %23617 = vmatmul.mubr.msk.f32.gmra.mrb[62].mxu0 %vm434_vm0, %v29188_v63 }
 0x665   : > { %23621 = vmatprep.mubr.msk.f32.mxu0 %vm434_vm0, %v32235_v51  ;;  %v32249_v51 = vld [vmem:[#allocation31_spill] sm:$0xff] }
 0x668   : > { %23622 = vmatmul.mubr.msk.f32.vlgmr.msra.gmra.mrb[32].mxu0 %vm434_vm0, %v32236_v48  ;;  %v32250_v48 = vld [vmem:[#allocation23_spill] sm:$0xff] }
 0x669   : > { %23670 = vmatpush3.msra.mxu0 %v10240_v12  ;;  %23624 = vmatprep.mubr.msk.f32.mxu0 %vm434_vm0, %v32237_v33  ;;  %v32246_v12 = vld [vmem:[#allocation17_spill] sm:$0xff] }
 0x66a   : > { %23719 = vmatprep.subr.mxu0 %v10626_v44 }
 0x66c   : > { %23625 = vmatmul.mubr.msk.f32.gmra.mrb[34].mxu0 %vm434_vm0, %v32238_v1 }
 0x66d   : > { %23627 = vmatprep.mubr.msk.f32.mxu0 %vm434_vm0, %v32239_v59 }
 0x670   : > { %23628 = vmatmul.mubr.msk.f32.gmra.mrb[36].mxu0 %vm434_vm0, %v32240_v4 }
 0x671   : > { %23630 = vmatprep.mubr.msk.f32.mxu0 %vm434_vm0, %v32241_v46 }
 0x674   : > { %23631 = vmatmul.mubr.msk.f32.gmra.mrb[38].mxu0 %vm434_vm0, %v32242_v62 }
 0x675   : > { %23633 = vmatprep.mubr.msk.f32.mxu0 %vm434_vm0, %v32243_v52  ;;  %v32256_v52 = vld [vmem:[#allocation26_spill] sm:$0xff] }
 0x678   : > { %23634 = vmatmul.mubr.msk.f32.gmra.mrb[40].mxu0 %vm434_vm0, %v32244_v5  ;;  %v32251_v5 = vld [vmem:[#allocation11_spill] sm:$0xff] }
 0x679   : > { %23636 = vmatprep.mubr.msk.f32.mxu0 %vm434_vm0, %v32245_v36  ;;  %v32252_v36 = vld [vmem:[#allocation24_spill] sm:$0xff] }
 0x67c   : > { %23637 = vmatmul.mubr.msk.f32.gmra.mrb[42].mxu0 %vm434_vm0, %v32246_v12  ;;  %v32253_v12 = vld [vmem:[#allocation12_spill] sm:$0xff] }
 0x67d   : > { %23639 = vmatprep.mubr.msk.f32.mxu0 %vm434_vm0, %v32247_v50  ;;  %v32254_v50 = vld [vmem:[#allocation25_spill] sm:$0xff] }
 0x680   : > { %23640 = vmatmul.mubr.msk.f32.gmra.mrb[44].mxu0 %vm434_vm0, %v32248_v27  ;;  %v32255_v27 = vld [vmem:[#allocation13_spill] sm:$0xff] }
 0x681   : > { %23642 = vmatprep.mubr.msk.f32.mxu0 %vm434_vm0, %v32249_v51  ;;  %v32257_v51 = vld [vmem:[#allocation14_spill] sm:$0xff] }
 0x684   : > { %23643 = vmatmul.mubr.msk.f32.gmra.mrb[46].mxu0 %vm434_vm0, %v32250_v48  ;;  %v32258_v48 = vld [vmem:[#allocation27_spill] sm:$0xff] }
 0x685   : > { %23645 = vmatprep.mubr.msk.f32.mxu0 %vm434_vm0, %v32251_v5  ;;  %v32259_v5 = vld [vmem:[#allocation15_spill] sm:$0xff] }
 0x688   : > { %23646 = vmatmul.mubr.msk.f32.gmra.mrb[48].mxu0 %vm434_vm0, %v32252_v36 }
 0x689   : > { %23648 = vmatprep.mubr.msk.f32.mxu0 %vm434_vm0, %v32253_v12  ;;  %v32260_v12 = vld [vmem:[#allocation32_spill] sm:$0xff] }
 0x68c   : > { %23649 = vmatmul.mubr.msk.f32.gmra.mrb[50].mxu0 %vm434_vm0, %v32254_v50 }
 0x68d   : > { %23651 = vmatprep.mubr.msk.f32.mxu0 %vm434_vm0, %v32255_v27 }
 0x690   : > { %23652 = vmatmul.mubr.msk.f32.gmra.mrb[52].mxu0 %vm434_vm0, %v32256_v52  ;;  %v7736_v52 = vld [vmem:[%s28451_s23 + $0x1a8] sm:$0x3] }
 0x691   : > { %23654 = vmatprep.mubr.msk.f32.mxu0 %vm434_vm0, %v32257_v51  ;;  %7792 = vst.msk [vmem:[#allocation3 + $0x1a8] sm:$0x3] %vm7740_vm7, %v7736_v52  ;;  %v11012_v52 = vld [vmem:[%s31785_s6 + $0x40] sm:$0xff] }
 0x694   : > { %23655 = vmatmul.mubr.msk.f32.gmra.mrb[54].mxu0 %vm434_vm0, %v32258_v48  ;;  %v29257_v48 = vld [vmem:[#allocation3 + $0x182] sm:$0xff] }
 0x695   : > { %23657 = vmatprep.mubr.msk.f32.mxu0 %vm434_vm0, %v32259_v5 }
 0x698   : > { %23658 = vmatmul.mubr.msk.f32.gmra.mrb[56].mxu0 %vm434_vm0, %v29025_v45  ;;  %v29261_v45 = vld [vmem:[#allocation3 + $0x18a] sm:$0xff] }
 0x699   : > { %23660 = vmatprep.mubr.msk.f32.mxu0 %vm434_vm0, %v32260_v12 }
 0x69c   : > { %23661 = vmatmul.mubr.msk.f32.gmra.mrb[58].mxu0 %vm434_vm0, %v29033_v47 }
 0x69d   : > { %23663 = vmatprep.mubr.msk.f32.mxu0 %vm434_vm0, %v29037_v43 }
 0x6a0   : > { %23664 = vmatmul.mubr.msk.f32.gmra.mrb[60].mxu0 %vm434_vm0, %v29041_v58 }
 0x6a1   : > { %23666 = vmatprep.mubr.msk.f32.mxu0 %vm434_vm0, %v29257_v48 }
 0x6a4   : > { %23667 = vmatmul.mubr.msk.f32.gmra.mrb[62].mxu0 %vm434_vm0, %v29261_v45 }
 0x6a5   : > { %23671 = vmatprep.mubr.msk.f32.mxu0 %vm434_vm0, %v28804_v14  ;;  %v10238_v14 = vld [vmem:[#allocation3 + $0x198] sm:$0xff] }
 0x6a8   : > { %23672 = vmatmul.mubr.msk.f32.vlgmr.msra.gmra.mrb[32].mxu0 %vm434_vm0, %v28808_v0  ;;  %v10239_v0 = vld [vmem:[#allocation3 + $0x1a0] sm:$0xff] }
 0x6a9   : > { %23720 = vmatpush3.msra.mxu0 %v10626_v44  ;;  %23674 = vmatprep.mubr.msk.f32.mxu0 %vm434_vm0, %v28812_v3  ;;  %v10594_v3 = vld [vmem:[#allocation3 + $0x31] sm:$0xff] }
 0x6aa   : > { %23769 = vmatprep.subr.mxu0 %v11012_v52 }
 0x6ac   : > { %23675 = vmatmul.mubr.msk.f32.gmra.mrb[34].mxu0 %vm434_vm0, %v28816_v23  ;;  %v11599_v23 = vld [vmem:[%s31787_s8 + $0x8] sm:$0xff] }
 0x6ad   : > { %23677 = vmatprep.mubr.msk.f32.mxu0 %vm434_vm0, %v28820_v30  ;;  %23819 = vmatprep.subr.mxu1 %v11599_v23  ;;  %v10595_v30 = vld [vmem:[#allocation3 + $0x39] sm:$0xff] }
 0x6ae   : > { %23820 = vmatpush3.msra.mxu1 %v11599_v23 }
 0x6b0   : > { %23678 = vmatmul.mubr.msk.f32.gmra.mrb[36].mxu0 %vm434_vm0, %v28824_v35  ;;  %v10596_v35 = vld [vmem:[#allocation3 + $0x49] sm:$0xff] }
 0x6b1   : > { %23680 = vmatprep.mubr.msk.f32.mxu0 %vm434_vm0, %v28828_v42  ;;  %v10597_v42 = vld [vmem:[#allocation3 + $0x51] sm:$0xff] }
 0x6b4   : > { %23681 = vmatmul.mubr.msk.f32.gmra.mrb[38].mxu0 %vm434_vm0, %v28832_v49  ;;  %v10598_v49 = vld [vmem:[#allocation3 + $0x61] sm:$0xff] }
 0x6b5   : > { %23683 = vmatprep.mubr.msk.f32.mxu0 %vm434_vm0, %v28836_v29  ;;  %v10599_v29 = vld [vmem:[#allocation3 + $0x69] sm:$0xff] }
 0x6b8   : > { %23684 = vmatmul.mubr.msk.f32.gmra.mrb[40].mxu0 %vm434_vm0, %v28840_v34  ;;  %v10600_v34 = vld [vmem:[#allocation3 + $0x79] sm:$0xff] }
 0x6b9   : > { %23686 = vmatprep.mubr.msk.f32.mxu0 %vm434_vm0, %v28844_v6  ;;  %v10601_v6 = vld [vmem:[#allocation3 + $0x81] sm:$0xff] }
 0x6bc   : > { %23687 = vmatmul.mubr.msk.f32.gmra.mrb[42].mxu0 %vm434_vm0, %v28848_v11  ;;  %v10602_v11 = vld [vmem:[#allocation3 + $0x91] sm:$0xff] }
 0x6bd   : > { %23689 = vmatprep.mubr.msk.f32.mxu0 %vm434_vm0, %v28852_v31  ;;  %v10603_v31 = vld [vmem:[#allocation3 + $0x99] sm:$0xff] }
 0x6c0   : > { %23690 = vmatmul.mubr.msk.f32.gmra.mrb[44].mxu0 %vm434_vm0, %v28856_v39  ;;  %v10604_v39 = vld [vmem:[#allocation3 + $0xa9] sm:$0xff] }
 0x6c1   : > { %23692 = vmatprep.mubr.msk.f32.mxu0 %vm434_vm0, %v28860_v28  ;;  %v10605_v28 = vld [vmem:[#allocation3 + $0xb1] sm:$0xff] }
 0x6c4   : > { %23693 = vmatmul.mubr.msk.f32.gmra.mrb[46].mxu0 %vm434_vm0, %v28864_v15  ;;  %v10606_v15 = vld [vmem:[#allocation3 + $0xc1] sm:$0xff] }
 0x6c5   : > { %23695 = vmatprep.mubr.msk.f32.mxu0 %vm434_vm0, %v28868_v2  ;;  %v10607_v2 = vld [vmem:[#allocation3 + $0xc9] sm:$0xff] }
 0x6c8   : > { %23696 = vmatmul.mubr.msk.f32.gmra.mrb[48].mxu0 %vm434_vm0, %v28872_v24  ;;  %v10608_v24 = vld [vmem:[#allocation3 + $0xd9] sm:$0xff] }
 0x6c9   : > { %23698 = vmatprep.mubr.msk.f32.mxu0 %vm434_vm0, %v28876_v40  ;;  %v32270_v40 = vld [vmem:[#allocation12_spill] sm:$0xff] }
 0x6cc   : > { %23699 = vmatmul.mubr.msk.f32.gmra.mrb[50].mxu0 %vm434_vm0, %v28880_v9  ;;  %v32271_v9 = vld [vmem:[#allocation26_spill] sm:$0xff] }
 0x6cd   : > { %23701 = vmatprep.mubr.msk.f32.mxu0 %vm434_vm0, %v28884_v57  ;;  %v32272_v57 = vld [vmem:[#allocation27_spill] sm:$0xff] }
 0x6d0   : > { %23702 = vmatmul.mubr.msk.f32.gmra.mrb[52].mxu0 %vm434_vm0, %v28888_v25  ;;  %v32273_v25 = vld [vmem:[#allocation16_spill] sm:$0xff] }
 0x6d1   : > { %23704 = vmatprep.mubr.msk.f32.mxu0 %vm434_vm0, %v28892_v13  ;;  %v11010_v13 = vld [vmem:[#allocation3 + $0x19a] sm:$0xff] }
 0x6d4   : > { %23705 = vmatmul.mubr.msk.f32.gmra.mrb[54].mxu0 %vm434_vm0, %v28896_v17  ;;  %v11011_v17 = vld [vmem:[#allocation3 + $0x1a2] sm:$0xff] }
 0x6d5   : > { %23707 = vmatprep.mubr.msk.f32.mxu0 %vm434_vm0, %v28900_v56  ;;  %v11567_v56 = vld [vmem:[#allocation4 + $0x1] sm:$0xff] }
 0x6d6   : > { %23821 = vmatprep.mubr.msk.f32.mxu1 %vm434_vm0, %v11567_v56 }
 0x6d8   : > { %23708 = vmatmul.mubr.msk.f32.gmra.mrb[56].mxu0 %vm434_vm0, %v28904_v37  ;;  %v11568_v37 = vld [vmem:[#allocation4 + $0x9] sm:$0xff] }
 0x6d9   : > { %23710 = vmatprep.mubr.msk.f32.mxu0 %vm434_vm0, %v28908_v41  ;;  %23822 = vmatmul.mubr.msk.f32.vlgmr.msra.gmra.mrb[64].mxu1 %vm434_vm0, %v11568_v37  ;;  %v11566_v41 = vld [vmem:[%s31787_s8] sm:$0xff] }
 0x6da   : > { %23869 = vmatprep.subr.mxu1 %v11566_v41 }
 0x6db   : > { %23870 = vmatpush3.msra.mxu1 %v11566_v41 }
 0x6dc   : > { %23711 = vmatmul.mubr.msk.f32.gmra.mrb[58].mxu0 %vm434_vm0, %v28912_v22  ;;  %v29456_v22 = vld [vmem:[%s31786_s7] ss:$0 sm:$0xff] }
 0x6dd   : > { %23713 = vmatprep.mubr.msk.f32.mxu0 %vm434_vm0, %v29109_v20 }
 0x6e0   : > { %23714 = vmatmul.mubr.msk.f32.gmra.mrb[60].mxu0 %vm434_vm0, %v29113_v61 }
 0x6e1   : > { %23716 = vmatprep.mubr.msk.f32.mxu0 %vm434_vm0, %v10238_v14 }
 0x6e4   : > { %23717 = vmatmul.mubr.msk.f32.gmra.mrb[62].mxu0 %vm434_vm0, %v10239_v0 }
 0x6e5   : > { %23721 = vmatprep.mubr.msk.f32.mxu0 %vm434_vm0, %v10594_v3 }
 0x6e8   : > { %23722 = vmatmul.mubr.msk.f32.vlgmr.msra.gmra.mrb[32].mxu0 %vm434_vm0, %v10595_v30 }
 0x6e9   : > { %23770 = vmatpush3.msra.mxu0 %v11012_v52  ;;  %23724 = vmatprep.mubr.msk.f32.mxu0 %vm434_vm0, %v10596_v35 }
 0x6ec   : > { %23725 = vmatmul.mubr.msk.f32.gmra.mrb[34].mxu0 %vm434_vm0, %v10597_v42 }
 0x6ed   : > { %23727 = vmatprep.mubr.msk.f32.mxu0 %vm434_vm0, %v10598_v49 }
 0x6f0   : > { %23728 = vmatmul.mubr.msk.f32.gmra.mrb[36].mxu0 %vm434_vm0, %v10599_v29 }
 0x6f1   : > { %23730 = vmatprep.mubr.msk.f32.mxu0 %vm434_vm0, %v10600_v34 }
 0x6f4   : > { %23731 = vmatmul.mubr.msk.f32.gmra.mrb[38].mxu0 %vm434_vm0, %v10601_v6 }
 0x6f5   : > { %23733 = vmatprep.mubr.msk.f32.mxu0 %vm434_vm0, %v10602_v11 }
 0x6f8   : > { %23734 = vmatmul.mubr.msk.f32.gmra.mrb[40].mxu0 %vm434_vm0, %v10603_v31 }
 0x6f9   : > { %23736 = vmatprep.mubr.msk.f32.mxu0 %vm434_vm0, %v10604_v39 }
 0x6fc   : > { %23737 = vmatmul.mubr.msk.f32.gmra.mrb[42].mxu0 %vm434_vm0, %v10605_v28 }
 0x6fd   : > { %23739 = vmatprep.mubr.msk.f32.mxu0 %vm434_vm0, %v10606_v15 }
 0x700   : > { %23740 = vmatmul.mubr.msk.f32.gmra.mrb[44].mxu0 %vm434_vm0, %v10607_v2 }
 0x701   : > { %23742 = vmatprep.mubr.msk.f32.mxu0 %vm434_vm0, %v10608_v24 }
 0x704   : > { %23743 = vmatmul.mubr.msk.f32.gmra.mrb[46].mxu0 %vm434_vm0, %v28724_v10  ;;  %v10624_v10 = vld [vmem:[#allocation3 + $0x199] sm:$0xff] }
 0x705   : > { %23745 = vmatprep.mubr.msk.f32.mxu0 %vm434_vm0, %v28726_v55  ;;  %v10625_v55 = vld [vmem:[#allocation3 + $0x1a1] sm:$0xff] }
 0x708   : > { %23746 = vmatmul.mubr.msk.f32.gmra.mrb[48].mxu0 %vm434_vm0, %v28734_v54  ;;  %v32261_v54 = vld [vmem:[#allocation10_spill] sm:$0xff] }
 0x709   : > { %23748 = vmatprep.mubr.msk.f32.mxu0 %vm434_vm0, %v28736_v8  ;;  %v32262_v8 = vld [vmem:[#allocation28_spill] sm:$0xff] }
 0x70c   : > { %23749 = vmatmul.mubr.msk.f32.gmra.mrb[50].mxu0 %vm434_vm0, %v28744_v19  ;;  %v32263_v19 = vld [vmem:[#allocation29_spill] sm:$0xff] }
 0x70d   : > { %23751 = vmatprep.mubr.msk.f32.mxu0 %vm434_vm0, %v28746_v21  ;;  %v32264_v21 = vld [vmem:[#allocation17_spill] sm:$0xff] }
 0x710   : > { %23752 = vmatmul.mubr.msk.f32.gmra.mrb[52].mxu0 %vm434_vm0, %v28754_v16  ;;  %v32265_v16 = vld [vmem:[#allocation30_spill] sm:$0xff] }
 0x711   : > { %23754 = vmatprep.mubr.msk.f32.mxu0 %vm434_vm0, %v28756_v18  ;;  %v32266_v18 = vld [vmem:[#allocation34_spill] sm:$0xff] }
 0x714   : > { %23755 = vmatmul.mubr.msk.f32.gmra.mrb[54].mxu0 %vm434_vm0, %v28764_v7  ;;  %v32267_v7 = vld [vmem:[#allocation31_spill] sm:$0xff] }
 0x715   : > { %23757 = vmatprep.mubr.msk.f32.mxu0 %vm434_vm0, %v28766_v53  ;;  %v32268_v53 = vld [vmem:[#allocation23_spill] sm:$0xff] }
 0x718   : > { %23758 = vmatmul.mubr.msk.f32.gmra.mrb[56].mxu0 %vm434_vm0, %v28774_v32  ;;  %v32269_v32 = vld [vmem:[#allocation11_spill] sm:$0xff] }
 0x719   : > { %23760 = vmatprep.mubr.msk.f32.mxu0 %vm434_vm0, %v32233_v26 }
 0x71c   : > { %23761 = vmatmul.mubr.msk.f32.gmra.mrb[58].mxu0 %vm434_vm0, %v32234_v38 }
 0x71d   : > { %23763 = vmatprep.mubr.msk.f32.mxu0 %vm434_vm0, %v29184_v60 }
 0x720   : > { %23764 = vmatmul.mubr.msk.f32.gmra.mrb[60].mxu0 %vm434_vm0, %v29188_v63 }
 0x721   : > { %23766 = vmatprep.mubr.msk.f32.mxu0 %vm434_vm0, %v10624_v10 }
 0x724   : > { %23767 = vmatmul.mubr.msk.f32.gmra.mrb[62].mxu0 %vm434_vm0, %v10625_v55 }
 0x725   : > { %23771 = vmatprep.mubr.msk.f32.mxu0 %vm434_vm0, %v32237_v33 }
 0x728   : > { %23772 = vmatmul.mubr.msk.f32.vlgmr.msra.gmra.mrb[32].mxu0 %vm434_vm0, %v32238_v1 }
 0x729   : > { %23774 = vmatprep.mubr.msk.f32.mxu0 %vm434_vm0, %v32239_v59 }
 0x72c   : > { %23775 = vmatmul.mubr.msk.f32.gmra.mrb[34].mxu0 %vm434_vm0, %v32240_v4 }
 0x72d   : > { %23777 = vmatprep.mubr.msk.f32.mxu0 %vm434_vm0, %v32241_v46 }
 0x730   : > { %23778 = vmatmul.mubr.msk.f32.gmra.mrb[36].mxu0 %vm434_vm0, %v32242_v62 }
 0x731   : > { %23780 = vmatprep.mubr.msk.f32.mxu0 %vm434_vm0, %v32261_v54 }
 0x734   : > { %23781 = vmatmul.mubr.msk.f32.gmra.mrb[38].mxu0 %vm434_vm0, %v32262_v8 }
 0x735   : > { %23783 = vmatprep.mubr.msk.f32.mxu0 %vm434_vm0, %v32263_v19 }
 0x738   : > { %23784 = vmatmul.mubr.msk.f32.gmra.mrb[40].mxu0 %vm434_vm0, %v32264_v21 }
 0x739   : > { %23786 = vmatprep.mubr.msk.f32.mxu0 %vm434_vm0, %v32265_v16 }
 0x73c   : > { %23787 = vmatmul.mubr.msk.f32.gmra.mrb[42].mxu0 %vm434_vm0, %v32266_v18 }
 0x73d   : > { %23789 = vmatprep.mubr.msk.f32.mxu0 %vm434_vm0, %v32267_v7 }
 0x740   : > { %23790 = vmatmul.mubr.msk.f32.gmra.mrb[44].mxu0 %vm434_vm0, %v32268_v53 }
 0x741   : > { %23792 = vmatprep.mubr.msk.f32.mxu0 %vm434_vm0, %v32269_v32 }
 0x744   : > { %23793 = vmatmul.mubr.msk.f32.gmra.mrb[46].mxu0 %vm434_vm0, %v32252_v36 }
 0x745   : > { %23795 = vmatprep.mubr.msk.f32.mxu0 %vm434_vm0, %v32270_v40 }
 0x748   : > { %23796 = vmatmul.mubr.msk.f32.gmra.mrb[48].mxu0 %vm434_vm0, %v32254_v50 }
 0x749   : > { %23798 = vmatprep.mubr.msk.f32.mxu0 %vm434_vm0, %v32255_v27 }
 0x74c   : > { %23799 = vmatmul.mubr.msk.f32.gmra.mrb[50].mxu0 %vm434_vm0, %v32271_v9 }
 0x74d   : > { %23801 = vmatprep.mubr.msk.f32.mxu0 %vm434_vm0, %v32257_v51 }
 0x750   : > { %23802 = vmatmul.mubr.msk.f32.gmra.mrb[52].mxu0 %vm434_vm0, %v32272_v57 }
 0x751   : > { %23804 = vmatprep.mubr.msk.f32.mxu0 %vm434_vm0, %v32259_v5 }
 0x754   : > { %23805 = vmatmul.mubr.msk.f32.gmra.mrb[54].mxu0 %vm434_vm0, %v32273_v25 }
 0x755   : > { %23807 = vmatprep.mubr.msk.f32.mxu0 %vm434_vm0, %v32260_v12 }
 0x758   : > { %23808 = vmatmul.mubr.msk.f32.gmra.mrb[56].mxu0 %vm434_vm0, %v29033_v47 }
 0x759   : > { %23810 = vmatprep.mubr.msk.f32.mxu0 %vm434_vm0, %v29037_v43 }
 0x75c   : > { %23811 = vmatmul.mubr.msk.f32.gmra.mrb[58].mxu0 %vm434_vm0, %v29041_v58 }
 0x75d   : > { %23813 = vmatprep.mubr.msk.f32.mxu0 %vm434_vm0, %v29257_v48 }
 0x760   : > { %23814 = vmatmul.mubr.msk.f32.gmra.mrb[60].mxu0 %vm434_vm0, %v29261_v45  ;;  %v29450_v45 = vld [vmem:[%s31787_s8 + $0x10] sm:$0xff] }
 0x761   : > { %23816 = vmatprep.mubr.msk.f32.mxu0 %vm434_vm0, %v11010_v13  ;;  %23919 = vmatprep.subr.mxu1 %v29450_v45 }
 0x764   : > { %23817 = vmatmul.mubr.msk.f32.gmra.mrb[62].mxu0 %vm434_vm0, %v11011_v17 }
 0x7fb   : > { %v23773_v47 = vpop.f32.mrb[32].mxu0 }
 0x7fc   : > { %v11374_v43 = vadd.f32 %v23773_v47, %v29456_v22  ;;  %v11175_v58 = vpop.f32.mrb[33].mxu0 }
 0x7fd   : > { %v11373_v20 = vadd.f32 %v29456_v22, %v11175_v58 }
 0x7fe   : > { %vm11406_vm9 = vcmp.ge.f32.partialorder %v11374_v43, 0.0  ;;  %v11438_v61 = vmul.f32 0.2, %v11374_v43 }
 0x7ff   : > { %vm11405_vm10 = vcmp.ge.f32.partialorder %v11373_v20, 0.0  ;;  %v11437_v26 = vmul.f32 0.2, %v11373_v20  ;;  %v23776_v38 = vpop.f32.mrb[34].mxu0 }
 0x800   : > { %v11470_v60 = vsel %vm11406_vm9, %v11374_v43, %v11438_v61  ;;  %v11376_v63 = vadd.f32 %v23776_v38, %v29456_v22  ;;  %v11185_v44 = vpop.f32.mrb[35].mxu0 }
 0x801   : > { %11503 = vst.msk [vmem:[#allocation4 + $0x21] sm:$0xff] %vm434_vm0, %v11470_v60  ;;  %v11469_v33 = vsel %vm11405_vm10, %v11373_v20, %v11437_v26  ;;  %v11375_v1 = vadd.f32 %v29456_v22, %v11185_v44 }
 0x802   : > { %11502 = vst.msk [vmem:[#allocation4 + $0x19] sm:$0xff] %vm434_vm0, %v11469_v33  ;;  %vm11408_vm11 = vcmp.ge.f32.partialorder %v11376_v63, 0.0  ;;  %v11440_v59 = vmul.f32 0.2, %v11376_v63 }
 0x803   : > { %vm11407_vm12 = vcmp.ge.f32.partialorder %v11375_v1, 0.0  ;;  %v11439_v4 = vmul.f32 0.2, %v11375_v1  ;;  %v23779_v46 = vpop.f32.mrb[36].mxu0 }
 0x804   : > { %v11472_v62 = vsel %vm11408_vm11, %v11376_v63, %v11440_v59  ;;  %v11378_v5 = vadd.f32 %v23779_v46, %v29456_v22  ;;  %v11195_v36 = vpop.f32.mrb[37].mxu0 }
 0x805   : > { %11505 = vst.msk [vmem:[#allocation4 + $0x39] sm:$0xff] %vm434_vm0, %v11472_v62  ;;  %v11471_v12 = vsel %vm11407_vm12, %v11375_v1, %v11439_v4  ;;  %v11377_v50 = vadd.f32 %v29456_v22, %v11195_v36 }
 0x806   : > { %11504 = vst.msk [vmem:[#allocation4 + $0x31] sm:$0xff] %vm434_vm0, %v11471_v12  ;;  %vm11410_vm13 = vcmp.ge.f32.partialorder %v11378_v5, 0.0  ;;  %v11442_v27 = vmul.f32 0.2, %v11378_v5 }
 0x807   : > { %vm11409_vm14 = vcmp.ge.f32.partialorder %v11377_v50, 0.0  ;;  %v11441_v51 = vmul.f32 0.2, %v11377_v50  ;;  %v23782_v48 = vpop.f32.mrb[38].mxu0 }
 0x808   : > { %v11474_v52 = vsel %vm11410_vm13, %v11378_v5, %v11442_v27  ;;  %v11380_v14 = vadd.f32 %v23782_v48, %v29456_v22  ;;  %v11205_v0 = vpop.f32.mrb[39].mxu0  ;;  %v29476_v42 = vld [vmem:[#allocation4 + $0x21] sm:$0xff] }
 0x809   : > { %11507 = vst.msk [vmem:[#allocation4 + $0x51] sm:$0xff] %vm434_vm0, %v11474_v52  ;;  %v11473_v3 = vsel %vm11409_vm14, %v11377_v50, %v11441_v51  ;;  %v11379_v23 = vadd.f32 %v29456_v22, %v11205_v0  ;;  %v29471_v30 = vld [vmem:[#allocation4 + $0x19] sm:$0xff] }
 0x80a   : > { %11506 = vst.msk [vmem:[#allocation4 + $0x49] sm:$0xff] %vm434_vm0, %v11473_v3  ;;  %vm11412_vm15 = vcmp.ge.f32.partialorder %v11380_v14, 0.0  ;;  %v11444_v35 = vmul.f32 0.2, %v11380_v14  ;;  %23824 = vmatprep.mubr.msk.f32.mxu1 %vm434_vm0, %v29471_v30 }
 0x80b   : > { %vm11411_vm1 = vcmp.ge.f32.partialorder %v11379_v23, 0.0  ;;  %v11443_v49 = vmul.f32 0.2, %v11379_v23  ;;  %v23785_v29 = vpop.f32.mrb[40].mxu0  ;;  %23825 = vmatmul.mubr.msk.f32.gmra.mrb[66].mxu1 %vm434_vm0, %v29476_v42 }
 0x80c   : > { %v11476_v34 = vsel %vm11412_vm15, %v11380_v14, %v11444_v35  ;;  %v11382_v6 = vadd.f32 %v23785_v29, %v29456_v22  ;;  %v11215_v11 = vpop.f32.mrb[41].mxu0  ;;  %v29488_v2 = vld [vmem:[#allocation4 + $0x39] sm:$0xff] }
 0x80d   : > { %11509 = vst.msk [vmem:[#allocation4 + $0x69] sm:$0xff] %vm434_vm0, %v11476_v34  ;;  %v11475_v31 = vsel %vm11411_vm1, %v11379_v23, %v11443_v49  ;;  %v11381_v39 = vadd.f32 %v29456_v22, %v11215_v11  ;;  %v29483_v28 = vld [vmem:[#allocation4 + $0x31] sm:$0xff] }
 0x80e   : > { %11508 = vst.msk [vmem:[#allocation4 + $0x61] sm:$0xff] %vm434_vm0, %v11475_v31  ;;  %vm11414_vm2 = vcmp.ge.f32.partialorder %v11382_v6, 0.0  ;;  %v11446_v15 = vmul.f32 0.2, %v11382_v6  ;;  %23827 = vmatprep.mubr.msk.f32.mxu1 %vm434_vm0, %v29483_v28 }
 0x80f   : > { %vm11413_vm4 = vcmp.ge.f32.partialorder %v11381_v39, 0.0  ;;  %v11445_v24 = vmul.f32 0.2, %v11381_v39  ;;  %v23788_v10 = vpop.f32.mrb[42].mxu0  ;;  %23828 = vmatmul.mubr.msk.f32.gmra.mrb[68].mxu1 %vm434_vm0, %v29488_v2 }
 0x810   : > { %v11478_v55 = vsel %vm11414_vm2, %v11382_v6, %v11446_v15  ;;  %v11384_v54 = vadd.f32 %v23788_v10, %v29456_v22  ;;  %v11225_v8 = vpop.f32.mrb[43].mxu0  ;;  %v29500_v7 = vld [vmem:[#allocation4 + $0x51] sm:$0xff] }
 0x811   : > { %11511 = vst.msk [vmem:[#allocation4 + $0x81] sm:$0xff] %vm434_vm0, %v11478_v55  ;;  %v11477_v19 = vsel %vm11413_vm4, %v11381_v39, %v11445_v24  ;;  %v11383_v21 = vadd.f32 %v29456_v22, %v11225_v8  ;;  %v29495_v16 = vld [vmem:[#allocation4 + $0x49] sm:$0xff] }
 0x812   : > { %11510 = vst.msk [vmem:[#allocation4 + $0x79] sm:$0xff] %vm434_vm0, %v11477_v19  ;;  %vm11416_vm5 = vcmp.ge.f32.partialorder %v11384_v54, 0.0  ;;  %v11448_v18 = vmul.f32 0.2, %v11384_v54  ;;  %23830 = vmatprep.mubr.msk.f32.mxu1 %vm434_vm0, %v29495_v16 }
 0x813   : > { %vm11415_vm6 = vcmp.ge.f32.partialorder %v11383_v21, 0.0  ;;  %v11447_v53 = vmul.f32 0.2, %v11383_v21  ;;  %v23791_v32 = vpop.f32.mrb[44].mxu0  ;;  %23831 = vmatmul.mubr.msk.f32.gmra.mrb[70].mxu1 %vm434_vm0, %v29500_v7 }
 0x814   : > { %v11480_v40 = vsel %vm11416_vm5, %v11384_v54, %v11448_v18  ;;  %v11386_v9 = vadd.f32 %v23791_v32, %v29456_v22  ;;  %v11235_v57 = vpop.f32.mrb[45].mxu0  ;;  %v29512_v37 = vld [vmem:[#allocation4 + $0x69] sm:$0xff] }
 0x815   : > { %11513 = vst.msk [vmem:[#allocation4 + $0x99] sm:$0xff] %vm434_vm0, %v11480_v40  ;;  %v11479_v25 = vsel %vm11415_vm6, %v11383_v21, %v11447_v53  ;;  %v11385_v13 = vadd.f32 %v29456_v22, %v11235_v57  ;;  %v29507_v17 = vld [vmem:[#allocation4 + $0x61] sm:$0xff] }
 0x816   : > { %11512 = vst.msk [vmem:[#allocation4 + $0x91] sm:$0xff] %vm434_vm0, %v11479_v25  ;;  %vm11418_vm7 = vcmp.ge.f32.partialorder %v11386_v9, 0.0  ;;  %v11450_v56 = vmul.f32 0.2, %v11386_v9  ;;  %23833 = vmatprep.mubr.msk.f32.mxu1 %vm434_vm0, %v29507_v17 }
 0x817   : > { %vm11417_vm9 = vcmp.ge.f32.partialorder %v11385_v13, 0.0  ;;  %v11449_v41 = vmul.f32 0.2, %v11385_v13  ;;  %v23794_v47 = vpop.f32.mrb[46].mxu0  ;;  %23834 = vmatmul.mubr.msk.f32.gmra.mrb[72].mxu1 %vm434_vm0, %v29512_v37 }
 0x818   : > { %v11482_v43 = vsel %vm11418_vm7, %v11386_v9, %v11450_v56  ;;  %v11388_v58 = vadd.f32 %v23794_v47, %v29456_v22  ;;  %v11245_v20 = vpop.f32.mrb[47].mxu0  ;;  %v29524_v63 = vld [vmem:[#allocation4 + $0x81] sm:$0xff] }
 0x819   : > { %11515 = vst.msk [vmem:[#allocation4 + $0xb1] sm:$0xff] %vm434_vm0, %v11482_v43  ;;  %v11481_v61 = vsel %vm11417_vm9, %v11385_v13, %v11449_v41  ;;  %v11387_v26 = vadd.f32 %v29456_v22, %v11245_v20  ;;  %v29519_v38 = vld [vmem:[#allocation4 + $0x79] sm:$0xff] }
 0x81a   : > { %11514 = vst.msk [vmem:[#allocation4 + $0xa9] sm:$0xff] %vm434_vm0, %v11481_v61  ;;  %vm11420_vm10 = vcmp.ge.f32.partialorder %v11388_v58, 0.0  ;;  %v11452_v60 = vmul.f32 0.2, %v11388_v58  ;;  %23836 = vmatprep.mubr.msk.f32.mxu1 %vm434_vm0, %v29519_v38 }
 0x81b   : > { %vm11419_vm11 = vcmp.ge.f32.partialorder %v11387_v26, 0.0  ;;  %v11451_v44 = vmul.f32 0.2, %v11387_v26  ;;  %v23797_v33 = vpop.f32.mrb[48].mxu0  ;;  %23837 = vmatmul.mubr.msk.f32.gmra.mrb[74].mxu1 %vm434_vm0, %v29524_v63 }
 0x81c   : > { %v11484_v1 = vsel %vm11420_vm10, %v11388_v58, %v11452_v60  ;;  %v11390_v59 = vadd.f32 %v23797_v33, %v29456_v22  ;;  %v11255_v4 = vpop.f32.mrb[49].mxu0  ;;  %v29536_v12 = vld [vmem:[#allocation4 + $0x99] sm:$0xff] }
 0x81d   : > { %11517 = vst.msk [vmem:[#allocation4 + $0xc9] sm:$0xff] %vm434_vm0, %v11484_v1  ;;  %v11483_v46 = vsel %vm11419_vm11, %v11387_v26, %v11451_v44  ;;  %v11389_v62 = vadd.f32 %v29456_v22, %v11255_v4  ;;  %v29531_v5 = vld [vmem:[#allocation4 + $0x91] sm:$0xff] }
 0x81e   : > { %11516 = vst.msk [vmem:[#allocation4 + $0xc1] sm:$0xff] %vm434_vm0, %v11483_v46  ;;  %vm11422_vm12 = vcmp.ge.f32.partialorder %v11390_v59, 0.0  ;;  %v11454_v36 = vmul.f32 0.2, %v11390_v59  ;;  %23839 = vmatprep.mubr.msk.f32.mxu1 %vm434_vm0, %v29531_v5 }
 0x81f   : > { %vm11421_vm13 = vcmp.ge.f32.partialorder %v11389_v62, 0.0  ;;  %v11453_v50 = vmul.f32 0.2, %v11389_v62  ;;  %v23800_v27 = vpop.f32.mrb[50].mxu0  ;;  %23840 = vmatmul.mubr.msk.f32.gmra.mrb[76].mxu1 %vm434_vm0, %v29536_v12 }
 0x820   : > { %v11486_v51 = vsel %vm11422_vm12, %v11390_v59, %v11454_v36  ;;  %v11392_v48 = vadd.f32 %v23800_v27, %v29456_v22  ;;  %v11265_v52 = vpop.f32.mrb[51].mxu0  ;;  %v29548_v35 = vld [vmem:[#allocation4 + $0xb1] sm:$0xff] }
 0x821   : > { %11519 = vst.msk [vmem:[#allocation4 + $0xe1] sm:$0xff] %vm434_vm0, %v11486_v51  ;;  %v11485_v14 = vsel %vm11421_vm13, %v11389_v62, %v11453_v50  ;;  %v11391_v0 = vadd.f32 %v29456_v22, %v11265_v52  ;;  %v29543_v3 = vld [vmem:[#allocation4 + $0xa9] sm:$0xff] }
 0x822   : > { %11518 = vst.msk [vmem:[#allocation4 + $0xd9] sm:$0xff] %vm434_vm0, %v11485_v14  ;;  %vm11424_vm14 = vcmp.ge.f32.partialorder %v11392_v48, 0.0  ;;  %v11456_v23 = vmul.f32 0.2, %v11392_v48  ;;  %23842 = vmatprep.mubr.msk.f32.mxu1 %vm434_vm0, %v29543_v3 }
 0x823   : > { %vm11423_vm15 = vcmp.ge.f32.partialorder %v11391_v0, 0.0  ;;  %v11455_v49 = vmul.f32 0.2, %v11391_v0  ;;  %v23803_v29 = vpop.f32.mrb[52].mxu0  ;;  %23843 = vmatmul.mubr.msk.f32.gmra.mrb[78].mxu1 %vm434_vm0, %v29548_v35 }
 0x824   : > { %v11488_v34 = vsel %vm11424_vm14, %v11392_v48, %v11456_v23  ;;  %v11394_v6 = vadd.f32 %v23803_v29, %v29456_v22  ;;  %v11275_v11 = vpop.f32.mrb[53].mxu0  ;;  %v29560_v10 = vld [vmem:[#allocation4 + $0xc9] sm:$0xff] }
 0x825   : > { %11521 = vst.msk [vmem:[#allocation4 + $0xf9] sm:$0xff] %vm434_vm0, %v11488_v34  ;;  %v11487_v31 = vsel %vm11423_vm15, %v11391_v0, %v11455_v49  ;;  %v11393_v39 = vadd.f32 %v29456_v22, %v11275_v11  ;;  %v29555_v15 = vld [vmem:[#allocation4 + $0xc1] sm:$0xff] }
 0x826   : > { %11520 = vst.msk [vmem:[#allocation4 + $0xf1] sm:$0xff] %vm434_vm0, %v11487_v31  ;;  %vm11426_vm1 = vcmp.ge.f32.partialorder %v11394_v6, 0.0  ;;  %v11458_v24 = vmul.f32 0.2, %v11394_v6  ;;  %23845 = vmatprep.mubr.msk.f32.mxu1 %vm434_vm0, %v29555_v15 }
 0x827   : > { %vm11425_vm2 = vcmp.ge.f32.partialorder %v11393_v39, 0.0  ;;  %v11457_v55 = vmul.f32 0.2, %v11393_v39  ;;  %v23806_v54 = vpop.f32.mrb[54].mxu0  ;;  %23846 = vmatmul.mubr.msk.f32.gmra.mrb[80].mxu1 %vm434_vm0, %v29560_v10 }
 0x828   : > { %v11490_v8 = vsel %vm11426_vm1, %v11394_v6, %v11458_v24  ;;  %v11396_v19 = vadd.f32 %v23806_v54, %v29456_v22  ;;  %v11285_v21 = vpop.f32.mrb[55].mxu0  ;;  %v29572_v9 = vld [vmem:[#allocation4 + $0xe1] sm:$0xff] }
 0x829   : > { %11523 = vst.msk [vmem:[#allocation4 + $0x111] sm:$0xff] %vm434_vm0, %v11490_v8  ;;  %v11489_v18 = vsel %vm11425_vm2, %v11393_v39, %v11457_v55  ;;  %v11395_v53 = vadd.f32 %v29456_v22, %v11285_v21  ;;  %v29567_v32 = vld [vmem:[#allocation4 + $0xd9] sm:$0xff] }
 0x82a   : > { %11522 = vst.msk [vmem:[#allocation4 + $0x109] sm:$0xff] %vm434_vm0, %v11489_v18  ;;  %vm11428_vm4 = vcmp.ge.f32.partialorder %v11396_v19, 0.0  ;;  %v11460_v40 = vmul.f32 0.2, %v11396_v19  ;;  %23848 = vmatprep.mubr.msk.f32.mxu1 %vm434_vm0, %v29567_v32 }
 0x82b   : > { %vm11427_vm5 = vcmp.ge.f32.partialorder %v11395_v53, 0.0  ;;  %v11459_v57 = vmul.f32 0.2, %v11395_v53  ;;  %v23809_v25 = vpop.f32.mrb[56].mxu0  ;;  %23849 = vmatmul.mubr.msk.f32.gmra.mrb[82].mxu1 %vm434_vm0, %v29572_v9 }
 0x82c   : > { %v11492_v13 = vsel %vm11428_vm4, %v11396_v19, %v11460_v40  ;;  %v11398_v56 = vadd.f32 %v23809_v25, %v29456_v22  ;;  %v11295_v41 = vpop.f32.mrb[57].mxu0  ;;  %v29584_v61 = vld [vmem:[#allocation4 + $0xf9] sm:$0xff] }
 0x82d   : > { %11525 = vst.msk [vmem:[#allocation4 + $0x129] sm:$0xff] %vm434_vm0, %v11492_v13  ;;  %v11491_v47 = vsel %vm11427_vm5, %v11395_v53, %v11459_v57  ;;  %v11397_v43 = vadd.f32 %v29456_v22, %v11295_v41  ;;  %v29579_v58 = vld [vmem:[#allocation4 + $0xf1] sm:$0xff]  ;;  %v11534_v25 = vld [vmem:[#allocation4] sm:$0xff] }
 0x82e   : > { %11524 = vst.msk [vmem:[#allocation4 + $0x121] sm:$0xff] %vm434_vm0, %v11491_v47  ;;  %vm11430_vm6 = vcmp.ge.f32.partialorder %v11398_v56, 0.0  ;;  %v11462_v20 = vmul.f32 0.2, %v11398_v56  ;;  %23851 = vmatprep.mubr.msk.f32.mxu1 %vm434_vm0, %v29579_v58  ;;  %v29646_v41 = vld [vmem:[%s31787_s8 + $0x18] sm:$0xff] }
 0x82f   : > { %vm11429_vm7 = vcmp.ge.f32.partialorder %v11397_v43, 0.0  ;;  %v11461_v26 = vmul.f32 0.2, %v11397_v43  ;;  %v23812_v60 = vpop.f32.mrb[58].mxu0  ;;  %23852 = vmatmul.mubr.msk.f32.gmra.mrb[84].mxu1 %vm434_vm0, %v29584_v61  ;;  %v29649_v47 = vld [vmem:[#allocation4 + $0x18] sm:$0xff] }
 0x830   : > { %v11494_v44 = vsel %vm11430_vm6, %v11398_v56, %v11462_v20  ;;  %v11400_v33 = vadd.f32 %v23812_v60, %v29456_v22  ;;  %v11305_v1 = vpop.f32.mrb[59].mxu0  ;;  %v29596_v36 = vld [vmem:[#allocation4 + $0x111] sm:$0xff]  ;;  %v11535_v56 = vld [vmem:[#allocation4 + $0x8] sm:$0xff] }
 0x831   : > { %11527 = vst.msk [vmem:[#allocation4 + $0x141] sm:$0xff] %vm434_vm0, %v11494_v44  ;;  %v11493_v59 = vsel %vm11429_vm7, %v11397_v43, %v11461_v26  ;;  %v11399_v4 = vadd.f32 %v29456_v22, %v11305_v1  ;;  %v29591_v46 = vld [vmem:[#allocation4 + $0x109] sm:$0xff]  ;;  %v29655_v43 = vld [vmem:[#allocation4 + $0x20] sm:$0xff]  ;;  %v29663_v26 = vld [vmem:[#allocation4 + $0x38] sm:$0xff] }
 0x832   : > { %11526 = vst.msk [vmem:[#allocation4 + $0x139] sm:$0xff] %vm434_vm0, %v11493_v59  ;;  %vm11432_vm9 = vcmp.ge.f32.partialorder %v11400_v33, 0.0  ;;  %v11464_v62 = vmul.f32 0.2, %v11400_v33  ;;  %23854 = vmatprep.mubr.msk.f32.mxu1 %vm434_vm0, %v29591_v46  ;;  %v29659_v20 = vld [vmem:[#allocation4 + $0x30] sm:$0xff]  ;;  %v29675_v44 = vld [vmem:[#allocation4 + $0x60] sm:$0xff] }
 0x833   : > { %vm11431_vm10 = vcmp.ge.f32.partialorder %v11399_v4, 0.0  ;;  %v11463_v50 = vmul.f32 0.2, %v11399_v4  ;;  %v23815_v27 = vpop.f32.mrb[60].mxu0  ;;  %23855 = vmatmul.mubr.msk.f32.gmra.mrb[86].mxu1 %vm434_vm0, %v29596_v36  ;;  %v29671_v60 = vld [vmem:[#allocation4 + $0x50] sm:$0xff]  ;;  %v29683_v1 = vld [vmem:[#allocation4 + $0x78] sm:$0xff] }
 0x834   : > { %v11496_v51 = vsel %vm11432_vm9, %v11400_v33, %v11464_v62  ;;  %v11402_v48 = vadd.f32 %v23815_v27, %v29456_v22  ;;  %v11315_v52 = vpop.f32.mrb[61].mxu0  ;;  %v29608_v29 = vld [vmem:[#allocation4 + $0x129] sm:$0xff]  ;;  %v29687_v59 = vld [vmem:[#allocation4 + $0x80] sm:$0xff]  ;;  %v29695_v62 = vld [vmem:[#allocation4 + $0x98] sm:$0xff] }
 0x835   : > { %11529 = vst.msk [vmem:[#allocation4 + $0x159] sm:$0xff] %vm434_vm0, %v11496_v51  ;;  %v11495_v14 = vsel %vm11431_vm10, %v11399_v4, %v11463_v50  ;;  %v11401_v0 = vadd.f32 %v29456_v22, %v11315_v52  ;;  %v29603_v23 = vld [vmem:[#allocation4 + $0x121] sm:$0xff]  ;;  %v29691_v4 = vld [vmem:[#allocation4 + $0x90] sm:$0xff]  ;;  %v29715_v52 = vld [vmem:[#allocation4 + $0xd8] sm:$0xff] }
 0x836   : > { %11528 = vst.msk [vmem:[#allocation4 + $0x151] sm:$0xff] %vm434_vm0, %v11495_v14  ;;  %vm11434_vm11 = vcmp.ge.f32.partialorder %v11402_v48, 0.0  ;;  %v11466_v49 = vmul.f32 0.2, %v11402_v48  ;;  %23857 = vmatprep.mubr.msk.f32.mxu1 %vm434_vm0, %v29603_v23  ;;  %v29679_v33 = vld [vmem:[#allocation4 + $0x68] sm:$0xff]  ;;  %v29703_v27 = vld [vmem:[#allocation4 + $0xb0] sm:$0xff] }
 0x837   : > { %vm11433_vm12 = vcmp.ge.f32.partialorder %v11401_v0, 0.0  ;;  %v11465_v34 = vmul.f32 0.2, %v11401_v0  ;;  %v23818_v6 = vpop.f32.mrb[62].mxu0  ;;  %23858 = vmatmul.mubr.msk.f32.gmra.mrb[88].mxu1 %vm434_vm0, %v29608_v29  ;;  %v29699_v50 = vld [vmem:[#allocation4 + $0xa8] sm:$0xff]  ;;  %v29707_v51 = vld [vmem:[#allocation4 + $0xc0] sm:$0xff] }
 0x838   : > { %v11498_v11 = vsel %vm11434_vm11, %v11402_v48, %v11466_v49  ;;  %v11404_v31 = vadd.f32 %v23818_v6, %v29456_v22  ;;  %v11325_v39 = vpop.f32.mrb[63].mxu0  ;;  %v29620_v19 = vld [vmem:[#allocation4 + $0x141] sm:$0xff]  ;;  %v29727_v49 = vld [vmem:[#allocation4 + $0xf8] sm:$0xff]  ;;  %v29735_v6 = vld [vmem:[#allocation4 + $0x110] sm:$0xff] }
 0x839   : > { %11531 = vst.msk [vmem:[#allocation4 + $0x171] sm:$0xff] %vm434_vm0, %v11498_v11  ;;  %v11497_v24 = vsel %vm11433_vm12, %v11401_v0, %v11465_v34  ;;  %v11403_v55 = vadd.f32 %v29456_v22, %v11325_v39  ;;  %v29615_v54 = vld [vmem:[#allocation4 + $0x139] sm:$0xff]  ;;  %v29711_v48 = vld [vmem:[#allocation4 + $0xc8] sm:$0xff]  ;;  %v29723_v0 = vld [vmem:[#allocation4 + $0xf0] sm:$0xff] }
 0x83a   : > { %11530 = vst.msk [vmem:[#allocation4 + $0x169] sm:$0xff] %vm434_vm0, %v11497_v24  ;;  %vm11436_vm13 = vcmp.ge.f32.partialorder %v11404_v31, 0.0  ;;  %v11468_v8 = vmul.f32 0.2, %v11404_v31  ;;  %23860 = vmatprep.mubr.msk.f32.mxu1 %vm434_vm0, %v29615_v54  ;;  %v29719_v14 = vld [vmem:[#allocation4 + $0xe0] sm:$0xff]  ;;  %v29731_v34 = vld [vmem:[#allocation4 + $0x108] sm:$0xff] }
 0x83b   : > { %vm11435_vm14 = vcmp.ge.f32.partialorder %v11403_v55, 0.0  ;;  %v11467_v21 = vmul.f32 0.2, %v11403_v55  ;;  %23861 = vmatmul.mubr.msk.f32.gmra.mrb[90].mxu1 %vm434_vm0, %v29620_v19  ;;  %v29739_v11 = vld [vmem:[#allocation4 + $0x120] sm:$0xff]  ;;  %v29747_v39 = vld [vmem:[#allocation4 + $0x138] sm:$0xff] }
 0x83c   : > { %v11500_v18 = vsel %vm11436_vm13, %v11404_v31, %v11468_v8  ;;  %v29630_v40 = vld [vmem:[#allocation4 + $0x159] sm:$0xff]  ;;  %v29743_v31 = vld [vmem:[#allocation4 + $0x128] sm:$0xff] }
 0x83d   : > { %11533 = vst.msk [vmem:[#allocation4 + $0x189] sm:$0xff] %vm434_vm0, %v11500_v18  ;;  %v11499_v22 = vsel %vm11435_vm14, %v11403_v55, %v11467_v21  ;;  %v29625_v53 = vld [vmem:[#allocation4 + $0x151] sm:$0xff]  ;;  %v29751_v24 = vld [vmem:[#allocation4 + $0x140] sm:$0xff] }
 0x83e   : > { %11532 = vst.msk [vmem:[#allocation4 + $0x181] sm:$0xff] %vm434_vm0, %v11499_v22  ;;  %23863 = vmatprep.mubr.msk.f32.mxu1 %vm434_vm0, %v29625_v53  ;;  %v29755_v55 = vld [vmem:[#allocation4 + $0x150] sm:$0xff]  ;;  %v29759_v8 = vld [vmem:[#allocation4 + $0x158] sm:$0xff]  ;;  %v12242_v18 = vld [vmem:[#allocation4 + $0x2] sm:$0xff] }
 0x83f   : > { %23864 = vmatmul.mubr.msk.f32.gmra.mrb[92].mxu1 %vm434_vm0, %v29630_v40 }
 0x840   : > { %v29638_v13 = vld [vmem:[#allocation4 + $0x171] sm:$0xff] }
 0x841   : > { %v29634_v57 = vld [vmem:[#allocation4 + $0x169] sm:$0xff]  ;;  %32275 = vst [vmem:[#allocation33_spill] sm:$0xff] %v29638_v13 }
 0x842   : > { %32274 = vst [vmem:[#allocation36_spill] sm:$0xff] %v29634_v57  ;;  %23866 = vmatprep.mubr.msk.f32.mxu1 %vm434_vm0, %v29634_v57  ;;  %v29763_v21 = vld [vmem:[#allocation4 + $0x168] sm:$0xff]  ;;  %v29767_v22 = vld [vmem:[#allocation4 + $0x170] sm:$0xff] }
 0x843   : > { %23867 = vmatmul.mubr.msk.f32.gmra.mrb[94].mxu1 %vm434_vm0, %v29638_v13  ;;  %v29778_v13 = vld [vmem:[#allocation4 + $0x1a] sm:$0xff]  ;;  %v29784_v57 = vld [vmem:[#allocation4 + $0x22] sm:$0xff] }
 0x844   : > { %23871 = vmatprep.mubr.msk.f32.mxu1 %vm434_vm0, %v11534_v25  ;;  %v12243_v25 = vld [vmem:[#allocation4 + $0xa] sm:$0xff]  ;;  %32276 = vst [vmem:[#allocation18_spill] sm:$0xff] %v29778_v13  ;;  %32277 = vst [vmem:[#allocation35_spill] sm:$0xff] %v29784_v57 }
 0x847   : > { %23872 = vmatmul.mubr.msk.f32.vlgmr.msra.gmra.mrb[64].mxu1 %vm434_vm0, %v11535_v56  ;;  %v29775_v56 = vld [vmem:[%s31787_s8 + $0x20] sm:$0xff] }
 0x848   : > { %23920 = vmatpush3.msra.mxu1 %v29450_v45  ;;  %23874 = vmatprep.mubr.msk.f32.mxu1 %vm434_vm0, %v29649_v47  ;;  %v29667_v45 = vld [vmem:[#allocation4 + $0x48] sm:$0xff] }
 0x849   : > { %23969 = vmatprep.subr.mxu1 %v29646_v41 }
 0x84b   : > { %23875 = vmatmul.mubr.msk.f32.gmra.mrb[66].mxu1 %vm434_vm0, %v29655_v43 }
 0x84c   : > { %23877 = vmatprep.mubr.msk.f32.mxu1 %vm434_vm0, %v29659_v20 }
 0x84f   : > { %23878 = vmatmul.mubr.msk.f32.gmra.mrb[68].mxu1 %vm434_vm0, %v29663_v26 }
 0x850   : > { %23880 = vmatprep.mubr.msk.f32.mxu1 %vm434_vm0, %v29667_v45 }
 0x853   : > { %23881 = vmatmul.mubr.msk.f32.gmra.mrb[70].mxu1 %vm434_vm0, %v29671_v60 }
 0x854   : > { %23883 = vmatprep.mubr.msk.f32.mxu1 %vm434_vm0, %v29675_v44 }
 0x857   : > { %23884 = vmatmul.mubr.msk.f32.gmra.mrb[72].mxu1 %vm434_vm0, %v29679_v33 }
 0x858   : > { %23886 = vmatprep.mubr.msk.f32.mxu1 %vm434_vm0, %v29683_v1 }
 0x85b   : > { %23887 = vmatmul.mubr.msk.f32.gmra.mrb[74].mxu1 %vm434_vm0, %v29687_v59 }
 0x85c   : > { %23889 = vmatprep.mubr.msk.f32.mxu1 %vm434_vm0, %v29691_v4 }
 0x85f   : > { %23890 = vmatmul.mubr.msk.f32.gmra.mrb[76].mxu1 %vm434_vm0, %v29695_v62 }
 0x860   : > { %23892 = vmatprep.mubr.msk.f32.mxu1 %vm434_vm0, %v29699_v50 }
 0x863   : > { %23893 = vmatmul.mubr.msk.f32.gmra.mrb[78].mxu1 %vm434_vm0, %v29703_v27 }
 0x864   : > { %23895 = vmatprep.mubr.msk.f32.mxu1 %vm434_vm0, %v29707_v51 }
 0x867   : > { %23896 = vmatmul.mubr.msk.f32.gmra.mrb[80].mxu1 %vm434_vm0, %v29711_v48 }
 0x868   : > { %23898 = vmatprep.mubr.msk.f32.mxu1 %vm434_vm0, %v29715_v52 }
 0x86b   : > { %23899 = vmatmul.mubr.msk.f32.gmra.mrb[82].mxu1 %vm434_vm0, %v29719_v14 }
 0x86c   : > { %23901 = vmatprep.mubr.msk.f32.mxu1 %vm434_vm0, %v29723_v0 }
 0x86f   : > { %23902 = vmatmul.mubr.msk.f32.gmra.mrb[84].mxu1 %vm434_vm0, %v29727_v49 }
 0x870   : > { %23904 = vmatprep.mubr.msk.f32.mxu1 %vm434_vm0, %v29731_v34 }
 0x873   : > { %23905 = vmatmul.mubr.msk.f32.gmra.mrb[86].mxu1 %vm434_vm0, %v29735_v6 }
 0x874   : > { %23907 = vmatprep.mubr.msk.f32.mxu1 %vm434_vm0, %v29739_v11 }
 0x877   : > { %23908 = vmatmul.mubr.msk.f32.gmra.mrb[88].mxu1 %vm434_vm0, %v29743_v31 }
 0x878   : > { %23910 = vmatprep.mubr.msk.f32.mxu1 %vm434_vm0, %v29747_v39 }
 0x87b   : > { %23911 = vmatmul.mubr.msk.f32.gmra.mrb[90].mxu1 %vm434_vm0, %v29751_v24 }
 0x87c   : > { %23913 = vmatprep.mubr.msk.f32.mxu1 %vm434_vm0, %v29755_v55 }
 0x87f   : > { %23914 = vmatmul.mubr.msk.f32.gmra.mrb[92].mxu1 %vm434_vm0, %v29759_v8 }
 0x880   : > { %23916 = vmatprep.mubr.msk.f32.mxu1 %vm434_vm0, %v29763_v21 }
 0x883   : > { %23917 = vmatmul.mubr.msk.f32.gmra.mrb[94].mxu1 %vm434_vm0, %v29767_v22 }
 0x884   : > { %23921 = vmatprep.mubr.msk.f32.mxu1 %vm434_vm0, %v12242_v18  ;;  %v29788_v18 = vld [vmem:[#allocation4 + $0x32] sm:$0xff] }
 0x885   : > { %32278 = vst [vmem:[#allocation6_spill] sm:$0xff] %v29788_v18 }
 0x887   : > { %23922 = vmatmul.mubr.msk.f32.vlgmr.msra.gmra.mrb[64].mxu1 %vm434_vm0, %v12243_v25  ;;  %v29792_v25 = vld [vmem:[#allocation4 + $0x3a] sm:$0xff] }
 0x888   : > { %23970 = vmatpush3.msra.mxu1 %v29646_v41  ;;  %23924 = vmatprep.mubr.msk.f32.mxu1 %vm434_vm0, %v29778_v13  ;;  %32279 = vst [vmem:[#allocation19_spill] sm:$0xff] %v29792_v25  ;;  %v29796_v41 = vld [vmem:[#allocation4 + $0x4a] sm:$0xff]  ;;  %v29800_v13 = vld [vmem:[#allocation4 + $0x52] sm:$0xff] }
 0x889   : > { %24019 = vmatprep.subr.mxu1 %v29775_v56  ;;  %32280 = vst [vmem:[#allocation7_spill] sm:$0xff] %v29796_v41  ;;  %32281 = vst [vmem:[#allocation20_spill] sm:$0xff] %v29800_v13 }
 0x88b   : > { %23925 = vmatmul.mubr.msk.f32.gmra.mrb[66].mxu1 %vm434_vm0, %v29784_v57  ;;  %v29804_v57 = vld [vmem:[#allocation4 + $0x62] sm:$0xff] }
 0x88c   : > { %23927 = vmatprep.mubr.msk.f32.mxu1 %vm434_vm0, %v29788_v18  ;;  %32282 = vst [vmem:[#allocation8_spill] sm:$0xff] %v29804_v57  ;;  %v29808_v18 = vld [vmem:[#allocation4 + $0x6a] sm:$0xff] }
 0x88d   : > { %32283 = vst [vmem:[#allocation21_spill] sm:$0xff] %v29808_v18 }
 0x88f   : > { %23928 = vmatmul.mubr.msk.f32.gmra.mrb[68].mxu1 %vm434_vm0, %v29792_v25  ;;  %v29812_v25 = vld [vmem:[#allocation4 + $0x7a] sm:$0xff] }
 0x890   : > { %23930 = vmatprep.mubr.msk.f32.mxu1 %vm434_vm0, %v29796_v41  ;;  %32284 = vst [vmem:[#allocation9_spill] sm:$0xff] %v29812_v25  ;;  %v29816_v41 = vld [vmem:[#allocation4 + $0x82] sm:$0xff] }
 0x891   : > { %32285 = vst [vmem:[#allocation22_spill] sm:$0xff] %v29816_v41 }
 0x893   : > { %23931 = vmatmul.mubr.msk.f32.gmra.mrb[70].mxu1 %vm434_vm0, %v29800_v13  ;;  %v29820_v13 = vld [vmem:[#allocation4 + $0x92] sm:$0xff] }
 0x894   : > { %23933 = vmatprep.mubr.msk.f32.mxu1 %vm434_vm0, %v29804_v57  ;;  %32286 = vst [vmem:[#allocation24_spill] sm:$0xff] %v29820_v13  ;;  %v29824_v57 = vld [vmem:[#allocation4 + $0x9a] sm:$0xff] }
 0x895   : > { %32287 = vst [vmem:[#allocation25_spill] sm:$0xff] %v29824_v57 }
 0x897   : > { %23934 = vmatmul.mubr.msk.f32.gmra.mrb[72].mxu1 %vm434_vm0, %v29808_v18  ;;  %v29828_v18 = vld [vmem:[#allocation4 + $0xaa] sm:$0xff] }
 0x898   : > { %23936 = vmatprep.mubr.msk.f32.mxu1 %vm434_vm0, %v29812_v25  ;;  %32288 = vst [vmem:[#allocation13_spill] sm:$0xff] %v29828_v18  ;;  %v29832_v25 = vld [vmem:[#allocation4 + $0xb2] sm:$0xff] }
 0x899   : > { %32289 = vst [vmem:[#allocation14_spill] sm:$0xff] %v29832_v25 }
 0x89b   : > { %23937 = vmatmul.mubr.msk.f32.gmra.mrb[74].mxu1 %vm434_vm0, %v29816_v41  ;;  %v29836_v41 = vld [vmem:[#allocation4 + $0xc2] sm:$0xff] }
 0x89c   : > { %23939 = vmatprep.mubr.msk.f32.mxu1 %vm434_vm0, %v29820_v13  ;;  %32290 = vst [vmem:[#allocation15_spill] sm:$0xff] %v29836_v41  ;;  %v29840_v13 = vld [vmem:[#allocation4 + $0xca] sm:$0xff] }
 0x89d   : > { %32291 = vst [vmem:[#allocation32_spill] sm:$0xff] %v29840_v13 }
 0x89f   : > { %23940 = vmatmul.mubr.msk.f32.gmra.mrb[76].mxu1 %vm434_vm0, %v29824_v57  ;;  %v29844_v57 = vld [vmem:[#allocation4 + $0xda] sm:$0xff] }
 0x8a0   : > { %23942 = vmatprep.mubr.msk.f32.mxu1 %vm434_vm0, %v29828_v18  ;;  %32292 = vst [vmem:[#allocation10_spill] sm:$0xff] %v29844_v57  ;;  %v29848_v18 = vld [vmem:[#allocation4 + $0xe2] sm:$0xff] }
 0x8a1   : > { %32293 = vst [vmem:[#allocation28_spill] sm:$0xff] %v29848_v18 }
 0x8a3   : > { %23943 = vmatmul.mubr.msk.f32.gmra.mrb[78].mxu1 %vm434_vm0, %v29832_v25  ;;  %v29852_v25 = vld [vmem:[#allocation4 + $0xf2] sm:$0xff] }
 0x8a4   : > { %23945 = vmatprep.mubr.msk.f32.mxu1 %vm434_vm0, %v29836_v41  ;;  %32294 = vst [vmem:[#allocation29_spill] sm:$0xff] %v29852_v25  ;;  %v29856_v41 = vld [vmem:[#allocation4 + $0xfa] sm:$0xff] }
 0x8a5   : > { %32295 = vst [vmem:[#allocation17_spill] sm:$0xff] %v29856_v41 }
 0x8a7   : > { %23946 = vmatmul.mubr.msk.f32.gmra.mrb[80].mxu1 %vm434_vm0, %v29840_v13  ;;  %v29860_v13 = vld [vmem:[#allocation4 + $0x10a] sm:$0xff] }
 0x8a8   : > { %23948 = vmatprep.mubr.msk.f32.mxu1 %vm434_vm0, %v29844_v57  ;;  %32296 = vst [vmem:[#allocation30_spill] sm:$0xff] %v29860_v13  ;;  %v29864_v57 = vld [vmem:[#allocation4 + $0x112] sm:$0xff] }
 0x8a9   : > { %32297 = vst [vmem:[#allocation34_spill] sm:$0xff] %v29864_v57 }
 0x8ab   : > { %23949 = vmatmul.mubr.msk.f32.gmra.mrb[82].mxu1 %vm434_vm0, %v29848_v18  ;;  %v29868_v18 = vld [vmem:[#allocation4 + $0x122] sm:$0xff] }
 0x8ac   : > { %23951 = vmatprep.mubr.msk.f32.mxu1 %vm434_vm0, %v29852_v25  ;;  %32298 = vst [vmem:[#allocation31_spill] sm:$0xff] %v29868_v18  ;;  %v29872_v25 = vld [vmem:[#allocation4 + $0x12a] sm:$0xff] }
 0x8ad   : > { %32299 = vst [vmem:[#allocation23_spill] sm:$0xff] %v29872_v25 }
 0x8af   : > { %23952 = vmatmul.mubr.msk.f32.gmra.mrb[84].mxu1 %vm434_vm0, %v29856_v41  ;;  %v29876_v41 = vld [vmem:[#allocation4 + $0x13a] sm:$0xff] }
 0x8b0   : > { %23954 = vmatprep.mubr.msk.f32.mxu1 %vm434_vm0, %v29860_v13  ;;  %32300 = vst [vmem:[#allocation11_spill] sm:$0xff] %v29876_v41  ;;  %v29880_v13 = vld [vmem:[#allocation4 + $0x142] sm:$0xff] }
 0x8b3   : > { %23955 = vmatmul.mubr.msk.f32.gmra.mrb[86].mxu1 %vm434_vm0, %v29864_v57  ;;  %v29884_v57 = vld [vmem:[#allocation4 + $0x152] sm:$0xff] }
 0x8b4   : > { %23957 = vmatprep.mubr.msk.f32.mxu1 %vm434_vm0, %v29868_v18  ;;  %32301 = vst [vmem:[#allocation12_spill] sm:$0xff] %v29884_v57  ;;  %v29888_v18 = vld [vmem:[#allocation4 + $0x15a] sm:$0xff] }
 0x8b7   : > { %23958 = vmatmul.mubr.msk.f32.gmra.mrb[88].mxu1 %vm434_vm0, %v29872_v25  ;;  %v29892_v25 = vld [vmem:[#allocation4 + $0x16a] sm:$0xff] }
 0x8b8   : > { %23960 = vmatprep.mubr.msk.f32.mxu1 %vm434_vm0, %v29876_v41  ;;  %32302 = vst [vmem:[#allocation26_spill] sm:$0xff] %v29892_v25  ;;  %v29896_v41 = vld [vmem:[#allocation4 + $0x172] sm:$0xff] }
 0x8bb   : > { %23961 = vmatmul.mubr.msk.f32.gmra.mrb[90].mxu1 %vm434_vm0, %v29880_v13 }
 0x8bc   : > { %23963 = vmatprep.mubr.msk.f32.mxu1 %vm434_vm0, %v29884_v57  ;;  %v13432_v57 = vld [vmem:[%s31787_s8 + $0x28] sm:$0xff] }
 0x8bf   : > { %23964 = vmatmul.mubr.msk.f32.gmra.mrb[92].mxu1 %vm434_vm0, %v29888_v18 }
 0x8c0   : > { %23966 = vmatprep.mubr.msk.f32.mxu1 %vm434_vm0, %v29892_v25 }
 0x8c3   : > { %23967 = vmatmul.mubr.msk.f32.gmra.mrb[94].mxu1 %vm434_vm0, %v29896_v41 }
 0x8c4   : > { %23971 = vmatprep.mubr.msk.f32.mxu1 %vm434_vm0, %v29649_v47  ;;  %v29964_v47 = vld [vmem:[#allocation4 + $0x180] sm:$0xff] }
 0x8c7   : > { %23972 = vmatmul.mubr.msk.f32.vlgmr.msra.gmra.mrb[64].mxu1 %vm434_vm0, %v29655_v43  ;;  %v29968_v43 = vld [vmem:[#allocation4 + $0x188] sm:$0xff] }
 0x8c8   : > { %24020 = vmatpush3.msra.mxu1 %v29775_v56  ;;  %23974 = vmatprep.mubr.msk.f32.mxu1 %vm434_vm0, %v29659_v20  ;;  %v13819_v56 = vld [vmem:[%s31787_s8 + $0x30] sm:$0xff] }
 0x8c9   : > { %24069 = vmatprep.subr.mxu1 %v13432_v57 }
 0x8cb   : > { %23975 = vmatmul.mubr.msk.f32.gmra.mrb[66].mxu1 %vm434_vm0, %v29663_v26 }
 0x8cc   : > { %23977 = vmatprep.mubr.msk.f32.mxu1 %vm434_vm0, %v29667_v45 }
 0x8cf   : > { %23978 = vmatmul.mubr.msk.f32.gmra.mrb[68].mxu1 %vm434_vm0, %v29671_v60 }
 0x8d0   : > { %23980 = vmatprep.mubr.msk.f32.mxu1 %vm434_vm0, %v29675_v44 }
 0x8d3   : > { %23981 = vmatmul.mubr.msk.f32.gmra.mrb[70].mxu1 %vm434_vm0, %v29679_v33 }
 0x8d4   : > { %23983 = vmatprep.mubr.msk.f32.mxu1 %vm434_vm0, %v29683_v1 }
 0x8d7   : > { %23984 = vmatmul.mubr.msk.f32.gmra.mrb[72].mxu1 %vm434_vm0, %v29687_v59 }
 0x8d8   : > { %23986 = vmatprep.mubr.msk.f32.mxu1 %vm434_vm0, %v29691_v4 }
 0x8db   : > { %23987 = vmatmul.mubr.msk.f32.gmra.mrb[74].mxu1 %vm434_vm0, %v29695_v62 }
 0x8dc   : > { %23989 = vmatprep.mubr.msk.f32.mxu1 %vm434_vm0, %v29699_v50 }
 0x8df   : > { %23990 = vmatmul.mubr.msk.f32.gmra.mrb[76].mxu1 %vm434_vm0, %v29703_v27 }
 0x8e0   : > { %23992 = vmatprep.mubr.msk.f32.mxu1 %vm434_vm0, %v29707_v51 }
 0x8e3   : > { %23993 = vmatmul.mubr.msk.f32.gmra.mrb[78].mxu1 %vm434_vm0, %v29711_v48 }
 0x8e4   : > { %23995 = vmatprep.mubr.msk.f32.mxu1 %vm434_vm0, %v29715_v52 }
 0x8e7   : > { %23996 = vmatmul.mubr.msk.f32.gmra.mrb[80].mxu1 %vm434_vm0, %v29719_v14 }
 0x8e8   : > { %23998 = vmatprep.mubr.msk.f32.mxu1 %vm434_vm0, %v29723_v0 }
 0x8eb   : > { %23999 = vmatmul.mubr.msk.f32.gmra.mrb[82].mxu1 %vm434_vm0, %v29727_v49 }
 0x8ec   : > { %24001 = vmatprep.mubr.msk.f32.mxu1 %vm434_vm0, %v29731_v34 }
 0x8ef   : > { %24002 = vmatmul.mubr.msk.f32.gmra.mrb[84].mxu1 %vm434_vm0, %v29735_v6 }
 0x8f0   : > { %24004 = vmatprep.mubr.msk.f32.mxu1 %vm434_vm0, %v29739_v11 }
 0x8f3   : > { %24005 = vmatmul.mubr.msk.f32.gmra.mrb[86].mxu1 %vm434_vm0, %v29743_v31 }
 0x8f4   : > { %24007 = vmatprep.mubr.msk.f32.mxu1 %vm434_vm0, %v29747_v39 }
 0x8f7   : > { %24008 = vmatmul.mubr.msk.f32.gmra.mrb[88].mxu1 %vm434_vm0, %v29751_v24 }
 0x8f8   : > { %24010 = vmatprep.mubr.msk.f32.mxu1 %vm434_vm0, %v29755_v55 }
 0x8fb   : > { %24011 = vmatmul.mubr.msk.f32.gmra.mrb[90].mxu1 %vm434_vm0, %v29759_v8 }
 0x8fc   : > { %24013 = vmatprep.mubr.msk.f32.mxu1 %vm434_vm0, %v29763_v21 }
 0x8ff   : > { %24014 = vmatmul.mubr.msk.f32.gmra.mrb[92].mxu1 %vm434_vm0, %v29767_v22 }
 0x900   : > { %24016 = vmatprep.mubr.msk.f32.mxu1 %vm434_vm0, %v29964_v47 }
 0x903   : > { %24017 = vmatmul.mubr.msk.f32.gmra.mrb[94].mxu1 %vm434_vm0, %v29968_v43 }
 0x904   : > { %24021 = vmatprep.mubr.msk.f32.mxu1 %vm434_vm0, %v29471_v30  ;;  %v32303_v30 = vld [vmem:[#allocation36_spill] sm:$0xff] }
 0x907   : > { %24022 = vmatmul.mubr.msk.f32.vlgmr.msra.gmra.mrb[64].mxu1 %vm434_vm0, %v29476_v42  ;;  %v32304_v42 = vld [vmem:[#allocation33_spill] sm:$0xff] }
 0x908   : > { %24070 = vmatpush3.msra.mxu1 %v13432_v57  ;;  %24024 = vmatprep.mubr.msk.f32.mxu1 %vm434_vm0, %v29483_v28  ;;  %v30035_v28 = vld [vmem:[#allocation4 + $0x181] sm:$0xff]  ;;  %v32316_v57 = vld [vmem:[#allocation25_spill] sm:$0xff] }
 0x909   : > { %24119 = vmatprep.subr.mxu1 %v13819_v56 }
 0x90b   : > { %24025 = vmatmul.mubr.msk.f32.gmra.mrb[66].mxu1 %vm434_vm0, %v29488_v2  ;;  %v30039_v2 = vld [vmem:[#allocation4 + $0x189] sm:$0xff] }
 0x90c   : > { %24027 = vmatprep.mubr.msk.f32.mxu1 %vm434_vm0, %v29495_v16  ;;  %v32305_v16 = vld [vmem:[#allocation18_spill] sm:$0xff] }
 0x90f   : > { %24028 = vmatmul.mubr.msk.f32.gmra.mrb[68].mxu1 %vm434_vm0, %v29500_v7  ;;  %v14205_v7 = vld [vmem:[%s31787_s8 + $0x38] sm:$0xff] }
 0x910   : > { %24030 = vmatprep.mubr.msk.f32.mxu1 %vm434_vm0, %v29507_v17  ;;  %v32306_v17 = vld [vmem:[#allocation35_spill] sm:$0xff] }
 0x913   : > { %24031 = vmatmul.mubr.msk.f32.gmra.mrb[70].mxu1 %vm434_vm0, %v29512_v37  ;;  %v32307_v37 = vld [vmem:[#allocation6_spill] sm:$0xff] }
 0x914   : > { %24033 = vmatprep.mubr.msk.f32.mxu1 %vm434_vm0, %v29519_v38  ;;  %v32308_v38 = vld [vmem:[#allocation19_spill] sm:$0xff] }
 0x917   : > { %24034 = vmatmul.mubr.msk.f32.gmra.mrb[72].mxu1 %vm434_vm0, %v29524_v63  ;;  %v32309_v63 = vld [vmem:[#allocation7_spill] sm:$0xff] }
 0x918   : > { %24036 = vmatprep.mubr.msk.f32.mxu1 %vm434_vm0, %v29531_v5  ;;  %v32310_v5 = vld [vmem:[#allocation20_spill] sm:$0xff] }
 0x91b   : > { %24037 = vmatmul.mubr.msk.f32.gmra.mrb[74].mxu1 %vm434_vm0, %v29536_v12  ;;  %v32311_v12 = vld [vmem:[#allocation8_spill] sm:$0xff] }
 0x91c   : > { %24039 = vmatprep.mubr.msk.f32.mxu1 %vm434_vm0, %v29543_v3  ;;  %v32312_v3 = vld [vmem:[#allocation21_spill] sm:$0xff] }
 0x91f   : > { %24040 = vmatmul.mubr.msk.f32.gmra.mrb[76].mxu1 %vm434_vm0, %v29548_v35  ;;  %v32313_v35 = vld [vmem:[#allocation9_spill] sm:$0xff] }
 0x920   : > { %24042 = vmatprep.mubr.msk.f32.mxu1 %vm434_vm0, %v29555_v15  ;;  %v32314_v15 = vld [vmem:[#allocation22_spill] sm:$0xff] }
 0x923   : > { %24043 = vmatmul.mubr.msk.f32.gmra.mrb[78].mxu1 %vm434_vm0, %v29560_v10  ;;  %v32315_v10 = vld [vmem:[#allocation24_spill] sm:$0xff] }
 0x924   : > { %24045 = vmatprep.mubr.msk.f32.mxu1 %vm434_vm0, %v29567_v32 }
 0x927   : > { %24046 = vmatmul.mubr.msk.f32.gmra.mrb[80].mxu1 %vm434_vm0, %v29572_v9 }
 0x928   : > { %24048 = vmatprep.mubr.msk.f32.mxu1 %vm434_vm0, %v29579_v58 }
 0x92b   : > { %24049 = vmatmul.mubr.msk.f32.gmra.mrb[82].mxu1 %vm434_vm0, %v29584_v61 }
 0x92c   : > { %24051 = vmatprep.mubr.msk.f32.mxu1 %vm434_vm0, %v29591_v46 }
 0x92f   : > { %24052 = vmatmul.mubr.msk.f32.gmra.mrb[84].mxu1 %vm434_vm0, %v29596_v36 }
 0x930   : > { %24054 = vmatprep.mubr.msk.f32.mxu1 %vm434_vm0, %v29603_v23 }
 0x933   : > { %24055 = vmatmul.mubr.msk.f32.gmra.mrb[86].mxu1 %vm434_vm0, %v29608_v29 }
 0x934   : > { %24057 = vmatprep.mubr.msk.f32.mxu1 %vm434_vm0, %v29615_v54 }
 0x937   : > { %24058 = vmatmul.mubr.msk.f32.gmra.mrb[88].mxu1 %vm434_vm0, %v29620_v19 }
 0x938   : > { %24060 = vmatprep.mubr.msk.f32.mxu1 %vm434_vm0, %v29625_v53 }
 0x93b   : > { %24061 = vmatmul.mubr.msk.f32.gmra.mrb[90].mxu1 %vm434_vm0, %v29630_v40 }
 0x93c   : > { %24063 = vmatprep.mubr.msk.f32.mxu1 %vm434_vm0, %v32303_v30 }
 0x93f   : > { %24064 = vmatmul.mubr.msk.f32.gmra.mrb[92].mxu1 %vm434_vm0, %v32304_v42 }
 0x940   : > { %24066 = vmatprep.mubr.msk.f32.mxu1 %vm434_vm0, %v30035_v28 }
 0x943   : > { %24067 = vmatmul.mubr.msk.f32.gmra.mrb[94].mxu1 %vm434_vm0, %v30039_v2 }
 0x944   : > { %24071 = vmatprep.mubr.msk.f32.mxu1 %vm434_vm0, %v32305_v16  ;;  %v32318_v16 = vld [vmem:[#allocation14_spill] sm:$0xff] }
 0x947   : > { %24072 = vmatmul.mubr.msk.f32.vlgmr.msra.gmra.mrb[64].mxu1 %vm434_vm0, %v32306_v17  ;;  %v32319_v17 = vld [vmem:[#allocation15_spill] sm:$0xff] }
 0x948   : > { %24120 = vmatpush3.msra.mxu1 %v13819_v56  ;;  %24074 = vmatprep.mubr.msk.f32.mxu1 %vm434_vm0, %v32307_v37  ;;  %v32317_v56 = vld [vmem:[#allocation13_spill] sm:$0xff] }
 0x949   : > { %24169 = vmatprep.subr.mxu1 %v14205_v7 }
 0x94b   : > { %24075 = vmatmul.mubr.msk.f32.gmra.mrb[66].mxu1 %vm434_vm0, %v32308_v38 }
 0x94c   : > { %24077 = vmatprep.mubr.msk.f32.mxu1 %vm434_vm0, %v32309_v63 }
 0x94f   : > { %24078 = vmatmul.mubr.msk.f32.gmra.mrb[68].mxu1 %vm434_vm0, %v32310_v5 }
 0x950   : > { %24080 = vmatprep.mubr.msk.f32.mxu1 %vm434_vm0, %v32311_v12 }
 0x953   : > { %24081 = vmatmul.mubr.msk.f32.gmra.mrb[70].mxu1 %vm434_vm0, %v32312_v3  ;;  %v32320_v3 = vld [vmem:[#allocation32_spill] sm:$0xff] }
 0x954   : > { %24083 = vmatprep.mubr.msk.f32.mxu1 %vm434_vm0, %v32313_v35  ;;  %v32321_v35 = vld [vmem:[#allocation10_spill] sm:$0xff] }
 0x957   : > { %24084 = vmatmul.mubr.msk.f32.gmra.mrb[72].mxu1 %vm434_vm0, %v32314_v15  ;;  %v32322_v15 = vld [vmem:[#allocation28_spill] sm:$0xff] }
 0x958   : > { %24086 = vmatprep.mubr.msk.f32.mxu1 %vm434_vm0, %v32315_v10  ;;  %v32323_v10 = vld [vmem:[#allocation29_spill] sm:$0xff] }
 0x95b   : > { %24087 = vmatmul.mubr.msk.f32.gmra.mrb[74].mxu1 %vm434_vm0, %v32316_v57  ;;  %v32324_v57 = vld [vmem:[#allocation17_spill] sm:$0xff] }
 0x95c   : > { %24089 = vmatprep.mubr.msk.f32.mxu1 %vm434_vm0, %v32317_v56  ;;  %v32325_v56 = vld [vmem:[#allocation30_spill] sm:$0xff] }
 0x95f   : > { %24090 = vmatmul.mubr.msk.f32.gmra.mrb[76].mxu1 %vm434_vm0, %v32318_v16  ;;  %v32326_v16 = vld [vmem:[#allocation34_spill] sm:$0xff] }
 0x960   : > { %24092 = vmatprep.mubr.msk.f32.mxu1 %vm434_vm0, %v32319_v17  ;;  %v32327_v17 = vld [vmem:[#allocation31_spill] sm:$0xff] }
 0x963   : > { %24093 = vmatmul.mubr.msk.f32.gmra.mrb[78].mxu1 %vm434_vm0, %v32320_v3  ;;  %v32328_v3 = vld [vmem:[#allocation23_spill] sm:$0xff] }
 0x964   : > { %24095 = vmatprep.mubr.msk.f32.mxu1 %vm434_vm0, %v32321_v35  ;;  %v32329_v35 = vld [vmem:[#allocation11_spill] sm:$0xff] }
 0x967   : > { %24096 = vmatmul.mubr.msk.f32.gmra.mrb[80].mxu1 %vm434_vm0, %v32322_v15 }
 0x968   : > { %24098 = vmatprep.mubr.msk.f32.mxu1 %vm434_vm0, %v32323_v10  ;;  %v32330_v10 = vld [vmem:[#allocation12_spill] sm:$0xff] }
 0x96b   : > { %24099 = vmatmul.mubr.msk.f32.gmra.mrb[82].mxu1 %vm434_vm0, %v32324_v57 }
 0x96c   : > { %24101 = vmatprep.mubr.msk.f32.mxu1 %vm434_vm0, %v32325_v56 }
 0x96f   : > { %24102 = vmatmul.mubr.msk.f32.gmra.mrb[84].mxu1 %vm434_vm0, %v32326_v16 }
 0x970   : > { %24104 = vmatprep.mubr.msk.f32.mxu1 %vm434_vm0, %v32327_v17  ;;  %v30106_v17 = vld [vmem:[#allocation4 + $0x182] sm:$0xff] }
 0x973   : > { %24105 = vmatmul.mubr.msk.f32.gmra.mrb[86].mxu1 %vm434_vm0, %v32328_v3 }
 0x974   : > { %24107 = vmatprep.mubr.msk.f32.mxu1 %vm434_vm0, %v32329_v35  ;;  %v30110_v35 = vld [vmem:[#allocation4 + $0x18a] sm:$0xff] }
 0x977   : > { %24108 = vmatmul.mubr.msk.f32.gmra.mrb[88].mxu1 %vm434_vm0, %v29880_v13 }
 0x978   : > { %24110 = vmatprep.mubr.msk.f32.mxu1 %vm434_vm0, %v32330_v10 }
 0x97b   : > { %24111 = vmatmul.mubr.msk.f32.gmra.mrb[90].mxu1 %vm434_vm0, %v29888_v18 }
 0x97c   : > { %24113 = vmatprep.mubr.msk.f32.mxu1 %vm434_vm0, %v29892_v25  ;;  %v14591_v25 = vld [vmem:[%s31787_s8 + $0x40] sm:$0xff] }
 0x97f   : > { %24114 = vmatmul.mubr.msk.f32.gmra.mrb[92].mxu1 %vm434_vm0, %v29896_v41 }
 0x980   : > { %24116 = vmatprep.mubr.msk.f32.mxu1 %vm434_vm0, %v30106_v17 }
 0x983   : > { %24117 = vmatmul.mubr.msk.f32.gmra.mrb[94].mxu1 %vm434_vm0, %v30110_v35 }
 0x984   : > { %24121 = vmatprep.mubr.msk.f32.mxu1 %vm434_vm0, %v29659_v20  ;;  %v13817_v20 = vld [vmem:[#allocation4 + $0x198] sm:$0xff] }
 0x987   : > { %24122 = vmatmul.mubr.msk.f32.vlgmr.msra.gmra.mrb[64].mxu1 %vm434_vm0, %v29663_v26  ;;  %v13818_v26 = vld [vmem:[#allocation4 + $0x1a0] sm:$0xff] }
 0x988   : > { %24170 = vmatpush3.msra.mxu1 %v14205_v7  ;;  %24124 = vmatprep.mubr.msk.f32.mxu1 %vm434_vm0, %v29667_v45  ;;  %v14173_v45 = vld [vmem:[#allocation4 + $0x31] sm:$0xff] }
 0x989   : > { %24219 = vmatprep.subr.mxu1 %v14591_v25 }
 0x98b   : > { %24125 = vmatmul.mubr.msk.f32.gmra.mrb[66].mxu1 %vm434_vm0, %v29671_v60  ;;  %v15178_v60 = vld [vmem:[%s31789_s10 + $0x8] sm:$0xff] }
 0x98c   : > { %24127 = vmatprep.mubr.msk.f32.mxu1 %vm434_vm0, %v29675_v44  ;;  %24269 = vmatprep.subr.mxu0 %v15178_v60  ;;  %v14174_v44 = vld [vmem:[#allocation4 + $0x39] sm:$0xff] }
 0x98d   : > { %24270 = vmatpush3.msra.mxu0 %v15178_v60 }
 0x98f   : > { %24128 = vmatmul.mubr.msk.f32.gmra.mrb[68].mxu1 %vm434_vm0, %v29679_v33  ;;  %v14175_v33 = vld [vmem:[#allocation4 + $0x49] sm:$0xff] }
 0x990   : > { %24130 = vmatprep.mubr.msk.f32.mxu1 %vm434_vm0, %v29683_v1  ;;  %v14176_v1 = vld [vmem:[#allocation4 + $0x51] sm:$0xff] }
 0x993   : > { %24131 = vmatmul.mubr.msk.f32.gmra.mrb[70].mxu1 %vm434_vm0, %v29687_v59  ;;  %v14177_v59 = vld [vmem:[#allocation4 + $0x61] sm:$0xff] }
 0x994   : > { %24133 = vmatprep.mubr.msk.f32.mxu1 %vm434_vm0, %v29691_v4  ;;  %v14178_v4 = vld [vmem:[#allocation4 + $0x69] sm:$0xff] }
 0x997   : > { %24134 = vmatmul.mubr.msk.f32.gmra.mrb[72].mxu1 %vm434_vm0, %v29695_v62  ;;  %v14179_v62 = vld [vmem:[#allocation4 + $0x79] sm:$0xff] }
 0x998   : > { %24136 = vmatprep.mubr.msk.f32.mxu1 %vm434_vm0, %v29699_v50  ;;  %v14180_v50 = vld [vmem:[#allocation4 + $0x81] sm:$0xff] }
 0x99b   : > { %24137 = vmatmul.mubr.msk.f32.gmra.mrb[74].mxu1 %vm434_vm0, %v29703_v27  ;;  %v14181_v27 = vld [vmem:[#allocation4 + $0x91] sm:$0xff] }
 0x99c   : > { %24139 = vmatprep.mubr.msk.f32.mxu1 %vm434_vm0, %v29707_v51  ;;  %v14182_v51 = vld [vmem:[#allocation4 + $0x99] sm:$0xff] }
 0x99f   : > { %24140 = vmatmul.mubr.msk.f32.gmra.mrb[76].mxu1 %vm434_vm0, %v29711_v48  ;;  %v14183_v48 = vld [vmem:[#allocation4 + $0xa9] sm:$0xff] }
 0x9a0   : > { %24142 = vmatprep.mubr.msk.f32.mxu1 %vm434_vm0, %v29715_v52  ;;  %v14184_v52 = vld [vmem:[#allocation4 + $0xb1] sm:$0xff] }
 0x9a3   : > { %24143 = vmatmul.mubr.msk.f32.gmra.mrb[78].mxu1 %vm434_vm0, %v29719_v14  ;;  %v14185_v14 = vld [vmem:[#allocation4 + $0xc1] sm:$0xff] }
 0x9a4   : > { %24145 = vmatprep.mubr.msk.f32.mxu1 %vm434_vm0, %v29723_v0  ;;  %v14186_v0 = vld [vmem:[#allocation4 + $0xc9] sm:$0xff] }
 0x9a7   : > { %24146 = vmatmul.mubr.msk.f32.gmra.mrb[80].mxu1 %vm434_vm0, %v29727_v49  ;;  %v32341_v49 = vld [vmem:[#allocation29_spill] sm:$0xff] }
 0x9a8   : > { %24148 = vmatprep.mubr.msk.f32.mxu1 %vm434_vm0, %v29731_v34  ;;  %v32342_v34 = vld [vmem:[#allocation31_spill] sm:$0xff] }
 0x9ab   : > { %24149 = vmatmul.mubr.msk.f32.gmra.mrb[82].mxu1 %vm434_vm0, %v29735_v6  ;;  %v32343_v6 = vld [vmem:[#allocation11_spill] sm:$0xff] }
 0x9ac   : > { %24151 = vmatprep.mubr.msk.f32.mxu1 %vm434_vm0, %v29739_v11  ;;  %v32344_v11 = vld [vmem:[#allocation26_spill] sm:$0xff] }
 0x9af   : > { %24152 = vmatmul.mubr.msk.f32.gmra.mrb[84].mxu1 %vm434_vm0, %v29743_v31  ;;  %v14589_v31 = vld [vmem:[#allocation4 + $0x19a] sm:$0xff] }
 0x9b0   : > { %24154 = vmatprep.mubr.msk.f32.mxu1 %vm434_vm0, %v29747_v39  ;;  %v15146_v39 = vld [vmem:[#allocation5 + $0x1] sm:$0xff] }
 0x9b1   : > { %24271 = vmatprep.mubr.msk.f32.mxu0 %vm434_vm0, %v15146_v39 }
 0x9b3   : > { %24155 = vmatmul.mubr.msk.f32.gmra.mrb[86].mxu1 %vm434_vm0, %v29751_v24  ;;  %v15147_v24 = vld [vmem:[#allocation5 + $0x9] sm:$0xff] }
 0x9b4   : > { %24157 = vmatprep.mubr.msk.f32.mxu1 %vm434_vm0, %v29755_v55  ;;  %24272 = vmatmul.mubr.msk.f32.vlgmr.msra.gmra.mrb[64].mxu0 %vm434_vm0, %v15147_v24  ;;  %v15145_v55 = vld [vmem:[%s31789_s10] sm:$0xff] }
 0x9b5   : > { %24319 = vmatprep.subr.mxu0 %v15145_v55 }
 0x9b6   : > { %24320 = vmatpush3.msra.mxu0 %v15145_v55 }
 0x9b7   : > { %24158 = vmatmul.mubr.msk.f32.gmra.mrb[88].mxu1 %vm434_vm0, %v29759_v8  ;;  %v30300_v8 = vld [vmem:[%s31789_s10 + $0x10] sm:$0xff] }
 0x9b8   : > { %24160 = vmatprep.mubr.msk.f32.mxu1 %vm434_vm0, %v29763_v21  ;;  %24369 = vmatprep.subr.mxu0 %v30300_v8  ;;  %v30306_v21 = vld [vmem:[%s31788_s9] ss:$0 sm:$0xff] }
 0x9bb   : > { %24161 = vmatmul.mubr.msk.f32.gmra.mrb[90].mxu1 %vm434_vm0, %v29767_v22 }
 0x9bc   : > { %24163 = vmatprep.mubr.msk.f32.mxu1 %vm434_vm0, %v29964_v47 }
 0x9bf   : > { %24164 = vmatmul.mubr.msk.f32.gmra.mrb[92].mxu1 %vm434_vm0, %v29968_v43 }
 0x9c0   : > { %24166 = vmatprep.mubr.msk.f32.mxu1 %vm434_vm0, %v13817_v20 }
 0x9c3   : > { %24167 = vmatmul.mubr.msk.f32.gmra.mrb[94].mxu1 %vm434_vm0, %v13818_v26 }
 0x9c4   : > { %24171 = vmatprep.mubr.msk.f32.mxu1 %vm434_vm0, %v14173_v45 }
 0x9c7   : > { %24172 = vmatmul.mubr.msk.f32.vlgmr.msra.gmra.mrb[64].mxu1 %vm434_vm0, %v14174_v44 }
 0x9c8   : > { %24220 = vmatpush3.msra.mxu1 %v14591_v25  ;;  %24174 = vmatprep.mubr.msk.f32.mxu1 %vm434_vm0, %v14175_v33 }
 0x9cb   : > { %24175 = vmatmul.mubr.msk.f32.gmra.mrb[66].mxu1 %vm434_vm0, %v14176_v1 }
 0x9cc   : > { %24177 = vmatprep.mubr.msk.f32.mxu1 %vm434_vm0, %v14177_v59 }
 0x9cf   : > { %24178 = vmatmul.mubr.msk.f32.gmra.mrb[68].mxu1 %vm434_vm0, %v14178_v4 }
 0x9d0   : > { %24180 = vmatprep.mubr.msk.f32.mxu1 %vm434_vm0, %v14179_v62 }
 0x9d3   : > { %24181 = vmatmul.mubr.msk.f32.gmra.mrb[70].mxu1 %vm434_vm0, %v14180_v50 }
 0x9d4   : > { %24183 = vmatprep.mubr.msk.f32.mxu1 %vm434_vm0, %v14181_v27 }
 0x9d7   : > { %24184 = vmatmul.mubr.msk.f32.gmra.mrb[72].mxu1 %vm434_vm0, %v14182_v51 }
 0x9d8   : > { %24186 = vmatprep.mubr.msk.f32.mxu1 %vm434_vm0, %v14183_v48 }
 0x9db   : > { %24187 = vmatmul.mubr.msk.f32.gmra.mrb[74].mxu1 %vm434_vm0, %v14184_v52 }
 0x9dc   : > { %24189 = vmatprep.mubr.msk.f32.mxu1 %vm434_vm0, %v14185_v14 }
 0x9df   : > { %24190 = vmatmul.mubr.msk.f32.gmra.mrb[76].mxu1 %vm434_vm0, %v14186_v0 }
 0x9e0   : > { %24192 = vmatprep.mubr.msk.f32.mxu1 %vm434_vm0, %v29567_v32  ;;  %v14203_v32 = vld [vmem:[#allocation4 + $0x199] sm:$0xff] }
 0x9e3   : > { %24193 = vmatmul.mubr.msk.f32.gmra.mrb[78].mxu1 %vm434_vm0, %v29572_v9  ;;  %v14204_v9 = vld [vmem:[#allocation4 + $0x1a1] sm:$0xff] }
 0x9e4   : > { %24195 = vmatprep.mubr.msk.f32.mxu1 %vm434_vm0, %v29579_v58  ;;  %v32331_v58 = vld [vmem:[#allocation21_spill] sm:$0xff] }
 0x9e7   : > { %24196 = vmatmul.mubr.msk.f32.gmra.mrb[80].mxu1 %vm434_vm0, %v29584_v61  ;;  %v32332_v61 = vld [vmem:[#allocation9_spill] sm:$0xff] }
 0x9e8   : > { %24198 = vmatprep.mubr.msk.f32.mxu1 %vm434_vm0, %v29591_v46  ;;  %v32333_v46 = vld [vmem:[#allocation22_spill] sm:$0xff] }
 0x9eb   : > { %24199 = vmatmul.mubr.msk.f32.gmra.mrb[82].mxu1 %vm434_vm0, %v29596_v36  ;;  %v32334_v36 = vld [vmem:[#allocation24_spill] sm:$0xff] }
 0x9ec   : > { %24201 = vmatprep.mubr.msk.f32.mxu1 %vm434_vm0, %v29603_v23  ;;  %v32335_v23 = vld [vmem:[#allocation25_spill] sm:$0xff] }
 0x9ef   : > { %24202 = vmatmul.mubr.msk.f32.gmra.mrb[84].mxu1 %vm434_vm0, %v29608_v29  ;;  %v32336_v29 = vld [vmem:[#allocation13_spill] sm:$0xff] }
 0x9f0   : > { %24204 = vmatprep.mubr.msk.f32.mxu1 %vm434_vm0, %v29615_v54  ;;  %v32337_v54 = vld [vmem:[#allocation14_spill] sm:$0xff] }
 0x9f3   : > { %24205 = vmatmul.mubr.msk.f32.gmra.mrb[86].mxu1 %vm434_vm0, %v29620_v19  ;;  %v32338_v19 = vld [vmem:[#allocation15_spill] sm:$0xff] }
 0x9f4   : > { %24207 = vmatprep.mubr.msk.f32.mxu1 %vm434_vm0, %v29625_v53  ;;  %v32339_v53 = vld [vmem:[#allocation32_spill] sm:$0xff] }
 0x9f7   : > { %24208 = vmatmul.mubr.msk.f32.gmra.mrb[88].mxu1 %vm434_vm0, %v29630_v40  ;;  %v32340_v40 = vld [vmem:[#allocation10_spill] sm:$0xff] }
 0x9f8   : > { %24210 = vmatprep.mubr.msk.f32.mxu1 %vm434_vm0, %v32303_v30 }
 0x9fb   : > { %24211 = vmatmul.mubr.msk.f32.gmra.mrb[90].mxu1 %vm434_vm0, %v32304_v42 }
 0x9fc   : > { %24213 = vmatprep.mubr.msk.f32.mxu1 %vm434_vm0, %v30035_v28 }
 0x9ff   : > { %24214 = vmatmul.mubr.msk.f32.gmra.mrb[92].mxu1 %vm434_vm0, %v30039_v2 }
 0xa00   : > { %24216 = vmatprep.mubr.msk.f32.mxu1 %vm434_vm0, %v14203_v32 }
 0xa03   : > { %24217 = vmatmul.mubr.msk.f32.gmra.mrb[94].mxu1 %vm434_vm0, %v14204_v9 }
 0xa04   : > { %24221 = vmatprep.mubr.msk.f32.mxu1 %vm434_vm0, %v32307_v37 }
 0xa07   : > { %24222 = vmatmul.mubr.msk.f32.vlgmr.msra.gmra.mrb[64].mxu1 %vm434_vm0, %v32308_v38 }
 0xa08   : > { %24224 = vmatprep.mubr.msk.f32.mxu1 %vm434_vm0, %v32309_v63 }
 0xa0b   : > { %24225 = vmatmul.mubr.msk.f32.gmra.mrb[66].mxu1 %vm434_vm0, %v32310_v5 }
 0xa0c   : > { %24227 = vmatprep.mubr.msk.f32.mxu1 %vm434_vm0, %v32311_v12 }
 0xa0f   : > { %24228 = vmatmul.mubr.msk.f32.gmra.mrb[68].mxu1 %vm434_vm0, %v32331_v58 }
 0xa10   : > { %24230 = vmatprep.mubr.msk.f32.mxu1 %vm434_vm0, %v32332_v61 }
 0xa13   : > { %24231 = vmatmul.mubr.msk.f32.gmra.mrb[70].mxu1 %vm434_vm0, %v32333_v46 }
 0xa14   : > { %24233 = vmatprep.mubr.msk.f32.mxu1 %vm434_vm0, %v32334_v36 }
 0xa17   : > { %24234 = vmatmul.mubr.msk.f32.gmra.mrb[72].mxu1 %vm434_vm0, %v32335_v23 }
 0xa18   : > { %24236 = vmatprep.mubr.msk.f32.mxu1 %vm434_vm0, %v32336_v29 }
 0xa1b   : > { %24237 = vmatmul.mubr.msk.f32.gmra.mrb[74].mxu1 %vm434_vm0, %v32337_v54 }
 0xa1c   : > { %24239 = vmatprep.mubr.msk.f32.mxu1 %vm434_vm0, %v32338_v19 }
 0xa1f   : > { %24240 = vmatmul.mubr.msk.f32.gmra.mrb[76].mxu1 %vm434_vm0, %v32339_v53 }
 0xa20   : > { %24242 = vmatprep.mubr.msk.f32.mxu1 %vm434_vm0, %v32340_v40 }
 0xa23   : > { %24243 = vmatmul.mubr.msk.f32.gmra.mrb[78].mxu1 %vm434_vm0, %v32322_v15 }
 0xa24   : > { %24245 = vmatprep.mubr.msk.f32.mxu1 %vm434_vm0, %v32341_v49 }
 0xa27   : > { %24246 = vmatmul.mubr.msk.f32.gmra.mrb[80].mxu1 %vm434_vm0, %v32324_v57 }
 0xa28   : > { %24248 = vmatprep.mubr.msk.f32.mxu1 %vm434_vm0, %v32325_v56 }
 0xa2b   : > { %24249 = vmatmul.mubr.msk.f32.gmra.mrb[82].mxu1 %vm434_vm0, %v32326_v16 }
 0xa2c   : > { %24251 = vmatprep.mubr.msk.f32.mxu1 %vm434_vm0, %v32342_v34 }
 0xa2f   : > { %24252 = vmatmul.mubr.msk.f32.gmra.mrb[84].mxu1 %vm434_vm0, %v32328_v3 }
 0xa30   : > { %24254 = vmatprep.mubr.msk.f32.mxu1 %vm434_vm0, %v32343_v6 }
 0xa33   : > { %24255 = vmatmul.mubr.msk.f32.gmra.mrb[86].mxu1 %vm434_vm0, %v29880_v13  ;;  %v14590_v13 = vld [vmem:[#allocation4 + $0x1a2] sm:$0xff] }
 0xa34   : > { %24257 = vmatprep.mubr.msk.f32.mxu1 %vm434_vm0, %v32330_v10 }
 0xa37   : > { %24258 = vmatmul.mubr.msk.f32.gmra.mrb[88].mxu1 %vm434_vm0, %v29888_v18 }
 0xa38   : > { %24260 = vmatprep.mubr.msk.f32.mxu1 %vm434_vm0, %v32344_v11 }
 0xa3b   : > { %24261 = vmatmul.mubr.msk.f32.gmra.mrb[90].mxu1 %vm434_vm0, %v29896_v41 }
 0xa3c   : > { %24263 = vmatprep.mubr.msk.f32.mxu1 %vm434_vm0, %v30106_v17 }
 0xa3f   : > { %24264 = vmatmul.mubr.msk.f32.gmra.mrb[92].mxu1 %vm434_vm0, %v30110_v35 }
 0xa40   : > { %24266 = vmatprep.mubr.msk.f32.mxu1 %vm434_vm0, %v14589_v31 }
 0xa43   : > { %24267 = vmatmul.mubr.msk.f32.gmra.mrb[94].mxu1 %vm434_vm0, %v14590_v13 }
 0xada   : > { %v24223_v22 = vpop.f32.mrb[64].mxu1 }
 0xadb   : > { %v14953_v18 = vadd.f32 %v24223_v22, %v30306_v21  ;;  %v14754_v25 = vpop.f32.mrb[65].mxu1 }
 0xadc   : > { %v14952_v41 = vadd.f32 %v30306_v21, %v14754_v25 }
 0xadd   : > { %vm14985_vm15 = vcmp.ge.f32.partialorder %v14953_v18, 0.0  ;;  %v15017_v47 = vmul.f32 0.2, %v14953_v18 }
 0xade   : > { %vm14984_vm1 = vcmp.ge.f32.partialorder %v14952_v41, 0.0  ;;  %v15016_v43 = vmul.f32 0.2, %v14952_v41  ;;  %v24226_v30 = vpop.f32.mrb[66].mxu1 }
 0xadf   : > { %v15049_v42 = vsel %vm14985_vm15, %v14953_v18, %v15017_v47  ;;  %v14955_v28 = vadd.f32 %v24226_v30, %v30306_v21  ;;  %v14764_v2 = vpop.f32.mrb[67].mxu1 }
 0xae0   : > { %15082 = vst.msk [vmem:[#allocation5 + $0x21] sm:$0xff] %vm434_vm0, %v15049_v42  ;;  %v15048_v7 = vsel %vm14984_vm1, %v14952_v41, %v15016_v43  ;;  %v14954_v37 = vadd.f32 %v30306_v21, %v14764_v2 }
 0xae1   : > { %15081 = vst.msk [vmem:[#allocation5 + $0x19] sm:$0xff] %vm434_vm0, %v15048_v7  ;;  %vm14987_vm2 = vcmp.ge.f32.partialorder %v14955_v28, 0.0  ;;  %v15019_v38 = vmul.f32 0.2, %v14955_v28 }
 0xae2   : > { %vm14986_vm4 = vcmp.ge.f32.partialorder %v14954_v37, 0.0  ;;  %v15018_v63 = vmul.f32 0.2, %v14954_v37  ;;  %v24229_v5 = vpop.f32.mrb[68].mxu1 }
 0xae3   : > { %v15051_v12 = vsel %vm14987_vm2, %v14955_v28, %v15019_v38  ;;  %v14957_v3 = vadd.f32 %v24229_v5, %v30306_v21  ;;  %v14774_v35 = vpop.f32.mrb[69].mxu1 }
 0xae4   : > { %15084 = vst.msk [vmem:[#allocation5 + $0x39] sm:$0xff] %vm434_vm0, %v15051_v12  ;;  %v15050_v15 = vsel %vm14986_vm4, %v14954_v37, %v15018_v63  ;;  %v14956_v10 = vadd.f32 %v30306_v21, %v14774_v35 }
 0xae5   : > { %15083 = vst.msk [vmem:[#allocation5 + $0x31] sm:$0xff] %vm434_vm0, %v15050_v15  ;;  %vm14989_vm5 = vcmp.ge.f32.partialorder %v14957_v3, 0.0  ;;  %v15021_v57 = vmul.f32 0.2, %v14957_v3 }
 0xae6   : > { %vm14988_vm6 = vcmp.ge.f32.partialorder %v14956_v10, 0.0  ;;  %v15020_v56 = vmul.f32 0.2, %v14956_v10  ;;  %v24232_v16 = vpop.f32.mrb[70].mxu1 }
 0xae7   : > { %v15053_v17 = vsel %vm14989_vm5, %v14957_v3, %v15021_v57  ;;  %v14959_v20 = vadd.f32 %v24232_v16, %v30306_v21  ;;  %v14784_v26 = vpop.f32.mrb[71].mxu1  ;;  %v30326_v1 = vld [vmem:[#allocation5 + $0x21] sm:$0xff] }
 0xae8   : > { %15086 = vst.msk [vmem:[#allocation5 + $0x51] sm:$0xff] %vm434_vm0, %v15053_v17  ;;  %v15052_v45 = vsel %vm14988_vm6, %v14956_v10, %v15020_v56  ;;  %v14958_v60 = vadd.f32 %v30306_v21, %v14784_v26  ;;  %v30321_v44 = vld [vmem:[#allocation5 + $0x19] sm:$0xff] }
 0xae9   : > { %15085 = vst.msk [vmem:[#allocation5 + $0x49] sm:$0xff] %vm434_vm0, %v15052_v45  ;;  %vm14991_vm7 = vcmp.ge.f32.partialorder %v14959_v20, 0.0  ;;  %v15023_v33 = vmul.f32 0.2, %v14959_v20  ;;  %24274 = vmatprep.mubr.msk.f32.mxu0 %vm434_vm0, %v30321_v44 }
 0xaea   : > { %vm14990_vm9 = vcmp.ge.f32.partialorder %v14958_v60, 0.0  ;;  %v15022_v59 = vmul.f32 0.2, %v14958_v60  ;;  %v24235_v4 = vpop.f32.mrb[72].mxu1  ;;  %24275 = vmatmul.mubr.msk.f32.gmra.mrb[66].mxu0 %vm434_vm0, %v30326_v1 }
 0xaeb   : > { %v15055_v62 = vsel %vm14991_vm7, %v14959_v20, %v15023_v33  ;;  %v14961_v50 = vadd.f32 %v24235_v4, %v30306_v21  ;;  %v14794_v27 = vpop.f32.mrb[73].mxu1  ;;  %v30338_v0 = vld [vmem:[#allocation5 + $0x39] sm:$0xff] }
 0xaec   : > { %15088 = vst.msk [vmem:[#allocation5 + $0x69] sm:$0xff] %vm434_vm0, %v15055_v62  ;;  %v15054_v51 = vsel %vm14990_vm9, %v14958_v60, %v15022_v59  ;;  %v14960_v48 = vadd.f32 %v30306_v21, %v14794_v27  ;;  %v30333_v52 = vld [vmem:[#allocation5 + $0x31] sm:$0xff] }
 0xaed   : > { %15087 = vst.msk [vmem:[#allocation5 + $0x61] sm:$0xff] %vm434_vm0, %v15054_v51  ;;  %vm14993_vm10 = vcmp.ge.f32.partialorder %v14961_v50, 0.0  ;;  %v15025_v14 = vmul.f32 0.2, %v14961_v50  ;;  %24277 = vmatprep.mubr.msk.f32.mxu0 %vm434_vm0, %v30333_v52 }
 0xaee   : > { %vm14992_vm11 = vcmp.ge.f32.partialorder %v14960_v48, 0.0  ;;  %v15024_v32 = vmul.f32 0.2, %v14960_v48  ;;  %v24238_v9 = vpop.f32.mrb[74].mxu1  ;;  %24278 = vmatmul.mubr.msk.f32.gmra.mrb[68].mxu0 %vm434_vm0, %v30338_v0 }
 0xaef   : > { %v15057_v58 = vsel %vm14993_vm10, %v14961_v50, %v15025_v14  ;;  %v14963_v61 = vadd.f32 %v24238_v9, %v30306_v21  ;;  %v14804_v46 = vpop.f32.mrb[75].mxu1  ;;  %v30350_v19 = vld [vmem:[#allocation5 + $0x51] sm:$0xff] }
 0xaf0   : > { %15090 = vst.msk [vmem:[#allocation5 + $0x81] sm:$0xff] %vm434_vm0, %v15057_v58  ;;  %v15056_v36 = vsel %vm14992_vm11, %v14960_v48, %v15024_v32  ;;  %v14962_v23 = vadd.f32 %v30306_v21, %v14804_v46  ;;  %v30345_v29 = vld [vmem:[#allocation5 + $0x49] sm:$0xff] }
 0xaf1   : > { %15089 = vst.msk [vmem:[#allocation5 + $0x79] sm:$0xff] %vm434_vm0, %v15056_v36  ;;  %vm14995_vm12 = vcmp.ge.f32.partialorder %v14963_v61, 0.0  ;;  %v15027_v54 = vmul.f32 0.2, %v14963_v61  ;;  %24280 = vmatprep.mubr.msk.f32.mxu0 %vm434_vm0, %v30345_v29 }
 0xaf2   : > { %vm14994_vm13 = vcmp.ge.f32.partialorder %v14962_v23, 0.0  ;;  %v15026_v53 = vmul.f32 0.2, %v14962_v23  ;;  %v24241_v40 = vpop.f32.mrb[76].mxu1  ;;  %24281 = vmatmul.mubr.msk.f32.gmra.mrb[70].mxu0 %vm434_vm0, %v30350_v19 }
 0xaf3   : > { %v15059_v49 = vsel %vm14995_vm12, %v14963_v61, %v15027_v54  ;;  %v14965_v34 = vadd.f32 %v24241_v40, %v30306_v21  ;;  %v14814_v6 = vpop.f32.mrb[77].mxu1  ;;  %v30362_v24 = vld [vmem:[#allocation5 + $0x69] sm:$0xff] }
 0xaf4   : > { %15092 = vst.msk [vmem:[#allocation5 + $0x99] sm:$0xff] %vm434_vm0, %v15059_v49  ;;  %v15058_v11 = vsel %vm14994_vm13, %v14962_v23, %v15026_v53  ;;  %v14964_v31 = vadd.f32 %v30306_v21, %v14814_v6  ;;  %v30357_v13 = vld [vmem:[#allocation5 + $0x61] sm:$0xff] }
 0xaf5   : > { %15091 = vst.msk [vmem:[#allocation5 + $0x91] sm:$0xff] %vm434_vm0, %v15058_v11  ;;  %vm14997_vm14 = vcmp.ge.f32.partialorder %v14965_v34, 0.0  ;;  %v15029_v39 = vmul.f32 0.2, %v14965_v34  ;;  %24283 = vmatprep.mubr.msk.f32.mxu0 %vm434_vm0, %v30357_v13 }
 0xaf6   : > { %vm14996_vm15 = vcmp.ge.f32.partialorder %v14964_v31, 0.0  ;;  %v15028_v55 = vmul.f32 0.2, %v14964_v31  ;;  %v24244_v22 = vpop.f32.mrb[78].mxu1  ;;  %24284 = vmatmul.mubr.msk.f32.gmra.mrb[72].mxu0 %vm434_vm0, %v30362_v24 }
 0xaf7   : > { %v15061_v18 = vsel %vm14997_vm14, %v14965_v34, %v15029_v39  ;;  %v14967_v25 = vadd.f32 %v24244_v22, %v30306_v21  ;;  %v14824_v41 = vpop.f32.mrb[79].mxu1  ;;  %v30374_v28 = vld [vmem:[#allocation5 + $0x81] sm:$0xff] }
 0xaf8   : > { %15094 = vst.msk [vmem:[#allocation5 + $0xb1] sm:$0xff] %vm434_vm0, %v15061_v18  ;;  %v15060_v47 = vsel %vm14996_vm15, %v14964_v31, %v15028_v55  ;;  %v14966_v43 = vadd.f32 %v30306_v21, %v14824_v41  ;;  %v30369_v30 = vld [vmem:[#allocation5 + $0x79] sm:$0xff] }
 0xaf9   : > { %15093 = vst.msk [vmem:[#allocation5 + $0xa9] sm:$0xff] %vm434_vm0, %v15060_v47  ;;  %vm14999_vm1 = vcmp.ge.f32.partialorder %v14967_v25, 0.0  ;;  %v15031_v42 = vmul.f32 0.2, %v14967_v25  ;;  %24286 = vmatprep.mubr.msk.f32.mxu0 %vm434_vm0, %v30369_v30 }
 0xafa   : > { %vm14998_vm2 = vcmp.ge.f32.partialorder %v14966_v43, 0.0  ;;  %v15030_v2 = vmul.f32 0.2, %v14966_v43  ;;  %v24247_v7 = vpop.f32.mrb[80].mxu1  ;;  %24287 = vmatmul.mubr.msk.f32.gmra.mrb[74].mxu0 %vm434_vm0, %v30374_v28 }
 0xafb   : > { %v15063_v37 = vsel %vm14999_vm1, %v14967_v25, %v15031_v42  ;;  %v14969_v38 = vadd.f32 %v24247_v7, %v30306_v21  ;;  %v14834_v63 = vpop.f32.mrb[81].mxu1  ;;  %v30386_v15 = vld [vmem:[#allocation5 + $0x99] sm:$0xff] }
 0xafc   : > { %15096 = vst.msk [vmem:[#allocation5 + $0xc9] sm:$0xff] %vm434_vm0, %v15063_v37  ;;  %v15062_v5 = vsel %vm14998_vm2, %v14966_v43, %v15030_v2  ;;  %v14968_v12 = vadd.f32 %v30306_v21, %v14834_v63  ;;  %v30381_v3 = vld [vmem:[#allocation5 + $0x91] sm:$0xff] }
 0xafd   : > { %15095 = vst.msk [vmem:[#allocation5 + $0xc1] sm:$0xff] %vm434_vm0, %v15062_v5  ;;  %vm15001_vm4 = vcmp.ge.f32.partialorder %v14969_v38, 0.0  ;;  %v15033_v35 = vmul.f32 0.2, %v14969_v38  ;;  %24289 = vmatprep.mubr.msk.f32.mxu0 %vm434_vm0, %v30381_v3 }
 0xafe   : > { %vm15000_vm5 = vcmp.ge.f32.partialorder %v14968_v12, 0.0  ;;  %v15032_v10 = vmul.f32 0.2, %v14968_v12  ;;  %v24250_v57 = vpop.f32.mrb[82].mxu1  ;;  %24290 = vmatmul.mubr.msk.f32.gmra.mrb[76].mxu0 %vm434_vm0, %v30386_v15 }
 0xaff   : > { %v15065_v56 = vsel %vm15001_vm4, %v14969_v38, %v15033_v35  ;;  %v14971_v16 = vadd.f32 %v24250_v57, %v30306_v21  ;;  %v14844_v17 = vpop.f32.mrb[83].mxu1  ;;  %v30398_v33 = vld [vmem:[#allocation5 + $0xb1] sm:$0xff] }
 0xb00   : > { %15098 = vst.msk [vmem:[#allocation5 + $0xe1] sm:$0xff] %vm434_vm0, %v15065_v56  ;;  %v15064_v20 = vsel %vm15000_vm5, %v14968_v12, %v15032_v10  ;;  %v14970_v26 = vadd.f32 %v30306_v21, %v14844_v17  ;;  %v30393_v45 = vld [vmem:[#allocation5 + $0xa9] sm:$0xff] }
 0xb01   : > { %15097 = vst.msk [vmem:[#allocation5 + $0xd9] sm:$0xff] %vm434_vm0, %v15064_v20  ;;  %vm15003_vm6 = vcmp.ge.f32.partialorder %v14971_v16, 0.0  ;;  %v15035_v60 = vmul.f32 0.2, %v14971_v16  ;;  %24292 = vmatprep.mubr.msk.f32.mxu0 %vm434_vm0, %v30393_v45 }
 0xb02   : > { %vm15002_vm7 = vcmp.ge.f32.partialorder %v14970_v26, 0.0  ;;  %v15034_v59 = vmul.f32 0.2, %v14970_v26  ;;  %v24253_v4 = vpop.f32.mrb[84].mxu1  ;;  %24293 = vmatmul.mubr.msk.f32.gmra.mrb[78].mxu0 %vm434_vm0, %v30398_v33 }
 0xb03   : > { %v15067_v62 = vsel %vm15003_vm6, %v14971_v16, %v15035_v60  ;;  %v14973_v50 = vadd.f32 %v24253_v4, %v30306_v21  ;;  %v14854_v27 = vpop.f32.mrb[85].mxu1  ;;  %v30410_v9 = vld [vmem:[#allocation5 + $0xc9] sm:$0xff] }
 0xb04   : > { %15100 = vst.msk [vmem:[#allocation5 + $0xf9] sm:$0xff] %vm434_vm0, %v15067_v62  ;;  %v15066_v51 = vsel %vm15002_vm7, %v14970_v26, %v15034_v59  ;;  %v14972_v48 = vadd.f32 %v30306_v21, %v14854_v27  ;;  %v30405_v14 = vld [vmem:[#allocation5 + $0xc1] sm:$0xff] }
 0xb05   : > { %15099 = vst.msk [vmem:[#allocation5 + $0xf1] sm:$0xff] %vm434_vm0, %v15066_v51  ;;  %vm15005_vm9 = vcmp.ge.f32.partialorder %v14973_v50, 0.0  ;;  %v15037_v32 = vmul.f32 0.2, %v14973_v50  ;;  %24295 = vmatprep.mubr.msk.f32.mxu0 %vm434_vm0, %v30405_v14 }
 0xb06   : > { %vm15004_vm10 = vcmp.ge.f32.partialorder %v14972_v48, 0.0  ;;  %v15036_v58 = vmul.f32 0.2, %v14972_v48  ;;  %v24256_v61 = vpop.f32.mrb[86].mxu1  ;;  %24296 = vmatmul.mubr.msk.f32.gmra.mrb[80].mxu0 %vm434_vm0, %v30410_v9 }
 0xb07   : > { %v15069_v46 = vsel %vm15005_vm9, %v14973_v50, %v15037_v32  ;;  %v14975_v36 = vadd.f32 %v24256_v61, %v30306_v21  ;;  %v14864_v23 = vpop.f32.mrb[87].mxu1  ;;  %v30422_v34 = vld [vmem:[#allocation5 + $0xe1] sm:$0xff] }
 0xb08   : > { %15102 = vst.msk [vmem:[#allocation5 + $0x111] sm:$0xff] %vm434_vm0, %v15069_v46  ;;  %v15068_v54 = vsel %vm15004_vm10, %v14972_v48, %v15036_v58  ;;  %v14974_v53 = vadd.f32 %v30306_v21, %v14864_v23  ;;  %v30417_v40 = vld [vmem:[#allocation5 + $0xd9] sm:$0xff] }
 0xb09   : > { %15101 = vst.msk [vmem:[#allocation5 + $0x109] sm:$0xff] %vm434_vm0, %v15068_v54  ;;  %vm15007_vm11 = vcmp.ge.f32.partialorder %v14975_v36, 0.0  ;;  %v15039_v49 = vmul.f32 0.2, %v14975_v36  ;;  %24298 = vmatprep.mubr.msk.f32.mxu0 %vm434_vm0, %v30417_v40 }
 0xb0a   : > { %vm15006_vm12 = vcmp.ge.f32.partialorder %v14974_v53, 0.0  ;;  %v15038_v6 = vmul.f32 0.2, %v14974_v53  ;;  %v24259_v11 = vpop.f32.mrb[88].mxu1  ;;  %24299 = vmatmul.mubr.msk.f32.gmra.mrb[82].mxu0 %vm434_vm0, %v30422_v34 }
 0xb0b   : > { %v15071_v31 = vsel %vm15007_vm11, %v14975_v36, %v15039_v49  ;;  %v14977_v39 = vadd.f32 %v24259_v11, %v30306_v21  ;;  %v14874_v55 = vpop.f32.mrb[89].mxu1  ;;  %v30434_v47 = vld [vmem:[#allocation5 + $0xf9] sm:$0xff] }
 0xb0c   : > { %15104 = vst.msk [vmem:[#allocation5 + $0x129] sm:$0xff] %vm434_vm0, %v15071_v31  ;;  %v15070_v22 = vsel %vm15006_vm12, %v14974_v53, %v15038_v6  ;;  %v14976_v18 = vadd.f32 %v30306_v21, %v14874_v55  ;;  %v30429_v25 = vld [vmem:[#allocation5 + $0xf1] sm:$0xff]  ;;  %v15113_v11 = vld [vmem:[#allocation5] sm:$0xff]  ;;  %v30496_v55 = vld [vmem:[%s31789_s10 + $0x18] sm:$0xff] }
 0xb0d   : > { %15103 = vst.msk [vmem:[#allocation5 + $0x121] sm:$0xff] %vm434_vm0, %v15070_v22  ;;  %vm15009_vm13 = vcmp.ge.f32.partialorder %v14977_v39, 0.0  ;;  %v15041_v41 = vmul.f32 0.2, %v14977_v39  ;;  %24301 = vmatprep.mubr.msk.f32.mxu0 %vm434_vm0, %v30429_v25  ;;  %v30499_v22 = vld [vmem:[#allocation5 + $0x18] sm:$0xff] }
 0xb0e   : > { %vm15008_vm14 = vcmp.ge.f32.partialorder %v14976_v18, 0.0  ;;  %v15040_v43 = vmul.f32 0.2, %v14976_v18  ;;  %v24262_v42 = vpop.f32.mrb[90].mxu1  ;;  %24302 = vmatmul.mubr.msk.f32.gmra.mrb[84].mxu0 %vm434_vm0, %v30434_v47 }
 0xb0f   : > { %v15073_v2 = vsel %vm15009_vm13, %v14977_v39, %v15041_v41  ;;  %v14979_v7 = vadd.f32 %v24262_v42, %v30306_v21  ;;  %v14884_v37 = vpop.f32.mrb[91].mxu1  ;;  %v30446_v35 = vld [vmem:[#allocation5 + $0x111] sm:$0xff]  ;;  %v15114_v39 = vld [vmem:[#allocation5 + $0x8] sm:$0xff] }
 0xb10   : > { %15106 = vst.msk [vmem:[#allocation5 + $0x141] sm:$0xff] %vm434_vm0, %v15073_v2  ;;  %v15072_v38 = vsel %vm15008_vm14, %v14976_v18, %v15040_v43  ;;  %v14978_v63 = vadd.f32 %v30306_v21, %v14884_v37  ;;  %v30441_v5 = vld [vmem:[#allocation5 + $0x109] sm:$0xff]  ;;  %v30505_v18 = vld [vmem:[#allocation5 + $0x20] sm:$0xff]  ;;  %v30513_v43 = vld [vmem:[#allocation5 + $0x38] sm:$0xff] }
 0xb11   : > { %15105 = vst.msk [vmem:[#allocation5 + $0x139] sm:$0xff] %vm434_vm0, %v15072_v38  ;;  %vm15011_vm15 = vcmp.ge.f32.partialorder %v14979_v7, 0.0  ;;  %v15043_v12 = vmul.f32 0.2, %v14979_v7  ;;  %24304 = vmatprep.mubr.msk.f32.mxu0 %vm434_vm0, %v30441_v5  ;;  %v30509_v41 = vld [vmem:[#allocation5 + $0x30] sm:$0xff]  ;;  %v30525_v2 = vld [vmem:[#allocation5 + $0x60] sm:$0xff] }
 0xb12   : > { %vm15010_vm1 = vcmp.ge.f32.partialorder %v14978_v63, 0.0  ;;  %v15042_v10 = vmul.f32 0.2, %v14978_v63  ;;  %v24265_v57 = vpop.f32.mrb[92].mxu1  ;;  %24305 = vmatmul.mubr.msk.f32.gmra.mrb[86].mxu0 %vm434_vm0, %v30446_v35  ;;  %v30521_v42 = vld [vmem:[#allocation5 + $0x50] sm:$0xff]  ;;  %v30533_v37 = vld [vmem:[#allocation5 + $0x78] sm:$0xff] }
 0xb13   : > { %v15075_v56 = vsel %vm15011_vm15, %v14979_v7, %v15043_v12  ;;  %v14981_v16 = vadd.f32 %v24265_v57, %v30306_v21  ;;  %v14894_v17 = vpop.f32.mrb[93].mxu1  ;;  %v30458_v4 = vld [vmem:[#allocation5 + $0x129] sm:$0xff]  ;;  %v30537_v38 = vld [vmem:[#allocation5 + $0x80] sm:$0xff]  ;;  %v30545_v12 = vld [vmem:[#allocation5 + $0x98] sm:$0xff] }
 0xb14   : > { %15108 = vst.msk [vmem:[#allocation5 + $0x159] sm:$0xff] %vm434_vm0, %v15075_v56  ;;  %v15074_v20 = vsel %vm15010_vm1, %v14978_v63, %v15042_v10  ;;  %v14980_v26 = vadd.f32 %v30306_v21, %v14894_v17  ;;  %v30453_v60 = vld [vmem:[#allocation5 + $0x121] sm:$0xff]  ;;  %v30541_v63 = vld [vmem:[#allocation5 + $0x90] sm:$0xff]  ;;  %v30565_v17 = vld [vmem:[#allocation5 + $0xd8] sm:$0xff] }
 0xb15   : > { %15107 = vst.msk [vmem:[#allocation5 + $0x151] sm:$0xff] %vm434_vm0, %v15074_v20  ;;  %vm15013_vm2 = vcmp.ge.f32.partialorder %v14981_v16, 0.0  ;;  %v15045_v59 = vmul.f32 0.2, %v14981_v16  ;;  %24307 = vmatprep.mubr.msk.f32.mxu0 %vm434_vm0, %v30453_v60  ;;  %v30529_v7 = vld [vmem:[#allocation5 + $0x68] sm:$0xff]  ;;  %v30553_v57 = vld [vmem:[#allocation5 + $0xb0] sm:$0xff] }
 0xb16   : > { %vm15012_vm4 = vcmp.ge.f32.partialorder %v14980_v26, 0.0  ;;  %v15044_v62 = vmul.f32 0.2, %v14980_v26  ;;  %v24268_v50 = vpop.f32.mrb[94].mxu1  ;;  %24308 = vmatmul.mubr.msk.f32.gmra.mrb[88].mxu0 %vm434_vm0, %v30458_v4  ;;  %v30549_v10 = vld [vmem:[#allocation5 + $0xa8] sm:$0xff]  ;;  %v30557_v56 = vld [vmem:[#allocation5 + $0xc0] sm:$0xff] }
 0xb17   : > { %v15077_v27 = vsel %vm15013_vm2, %v14981_v16, %v15045_v59  ;;  %v14983_v51 = vadd.f32 %v24268_v50, %v30306_v21  ;;  %v14904_v48 = vpop.f32.mrb[95].mxu1  ;;  %v30470_v36 = vld [vmem:[#allocation5 + $0x141] sm:$0xff]  ;;  %v30577_v59 = vld [vmem:[#allocation5 + $0xf8] sm:$0xff]  ;;  %v30585_v50 = vld [vmem:[#allocation5 + $0x110] sm:$0xff] }
 0xb18   : > { %15110 = vst.msk [vmem:[#allocation5 + $0x171] sm:$0xff] %vm434_vm0, %v15077_v27  ;;  %v15076_v32 = vsel %vm15012_vm4, %v14980_v26, %v15044_v62  ;;  %v14982_v58 = vadd.f32 %v30306_v21, %v14904_v48  ;;  %v30465_v61 = vld [vmem:[#allocation5 + $0x139] sm:$0xff]  ;;  %v30561_v16 = vld [vmem:[#allocation5 + $0xc8] sm:$0xff]  ;;  %v30573_v26 = vld [vmem:[#allocation5 + $0xf0] sm:$0xff] }
 0xb19   : > { %15109 = vst.msk [vmem:[#allocation5 + $0x169] sm:$0xff] %vm434_vm0, %v15076_v32  ;;  %vm15015_vm5 = vcmp.ge.f32.partialorder %v14983_v51, 0.0  ;;  %v15047_v46 = vmul.f32 0.2, %v14983_v51  ;;  %24310 = vmatprep.mubr.msk.f32.mxu0 %vm434_vm0, %v30465_v61  ;;  %v30569_v20 = vld [vmem:[#allocation5 + $0xe0] sm:$0xff]  ;;  %v30581_v62 = vld [vmem:[#allocation5 + $0x108] sm:$0xff] }
 0xb1a   : > { %vm15014_vm6 = vcmp.ge.f32.partialorder %v14982_v58, 0.0  ;;  %v15046_v23 = vmul.f32 0.2, %v14982_v58  ;;  %24311 = vmatmul.mubr.msk.f32.gmra.mrb[90].mxu0 %vm434_vm0, %v30470_v36  ;;  %v30589_v27 = vld [vmem:[#allocation5 + $0x120] sm:$0xff]  ;;  %v30597_v48 = vld [vmem:[#allocation5 + $0x138] sm:$0xff] }
 0xb1b   : > { %v15079_v54 = vsel %vm15015_vm5, %v14983_v51, %v15047_v46  ;;  %v30480_v49 = vld [vmem:[#allocation5 + $0x159] sm:$0xff]  ;;  %v30593_v51 = vld [vmem:[#allocation5 + $0x128] sm:$0xff] }
 0xb1c   : > { %15112 = vst.msk [vmem:[#allocation5 + $0x189] sm:$0xff] %vm434_vm0, %v15079_v54  ;;  %v15078_v21 = vsel %vm15014_vm6, %v14982_v58, %v15046_v23  ;;  %v30475_v53 = vld [vmem:[#allocation5 + $0x151] sm:$0xff]  ;;  %v30601_v32 = vld [vmem:[#allocation5 + $0x140] sm:$0xff] }
 0xb1d   : > { %15111 = vst.msk [vmem:[#allocation5 + $0x181] sm:$0xff] %vm434_vm0, %v15078_v21  ;;  %24313 = vmatprep.mubr.msk.f32.mxu0 %vm434_vm0, %v30475_v53  ;;  %v30605_v58 = vld [vmem:[#allocation5 + $0x150] sm:$0xff]  ;;  %v30609_v46 = vld [vmem:[#allocation5 + $0x158] sm:$0xff]  ;;  %v15821_v54 = vld [vmem:[#allocation5 + $0x2] sm:$0xff] }
 0xb1e   : > { %24314 = vmatmul.mubr.msk.f32.gmra.mrb[92].mxu0 %vm434_vm0, %v30480_v49 }
 0xb1f   : > { %v30488_v31 = vld [vmem:[#allocation5 + $0x171] sm:$0xff] }
 0xb20   : > { %v30484_v6 = vld [vmem:[#allocation5 + $0x169] sm:$0xff]  ;;  %32346 = vst [vmem:[#allocation16_spill] sm:$0xff] %v30488_v31 }
 0xb21   : > { %32345 = vst [vmem:[#allocation27_spill] sm:$0xff] %v30484_v6  ;;  %24316 = vmatprep.mubr.msk.f32.mxu0 %vm434_vm0, %v30484_v6  ;;  %v30613_v23 = vld [vmem:[#allocation5 + $0x168] sm:$0xff]  ;;  %v30617_v21 = vld [vmem:[#allocation5 + $0x170] sm:$0xff] }
 0xb22   : > { %24317 = vmatmul.mubr.msk.f32.gmra.mrb[94].mxu0 %vm434_vm0, %v30488_v31  ;;  %v30628_v31 = vld [vmem:[#allocation5 + $0x1a] sm:$0xff]  ;;  %v30634_v6 = vld [vmem:[#allocation5 + $0x22] sm:$0xff] }
 0xb23   : > { %24321 = vmatprep.mubr.msk.f32.mxu0 %vm434_vm0, %v15113_v11  ;;  %v15822_v11 = vld [vmem:[#allocation5 + $0xa] sm:$0xff]  ;;  %32347 = vst [vmem:[#allocation36_spill] sm:$0xff] %v30628_v31  ;;  %32348 = vst [vmem:[#allocation33_spill] sm:$0xff] %v30634_v6 }
 0xb26   : > { %24322 = vmatmul.mubr.msk.f32.vlgmr.msra.gmra.mrb[64].mxu0 %vm434_vm0, %v15114_v39  ;;  %v30625_v39 = vld [vmem:[%s31789_s10 + $0x20] sm:$0xff] }
 0xb27   : > { %24370 = vmatpush3.msra.mxu0 %v30300_v8  ;;  %24324 = vmatprep.mubr.msk.f32.mxu0 %vm434_vm0, %v30499_v22  ;;  %v30517_v8 = vld [vmem:[#allocation5 + $0x48] sm:$0xff] }
 0xb28   : > { %24419 = vmatprep.subr.mxu0 %v30496_v55 }
 0xb2a   : > { %24325 = vmatmul.mubr.msk.f32.gmra.mrb[66].mxu0 %vm434_vm0, %v30505_v18 }
 0xb2b   : > { %24327 = vmatprep.mubr.msk.f32.mxu0 %vm434_vm0, %v30509_v41 }
 0xb2e   : > { %24328 = vmatmul.mubr.msk.f32.gmra.mrb[68].mxu0 %vm434_vm0, %v30513_v43 }
 0xb2f   : > { %24330 = vmatprep.mubr.msk.f32.mxu0 %vm434_vm0, %v30517_v8 }
 0xb32   : > { %24331 = vmatmul.mubr.msk.f32.gmra.mrb[70].mxu0 %vm434_vm0, %v30521_v42 }
 0xb33   : > { %24333 = vmatprep.mubr.msk.f32.mxu0 %vm434_vm0, %v30525_v2 }
 0xb36   : > { %24334 = vmatmul.mubr.msk.f32.gmra.mrb[72].mxu0 %vm434_vm0, %v30529_v7 }
 0xb37   : > { %24336 = vmatprep.mubr.msk.f32.mxu0 %vm434_vm0, %v30533_v37 }
 0xb3a   : > { %24337 = vmatmul.mubr.msk.f32.gmra.mrb[74].mxu0 %vm434_vm0, %v30537_v38 }
 0xb3b   : > { %24339 = vmatprep.mubr.msk.f32.mxu0 %vm434_vm0, %v30541_v63 }
 0xb3e   : > { %24340 = vmatmul.mubr.msk.f32.gmra.mrb[76].mxu0 %vm434_vm0, %v30545_v12 }
 0xb3f   : > { %24342 = vmatprep.mubr.msk.f32.mxu0 %vm434_vm0, %v30549_v10 }
 0xb42   : > { %24343 = vmatmul.mubr.msk.f32.gmra.mrb[78].mxu0 %vm434_vm0, %v30553_v57 }
 0xb43   : > { %24345 = vmatprep.mubr.msk.f32.mxu0 %vm434_vm0, %v30557_v56 }
 0xb46   : > { %24346 = vmatmul.mubr.msk.f32.gmra.mrb[80].mxu0 %vm434_vm0, %v30561_v16 }
 0xb47   : > { %24348 = vmatprep.mubr.msk.f32.mxu0 %vm434_vm0, %v30565_v17 }
 0xb4a   : > { %24349 = vmatmul.mubr.msk.f32.gmra.mrb[82].mxu0 %vm434_vm0, %v30569_v20 }
 0xb4b   : > { %24351 = vmatprep.mubr.msk.f32.mxu0 %vm434_vm0, %v30573_v26 }
 0xb4e   : > { %24352 = vmatmul.mubr.msk.f32.gmra.mrb[84].mxu0 %vm434_vm0, %v30577_v59 }
 0xb4f   : > { %24354 = vmatprep.mubr.msk.f32.mxu0 %vm434_vm0, %v30581_v62 }
 0xb52   : > { %24355 = vmatmul.mubr.msk.f32.gmra.mrb[86].mxu0 %vm434_vm0, %v30585_v50 }
 0xb53   : > { %24357 = vmatprep.mubr.msk.f32.mxu0 %vm434_vm0, %v30589_v27 }
 0xb56   : > { %24358 = vmatmul.mubr.msk.f32.gmra.mrb[88].mxu0 %vm434_vm0, %v30593_v51 }
 0xb57   : > { %24360 = vmatprep.mubr.msk.f32.mxu0 %vm434_vm0, %v30597_v48 }
 0xb5a   : > { %24361 = vmatmul.mubr.msk.f32.gmra.mrb[90].mxu0 %vm434_vm0, %v30601_v32 }
 0xb5b   : > { %24363 = vmatprep.mubr.msk.f32.mxu0 %vm434_vm0, %v30605_v58 }
 0xb5e   : > { %24364 = vmatmul.mubr.msk.f32.gmra.mrb[92].mxu0 %vm434_vm0, %v30609_v46 }
 0xb5f   : > { %24366 = vmatprep.mubr.msk.f32.mxu0 %vm434_vm0, %v30613_v23 }
 0xb62   : > { %24367 = vmatmul.mubr.msk.f32.gmra.mrb[94].mxu0 %vm434_vm0, %v30617_v21 }
 0xb63   : > { %24371 = vmatprep.mubr.msk.f32.mxu0 %vm434_vm0, %v15821_v54  ;;  %v30638_v54 = vld [vmem:[#allocation5 + $0x32] sm:$0xff] }
 0xb64   : > { %32349 = vst [vmem:[#allocation18_spill] sm:$0xff] %v30638_v54 }
 0xb66   : > { %24372 = vmatmul.mubr.msk.f32.vlgmr.msra.gmra.mrb[64].mxu0 %vm434_vm0, %v15822_v11  ;;  %v30642_v11 = vld [vmem:[#allocation5 + $0x3a] sm:$0xff] }
 0xb67   : > { %24420 = vmatpush3.msra.mxu0 %v30496_v55  ;;  %24374 = vmatprep.mubr.msk.f32.mxu0 %vm434_vm0, %v30628_v31  ;;  %32350 = vst [vmem:[#allocation35_spill] sm:$0xff] %v30642_v11  ;;  %v30646_v55 = vld [vmem:[#allocation5 + $0x4a] sm:$0xff]  ;;  %v30650_v31 = vld [vmem:[#allocation5 + $0x52] sm:$0xff] }
 0xb68   : > { %24469 = vmatprep.subr.mxu0 %v30625_v39  ;;  %32351 = vst [vmem:[#allocation6_spill] sm:$0xff] %v30646_v55  ;;  %32352 = vst [vmem:[#allocation19_spill] sm:$0xff] %v30650_v31 }
 0xb6a   : > { %24375 = vmatmul.mubr.msk.f32.gmra.mrb[66].mxu0 %vm434_vm0, %v30634_v6  ;;  %v30654_v6 = vld [vmem:[#allocation5 + $0x62] sm:$0xff] }
 0xb6b   : > { %24377 = vmatprep.mubr.msk.f32.mxu0 %vm434_vm0, %v30638_v54  ;;  %32353 = vst [vmem:[#allocation7_spill] sm:$0xff] %v30654_v6  ;;  %v30658_v54 = vld [vmem:[#allocation5 + $0x6a] sm:$0xff] }
 0xb6c   : > { %32354 = vst [vmem:[#allocation20_spill] sm:$0xff] %v30658_v54 }
 0xb6e   : > { %24378 = vmatmul.mubr.msk.f32.gmra.mrb[68].mxu0 %vm434_vm0, %v30642_v11  ;;  %v30662_v11 = vld [vmem:[#allocation5 + $0x7a] sm:$0xff] }
 0xb6f   : > { %24380 = vmatprep.mubr.msk.f32.mxu0 %vm434_vm0, %v30646_v55  ;;  %32355 = vst [vmem:[#allocation8_spill] sm:$0xff] %v30662_v11  ;;  %v30666_v55 = vld [vmem:[#allocation5 + $0x82] sm:$0xff] }
 0xb70   : > { %32356 = vst [vmem:[#allocation28_spill] sm:$0xff] %v30666_v55 }
 0xb72   : > { %24381 = vmatmul.mubr.msk.f32.gmra.mrb[70].mxu0 %vm434_vm0, %v30650_v31  ;;  %v30670_v31 = vld [vmem:[#allocation5 + $0x92] sm:$0xff] }
 0xb73   : > { %24383 = vmatprep.mubr.msk.f32.mxu0 %vm434_vm0, %v30654_v6  ;;  %32357 = vst [vmem:[#allocation17_spill] sm:$0xff] %v30670_v31  ;;  %v30674_v6 = vld [vmem:[#allocation5 + $0x9a] sm:$0xff] }
 0xb74   : > { %32358 = vst [vmem:[#allocation30_spill] sm:$0xff] %v30674_v6 }
 0xb76   : > { %24384 = vmatmul.mubr.msk.f32.gmra.mrb[72].mxu0 %vm434_vm0, %v30658_v54  ;;  %v30678_v54 = vld [vmem:[#allocation5 + $0xaa] sm:$0xff] }
 0xb77   : > { %24386 = vmatprep.mubr.msk.f32.mxu0 %vm434_vm0, %v30662_v11  ;;  %32359 = vst [vmem:[#allocation34_spill] sm:$0xff] %v30678_v54  ;;  %v30682_v11 = vld [vmem:[#allocation5 + $0xb2] sm:$0xff] }
 0xb78   : > { %32360 = vst [vmem:[#allocation23_spill] sm:$0xff] %v30682_v11 }
 0xb7a   : > { %24387 = vmatmul.mubr.msk.f32.gmra.mrb[74].mxu0 %vm434_vm0, %v30666_v55  ;;  %v30686_v55 = vld [vmem:[#allocation5 + $0xc2] sm:$0xff] }
 0xb7b   : > { %24389 = vmatprep.mubr.msk.f32.mxu0 %vm434_vm0, %v30670_v31  ;;  %32361 = vst [vmem:[#allocation12_spill] sm:$0xff] %v30686_v55  ;;  %v30690_v31 = vld [vmem:[#allocation5 + $0xca] sm:$0xff] }
 0xb7c   : > { %32362 = vst [vmem:[#allocation21_spill] sm:$0xff] %v30690_v31 }
 0xb7e   : > { %24390 = vmatmul.mubr.msk.f32.gmra.mrb[76].mxu0 %vm434_vm0, %v30674_v6  ;;  %v30694_v6 = vld [vmem:[#allocation5 + $0xda] sm:$0xff] }
 0xb7f   : > { %24392 = vmatprep.mubr.msk.f32.mxu0 %vm434_vm0, %v30678_v54  ;;  %32363 = vst [vmem:[#allocation9_spill] sm:$0xff] %v30694_v6  ;;  %v30698_v54 = vld [vmem:[#allocation5 + $0xe2] sm:$0xff] }
 0xb80   : > { %32364 = vst [vmem:[#allocation22_spill] sm:$0xff] %v30698_v54 }
 0xb82   : > { %24393 = vmatmul.mubr.msk.f32.gmra.mrb[78].mxu0 %vm434_vm0, %v30682_v11  ;;  %v30702_v11 = vld [vmem:[#allocation5 + $0xf2] sm:$0xff] }
 0xb83   : > { %24395 = vmatprep.mubr.msk.f32.mxu0 %vm434_vm0, %v30686_v55  ;;  %32365 = vst [vmem:[#allocation24_spill] sm:$0xff] %v30702_v11  ;;  %v30706_v55 = vld [vmem:[#allocation5 + $0xfa] sm:$0xff] }
 0xb84   : > { %32366 = vst [vmem:[#allocation25_spill] sm:$0xff] %v30706_v55 }
 0xb86   : > { %24396 = vmatmul.mubr.msk.f32.gmra.mrb[80].mxu0 %vm434_vm0, %v30690_v31  ;;  %v30710_v31 = vld [vmem:[#allocation5 + $0x10a] sm:$0xff] }
 0xb87   : > { %24398 = vmatprep.mubr.msk.f32.mxu0 %vm434_vm0, %v30694_v6  ;;  %32367 = vst [vmem:[#allocation13_spill] sm:$0xff] %v30710_v31  ;;  %v30714_v6 = vld [vmem:[#allocation5 + $0x112] sm:$0xff] }
 0xb88   : > { %32368 = vst [vmem:[#allocation14_spill] sm:$0xff] %v30714_v6 }
 0xb8a   : > { %24399 = vmatmul.mubr.msk.f32.gmra.mrb[82].mxu0 %vm434_vm0, %v30698_v54  ;;  %v30718_v54 = vld [vmem:[#allocation5 + $0x122] sm:$0xff] }
 0xb8b   : > { %24401 = vmatprep.mubr.msk.f32.mxu0 %vm434_vm0, %v30702_v11  ;;  %32369 = vst [vmem:[#allocation15_spill] sm:$0xff] %v30718_v54  ;;  %v30722_v11 = vld [vmem:[#allocation5 + $0x12a] sm:$0xff] }
 0xb8c   : > { %32370 = vst [vmem:[#allocation32_spill] sm:$0xff] %v30722_v11 }
 0xb8e   : > { %24402 = vmatmul.mubr.msk.f32.gmra.mrb[84].mxu0 %vm434_vm0, %v30706_v55  ;;  %v30726_v55 = vld [vmem:[#allocation5 + $0x13a] sm:$0xff] }
 0xb8f   : > { %24404 = vmatprep.mubr.msk.f32.mxu0 %vm434_vm0, %v30710_v31  ;;  %32371 = vst [vmem:[#allocation10_spill] sm:$0xff] %v30726_v55  ;;  %v30730_v31 = vld [vmem:[#allocation5 + $0x142] sm:$0xff] }
 0xb92   : > { %24405 = vmatmul.mubr.msk.f32.gmra.mrb[86].mxu0 %vm434_vm0, %v30714_v6  ;;  %v30734_v6 = vld [vmem:[#allocation5 + $0x152] sm:$0xff] }
 0xb93   : > { %24407 = vmatprep.mubr.msk.f32.mxu0 %vm434_vm0, %v30718_v54  ;;  %32372 = vst [vmem:[#allocation29_spill] sm:$0xff] %v30734_v6  ;;  %v30738_v54 = vld [vmem:[#allocation5 + $0x15a] sm:$0xff] }
 0xb96   : > { %24408 = vmatmul.mubr.msk.f32.gmra.mrb[88].mxu0 %vm434_vm0, %v30722_v11  ;;  %v30742_v11 = vld [vmem:[#allocation5 + $0x16a] sm:$0xff] }
 0xb97   : > { %24410 = vmatprep.mubr.msk.f32.mxu0 %vm434_vm0, %v30726_v55  ;;  %32373 = vst [vmem:[#allocation31_spill] sm:$0xff] %v30742_v11  ;;  %v30746_v55 = vld [vmem:[#allocation5 + $0x172] sm:$0xff] }
 0xb9a   : > { %24411 = vmatmul.mubr.msk.f32.gmra.mrb[90].mxu0 %vm434_vm0, %v30730_v31 }
 0xb9b   : > { %24413 = vmatprep.mubr.msk.f32.mxu0 %vm434_vm0, %v30734_v6  ;;  %v17011_v6 = vld [vmem:[%s31789_s10 + $0x28] sm:$0xff] }
 0xb9e   : > { %24414 = vmatmul.mubr.msk.f32.gmra.mrb[92].mxu0 %vm434_vm0, %v30738_v54 }
 0xb9f   : > { %24416 = vmatprep.mubr.msk.f32.mxu0 %vm434_vm0, %v30742_v11 }
 0xba2   : > { %24417 = vmatmul.mubr.msk.f32.gmra.mrb[94].mxu0 %vm434_vm0, %v30746_v55 }
 0xba3   : > { %24421 = vmatprep.mubr.msk.f32.mxu0 %vm434_vm0, %v30499_v22  ;;  %v30814_v22 = vld [vmem:[#allocation5 + $0x180] sm:$0xff] }
 0xba6   : > { %24422 = vmatmul.mubr.msk.f32.vlgmr.msra.gmra.mrb[64].mxu0 %vm434_vm0, %v30505_v18  ;;  %v30818_v18 = vld [vmem:[#allocation5 + $0x188] sm:$0xff] }
 0xba7   : > { %24470 = vmatpush3.msra.mxu0 %v30625_v39  ;;  %24424 = vmatprep.mubr.msk.f32.mxu0 %vm434_vm0, %v30509_v41  ;;  %v17398_v39 = vld [vmem:[%s31789_s10 + $0x30] sm:$0xff] }
 0xba8   : > { %24519 = vmatprep.subr.mxu0 %v17011_v6 }
 0xbaa   : > { %24425 = vmatmul.mubr.msk.f32.gmra.mrb[66].mxu0 %vm434_vm0, %v30513_v43 }
 0xbab   : > { %24427 = vmatprep.mubr.msk.f32.mxu0 %vm434_vm0, %v30517_v8 }
 0xbae   : > { %24428 = vmatmul.mubr.msk.f32.gmra.mrb[68].mxu0 %vm434_vm0, %v30521_v42 }
 0xbaf   : > { %24430 = vmatprep.mubr.msk.f32.mxu0 %vm434_vm0, %v30525_v2 }
 0xbb2   : > { %24431 = vmatmul.mubr.msk.f32.gmra.mrb[70].mxu0 %vm434_vm0, %v30529_v7 }
 0xbb3   : > { %24433 = vmatprep.mubr.msk.f32.mxu0 %vm434_vm0, %v30533_v37 }
 0xbb6   : > { %24434 = vmatmul.mubr.msk.f32.gmra.mrb[72].mxu0 %vm434_vm0, %v30537_v38 }
 0xbb7   : > { %24436 = vmatprep.mubr.msk.f32.mxu0 %vm434_vm0, %v30541_v63 }
 0xbba   : > { %24437 = vmatmul.mubr.msk.f32.gmra.mrb[74].mxu0 %vm434_vm0, %v30545_v12 }
 0xbbb   : > { %24439 = vmatprep.mubr.msk.f32.mxu0 %vm434_vm0, %v30549_v10 }
 0xbbe   : > { %24440 = vmatmul.mubr.msk.f32.gmra.mrb[76].mxu0 %vm434_vm0, %v30553_v57 }
 0xbbf   : > { %24442 = vmatprep.mubr.msk.f32.mxu0 %vm434_vm0, %v30557_v56 }
 0xbc2   : > { %24443 = vmatmul.mubr.msk.f32.gmra.mrb[78].mxu0 %vm434_vm0, %v30561_v16 }
 0xbc3   : > { %24445 = vmatprep.mubr.msk.f32.mxu0 %vm434_vm0, %v30565_v17 }
 0xbc6   : > { %24446 = vmatmul.mubr.msk.f32.gmra.mrb[80].mxu0 %vm434_vm0, %v30569_v20 }
 0xbc7   : > { %24448 = vmatprep.mubr.msk.f32.mxu0 %vm434_vm0, %v30573_v26 }
 0xbca   : > { %24449 = vmatmul.mubr.msk.f32.gmra.mrb[82].mxu0 %vm434_vm0, %v30577_v59 }
 0xbcb   : > { %24451 = vmatprep.mubr.msk.f32.mxu0 %vm434_vm0, %v30581_v62 }
 0xbce   : > { %24452 = vmatmul.mubr.msk.f32.gmra.mrb[84].mxu0 %vm434_vm0, %v30585_v50 }
 0xbcf   : > { %24454 = vmatprep.mubr.msk.f32.mxu0 %vm434_vm0, %v30589_v27 }
 0xbd2   : > { %24455 = vmatmul.mubr.msk.f32.gmra.mrb[86].mxu0 %vm434_vm0, %v30593_v51 }
 0xbd3   : > { %24457 = vmatprep.mubr.msk.f32.mxu0 %vm434_vm0, %v30597_v48 }
 0xbd6   : > { %24458 = vmatmul.mubr.msk.f32.gmra.mrb[88].mxu0 %vm434_vm0, %v30601_v32 }
 0xbd7   : > { %24460 = vmatprep.mubr.msk.f32.mxu0 %vm434_vm0, %v30605_v58 }
 0xbda   : > { %24461 = vmatmul.mubr.msk.f32.gmra.mrb[90].mxu0 %vm434_vm0, %v30609_v46 }
 0xbdb   : > { %24463 = vmatprep.mubr.msk.f32.mxu0 %vm434_vm0, %v30613_v23 }
 0xbde   : > { %24464 = vmatmul.mubr.msk.f32.gmra.mrb[92].mxu0 %vm434_vm0, %v30617_v21 }
 0xbdf   : > { %24466 = vmatprep.mubr.msk.f32.mxu0 %vm434_vm0, %v30814_v22 }
 0xbe2   : > { %24467 = vmatmul.mubr.msk.f32.gmra.mrb[94].mxu0 %vm434_vm0, %v30818_v18 }
 0xbe3   : > { %24471 = vmatprep.mubr.msk.f32.mxu0 %vm434_vm0, %v30321_v44  ;;  %v32374_v44 = vld [vmem:[#allocation27_spill] sm:$0xff] }
 0xbe6   : > { %24472 = vmatmul.mubr.msk.f32.vlgmr.msra.gmra.mrb[64].mxu0 %vm434_vm0, %v30326_v1  ;;  %v32375_v1 = vld [vmem:[#allocation16_spill] sm:$0xff] }
 0xbe7   : > { %24520 = vmatpush3.msra.mxu0 %v17011_v6  ;;  %24474 = vmatprep.mubr.msk.f32.mxu0 %vm434_vm0, %v30333_v52  ;;  %v30885_v52 = vld [vmem:[#allocation5 + $0x181] sm:$0xff]  ;;  %v32387_v6 = vld [vmem:[#allocation30_spill] sm:$0xff] }
 0xbe8   : > { %24569 = vmatprep.subr.mxu0 %v17398_v39 }
 0xbea   : > { %24475 = vmatmul.mubr.msk.f32.gmra.mrb[66].mxu0 %vm434_vm0, %v30338_v0  ;;  %v30889_v0 = vld [vmem:[#allocation5 + $0x189] sm:$0xff] }
 0xbeb   : > { %24477 = vmatprep.mubr.msk.f32.mxu0 %vm434_vm0, %v30345_v29  ;;  %v32376_v29 = vld [vmem:[#allocation36_spill] sm:$0xff] }
 0xbee   : > { %24478 = vmatmul.mubr.msk.f32.gmra.mrb[68].mxu0 %vm434_vm0, %v30350_v19  ;;  %v17784_v19 = vld [vmem:[%s31789_s10 + $0x38] sm:$0xff] }
 0xbef   : > { %24480 = vmatprep.mubr.msk.f32.mxu0 %vm434_vm0, %v30357_v13  ;;  %v32377_v13 = vld [vmem:[#allocation33_spill] sm:$0xff] }
 0xbf2   : > { %24481 = vmatmul.mubr.msk.f32.gmra.mrb[70].mxu0 %vm434_vm0, %v30362_v24  ;;  %v32378_v24 = vld [vmem:[#allocation18_spill] sm:$0xff] }
 0xbf3   : > { %24483 = vmatprep.mubr.msk.f32.mxu0 %vm434_vm0, %v30369_v30  ;;  %v32379_v30 = vld [vmem:[#allocation35_spill] sm:$0xff] }
 0xbf6   : > { %24484 = vmatmul.mubr.msk.f32.gmra.mrb[72].mxu0 %vm434_vm0, %v30374_v28  ;;  %v32380_v28 = vld [vmem:[#allocation6_spill] sm:$0xff] }
 0xbf7   : > { %24486 = vmatprep.mubr.msk.f32.mxu0 %vm434_vm0, %v30381_v3  ;;  %v32381_v3 = vld [vmem:[#allocation19_spill] sm:$0xff] }
 0xbfa   : > { %24487 = vmatmul.mubr.msk.f32.gmra.mrb[74].mxu0 %vm434_vm0, %v30386_v15  ;;  %v32382_v15 = vld [vmem:[#allocation7_spill] sm:$0xff] }
 0xbfb   : > { %24489 = vmatprep.mubr.msk.f32.mxu0 %vm434_vm0, %v30393_v45  ;;  %v32383_v45 = vld [vmem:[#allocation20_spill] sm:$0xff] }
 0xbfe   : > { %24490 = vmatmul.mubr.msk.f32.gmra.mrb[76].mxu0 %vm434_vm0, %v30398_v33  ;;  %v32384_v33 = vld [vmem:[#allocation8_spill] sm:$0xff] }
 0xbff   : > { %24492 = vmatprep.mubr.msk.f32.mxu0 %vm434_vm0, %v30405_v14  ;;  %v32385_v14 = vld [vmem:[#allocation28_spill] sm:$0xff] }
 0xc02   : > { %24493 = vmatmul.mubr.msk.f32.gmra.mrb[78].mxu0 %vm434_vm0, %v30410_v9  ;;  %v32386_v9 = vld [vmem:[#allocation17_spill] sm:$0xff] }
 0xc03   : > { %24495 = vmatprep.mubr.msk.f32.mxu0 %vm434_vm0, %v30417_v40 }
 0xc06   : > { %24496 = vmatmul.mubr.msk.f32.gmra.mrb[80].mxu0 %vm434_vm0, %v30422_v34 }
 0xc07   : > { %24498 = vmatprep.mubr.msk.f32.mxu0 %vm434_vm0, %v30429_v25 }
 0xc0a   : > { %24499 = vmatmul.mubr.msk.f32.gmra.mrb[82].mxu0 %vm434_vm0, %v30434_v47 }
 0xc0b   : > { %24501 = vmatprep.mubr.msk.f32.mxu0 %vm434_vm0, %v30441_v5 }
 0xc0e   : > { %24502 = vmatmul.mubr.msk.f32.gmra.mrb[84].mxu0 %vm434_vm0, %v30446_v35 }
 0xc0f   : > { %24504 = vmatprep.mubr.msk.f32.mxu0 %vm434_vm0, %v30453_v60 }
 0xc12   : > { %24505 = vmatmul.mubr.msk.f32.gmra.mrb[86].mxu0 %vm434_vm0, %v30458_v4 }
 0xc13   : > { %24507 = vmatprep.mubr.msk.f32.mxu0 %vm434_vm0, %v30465_v61 }
 0xc16   : > { %24508 = vmatmul.mubr.msk.f32.gmra.mrb[88].mxu0 %vm434_vm0, %v30470_v36 }
 0xc17   : > { %24510 = vmatprep.mubr.msk.f32.mxu0 %vm434_vm0, %v30475_v53 }
 0xc1a   : > { %24511 = vmatmul.mubr.msk.f32.gmra.mrb[90].mxu0 %vm434_vm0, %v30480_v49 }
 0xc1b   : > { %24513 = vmatprep.mubr.msk.f32.mxu0 %vm434_vm0, %v32374_v44 }
 0xc1e   : > { %24514 = vmatmul.mubr.msk.f32.gmra.mrb[92].mxu0 %vm434_vm0, %v32375_v1 }
 0xc1f   : > { %24516 = vmatprep.mubr.msk.f32.mxu0 %vm434_vm0, %v30885_v52 }
 0xc22   : > { %24517 = vmatmul.mubr.msk.f32.gmra.mrb[94].mxu0 %vm434_vm0, %v30889_v0 }
 0xc23   : > { %24521 = vmatprep.mubr.msk.f32.mxu0 %vm434_vm0, %v32376_v29  ;;  %v32389_v29 = vld [vmem:[#allocation23_spill] sm:$0xff] }
 0xc26   : > { %24522 = vmatmul.mubr.msk.f32.vlgmr.msra.gmra.mrb[64].mxu0 %vm434_vm0, %v32377_v13  ;;  %v32390_v13 = vld [vmem:[#allocation12_spill] sm:$0xff] }
 0xc27   : > { %24570 = vmatpush3.msra.mxu0 %v17398_v39  ;;  %24524 = vmatprep.mubr.msk.f32.mxu0 %vm434_vm0, %v32378_v24  ;;  %v32388_v39 = vld [vmem:[#allocation34_spill] sm:$0xff] }
 0xc28   : > { %24619 = vmatprep.subr.mxu0 %v17784_v19 }
 0xc2a   : > { %24525 = vmatmul.mubr.msk.f32.gmra.mrb[66].mxu0 %vm434_vm0, %v32379_v30 }
 0xc2b   : > { %24527 = vmatprep.mubr.msk.f32.mxu0 %vm434_vm0, %v32380_v28 }
 0xc2e   : > { %24528 = vmatmul.mubr.msk.f32.gmra.mrb[68].mxu0 %vm434_vm0, %v32381_v3 }
 0xc2f   : > { %24530 = vmatprep.mubr.msk.f32.mxu0 %vm434_vm0, %v32382_v15 }
 0xc32   : > { %24531 = vmatmul.mubr.msk.f32.gmra.mrb[70].mxu0 %vm434_vm0, %v32383_v45  ;;  %v32391_v45 = vld [vmem:[#allocation21_spill] sm:$0xff] }
 0xc33   : > { %24533 = vmatprep.mubr.msk.f32.mxu0 %vm434_vm0, %v32384_v33  ;;  %v32392_v33 = vld [vmem:[#allocation9_spill] sm:$0xff] }
 0xc36   : > { %24534 = vmatmul.mubr.msk.f32.gmra.mrb[72].mxu0 %vm434_vm0, %v32385_v14  ;;  %v32393_v14 = vld [vmem:[#allocation22_spill] sm:$0xff] }
 0xc37   : > { %24536 = vmatprep.mubr.msk.f32.mxu0 %vm434_vm0, %v32386_v9  ;;  %v32394_v9 = vld [vmem:[#allocation24_spill] sm:$0xff] }
 0xc3a   : > { %24537 = vmatmul.mubr.msk.f32.gmra.mrb[74].mxu0 %vm434_vm0, %v32387_v6  ;;  %v32395_v6 = vld [vmem:[#allocation25_spill] sm:$0xff] }
 0xc3b   : > { %24539 = vmatprep.mubr.msk.f32.mxu0 %vm434_vm0, %v32388_v39  ;;  %v32396_v39 = vld [vmem:[#allocation13_spill] sm:$0xff] }
 0xc3e   : > { %24540 = vmatmul.mubr.msk.f32.gmra.mrb[76].mxu0 %vm434_vm0, %v32389_v29  ;;  %v32397_v29 = vld [vmem:[#allocation14_spill] sm:$0xff] }
 0xc3f   : > { %24542 = vmatprep.mubr.msk.f32.mxu0 %vm434_vm0, %v32390_v13  ;;  %v32398_v13 = vld [vmem:[#allocation15_spill] sm:$0xff] }
 0xc42   : > { %24543 = vmatmul.mubr.msk.f32.gmra.mrb[78].mxu0 %vm434_vm0, %v32391_v45  ;;  %v32399_v45 = vld [vmem:[#allocation32_spill] sm:$0xff] }
 0xc43   : > { %24545 = vmatprep.mubr.msk.f32.mxu0 %vm434_vm0, %v32392_v33  ;;  %v32400_v33 = vld [vmem:[#allocation10_spill] sm:$0xff] }
 0xc46   : > { %24546 = vmatmul.mubr.msk.f32.gmra.mrb[80].mxu0 %vm434_vm0, %v32393_v14 }
 0xc47   : > { %24548 = vmatprep.mubr.msk.f32.mxu0 %vm434_vm0, %v32394_v9  ;;  %v32401_v9 = vld [vmem:[#allocation29_spill] sm:$0xff] }
 0xc4a   : > { %24549 = vmatmul.mubr.msk.f32.gmra.mrb[82].mxu0 %vm434_vm0, %v32395_v6 }
 0xc4b   : > { %24551 = vmatprep.mubr.msk.f32.mxu0 %vm434_vm0, %v32396_v39 }
 0xc4e   : > { %24552 = vmatmul.mubr.msk.f32.gmra.mrb[84].mxu0 %vm434_vm0, %v32397_v29 }
 0xc4f   : > { %24554 = vmatprep.mubr.msk.f32.mxu0 %vm434_vm0, %v32398_v13  ;;  %v30956_v13 = vld [vmem:[#allocation5 + $0x182] sm:$0xff] }
 0xc52   : > { %24555 = vmatmul.mubr.msk.f32.gmra.mrb[86].mxu0 %vm434_vm0, %v32399_v45 }
 0xc53   : > { %24557 = vmatprep.mubr.msk.f32.mxu0 %vm434_vm0, %v32400_v33  ;;  %v30960_v33 = vld [vmem:[#allocation5 + $0x18a] sm:$0xff] }
 0xc56   : > { %24558 = vmatmul.mubr.msk.f32.gmra.mrb[88].mxu0 %vm434_vm0, %v30730_v31 }
 0xc57   : > { %24560 = vmatprep.mubr.msk.f32.mxu0 %vm434_vm0, %v32401_v9 }
 0xc5a   : > { %24561 = vmatmul.mubr.msk.f32.gmra.mrb[90].mxu0 %vm434_vm0, %v30738_v54 }
 0xc5b   : > { %24563 = vmatprep.mubr.msk.f32.mxu0 %vm434_vm0, %v30742_v11  ;;  %v18170_v11 = vld [vmem:[%s31789_s10 + $0x40] sm:$0xff] }
 0xc5e   : > { %24564 = vmatmul.mubr.msk.f32.gmra.mrb[92].mxu0 %vm434_vm0, %v30746_v55 }
 0xc5f   : > { %24566 = vmatprep.mubr.msk.f32.mxu0 %vm434_vm0, %v30956_v13 }
 0xc62   : > { %24567 = vmatmul.mubr.msk.f32.gmra.mrb[94].mxu0 %vm434_vm0, %v30960_v33 }
 0xc63   : > { %24571 = vmatprep.mubr.msk.f32.mxu0 %vm434_vm0, %v30509_v41  ;;  %v17396_v41 = vld [vmem:[#allocation5 + $0x198] sm:$0xff] }
 0xc66   : > { %24572 = vmatmul.mubr.msk.f32.vlgmr.msra.gmra.mrb[64].mxu0 %vm434_vm0, %v30513_v43  ;;  %v17397_v43 = vld [vmem:[#allocation5 + $0x1a0] sm:$0xff] }
 0xc67   : > { %24620 = vmatpush3.msra.mxu0 %v17784_v19  ;;  %24574 = vmatprep.mubr.msk.f32.mxu0 %vm434_vm0, %v30517_v8  ;;  %v17752_v8 = vld [vmem:[#allocation5 + $0x31] sm:$0xff] }
 0xc68   : > { %24669 = vmatprep.subr.mxu0 %v18170_v11  ;;  %v31116_v19 = vld [vmem:[%s28451_s23 + $0xc1] sm:$0xff] }
 0xc6a   : > { %24575 = vmatmul.mubr.msk.f32.gmra.mrb[66].mxu0 %vm434_vm0, %v30521_v42  ;;  %v31030_v42 = vld [vmem:[%s28451_s23 + $0x21] sm:$0xff] }
 0xc6b   : > { %24577 = vmatprep.mubr.msk.f32.mxu0 %vm434_vm0, %v30525_v2  ;;  %v31033_v2 = vld [vmem:[%s28451_s23 + $0x19] sm:$0xff]  ;;  %19110 = vrot.lane.b32.xlu1 %v31030_v42, %s26150_s27 }
 0xc6c   : > { %19108 = vrot.lane.b32.xlu0 %v31033_v2, %s26150_s27 }
 0xc6e   : > { %24578 = vmatmul.mubr.msk.f32.gmra.mrb[68].mxu0 %vm434_vm0, %v30529_v7  ;;  %v17753_v7 = vld [vmem:[#allocation5 + $0x39] sm:$0xff] }
 0xc6f   : > { %24580 = vmatprep.mubr.msk.f32.mxu0 %vm434_vm0, %v30533_v37  ;;  %v31041_v37 = vld [vmem:[%s28451_s23 + $0x39] sm:$0xff] }
 0xc70   : > { %19114 = vrot.lane.b32.xlu1 %v31041_v37, %s26150_s27 }
 0xc72   : > { %24581 = vmatmul.mubr.msk.f32.gmra.mrb[70].mxu0 %vm434_vm0, %v30537_v38  ;;  %v31044_v38 = vld [vmem:[%s28451_s23 + $0x31] sm:$0xff] }
 0xc73   : > { %24583 = vmatprep.mubr.msk.f32.mxu0 %vm434_vm0, %v30541_v63  ;;  %v17754_v63 = vld [vmem:[#allocation5 + $0x49] sm:$0xff]  ;;  %19112 = vrot.lane.b32.xlu0 %v31044_v38, %s26150_s27 }
 0xc76   : > { %24584 = vmatmul.mubr.msk.f32.gmra.mrb[72].mxu0 %vm434_vm0, %v30545_v12  ;;  %v17755_v12 = vld [vmem:[#allocation5 + $0x51] sm:$0xff] }
 0xc77   : > { %24586 = vmatprep.mubr.msk.f32.mxu0 %vm434_vm0, %v30549_v10  ;;  %v31053_v10 = vld [vmem:[%s28451_s23 + $0x51] sm:$0xff] }
 0xc78   : > { %19118 = vrot.lane.b32.xlu1 %v31053_v10, %s26150_s27 }
 0xc7a   : > { %24587 = vmatmul.mubr.msk.f32.gmra.mrb[74].mxu0 %vm434_vm0, %v30553_v57  ;;  %v31056_v57 = vld [vmem:[%s28451_s23 + $0x49] sm:$0xff] }
 0xc7b   : > { %24589 = vmatprep.mubr.msk.f32.mxu0 %vm434_vm0, %v30557_v56  ;;  %v17756_v56 = vld [vmem:[#allocation5 + $0x61] sm:$0xff]  ;;  %19116 = vrot.lane.b32.xlu0 %v31056_v57, %s26150_s27 }
 0xc7e   : > { %24590 = vmatmul.mubr.msk.f32.gmra.mrb[76].mxu0 %vm434_vm0, %v30561_v16  ;;  %v17757_v16 = vld [vmem:[#allocation5 + $0x69] sm:$0xff] }
 0xc7f   : > { %24592 = vmatprep.mubr.msk.f32.mxu0 %vm434_vm0, %v30565_v17  ;;  %v31065_v17 = vld [vmem:[%s28451_s23 + $0x69] sm:$0xff] }
 0xc80   : > { %19122 = vrot.lane.b32.xlu1 %v31065_v17, %s26150_s27 }
 0xc82   : > { %24593 = vmatmul.mubr.msk.f32.gmra.mrb[78].mxu0 %vm434_vm0, %v30569_v20  ;;  %v31068_v20 = vld [vmem:[%s28451_s23 + $0x61] sm:$0xff] }
 0xc83   : > { %24595 = vmatprep.mubr.msk.f32.mxu0 %vm434_vm0, %v30573_v26  ;;  %v17758_v26 = vld [vmem:[#allocation5 + $0x79] sm:$0xff]  ;;  %19120 = vrot.lane.b32.xlu0 %v31068_v20, %s26150_s27 }
 0xc86   : > { %24596 = vmatmul.mubr.msk.f32.gmra.mrb[80].mxu0 %vm434_vm0, %v30577_v59  ;;  %v17759_v59 = vld [vmem:[#allocation5 + $0x81] sm:$0xff] }
 0xc87   : > { %24598 = vmatprep.mubr.msk.f32.mxu0 %vm434_vm0, %v30581_v62  ;;  %v31077_v62 = vld [vmem:[%s28451_s23 + $0x81] sm:$0xff] }
 0xc88   : > { %19126 = vrot.lane.b32.xlu1 %v31077_v62, %s26150_s27 }
 0xc8a   : > { %24599 = vmatmul.mubr.msk.f32.gmra.mrb[82].mxu0 %vm434_vm0, %v30585_v50  ;;  %v31080_v50 = vld [vmem:[%s28451_s23 + $0x79] sm:$0xff] }
 0xc8b   : > { %24601 = vmatprep.mubr.msk.f32.mxu0 %vm434_vm0, %v30589_v27  ;;  %v17760_v27 = vld [vmem:[#allocation5 + $0x91] sm:$0xff]  ;;  %19124 = vrot.lane.b32.xlu0 %v31080_v50, %s26150_s27 }
 0xc8e   : > { %24602 = vmatmul.mubr.msk.f32.gmra.mrb[84].mxu0 %vm434_vm0, %v30593_v51  ;;  %v17761_v51 = vld [vmem:[#allocation5 + $0x99] sm:$0xff] }
 0xc8f   : > { %24604 = vmatprep.mubr.msk.f32.mxu0 %vm434_vm0, %v30597_v48  ;;  %v31089_v48 = vld [vmem:[%s28451_s23 + $0x99] sm:$0xff] }
 0xc90   : > { %19130 = vrot.lane.b32.xlu1 %v31089_v48, %s26150_s27 }
 0xc92   : > { %24605 = vmatmul.mubr.msk.f32.gmra.mrb[86].mxu0 %vm434_vm0, %v30601_v32  ;;  %v31092_v32 = vld [vmem:[%s28451_s23 + $0x91] sm:$0xff] }
 0xc93   : > { %24607 = vmatprep.mubr.msk.f32.mxu0 %vm434_vm0, %v30605_v58  ;;  %v17762_v58 = vld [vmem:[#allocation5 + $0xa9] sm:$0xff]  ;;  %19128 = vrot.lane.b32.xlu0 %v31092_v32, %s26150_s27 }
 0xc96   : > { %24608 = vmatmul.mubr.msk.f32.gmra.mrb[88].mxu0 %vm434_vm0, %v30609_v46  ;;  %v17763_v46 = vld [vmem:[#allocation5 + $0xb1] sm:$0xff] }
 0xc97   : > { %24610 = vmatprep.mubr.msk.f32.mxu0 %vm434_vm0, %v30613_v23  ;;  %v31101_v23 = vld [vmem:[%s28451_s23 + $0xb1] sm:$0xff] }
 0xc98   : > { %19134 = vrot.lane.b32.xlu1 %v31101_v23, %s26150_s27 }
 0xc9a   : > { %24611 = vmatmul.mubr.msk.f32.gmra.mrb[90].mxu0 %vm434_vm0, %v30617_v21  ;;  %v31104_v21 = vld [vmem:[%s28451_s23 + $0xa9] sm:$0xff] }
 0xc9b   : > { %24613 = vmatprep.mubr.msk.f32.mxu0 %vm434_vm0, %v30814_v22  ;;  %19132 = vrot.lane.b32.xlu0 %v31104_v21, %s26150_s27  ;;  %v17765_v22 = vld [vmem:[#allocation5 + $0xc9] sm:$0xff] }
 0xc9e   : > { %24614 = vmatmul.mubr.msk.f32.gmra.mrb[92].mxu0 %vm434_vm0, %v30818_v18  ;;  %v31113_v18 = vld [vmem:[%s28451_s23 + $0xc9] sm:$0xff] }
 0xc9f   : > { %24616 = vmatprep.mubr.msk.f32.mxu0 %vm434_vm0, %v17396_v41  ;;  %19138 = vrot.lane.b32.xlu1 %v31113_v18, %s26150_s27  ;;  %v31292_v41 = vld [vmem:[%s31790_s11] ss:$0 sm:$0xff] }
 0xca0   : > { %19136 = vrot.lane.b32.xlu0 %v31116_v19, %s26150_s27 }
 0xca2   : > { %24617 = vmatmul.mubr.msk.f32.gmra.mrb[94].mxu0 %vm434_vm0, %v17397_v43 }
 0xca3   : > { %24621 = vmatprep.mubr.msk.f32.mxu0 %vm434_vm0, %v17752_v8 }
 0xca6   : > { %24622 = vmatmul.mubr.msk.f32.vlgmr.msra.gmra.mrb[64].mxu0 %vm434_vm0, %v17753_v7 }
 0xca7   : > { %24670 = vmatpush3.msra.mxu0 %v18170_v11  ;;  %24624 = vmatprep.mubr.msk.f32.mxu0 %vm434_vm0, %v17754_v63  ;;  %v17764_v11 = vld [vmem:[#allocation5 + $0xc1] sm:$0xff] }
 0xcaa   : > { %24625 = vmatmul.mubr.msk.f32.gmra.mrb[66].mxu0 %vm434_vm0, %v17755_v12 }
 0xcab   : > { %24627 = vmatprep.mubr.msk.f32.mxu0 %vm434_vm0, %v17756_v56 }
 0xcae   : > { %24628 = vmatmul.mubr.msk.f32.gmra.mrb[68].mxu0 %vm434_vm0, %v17757_v16 }
 0xcaf   : > { %24630 = vmatprep.mubr.msk.f32.mxu0 %vm434_vm0, %v17758_v26 }
 0xcb2   : > { %24631 = vmatmul.mubr.msk.f32.gmra.mrb[70].mxu0 %vm434_vm0, %v17759_v59 }
 0xcb3   : > { %24633 = vmatprep.mubr.msk.f32.mxu0 %vm434_vm0, %v17760_v27 }
 0xcb6   : > { %24634 = vmatmul.mubr.msk.f32.gmra.mrb[72].mxu0 %vm434_vm0, %v17761_v51 }
 0xcb7   : > { %24636 = vmatprep.mubr.msk.f32.mxu0 %vm434_vm0, %v17762_v58 }
 0xcba   : > { %24637 = vmatmul.mubr.msk.f32.gmra.mrb[74].mxu0 %vm434_vm0, %v17763_v46 }
 0xcbb   : > { %24639 = vmatprep.mubr.msk.f32.mxu0 %vm434_vm0, %v17764_v11 }
 0xcbe   : > { %24640 = vmatmul.mubr.msk.f32.gmra.mrb[76].mxu0 %vm434_vm0, %v17765_v22 }
 0xcbf   : > { %24642 = vmatprep.mubr.msk.f32.mxu0 %vm434_vm0, %v30417_v40  ;;  %v17782_v40 = vld [vmem:[#allocation5 + $0x199] sm:$0xff] }
 0xcc2   : > { %24643 = vmatmul.mubr.msk.f32.gmra.mrb[78].mxu0 %vm434_vm0, %v30422_v34  ;;  %v17783_v34 = vld [vmem:[#allocation5 + $0x1a1] sm:$0xff] }
 0xcc3   : > { %24645 = vmatprep.mubr.msk.f32.mxu0 %vm434_vm0, %v30429_v25  ;;  %v32402_v25 = vld [vmem:[#allocation20_spill] sm:$0xff] }
 0xcc6   : > { %24646 = vmatmul.mubr.msk.f32.gmra.mrb[80].mxu0 %vm434_vm0, %v30434_v47  ;;  %v32403_v47 = vld [vmem:[#allocation8_spill] sm:$0xff] }
 0xcc7   : > { %24648 = vmatprep.mubr.msk.f32.mxu0 %vm434_vm0, %v30441_v5  ;;  %v32404_v5 = vld [vmem:[#allocation28_spill] sm:$0xff] }
 0xcca   : > { %24649 = vmatmul.mubr.msk.f32.gmra.mrb[82].mxu0 %vm434_vm0, %v30446_v35  ;;  %v32405_v35 = vld [vmem:[#allocation17_spill] sm:$0xff] }
 0xccb   : > { %24651 = vmatprep.mubr.msk.f32.mxu0 %vm434_vm0, %v30453_v60  ;;  %v32406_v60 = vld [vmem:[#allocation30_spill] sm:$0xff] }
 0xcce   : > { %24652 = vmatmul.mubr.msk.f32.gmra.mrb[84].mxu0 %vm434_vm0, %v30458_v4  ;;  %v32407_v4 = vld [vmem:[#allocation34_spill] sm:$0xff] }
 0xccf   : > { %24654 = vmatprep.mubr.msk.f32.mxu0 %vm434_vm0, %v30465_v61  ;;  %v32408_v61 = vld [vmem:[#allocation23_spill] sm:$0xff] }
 0xcd2   : > { %24655 = vmatmul.mubr.msk.f32.gmra.mrb[86].mxu0 %vm434_vm0, %v30470_v36  ;;  %v32409_v36 = vld [vmem:[#allocation12_spill] sm:$0xff] }
 0xcd3   : > { %24657 = vmatprep.mubr.msk.f32.mxu0 %vm434_vm0, %v30475_v53  ;;  %v32410_v53 = vld [vmem:[#allocation21_spill] sm:$0xff] }
 0xcd6   : > { %24658 = vmatmul.mubr.msk.f32.gmra.mrb[88].mxu0 %vm434_vm0, %v30480_v49  ;;  %v32411_v49 = vld [vmem:[#allocation9_spill] sm:$0xff] }
 0xcd7   : > { %24660 = vmatprep.mubr.msk.f32.mxu0 %vm434_vm0, %v32374_v44  ;;  %v32412_v44 = vld [vmem:[#allocation24_spill] sm:$0xff] }
 0xcda   : > { %24661 = vmatmul.mubr.msk.f32.gmra.mrb[90].mxu0 %vm434_vm0, %v32375_v1  ;;  %v32413_v1 = vld [vmem:[#allocation15_spill] sm:$0xff] }
 0xcdb   : > { %24663 = vmatprep.mubr.msk.f32.mxu0 %vm434_vm0, %v30885_v52  ;;  %v32414_v52 = vld [vmem:[#allocation10_spill] sm:$0xff] }
 0xcde   : > { %24664 = vmatmul.mubr.msk.f32.gmra.mrb[92].mxu0 %vm434_vm0, %v30889_v0  ;;  %v32415_v0 = vld [vmem:[#allocation31_spill] sm:$0xff] }
 0xcdf   : > { %24666 = vmatprep.mubr.msk.f32.mxu0 %vm434_vm0, %v17782_v40 }
 0xce2   : > { %24667 = vmatmul.mubr.msk.f32.gmra.mrb[94].mxu0 %vm434_vm0, %v17783_v34 }
 0xce3   : > { %24671 = vmatprep.mubr.msk.f32.mxu0 %vm434_vm0, %v32378_v24  ;;  %v18168_v24 = vld [vmem:[#allocation5 + $0x19a] sm:$0xff] }
 0xce6   : > { %24672 = vmatmul.mubr.msk.f32.vlgmr.msra.gmra.mrb[64].mxu0 %vm434_vm0, %v32379_v30  ;;  %v31230_v30 = vld [vmem:[%s28451_s23 + $0xf9] sm:$0xff] }
 0xce7   : > { %24674 = vmatprep.mubr.msk.f32.mxu0 %vm434_vm0, %v32380_v28  ;;  %v31235_v28 = vld [vmem:[%s28451_s23 + $0xf1] sm:$0xff] }
 0xcea   : > { %24675 = vmatmul.mubr.msk.f32.gmra.mrb[66].mxu0 %vm434_vm0, %v32381_v3  ;;  %v31240_v3 = vld [vmem:[%s28451_s23 + $0x111] sm:$0xff] }
 0xceb   : > { %24677 = vmatprep.mubr.msk.f32.mxu0 %vm434_vm0, %v32382_v15  ;;  %v31245_v15 = vld [vmem:[%s28451_s23 + $0x109] sm:$0xff] }
 0xcee   : > { %24678 = vmatmul.mubr.msk.f32.gmra.mrb[68].mxu0 %vm434_vm0, %v32402_v25 }
 0xcef   : > { %24680 = vmatprep.mubr.msk.f32.mxu0 %vm434_vm0, %v32403_v47 }
 0xcf2   : > { %24681 = vmatmul.mubr.msk.f32.gmra.mrb[70].mxu0 %vm434_vm0, %v32404_v5 }
 0xcf3   : > { %24683 = vmatprep.mubr.msk.f32.mxu0 %vm434_vm0, %v32405_v35 }
 0xcf6   : > { %24684 = vmatmul.mubr.msk.f32.gmra.mrb[72].mxu0 %vm434_vm0, %v32406_v60 }
 0xcf7   : > { %24686 = vmatprep.mubr.msk.f32.mxu0 %vm434_vm0, %v32407_v4 }
 0xcfa   : > { %24687 = vmatmul.mubr.msk.f32.gmra.mrb[74].mxu0 %vm434_vm0, %v32408_v61 }
 0xcfb   : > { %24689 = vmatprep.mubr.msk.f32.mxu0 %vm434_vm0, %v32409_v36 }
 0xcfe   : > { %24690 = vmatmul.mubr.msk.f32.gmra.mrb[76].mxu0 %vm434_vm0, %v32410_v53 }
 0xcff   : > { %24692 = vmatprep.mubr.msk.f32.mxu0 %vm434_vm0, %v32411_v49 }
 0xd02   : > { %24693 = vmatmul.mubr.msk.f32.gmra.mrb[78].mxu0 %vm434_vm0, %v32393_v14  ;;  %v31260_v14 = vld [vmem:[%s28451_s23 + $0x141] sm:$0xff] }
 0xd03   : > { %24695 = vmatprep.mubr.msk.f32.mxu0 %vm434_vm0, %v32412_v44  ;;  %32416 = vst [vmem:[#allocation11_spill] sm:$0xff] %v31260_v14 }
 0xd06   : > { %24696 = vmatmul.mubr.msk.f32.gmra.mrb[80].mxu0 %vm434_vm0, %v32395_v6  ;;  %v31270_v6 = vld [vmem:[%s28451_s23 + $0x159] sm:$0xff] }
 0xd07   : > { %24698 = vmatprep.mubr.msk.f32.mxu0 %vm434_vm0, %v32396_v39  ;;  %32418 = vst [vmem:[#allocation27_spill] sm:$0xff] %v31270_v6  ;;  %v31275_v39 = vld [vmem:[%s28451_s23 + $0x151] sm:$0xff] }
 0xd08   : > { %32419 = vst [vmem:[#allocation16_spill] sm:$0xff] %v31275_v39 }
 0xd0a   : > { %24699 = vmatmul.mubr.msk.f32.gmra.mrb[82].mxu0 %vm434_vm0, %v32397_v29  ;;  %v31280_v29 = vld [vmem:[%s28451_s23 + $0x171] sm:$0xff] }
 0xd0b   : > { %24701 = vmatprep.mubr.msk.f32.mxu0 %vm434_vm0, %v32413_v1  ;;  %32420 = vst [vmem:[#allocation36_spill] sm:$0xff] %v31280_v29 }
 0xd0e   : > { %24702 = vmatmul.mubr.msk.f32.gmra.mrb[84].mxu0 %vm434_vm0, %v32399_v45  ;;  %v31250_v45 = vld [vmem:[%s28451_s23 + $0x129] sm:$0xff] }
 0xd0f   : > { %24704 = vmatprep.mubr.msk.f32.mxu0 %vm434_vm0, %v32414_v52 }
 0xd12   : > { %24705 = vmatmul.mubr.msk.f32.gmra.mrb[86].mxu0 %vm434_vm0, %v30730_v31  ;;  %v18169_v31 = vld [vmem:[#allocation5 + $0x1a2] sm:$0xff] }
 0xd13   : > { %24707 = vmatprep.mubr.msk.f32.mxu0 %vm434_vm0, %v32401_v9  ;;  %v31265_v9 = vld [vmem:[%s28451_s23 + $0x139] sm:$0xff] }
 0xd14   : > { %32417 = vst [vmem:[#allocation26_spill] sm:$0xff] %v31265_v9 }
 0xd16   : > { %24708 = vmatmul.mubr.msk.f32.gmra.mrb[88].mxu0 %vm434_vm0, %v30738_v54  ;;  %v31220_v54 = vld [vmem:[%s28451_s23 + $0xe1] sm:$0xff] }
 0xd17   : > { %24710 = vmatprep.mubr.msk.f32.mxu0 %vm434_vm0, %v32415_v0  ;;  %19142 = vrot.lane.b32.xlu1 %v31220_v54, %s26150_s27 }
 0xd1a   : > { %24711 = vmatmul.mubr.msk.f32.gmra.mrb[90].mxu0 %vm434_vm0, %v30746_v55  ;;  %v31225_v55 = vld [vmem:[%s28451_s23 + $0xd9] sm:$0xff] }
 0xd1b   : > { %24713 = vmatprep.mubr.msk.f32.mxu0 %vm434_vm0, %v30956_v13  ;;  %19140 = vrot.lane.b32.xlu0 %v31225_v55, %s26150_s27  ;;  %v31285_v13 = vld [vmem:[%s28451_s23 + $0x169] sm:$0xff] }
 0xd1c   : > { %19146 = vrot.lane.b32.xlu1 %v31230_v30, %s26150_s27  ;;  %32421 = vst [vmem:[#allocation33_spill] sm:$0xff] %v31285_v13 }
 0xd1e   : > { %24714 = vmatmul.mubr.msk.f32.gmra.mrb[92].mxu0 %vm434_vm0, %v30960_v33  ;;  %v31255_v33 = vld [vmem:[%s28451_s23 + $0x121] sm:$0xff] }
 0xd1f   : > { %24716 = vmatprep.mubr.msk.f32.mxu0 %vm434_vm0, %v18168_v24  ;;  %19144 = vrot.lane.b32.xlu0 %v31235_v28, %s26150_s27 }
 0xd20   : > { %19150 = vrot.lane.b32.xlu1 %v31240_v3, %s26150_s27 }
 0xd22   : > { %24717 = vmatmul.mubr.msk.f32.gmra.mrb[94].mxu0 %vm434_vm0, %v18169_v31 }
 0xd23   : > { %19148 = vrot.lane.b32.xlu0 %v31245_v15, %s26150_s27 }
 0xd24   : > { %19154 = vrot.lane.b32.xlu1 %v31250_v45, %s26150_s27 }
 0xd27   : > { %19152 = vrot.lane.b32.xlu0 %v31255_v33, %s26150_s27 }
 0xd28   : > { %19158 = vrot.lane.b32.xlu1 %v31260_v14, %s26150_s27 }
 0xd2b   : > { %19156 = vrot.lane.b32.xlu0 %v31265_v9, %s26150_s27 }
 0xd2c   : > { %19162 = vrot.lane.b32.xlu1 %v31270_v6, %s26150_s27 }
 0xd2f   : > { %19160 = vrot.lane.b32.xlu0 %v31275_v39, %s26150_s27 }
 0xd30   : > { %19166 = vrot.lane.b32.xlu1 %v31280_v29, %s26150_s27 }
 0xd33   : > { %19164 = vrot.lane.b32.xlu0 %v31285_v13, %s26150_s27 }
 0xdb9   : > { %v24673_v43 = vpop.f32.mrb[64].mxu0 }
 0xdba   : > { %v31295_v8 = vadd.f32 %v24673_v43, %v31292_v41  ;;  %v18333_v7 = vpop.f32.mrb[65].mxu0 }
 0xdbb   : > { %v31298_v63 = vadd.f32 %v31292_v41, %v18333_v7 }
 0xdbc   : > { %v18564_v12 = vmul.f32 0.5, %v31295_v8 }
 0xdbd   : > { %v18563_v56 = vmul.f32 0.5, %v31298_v63  ;;  %v24676_v16 = vpop.f32.mrb[66].mxu0 }
 0xdbe   : > { %26013 = vtanh.f32 %v18564_v12  ;;  %v31303_v26 = vadd.f32 %v24676_v16, %v31292_v41  ;;  %v18343_v59 = vpop.f32.mrb[67].mxu0 }
 0xdbf   : > { %26015 = vtanh.f32 %v18563_v56  ;;  %v31306_v27 = vadd.f32 %v31292_v41, %v18343_v59 }
 0xdc0   : > { %v18566_v51 = vmul.f32 0.5, %v31303_v26 }
 0xdc1   : > { %v18565_v58 = vmul.f32 0.5, %v31306_v27  ;;  %v24679_v46 = vpop.f32.mrb[68].mxu0 }
 0xdc2   : > { %26017 = vtanh.f32 %v18566_v51  ;;  %v31311_v11 = vadd.f32 %v24679_v46, %v31292_v41  ;;  %v18353_v22 = vpop.f32.mrb[69].mxu0 }
 0xdc3   : > { %26019 = vtanh.f32 %v18565_v58  ;;  %v31314_v40 = vadd.f32 %v31292_v41, %v18353_v22 }
 0xdc4   : > { %v18568_v34 = vmul.f32 0.5, %v31311_v11 }
 0xdc5   : > { %v18567_v25 = vmul.f32 0.5, %v31314_v40  ;;  %v24682_v47 = vpop.f32.mrb[70].mxu0 }
 0xdc6   : > { %26021 = vtanh.f32 %v18568_v34  ;;  %v31319_v5 = vadd.f32 %v24682_v47, %v31292_v41  ;;  %v18363_v35 = vpop.f32.mrb[71].mxu0 }
 0xdc7   : > { %26023 = vtanh.f32 %v18567_v25  ;;  %v31322_v60 = vadd.f32 %v31292_v41, %v18363_v35 }
 0xdc8   : > { %v26014_v4 = vpop.eup %26013  ;;  %v18570_v61 = vmul.f32 0.5, %v31319_v5 }
 0xdc9   : > { %v26016_v36 = vpop.eup %26015  ;;  %v18662_v53 = vmul.f32 1.442695, %v26014_v4  ;;  %v18569_v49 = vmul.f32 0.5, %v31322_v60  ;;  %v24685_v44 = vpop.f32.mrb[72].mxu0 }
 0xdca   : > { %v18660_v1 = vmul.f32 1.442695, %v26016_v36  ;;  %26025 = vtanh.f32 %v18570_v61  ;;  %v31327_v52 = vadd.f32 %v24685_v44, %v31292_v41  ;;  %v18373_v0 = vpop.f32.mrb[73].mxu0 }
 0xdcb   : > { %26027 = vpow2.f32 %v18662_v53  ;;  %v31330_v24 = vadd.f32 %v31292_v41, %v18373_v0 }
 0xdcc   : > { %v26018_v31 = vpop.eup %26017  ;;  %26029 = vpow2.f32 %v18660_v1  ;;  %v18572_v43 = vmul.f32 0.5, %v31327_v52 }
 0xdcd   : > { %v26020_v7 = vpop.eup %26019  ;;  %v18666_v12 = vmul.f32 1.442695, %v26018_v31  ;;  %26031 = vtanh.f32 %v18569_v49  ;;  %v18571_v56 = vmul.f32 0.5, %v31330_v24  ;;  %v24688_v16 = vpop.f32.mrb[74].mxu0 }
 0xdce   : > { %v18664_v59 = vmul.f32 1.442695, %v26020_v7  ;;  %26033 = vtanh.f32 %v18572_v43  ;;  %v31335_v51 = vadd.f32 %v24688_v16, %v31292_v41  ;;  %v18383_v58 = vpop.f32.mrb[75].mxu0 }
 0xdcf   : > { %26035 = vpow2.f32 %v18666_v12  ;;  %v31338_v46 = vadd.f32 %v31292_v41, %v18383_v58 }
 0xdd0   : > { %v26022_v22 = vpop.eup %26021  ;;  %26037 = vpow2.f32 %v18664_v59  ;;  %v18574_v34 = vmul.f32 0.5, %v31335_v51 }
 0xdd1   : > { %v26024_v25 = vpop.eup %26023  ;;  %v18670_v47 = vmul.f32 1.442695, %v26022_v22  ;;  %26039 = vtanh.f32 %v18571_v56  ;;  %v18573_v35 = vmul.f32 0.5, %v31338_v46  ;;  %v24691_v4 = vpop.f32.mrb[76].mxu0 }
 0xdd2   : > { %v18668_v61 = vmul.f32 1.442695, %v26024_v25  ;;  %26041 = vtanh.f32 %v18574_v34  ;;  %v31343_v36 = vadd.f32 %v24691_v4, %v31292_v41  ;;  %v18393_v53 = vpop.f32.mrb[77].mxu0 }
 0xdd3   : > { %26043 = vpow2.f32 %v18670_v47  ;;  %v31346_v49 = vadd.f32 %v31292_v41, %v18393_v53 }
 0xdd4   : > { %v26026_v44 = vpop.eup %26025  ;;  %26045 = vpow2.f32 %v18668_v61  ;;  %v18576_v1 = vmul.f32 0.5, %v31343_v36 }
 0xdd5   : > { %v26028_v0 = vpop.eup %26027  ;;  %v18674_v31 = vmul.f32 1.442695, %v26026_v44  ;;  %26047 = vtanh.f32 %v18573_v35  ;;  %v18575_v43 = vmul.f32 0.5, %v31346_v49  ;;  %v24694_v7 = vpop.f32.mrb[78].mxu0 }
 0xdd6   : > { %v26030_v12 = vpop.eup %26029  ;;  %26049 = vtanh.f32 %v18576_v1  ;;  %v31351_v56 = vadd.f32 %v24694_v7, %v31292_v41  ;;  %18758 = vrot.lane.b32.xlu1 %v26028_v0, %s26150_s27  ;;  %v18403_v16 = vpop.f32.mrb[79].mxu0 }
 0xdd7   : > { %v26032_v59 = vpop.eup %26031  ;;  %26051 = vpow2.f32 %v18674_v31  ;;  %v31355_v58 = vadd.f32 %v31292_v41, %v18403_v16  ;;  %18756 = vrot.lane.b32.xlu0 %v26030_v12, %s26150_s27 }
 0xdd8   : > { %v26034_v22 = vpop.eup %26033  ;;  %v18672_v34 = vmul.f32 1.442695, %v26032_v59  ;;  %26053 = vtanh.f32 %v18575_v43  ;;  %v18578_v25 = vmul.f32 0.5, %v31351_v56 }
 0xdd9   : > { %v26036_v47 = vpop.eup %26035  ;;  %v18678_v35 = vmul.f32 1.442695, %v26034_v22  ;;  %v18577_v4 = vmul.f32 0.5, %v31355_v58  ;;  %v24697_v61 = vpop.f32.mrb[80].mxu0 }
 0xdda   : > { %v26038_v53 = vpop.eup %26037  ;;  %26055 = vpow2.f32 %v18672_v34  ;;  %v31361_v44 = vadd.f32 %v24697_v61, %v31292_v41  ;;  %18762 = vrot.lane.b32.xlu1 %v26036_v47, %s26150_s27  ;;  %v18413_v1 = vpop.f32.mrb[81].mxu0 }
 0xddb   : > { %v26040_v0 = vpop.eup %26039  ;;  %26057 = vpow2.f32 %v18678_v35  ;;  %v31365_v31 = vadd.f32 %v31292_v41, %v18413_v1  ;;  %18760 = vrot.lane.b32.xlu0 %v26038_v53, %s26150_s27 }
 0xddc   : > { %v26042_v43 = vpop.eup %26041  ;;  %v18676_v7 = vmul.f32 1.442695, %v26040_v0  ;;  %26059 = vtanh.f32 %v18578_v25  ;;  %v18580_v12 = vmul.f32 0.5, %v31361_v44 }
 0xddd   : > { %v26044_v16 = vpop.eup %26043  ;;  %v18682_v59 = vmul.f32 1.442695, %v26042_v43  ;;  %26061 = vtanh.f32 %v18577_v4  ;;  %v18579_v22 = vmul.f32 0.5, %v31365_v31  ;;  %v24700_v34 = vpop.f32.mrb[82].mxu0 }
 0xdde   : > { %v26046_v47 = vpop.eup %26045  ;;  %26063 = vpow2.f32 %v18676_v7  ;;  %v31371_v35 = vadd.f32 %v24700_v34, %v31292_v41  ;;  %18766 = vrot.lane.b32.xlu1 %v26044_v16, %s26150_s27  ;;  %v18423_v61 = vpop.f32.mrb[83].mxu0 }
 0xddf   : > { %v26048_v53 = vpop.eup %26047  ;;  %26065 = vpow2.f32 %v18682_v59  ;;  %v31375_v25 = vadd.f32 %v31292_v41, %v18423_v61  ;;  %18764 = vrot.lane.b32.xlu0 %v26046_v47, %s26150_s27 }
 0xde0   : > { %v26050_v1 = vpop.eup %26049  ;;  %v18680_v4 = vmul.f32 1.442695, %v26048_v53  ;;  %26067 = vtanh.f32 %v18580_v12  ;;  %v18582_v0 = vmul.f32 0.5, %v31371_v35 }
 0xde1   : > { %v26052_v43 = vpop.eup %26051  ;;  %v18686_v7 = vmul.f32 1.442695, %v26050_v1  ;;  %26069 = vtanh.f32 %v18579_v22  ;;  %v24703_v34 = vpop.f32.mrb[84].mxu0  ;;  %v18581_v16 = vmul.f32 0.5, %v31375_v25 }
 0xde2   : > { %v26054_v13 = vpop.eup %26053  ;;  %26071 = vpow2.f32 %v18680_v4  ;;  %v31381_v59 = vadd.f32 %v24703_v34, %v31292_v41  ;;  %18770 = vrot.lane.b32.xlu1 %v26052_v43, %s26150_s27  ;;  %v18433_v61 = vpop.f32.mrb[85].mxu0 }
 0xde3   : > { %26073 = vpow2.f32 %v18686_v7  ;;  %v18684_v47 = vmul.f32 1.442695, %v26054_v13  ;;  %v31385_v12 = vadd.f32 %v31292_v41, %v18433_v61 }
 0xde4   : > { %v26056_v53 = vpop.eup %26055  ;;  %26075 = vtanh.f32 %v18582_v0  ;;  %v18584_v22 = vmul.f32 0.5, %v31381_v59 }
 0xde5   : > { %v26058_v1 = vpop.eup %26057  ;;  %26077 = vpow2.f32 %v18684_v47  ;;  %v18583_v4 = vmul.f32 0.5, %v31385_v12  ;;  %18768 = vrot.lane.b32.xlu0 %v26056_v53, %s26150_s27  ;;  %v24706_v34 = vpop.f32.mrb[86].mxu0 }
 0xde6   : > { %v26060_v29 = vpop.eup %26059  ;;  %26079 = vtanh.f32 %v18581_v16  ;;  %v31391_v43 = vadd.f32 %v24706_v34, %v31292_v41  ;;  %18774 = vrot.lane.b32.xlu1 %v26058_v1, %s26150_s27  ;;  %v18443_v13 = vpop.f32.mrb[87].mxu0 }
 0xde7   : > { %v26062_v7 = vpop.eup %26061  ;;  %v18690_v61 = vmul.f32 1.442695, %v26060_v29  ;;  %26081 = vtanh.f32 %v18584_v22  ;;  %v31395_v0 = vadd.f32 %v31292_v41, %v18443_v13 }
 0xde8   : > { %v26064_v47 = vpop.eup %26063  ;;  %v18688_v39 = vmul.f32 1.442695, %v26062_v7  ;;  %26083 = vtanh.f32 %v18583_v4  ;;  %v18586_v53 = vmul.f32 0.5, %v31391_v43 }
 0xde9   : > { %32422 = vst [vmem:[#allocation18_spill] sm:$0xff] %v31395_v0  ;;  %v26066_v6 = vpop.eup %26065  ;;  %26085 = vpow2.f32 %v18690_v61  ;;  %v18585_v16 = vmul.f32 0.5, %v31395_v0  ;;  %18772 = vrot.lane.b32.xlu0 %v26064_v47, %s26150_s27  ;;  %v24709_v34 = vpop.f32.mrb[88].mxu0 }
 0xdea   : > { %v26068_v1 = vpop.eup %26067  ;;  %26087 = vpow2.f32 %v18688_v39  ;;  %v31401_v29 = vadd.f32 %v24709_v34, %v31292_v41  ;;  %18778 = vrot.lane.b32.xlu1 %v26066_v6, %s26150_s27  ;;  %v18453_v22 = vpop.f32.mrb[89].mxu0 }
 0xdeb   : > { %v26070_v13 = vpop.eup %26069  ;;  %v18694_v7 = vmul.f32 1.442695, %v26068_v1  ;;  %26089 = vtanh.f32 %v18586_v53  ;;  %v31405_v4 = vadd.f32 %v31292_v41, %v18453_v22  ;;  %v31414_v22 = vpop.permute.xlu1 %19110 }
 0xdec   : > { %32423 = vst [vmem:[#allocation35_spill] sm:$0xff] %v31401_v29  ;;  %v26072_v61 = vpop.eup %26071  ;;  %v18692_v9 = vmul.f32 1.442695, %v26070_v13  ;;  %26091 = vtanh.f32 %v18585_v16  ;;  %v18588_v47 = vmul.f32 0.5, %v31401_v29  ;;  %32426 = vst [vmem:[#allocation7_spill] sm:$0xff] %v31414_v22 }
 0xded   : > { %32424 = vst [vmem:[#allocation6_spill] sm:$0xff] %v31405_v4  ;;  %v26074_v14 = vpop.eup %26073  ;;  %26093 = vpow2.f32 %v18694_v7  ;;  %v18587_v39 = vmul.f32 0.5, %v31405_v4  ;;  %18776 = vrot.lane.b32.xlu0 %v26072_v61, %s26150_s27  ;;  %v24712_v34 = vpop.f32.mrb[90].mxu0 }
 0xdee   : > { %v26076_v6 = vpop.eup %26075  ;;  %26095 = vpow2.f32 %v18692_v9  ;;  %v31411_v1 = vadd.f32 %v24712_v34, %v31292_v41  ;;  %18782 = vrot.lane.b32.xlu1 %v26074_v14, %s26150_s27  ;;  %v18463_v53 = vpop.f32.mrb[91].mxu0 }
 0xdef   : > { %v26078_v16 = vpop.eup %26077  ;;  %v18698_v13 = vmul.f32 1.442695, %v26076_v6  ;;  %26097 = vtanh.f32 %v18588_v47  ;;  %v31417_v7 = vadd.f32 %v31292_v41, %v18463_v53  ;;  %v31419_v4 = vpop.permute.xlu0 %19108 }
 0xdf0   : > { %32425 = vst [vmem:[#allocation19_spill] sm:$0xff] %v31411_v1  ;;  %32428 = vst [vmem:[#allocation25_spill] sm:$0xff] %v31419_v4  ;;  %v26080_v61 = vpop.eup %26079  ;;  %26099 = vtanh.f32 %v18587_v39  ;;  %v18590_v9 = vmul.f32 0.5, %v31411_v1 }
 0xdf1   : > { %32427 = vst [vmem:[#allocation22_spill] sm:$0xff] %v31417_v7  ;;  %v26082_v29 = vpop.eup %26081  ;;  %26101 = vpow2.f32 %v18698_v13  ;;  %v18696_v34 = vmul.f32 1.442695, %v26080_v61  ;;  %18780 = vrot.lane.b32.xlu0 %v26078_v16, %s26150_s27  ;;  %v24715_v14 = vpop.f32.mrb[92].mxu0  ;;  %v18589_v47 = vmul.f32 0.5, %v31417_v7 }
 0xdf2   : > { %v26084_v0 = vpop.eup %26083  ;;  %v18702_v22 = vmul.f32 1.442695, %v26082_v29  ;;  %26103 = vtanh.f32 %v18590_v9  ;;  %v31425_v6 = vadd.f32 %v24715_v14, %v31292_v41  ;;  %v18473_v53 = vpop.f32.mrb[93].mxu0 }
 0xdf3   : > { %v26086_v4 = vpop.eup %26085  ;;  %26105 = vpow2.f32 %v18696_v34  ;;  %v18700_v39 = vmul.f32 1.442695, %v26084_v0  ;;  %v31428_v1 = vadd.f32 %v31292_v41, %v18473_v53  ;;  %v31432_v29 = vpop.permute.xlu1 %19114 }
 0xdf4   : > { %32429 = vst [vmem:[#allocation13_spill] sm:$0xff] %v31425_v6  ;;  %v26088_v13 = vpop.eup %26087  ;;  %26107 = vpow2.f32 %v18702_v22  ;;  %v18592_v16 = vmul.f32 0.5, %v31425_v6  ;;  %18786 = vrot.lane.b32.xlu1 %v26086_v4, %s26150_s27  ;;  %32430 = vst [vmem:[#allocation14_spill] sm:$0xff] %v31432_v29  ;;  %v31435_v14 = vpop.permute.xlu0 %19112 }
 0xdf5   : > { %v26090_v61 = vpop.eup %26089  ;;  %26109 = vpow2.f32 %v18700_v39  ;;  %18784 = vrot.lane.b32.xlu0 %v26088_v13, %s26150_s27  ;;  %v24718_v9 = vpop.f32.mrb[94].mxu0  ;;  %32431 = vst [vmem:[#allocation32_spill] sm:$0xff] %v31435_v14  ;;  %v18591_v53 = vmul.f32 0.5, %v31428_v1 }
 0xdf6   : > { %v26092_v34 = vpop.eup %26091  ;;  %v18706_v0 = vmul.f32 1.442695, %v26090_v61  ;;  %26111 = vtanh.f32 %v18589_v47  ;;  %v31439_v22 = vadd.f32 %v24718_v9, %v31292_v41  ;;  %v18483_v6 = vpop.f32.mrb[95].mxu0 }
 0xdf7   : > { %v26094_v7 = vpop.eup %26093  ;;  %v18704_v4 = vmul.f32 1.442695, %v26092_v34  ;;  %26113 = vtanh.f32 %v18592_v16  ;;  %v31442_v29 = vadd.f32 %v31292_v41, %v18483_v6  ;;  %v31448_v34 = vpop.permute.xlu1 %19118 }
 0xdf8   : > { %v26096_v39 = vpop.eup %26095  ;;  %26115 = vpow2.f32 %v18706_v0  ;;  %v18594_v13 = vmul.f32 0.5, %v31439_v22  ;;  %18790 = vrot.lane.b32.xlu1 %v26094_v7, %s26150_s27  ;;  %32432 = vst [vmem:[#allocation29_spill] sm:$0xff] %v31448_v34  ;;  %v31450_v6 = vpop.permute.xlu0 %19116 }
 0xdf9   : > { %v26098_v61 = vpop.eup %26097  ;;  %26117 = vpow2.f32 %v18704_v4  ;;  %18788 = vrot.lane.b32.xlu0 %v26096_v39, %s26150_s27  ;;  %v18593_v14 = vmul.f32 0.5, %v31442_v29  ;;  %32433 = vst [vmem:[#allocation20_spill] sm:$0xff] %v31450_v6 }
 0xdfa   : > { %v26100_v47 = vpop.eup %26099  ;;  %v18710_v9 = vmul.f32 1.442695, %v26098_v61  ;;  %26119 = vtanh.f32 %v18591_v53 }
 0xdfb   : > { %v26102_v16 = vpop.eup %26101  ;;  %v18708_v41 = vmul.f32 1.442695, %v26100_v47  ;;  %26121 = vtanh.f32 %v18594_v13  ;;  %v31455_v47 = vpop.permute.xlu1 %19122 }
 0xdfc   : > { %v26104_v0 = vpop.eup %26103  ;;  %26123 = vpow2.f32 %v18710_v9  ;;  %18794 = vrot.lane.b32.xlu1 %v26102_v16, %s26150_s27  ;;  %32434 = vst [vmem:[#allocation8_spill] sm:$0xff] %v31455_v47  ;;  %v31457_v34 = vpop.permute.xlu0 %19120 }
 0xdfd   : > { %v26106_v7 = vpop.eup %26105  ;;  %26125 = vpow2.f32 %v18708_v41  ;;  %v18714_v4 = vmul.f32 1.442695, %v26104_v0  ;;  %32435 = vst [vmem:[#allocation28_spill] sm:$0xff] %v31457_v34 }
 0xdfe   : > { %v26108_v39 = vpop.eup %26107  ;;  %26127 = vtanh.f32 %v18593_v14  ;;  %18792 = vrot.lane.b32.xlu0 %v26106_v7, %s26150_s27 }
 0xdff   : > { %v26110_v53 = vpop.eup %26109  ;;  %26129 = vpow2.f32 %v18714_v4  ;;  %v31462_v47 = vpop.permute.xlu1 %19126 }
 0xe00   : > { %v26112_v61 = vpop.eup %26111  ;;  %18798 = vrot.lane.b32.xlu1 %v26108_v39, %s26150_s27  ;;  %v31464_v34 = vpop.permute.xlu0 %19124 }
 0xe01   : > { %v26114_v13 = vpop.eup %26113  ;;  %v18712_v6 = vmul.f32 1.442695, %v26112_v61 }
 0xe02   : > { %v26116_v9 = vpop.eup %26115  ;;  %v18718_v16 = vmul.f32 1.442695, %v26114_v13  ;;  %18796 = vrot.lane.b32.xlu0 %v26110_v53, %s26150_s27 }
 0xe03   : > { %v26118_v41 = vpop.eup %26117  ;;  %26131 = vpow2.f32 %v18712_v6 }
 0xe04   : > { %v26120_v14 = vpop.eup %26119  ;;  %26133 = vpow2.f32 %v18718_v16  ;;  %18802 = vrot.lane.b32.xlu1 %v26116_v9, %s26150_s27  ;;  %v31469_v9 = vpop.permute.xlu1 %19130 }
 0xe05   : > { %v26122_v0 = vpop.eup %26121  ;;  %v18716_v7 = vmul.f32 1.442695, %v26120_v14  ;;  %32436 = vst [vmem:[#allocation17_spill] sm:$0xff] %v31469_v9 }
 0xe06   : > { %v26124_v4 = vpop.eup %26123  ;;  %v18722_v39 = vmul.f32 1.442695, %v26122_v0  ;;  %18800 = vrot.lane.b32.xlu0 %v26118_v41, %s26150_s27  ;;  %v31471_v41 = vpop.permute.xlu0 %19128 }
 0xe07   : > { %v26126_v61 = vpop.eup %26125  ;;  %26135 = vpow2.f32 %v18716_v7  ;;  %32437 = vst [vmem:[#allocation30_spill] sm:$0xff] %v31471_v41 }
 0xe08   : > { %v26128_v13 = vpop.eup %26127  ;;  %26137 = vpow2.f32 %v18722_v39  ;;  %18806 = vrot.lane.b32.xlu1 %v26124_v4, %s26150_s27  ;;  %v31476_v4 = vpop.permute.xlu1 %19134 }
 0xe09   : > { %v26130_v6 = vpop.eup %26129  ;;  %v18720_v53 = vmul.f32 1.442695, %v26128_v13  ;;  %32438 = vst [vmem:[#allocation34_spill] sm:$0xff] %v31476_v4 }
 0xe0a   : > { %18804 = vrot.lane.b32.xlu0 %v26126_v61, %s26150_s27  ;;  %v31478_v39 = vpop.permute.xlu0 %19132 }
 0xe0b   : > { %26139 = vpow2.f32 %v18720_v53  ;;  %32439 = vst [vmem:[#allocation23_spill] sm:$0xff] %v31478_v39 }
 0xe0c   : > { %18810 = vrot.lane.b32.xlu1 %v26130_v6, %s26150_s27  ;;  %v31482_v13 = vpop.permute.xlu1 %19138 }
 0xe0d   : > { %v26132_v16 = vpop.eup %26131  ;;  %32440 = vst [vmem:[#allocation12_spill] sm:$0xff] %v31482_v13 }
 0xe0e   : > { %v26134_v14 = vpop.eup %26133  ;;  %18808 = vrot.lane.b32.xlu0 %v26132_v16, %s26150_s27  ;;  %v31484_v6 = vpop.permute.xlu0 %19136 }
 0xe0f   : > { %32441 = vst [vmem:[#allocation21_spill] sm:$0xff] %v31484_v6 }
 0xe10   : > { %18814 = vrot.lane.b32.xlu1 %v26134_v14, %s26150_s27  ;;  %v31486_v53 = vpop.permute.xlu1 %19142 }
 0xe11   : > { %v26136_v0 = vpop.eup %26135  ;;  %32442 = vst [vmem:[#allocation9_spill] sm:$0xff] %v31486_v53 }
 0xe12   : > { %v26138_v7 = vpop.eup %26137  ;;  %18812 = vrot.lane.b32.xlu0 %v26136_v0, %s26150_s27  ;;  %v31488_v16 = vpop.permute.xlu0 %19140 }
 0xe13   : > { %32443 = vst [vmem:[#allocation24_spill] sm:$0xff] %v31488_v16 }
 0xe14   : > { %18818 = vrot.lane.b32.xlu1 %v26138_v7, %s26150_s27  ;;  %v31490_v14 = vpop.permute.xlu1 %19146 }
 0xe15   : > { %v26140_v61 = vpop.eup %26139  ;;  %32444 = vst [vmem:[#allocation15_spill] sm:$0xff] %v31490_v14 }
 0xe16   : > { %18816 = vrot.lane.b32.xlu0 %v26140_v61, %s26150_s27  ;;  %v31492_v0 = vpop.permute.xlu0 %19144 }
 0xe17   : > { %32445 = vst [vmem:[#allocation10_spill] sm:$0xff] %v31492_v0 }
 0xe18   : > { %v31494_v4 = vpop.permute.xlu1 %19150 }
 0xe19   : > { %32446 = vst [vmem:[#allocation31_spill] sm:$0xff] %v31494_v4 }
 0xe1a   : > { %v31496_v39 = vpop.permute.xlu0 %19148 }
 0xe1b   : > { %32447 = vst [vmem:[#allocation37_spill] sm:$0xff] %v31496_v39 }
 0xe1c   : > { %v31498_v7 = vpop.permute.xlu1 %19154 }
 0xe1d   : > { %32448 = vst [vmem:[#allocation38_spill] sm:$0xff] %v31498_v7 }
 0xe1e   : > { %v31500_v41 = vpop.permute.xlu0 %19152 }
 0xe1f   : > { %32449 = vst [vmem:[#allocation39_spill] sm:$0xff] %v31500_v41 }
 0xe20   : > { %v31502_v61 = vpop.permute.xlu1 %19158 }
 0xe21   : > { %32450 = vst [vmem:[#allocation40_spill] sm:$0xff] %v31502_v61 }
 0xe22   : > { %v31504_v13 = vpop.permute.xlu0 %19156 }
 0xe23   : > { %32451 = vst [vmem:[#allocation41_spill] sm:$0xff] %v31504_v13 }
 0xe24   : > { %v31506_v6 = vpop.permute.xlu1 %19162 }
 0xe26   : > { %v31508_v53 = vpop.permute.xlu0 %19160 }
 0xe27   : > { %32452 = vst [vmem:[#allocation42_spill] sm:$0xff] %v31508_v53 }
 0xe28   : > { %v31510_v16 = vpop.permute.xlu1 %19166 }
 0xe29   : > { %32453 = vst [vmem:[#allocation43_spill] sm:$0xff] %v31510_v16 }
 0xe2a   : > { %v31512_v14 = vpop.permute.xlu0 %19164 }
 0xe48   : > { %v18759_v0 = vpop.permute.xlu1 %18758 }
 0xe49   : > { %v18853_v4 = vmul.f32 %v31030_v42, %v18759_v0  ;;  %v18757_v39 = vpop.permute.xlu0 %18756 }
 0xe4a   : > { %v18852_v7 = vmul.f32 %v31033_v2, %v18757_v39 }
 0xe4b   : > { %v18885_v41 = vadd.f32 %v18853_v4, %v31295_v8 }
 0xe4c   : > { %v18884_v61 = vadd.f32 %v18852_v7, %v31298_v63  ;;  %v18763_v9 = vpop.permute.xlu1 %18762 }
 0xe4d   : > { %v18855_v13 = vmul.f32 %v31041_v37, %v18763_v9  ;;  %18950 = vrot.lane.b32.xlu1 %v18885_v41, %s26151_s28  ;;  %v18761_v53 = vpop.permute.xlu0 %18760 }
 0xe4e   : > { %v18854_v16 = vmul.f32 %v31044_v38, %v18761_v53  ;;  %18948 = vrot.lane.b32.xlu0 %v18884_v61, %s26151_s28 }
 0xe4f   : > { %v18887_v42 = vadd.f32 %v18855_v13, %v31303_v26 }
 0xe50   : > { %v18886_v0 = vadd.f32 %v18854_v16, %v31306_v27  ;;  %v18767_v2 = vpop.permute.xlu1 %18766 }
 0xe51   : > { %v18857_v8 = vmul.f32 %v31053_v10, %v18767_v2  ;;  %18954 = vrot.lane.b32.xlu1 %v18887_v42, %s26151_s28  ;;  %v18765_v63 = vpop.permute.xlu0 %18764 }
 0xe52   : > { %v18856_v37 = vmul.f32 %v31056_v57, %v18765_v63  ;;  %18952 = vrot.lane.b32.xlu0 %v18886_v0, %s26151_s28 }
 0xe53   : > { %v18889_v9 = vadd.f32 %v18857_v8, %v31311_v11 }
 0xe54   : > { %v18888_v38 = vadd.f32 %v18856_v37, %v31314_v40  ;;  %v18771_v41 = vpop.permute.xlu1 %18770 }
 0xe55   : > { %v18859_v4 = vmul.f32 %v31065_v17, %v18771_v41  ;;  %18958 = vrot.lane.b32.xlu1 %v18889_v9, %s26151_s28 }
 0xe56   : > { %18956 = vrot.lane.b32.xlu0 %v18888_v38, %s26151_s28 }
 0xe57   : > { %v18891_v10 = vadd.f32 %v18859_v4, %v31319_v5  ;;  %v18769_v26 = vpop.permute.xlu0 %18768 }
 0xe58   : > { %v18858_v27 = vmul.f32 %v31068_v20, %v18769_v26  ;;  %v18775_v39 = vpop.permute.xlu1 %18774 }
 0xe59   : > { %v18861_v57 = vmul.f32 %v31077_v62, %v18775_v39  ;;  %18962 = vrot.lane.b32.xlu1 %v18891_v10, %s26151_s28 }
 0xe5a   : > { %v18890_v11 = vadd.f32 %v18858_v27, %v31322_v60 }
 0xe5b   : > { %v18893_v40 = vadd.f32 %v18861_v57, %v31327_v52  ;;  %v18773_v13 = vpop.permute.xlu0 %18772 }
 0xe5c   : > { %v18860_v17 = vmul.f32 %v31080_v50, %v18773_v13  ;;  %18960 = vrot.lane.b32.xlu0 %v18890_v11, %s26151_s28  ;;  %v18779_v53 = vpop.permute.xlu1 %18778  ;;  %v32459_v13 = vld [vmem:[#allocation27_spill] sm:$0xff] }
 0xe5d   : > { %v18863_v5 = vmul.f32 %v31089_v48, %v18779_v53  ;;  %18966 = vrot.lane.b32.xlu1 %v18893_v40, %s26151_s28  ;;  %v32458_v40 = vld [vmem:[#allocation6_spill] sm:$0xff] }
 0xe5e   : > { %v18892_v20 = vadd.f32 %v18860_v17, %v31330_v24 }
 0xe5f   : > { %v18895_v62 = vadd.f32 %v18863_v5, %v31335_v51  ;;  %v18777_v16 = vpop.permute.xlu0 %18776  ;;  %v32460_v5 = vld [vmem:[#allocation19_spill] sm:$0xff] }
 0xe60   : > { %v18862_v7 = vmul.f32 %v31092_v32, %v18777_v16  ;;  %18964 = vrot.lane.b32.xlu0 %v18892_v20, %s26151_s28  ;;  %v18783_v60 = vpop.permute.xlu1 %18782 }
 0xe61   : > { %v18865_v52 = vmul.f32 %v31101_v23, %v18783_v60  ;;  %18970 = vrot.lane.b32.xlu1 %v18895_v62, %s26151_s28  ;;  %v32461_v62 = vld [vmem:[#allocation16_spill] sm:$0xff]  ;;  %v32462_v60 = vld [vmem:[#allocation22_spill] sm:$0xff] }
 0xe62   : > { %v18894_v50 = vadd.f32 %v18862_v7, %v31338_v46 }
 0xe63   : > { %v18897_v48 = vadd.f32 %v18865_v52, %v31343_v36  ;;  %v18781_v61 = vpop.permute.xlu0 %18780 }
 0xe64   : > { %v18864_v42 = vmul.f32 %v31104_v21, %v18781_v61  ;;  %18968 = vrot.lane.b32.xlu0 %v18894_v50, %s26151_s28  ;;  %v32463_v50 = vld [vmem:[#allocation36_spill] sm:$0xff] }
 0xe65   : > { %18974 = vrot.lane.b32.xlu1 %v18897_v48, %s26151_s28 }
 0xe66   : > { %v18896_v32 = vadd.f32 %v18864_v42, %v31346_v49  ;;  %v18787_v24 = vpop.permute.xlu1 %18786  ;;  %v20980_v42 = vld [vmem:[%s28451_s23 + $0x189] sm:$0xff] }
 0xe67   : > { %v18867_v51 = vmul.f32 %v31113_v18, %v18787_v24  ;;  %v18785_v0 = vpop.permute.xlu0 %18784 }
 0xe68   : > { %v18866_v23 = vmul.f32 %v31116_v19, %v18785_v0  ;;  %18972 = vrot.lane.b32.xlu0 %v18896_v32, %s26151_s28  ;;  %v32464_v32 = vld [vmem:[#allocation13_spill] sm:$0xff] }
 0xe69   : > { %v18899_v46 = vadd.f32 %v18867_v51, %v31351_v56  ;;  %v32465_v51 = vld [vmem:[#allocation33_spill] sm:$0xff] }
 0xe6a   : > { %v18898_v36 = vadd.f32 %v18866_v23, %v31355_v58  ;;  %v18791_v2 = vpop.permute.xlu1 %18790 }
 0xe6b   : > { %v18869_v21 = vmul.f32 %v31220_v54, %v18791_v2  ;;  %18978 = vrot.lane.b32.xlu1 %v18899_v46, %s26151_s28  ;;  %v18789_v8 = vpop.permute.xlu0 %18788  ;;  %v20979_v46 = vld [vmem:[%s28451_s23 + $0x181] sm:$0xff]  ;;  %s20983_s23 = sshll.u32 %s32493_s22, 8 }
 0xe6c   : > { %v18868_v49 = vmul.f32 %v31225_v55, %v18789_v8  ;;  %18976 = vrot.lane.b32.xlu0 %v18898_v36, %s26151_s28  ;;  %s31616_s14 = scalar_lea.vmem %s31791_s12, %s20983_s23 }
 0xe6d   : > { %v18901_v18 = vadd.f32 %v18869_v21, %v31361_v44 }
 0xe6e   : > { %v18900_v19 = vadd.f32 %v18868_v49, %v31365_v31  ;;  %v18795_v63 = vpop.permute.xlu1 %18794 }
 0xe6f   : > { %v18871_v37 = vmul.f32 %v31230_v30, %v18795_v63  ;;  %18982 = vrot.lane.b32.xlu1 %v18901_v18, %s26151_s28 }
 0xe70   : > { %v18793_v56 = vpop.permute.xlu0 %18792  ;;  %18980 = vrot.lane.b32.xlu0 %v18900_v19, %s26151_s28  ;;  %v32467_v19 = vld [vmem:[#allocation25_spill] sm:$0xff] }
 0xe71   : > { %v18903_v54 = vadd.f32 %v18871_v37, %v31371_v35  ;;  %v18870_v58 = vmul.f32 %v31235_v28, %v18793_v56  ;;  %v32468_v56 = vld [vmem:[#allocation14_spill] sm:$0xff] }
 0xe72   : > { %v18799_v9 = vpop.permute.xlu1 %18798 }
 0xe73   : > { %v18902_v55 = vadd.f32 %v18870_v58, %v31375_v25  ;;  %v18873_v38 = vmul.f32 %v31240_v3, %v18799_v9  ;;  %18986 = vrot.lane.b32.xlu1 %v18903_v54, %s26151_s28  ;;  %v32469_v54 = vld [vmem:[#allocation32_spill] sm:$0xff] }
 0xe74   : > { %v18797_v44 = vpop.permute.xlu0 %18796 }
 0xe75   : > { %v18905_v31 = vadd.f32 %v18873_v38, %v31381_v59  ;;  %v18872_v30 = vmul.f32 %v31245_v15, %v18797_v44  ;;  %18984 = vrot.lane.b32.xlu0 %v18902_v55, %s26151_s28  ;;  %v32454_v59 = vld [vmem:[#allocation18_spill] sm:$0xff]  ;;  %v32455_v15 = vld [vmem:[#allocation11_spill] sm:$0xff]  ;;  %v32470_v55 = vld [vmem:[#allocation29_spill] sm:$0xff] }
 0xe76   : > { %v18803_v41 = vpop.permute.xlu1 %18802  ;;  %v32471_v38 = vld [vmem:[#allocation20_spill] sm:$0xff] }
 0xe77   : > { %v18904_v4 = vadd.f32 %v18872_v30, %v31385_v12  ;;  %v18875_v35 = vmul.f32 %v31250_v45, %v18803_v41  ;;  %18990 = vrot.lane.b32.xlu1 %v18905_v31, %s26151_s28  ;;  %v32456_v12 = vld [vmem:[#allocation35_spill] sm:$0xff]  ;;  %v32457_v45 = vld [vmem:[#allocation26_spill] sm:$0xff]  ;;  %v32472_v31 = vld [vmem:[#allocation8_spill] sm:$0xff] }
 0xe78   : > { %v18801_v28 = vpop.permute.xlu0 %18800 }
 0xe79   : > { %v18907_v25 = vadd.f32 %v18875_v35, %v31391_v43  ;;  %v18874_v3 = vmul.f32 %v31255_v33, %v18801_v28  ;;  %18988 = vrot.lane.b32.xlu0 %v18904_v4, %s26151_s28  ;;  %v32473_v4 = vld [vmem:[#allocation28_spill] sm:$0xff] }
 0xe7a   : > { %v18807_v10 = vpop.permute.xlu1 %18806 }
 0xe7b   : > { %v18906_v26 = vadd.f32 %v18874_v3, %v32454_v59  ;;  %v18877_v27 = vmul.f32 %v32455_v15, %v18807_v10  ;;  %18994 = vrot.lane.b32.xlu1 %v18907_v25, %s26151_s28  ;;  %v32474_v25 = vld [vmem:[#allocation17_spill] sm:$0xff]  ;;  %v32475_v10 = vld [vmem:[#allocation30_spill] sm:$0xff] }
 0xe7c   : > { %v18805_v39 = vpop.permute.xlu0 %18804 }
 0xe7d   : > { %v18909_v57 = vadd.f32 %v18877_v27, %v32456_v12  ;;  %v18876_v11 = vmul.f32 %v32457_v45, %v18805_v39  ;;  %18992 = vrot.lane.b32.xlu0 %v18906_v26, %s26151_s28  ;;  %v32477_v26 = vld [vmem:[#allocation23_spill] sm:$0xff]  ;;  %v32478_v39 = vld [vmem:[#allocation12_spill] sm:$0xff]  ;;  %v32479_v12 = vld [vmem:[#allocation21_spill] sm:$0xff] }
 0xe7e   : > { %v18811_v43 = vpop.permute.xlu1 %18810 }
 0xe7f   : > { %v18908_v33 = vadd.f32 %v18876_v11, %v32458_v40  ;;  %v18879_v17 = vmul.f32 %v32459_v13, %v18811_v43  ;;  %18998 = vrot.lane.b32.xlu1 %v18909_v57, %s26151_s28  ;;  %v32480_v11 = vld [vmem:[#allocation9_spill] sm:$0xff]  ;;  %v32481_v43 = vld [vmem:[#allocation24_spill] sm:$0xff] }
 0xe80   : > { %v18809_v53 = vpop.permute.xlu0 %18808 }
 0xe81   : > { %v18911_v20 = vadd.f32 %v18879_v17, %v32460_v5  ;;  %v18878_v16 = vmul.f32 %v32461_v62, %v18809_v53  ;;  %18996 = vrot.lane.b32.xlu0 %v18908_v33, %s26151_s28  ;;  %v32482_v33 = vld [vmem:[#allocation15_spill] sm:$0xff]  ;;  %v32483_v17 = vld [vmem:[#allocation10_spill] sm:$0xff]  ;;  %v32485_v62 = vld [vmem:[#allocation37_spill] sm:$0xff] }
 0xe82   : > { %v18815_v7 = vpop.permute.xlu1 %18814  ;;  %v32484_v5 = vld [vmem:[#allocation31_spill] sm:$0xff] }
 0xe83   : > { %v18910_v52 = vadd.f32 %v18878_v16, %v32462_v60  ;;  %v18881_v48 = vmul.f32 %v32463_v50, %v18815_v7  ;;  %19002 = vrot.lane.b32.xlu1 %v18911_v20, %s26151_s28  ;;  %v32486_v7 = vld [vmem:[#allocation38_spill] sm:$0xff] }
 0xe84   : > { %v18813_v61 = vpop.permute.xlu0 %18812 }
 0xe85   : > { %v18913_v24 = vadd.f32 %v18881_v48, %v32464_v32  ;;  %v18880_v0 = vmul.f32 %v32465_v51, %v18813_v61  ;;  %19000 = vrot.lane.b32.xlu0 %v18910_v52, %s26151_s28  ;;  %v32487_v52 = vld [vmem:[#allocation39_spill] sm:$0xff]  ;;  %v32488_v48 = vld [vmem:[#allocation40_spill] sm:$0xff]  ;;  %v32490_v51 = vld [vmem:[#allocation42_spill] sm:$0xff] }
 0xe86   : > { %v18819_v23 = vpop.permute.xlu1 %18818 }
 0xe87   : > { %v18912_v36 = vadd.f32 %v18880_v0, %v31428_v1  ;;  %v18883_v2 = vmul.f32 %v20980_v42, %v18819_v23  ;;  %19006 = vrot.lane.b32.xlu1 %v18913_v24, %s26151_s28  ;;  %v32491_v23 = vld [vmem:[#allocation43_spill] sm:$0xff] }
 0xe88   : > { %v18817_v21 = vpop.permute.xlu0 %18816 }
 0xe89   : > { %v18915_v8 = vadd.f32 %v18883_v2, %v31439_v22  ;;  %v18882_v49 = vmul.f32 %v20979_v46, %v18817_v21  ;;  %19004 = vrot.lane.b32.xlu0 %v18912_v36, %s26151_s28  ;;  %v32466_v22 = vld [vmem:[#allocation7_spill] sm:$0xff] }
 0xe8b   : > { %v18914_v18 = vadd.f32 %v18882_v49, %v31442_v29  ;;  %19010 = vrot.lane.b32.xlu1 %v18915_v8, %s26151_s28 }
 0xe8d   : > { %19008 = vrot.lane.b32.xlu0 %v18914_v18, %s26151_s28 }
 0xe8f   : > { %19170 = vrot.lane.b32.xlu1 %v20980_v42, %s26150_s27  ;;  %v32489_v42 = vld [vmem:[#allocation41_spill] sm:$0xff] }
 0xe91   : > { %19168 = vrot.lane.b32.xlu0 %v20979_v46, %s26150_s27 }
 0xebf   : > { %v18951_v1 = vpop.permute.xlu1 %18950 }
 0xec0   : > { %19045 = vst.msk [vmem:[%s31616_s14 + $0x8] sm:$0xff] %vm7737_vm3, %v18951_v1  ;;  %v18949_v29 = vpop.permute.xlu0 %18948 }
 0xec1   : > { %19205 = vst.msk [vmem:[%s31616_s14 + $0x8] sm:$0xff] %vm7922_vm8, %v32466_v22 }
 0xec2   : > { %19044 = vst.msk [vmem:[%s31616_s14] sm:$0xff] %vm7737_vm3, %v18949_v29 }
 0xec3   : > { %19204 = vst.msk [vmem:[%s31616_s14] sm:$0xff] %vm7922_vm8, %v32467_v19  ;;  %v18955_v63 = vpop.permute.xlu1 %18954 }
 0xec4   : > { %19047 = vst.msk [vmem:[%s31616_s14 + $0x18] sm:$0xff] %vm7737_vm3, %v18955_v63  ;;  %v18953_v37 = vpop.permute.xlu0 %18952 }
 0xec5   : > { %19207 = vst.msk [vmem:[%s31616_s14 + $0x18] sm:$0xff] %vm7922_vm8, %v32468_v56 }
 0xec6   : > { %19046 = vst.msk [vmem:[%s31616_s14 + $0x10] sm:$0xff] %vm7737_vm3, %v18953_v37 }
 0xec7   : > { %19206 = vst.msk [vmem:[%s31616_s14 + $0x10] sm:$0xff] %vm7922_vm8, %v32469_v54  ;;  %v18959_v58 = vpop.permute.xlu1 %18958 }
 0xec8   : > { %19049 = vst.msk [vmem:[%s31616_s14 + $0x28] sm:$0xff] %vm7737_vm3, %v18959_v58  ;;  %v18957_v9 = vpop.permute.xlu0 %18956 }
 0xec9   : > { %19209 = vst.msk [vmem:[%s31616_s14 + $0x28] sm:$0xff] %vm7922_vm8, %v32470_v55 }
 0xeca   : > { %19048 = vst.msk [vmem:[%s31616_s14 + $0x20] sm:$0xff] %vm7737_vm3, %v18957_v9 }
 0xecb   : > { %19208 = vst.msk [vmem:[%s31616_s14 + $0x20] sm:$0xff] %vm7922_vm8, %v32471_v38  ;;  %v18963_v44 = vpop.permute.xlu1 %18962 }
 0xecc   : > { %19051 = vst.msk [vmem:[%s31616_s14 + $0x38] sm:$0xff] %vm7737_vm3, %v18963_v44 }
 0xecd   : > { %19211 = vst.msk [vmem:[%s31616_s14 + $0x38] sm:$0xff] %vm7922_vm8, %v32472_v31 }
 0xece   : > { %v18961_v30 = vpop.permute.xlu0 %18960 }
 0xecf   : > { %19050 = vst.msk [vmem:[%s31616_s14 + $0x30] sm:$0xff] %vm7737_vm3, %v18961_v30  ;;  %v18967_v41 = vpop.permute.xlu1 %18966 }
 0xed0   : > { %19210 = vst.msk [vmem:[%s31616_s14 + $0x30] sm:$0xff] %vm7922_vm8, %v32473_v4 }
 0xed1   : > { %19053 = vst.msk [vmem:[%s31616_s14 + $0x48] sm:$0xff] %vm7737_vm3, %v18967_v41 }
 0xed2   : > { %19213 = vst.msk [vmem:[%s31616_s14 + $0x48] sm:$0xff] %vm7922_vm8, %v31462_v47  ;;  %v18965_v35 = vpop.permute.xlu0 %18964 }
 0xed3   : > { %19052 = vst.msk [vmem:[%s31616_s14 + $0x40] sm:$0xff] %vm7737_vm3, %v18965_v35  ;;  %v18971_v28 = vpop.permute.xlu1 %18970 }
 0xed4   : > { %19212 = vst.msk [vmem:[%s31616_s14 + $0x40] sm:$0xff] %vm7922_vm8, %v31464_v34  ;;  %v32476_v34 = vld [vmem:[#allocation34_spill] sm:$0xff] }
 0xed5   : > { %19055 = vst.msk [vmem:[%s31616_s14 + $0x58] sm:$0xff] %vm7737_vm3, %v18971_v28 }
 0xed6   : > { %19215 = vst.msk [vmem:[%s31616_s14 + $0x58] sm:$0xff] %vm7922_vm8, %v32474_v25  ;;  %v18969_v3 = vpop.permute.xlu0 %18968 }
 0xed7   : > { %19054 = vst.msk [vmem:[%s31616_s14 + $0x50] sm:$0xff] %vm7737_vm3, %v18969_v3  ;;  %v18975_v47 = vpop.permute.xlu1 %18974 }
 0xed8   : > { %19214 = vst.msk [vmem:[%s31616_s14 + $0x50] sm:$0xff] %vm7922_vm8, %v32475_v10 }
 0xed9   : > { %19057 = vst.msk [vmem:[%s31616_s14 + $0x68] sm:$0xff] %vm7737_vm3, %v18975_v47 }
 0xeda   : > { %19217 = vst.msk [vmem:[%s31616_s14 + $0x68] sm:$0xff] %vm7922_vm8, %v32476_v34  ;;  %v18973_v59 = vpop.permute.xlu0 %18972 }
 0xedb   : > { %19056 = vst.msk [vmem:[%s31616_s14 + $0x60] sm:$0xff] %vm7737_vm3, %v18973_v59 }
 0xedc   : > { %19216 = vst.msk [vmem:[%s31616_s14 + $0x60] sm:$0xff] %vm7922_vm8, %v32477_v26 }
 0xedd   : > { %v18979_v15 = vpop.permute.xlu1 %18978 }
 0xede   : > { %19059 = vst.msk [vmem:[%s31616_s14 + $0x78] sm:$0xff] %vm7737_vm3, %v18979_v15  ;;  %v18977_v27 = vpop.permute.xlu0 %18976 }
 0xedf   : > { %19219 = vst.msk [vmem:[%s31616_s14 + $0x78] sm:$0xff] %vm7922_vm8, %v32478_v39 }
 0xee0   : > { %19058 = vst.msk [vmem:[%s31616_s14 + $0x70] sm:$0xff] %vm7737_vm3, %v18977_v27 }
 0xee1   : > { %19218 = vst.msk [vmem:[%s31616_s14 + $0x70] sm:$0xff] %vm7922_vm8, %v32479_v12  ;;  %v18983_v57 = vpop.permute.xlu1 %18982 }
 0xee2   : > { %19061 = vst.msk [vmem:[%s31616_s14 + $0x88] sm:$0xff] %vm7737_vm3, %v18983_v57  ;;  %v18981_v45 = vpop.permute.xlu0 %18980 }
 0xee3   : > { %19221 = vst.msk [vmem:[%s31616_s14 + $0x88] sm:$0xff] %vm7922_vm8, %v32480_v11 }
 0xee4   : > { %19060 = vst.msk [vmem:[%s31616_s14 + $0x80] sm:$0xff] %vm7737_vm3, %v18981_v45 }
 0xee5   : > { %19220 = vst.msk [vmem:[%s31616_s14 + $0x80] sm:$0xff] %vm7922_vm8, %v32481_v43  ;;  %v18987_v40 = vpop.permute.xlu1 %18986 }
 0xee6   : > { %19063 = vst.msk [vmem:[%s31616_s14 + $0x98] sm:$0xff] %vm7737_vm3, %v18987_v40 }
 0xee7   : > { %19223 = vst.msk [vmem:[%s31616_s14 + $0x98] sm:$0xff] %vm7922_vm8, %v32482_v33  ;;  %v18985_v13 = vpop.permute.xlu0 %18984 }
 0xee8   : > { %19062 = vst.msk [vmem:[%s31616_s14 + $0x90] sm:$0xff] %vm7737_vm3, %v18985_v13 }
 0xee9   : > { %19222 = vst.msk [vmem:[%s31616_s14 + $0x90] sm:$0xff] %vm7922_vm8, %v32483_v17  ;;  %v18991_v53 = vpop.permute.xlu1 %18990 }
 0xeea   : > { %19065 = vst.msk [vmem:[%s31616_s14 + $0xa8] sm:$0xff] %vm7737_vm3, %v18991_v53 }
 0xeeb   : > { %19225 = vst.msk [vmem:[%s31616_s14 + $0xa8] sm:$0xff] %vm7922_vm8, %v32484_v5  ;;  %v18989_v20 = vpop.permute.xlu0 %18988 }
 0xeec   : > { %19064 = vst.msk [vmem:[%s31616_s14 + $0xa0] sm:$0xff] %vm7737_vm3, %v18989_v20 }
 0xeed   : > { %19224 = vst.msk [vmem:[%s31616_s14 + $0xa0] sm:$0xff] %vm7922_vm8, %v32485_v62  ;;  %v18995_v16 = vpop.permute.xlu1 %18994 }
 0xeee   : > { %19067 = vst.msk [vmem:[%s31616_s14 + $0xb8] sm:$0xff] %vm7737_vm3, %v18995_v16 }
 0xeef   : > { %19227 = vst.msk [vmem:[%s31616_s14 + $0xb8] sm:$0xff] %vm7922_vm8, %v32486_v7  ;;  %v18993_v60 = vpop.permute.xlu0 %18992 }
 0xef0   : > { %19066 = vst.msk [vmem:[%s31616_s14 + $0xb0] sm:$0xff] %vm7737_vm3, %v18993_v60 }
 0xef1   : > { %19226 = vst.msk [vmem:[%s31616_s14 + $0xb0] sm:$0xff] %vm7922_vm8, %v32487_v52  ;;  %v18999_v50 = vpop.permute.xlu1 %18998 }
 0xef2   : > { %19069 = vst.msk [vmem:[%s31616_s14 + $0xc8] sm:$0xff] %vm7737_vm3, %v18999_v50 }
 0xef3   : > { %19229 = vst.msk [vmem:[%s31616_s14 + $0xc8] sm:$0xff] %vm7922_vm8, %v32488_v48  ;;  %v18997_v61 = vpop.permute.xlu0 %18996 }
 0xef4   : > { %19068 = vst.msk [vmem:[%s31616_s14 + $0xc0] sm:$0xff] %vm7737_vm3, %v18997_v61 }
 0xef5   : > { %19228 = vst.msk [vmem:[%s31616_s14 + $0xc0] sm:$0xff] %vm7922_vm8, %v32489_v42  ;;  %v19003_v32 = vpop.permute.xlu1 %19002 }
 0xef6   : > { %19071 = vst.msk [vmem:[%s31616_s14 + $0xd8] sm:$0xff] %vm7737_vm3, %v19003_v32 }
 0xef7   : > { %19231 = vst.msk [vmem:[%s31616_s14 + $0xd8] sm:$0xff] %vm7922_vm8, %v31506_v6  ;;  %v19001_v24 = vpop.permute.xlu0 %19000 }
 0xef8   : > { %19070 = vst.msk [vmem:[%s31616_s14 + $0xd0] sm:$0xff] %vm7737_vm3, %v19001_v24 }
 0xef9   : > { %19230 = vst.msk [vmem:[%s31616_s14 + $0xd0] sm:$0xff] %vm7922_vm8, %v32490_v51  ;;  %v19007_v0 = vpop.permute.xlu1 %19006 }
 0xefa   : > { %19073 = vst.msk [vmem:[%s31616_s14 + $0xe8] sm:$0xff] %vm7737_vm3, %v19007_v0 }
 0xefb   : > { %19233 = vst.msk [vmem:[%s31616_s14 + $0xe8] sm:$0xff] %vm7922_vm8, %v32491_v23  ;;  %v19005_v46 = vpop.permute.xlu0 %19004 }
 0xefc   : > { %19072 = vst.msk [vmem:[%s31616_s14 + $0xe0] sm:$0xff] %vm7737_vm3, %v19005_v46 }
 0xefd   : > { %19232 = vst.msk [vmem:[%s31616_s14 + $0xe0] sm:$0xff] %vm7922_vm8, %v31512_v14  ;;  %v19011_v6 = vpop.permute.xlu1 %19010 }
 0xefe   : > { %19075 = vst.msk [vmem:[%s31616_s14 + $0xf8] sm:$0xff] %vm7737_vm3, %v19011_v6 }
 0xeff   : > { %v19009_v36 = vpop.permute.xlu0 %19008 }
 0xf00   : > { %19074 = vst.msk [vmem:[%s31616_s14 + $0xf0] sm:$0xff] %vm7737_vm3, %v19009_v36 }
 0xf01   : > { %v19171_v2 = vpop.permute.xlu1 %19170 }
 0xf02   : > { %19235 = vst.msk [vmem:[%s31616_s14 + $0xf8] sm:$0xff] %vm7922_vm8, %v19171_v2 }
 0xf03   : > { %v19169_v21 = vpop.permute.xlu0 %19168 }
 0xf04   : > { %19234 = vst.msk [vmem:[%s31616_s14 + $0xf0] sm:$0xff] %vm7922_vm8, %v19169_v21 }
 0xf05 PF: > { %s22_s21 = sadd.s32 1, %s26147_s21  }
 0xf06   : > { %p19_p4 = scmp.ge.s32.totalorder %s22_s21, 4  }
 0xf08   :  { %21 = sbr.rel (!%p19_p4) target bundleno = 1 (0x1), region = 112 }

</bundles_post_ra>
